<compile_context>
chip_gen: v5e
topology: v5e:2x2
jax: 0.10.0
libtpu: 0.0.40
codegen_flags: <defaults>
</compile_context>

<pallas_src>
import numpy as np

import jax
import jax.numpy as jnp
from jax import lax
from jax.experimental import pallas as pl
from jax.experimental.pallas import tpu as pltpu

CONSTANT = 1e-05
LOG_GUARD = 2.0 ** (-24)


def _round_up(v, m):
    return (v + m - 1) // m * m


# ----------------------------------------------------------------------------
# Deterministic parameter construction (window, DFT matrices, mel filterbank)
# ----------------------------------------------------------------------------
def _hann_window_padded(win_length, n_fft):
    n = np.arange(win_length, dtype=np.float64)
    hann = 0.5 - 0.5 * np.cos(2.0 * np.pi * n / (win_length - 1))  # periodic=False
    lpad = (n_fft - win_length) // 2
    win = np.zeros(n_fft, dtype=np.float64)
    win[lpad:lpad + win_length] = hann
    return win  # float64, (n_fft,)


def _dft_matrices(n_fft):
    n_freq = n_fft // 2 + 1
    n = np.arange(n_fft, dtype=np.float64)[:, None]
    k = np.arange(n_freq, dtype=np.float64)[None, :]
    ang = 2.0 * np.pi * n * k / n_fft
    cos_mat = np.cos(ang)        # real part basis
    sin_mat = -np.sin(ang)       # imag part basis (exp(-i...))
    return cos_mat, sin_mat      # each (n_fft, n_freq), float64


def _mel_filterbank_slaney(sr, n_fft, n_mels, fmin, fmax):
    # librosa.filters.mel(htk=False, norm='slaney') re-implemented in numpy.
    def hz_to_mel(f):
        f = np.asarray(f, dtype=np.float64)
        f_sp = 200.0 / 3.0
        mels = f / f_sp
        min_log_hz = 1000.0
        min_log_mel = min_log_hz / f_sp
        logstep = np.log(6.4) / 27.0
        return np.where(f >= min_log_hz,
                        min_log_mel + np.log(np.maximum(f, 1e-10) / min_log_hz) / logstep,
                        mels)

    def mel_to_hz(m):
        m = np.asarray(m, dtype=np.float64)
        f_sp = 200.0 / 3.0
        freqs = f_sp * m
        min_log_hz = 1000.0
        min_log_mel = min_log_hz / f_sp
        logstep = np.log(6.4) / 27.0
        return np.where(m >= min_log_mel,
                        min_log_hz * np.exp(logstep * (m - min_log_mel)),
                        freqs)

    n_freq = n_fft // 2 + 1
    fftfreqs = np.linspace(0.0, sr / 2.0, n_freq)
    mel_pts = mel_to_hz(np.linspace(hz_to_mel(fmin), hz_to_mel(fmax), n_mels + 2))
    fdiff = np.diff(mel_pts)
    ramps = mel_pts[:, None] - fftfreqs[None, :]
    lower = -ramps[:-2] / fdiff[:-1, None]
    upper = ramps[2:] / fdiff[1:, None]
    weights = np.maximum(0.0, np.minimum(lower, upper))
    enorm = 2.0 / (mel_pts[2:n_mels + 2] - mel_pts[:n_mels])  # slaney norm
    weights = weights * enorm[:, None]
    return weights  # (n_mels, n_freq), float64


# ----------------------------------------------------------------------------
# Pallas kernel
#   grid = (B, T_tiles); per tile: [win*DFT] matmul -> |.|^2 -> mel matmul ->
#   log -> store into the resident (T_k, 128) output block.  At the last time
#   tile: masked per-feature mean/std over valid frames, normalize, mask.
# ----------------------------------------------------------------------------
def _fbank_kernel(seq_ref, frames_ref, w_ref, fb_ref, o_ref):
    b = pl.program_id(0)
    t = pl.program_id(1)
    n_t = pl.num_programs(1)

    tt = frames_ref.shape[1]      # time tile (frames per grid step)
    nf_pad = fb_ref.shape[0]      # padded number of frequency bins (3*128)

    # One MXU matmul: windowed real & imag DFT at once (window is folded into
    # w_ref = [win*cos | win*sin]); bf16 inputs, f32 accumulation.
    g = jnp.dot(frames_ref[0], w_ref[...], preferred_element_type=jnp.float32)
    re = g[:, :nf_pad]
    im = g[:, nf_pad:]
    # mag_power=2, guard=0  =>  power spectrum directly (no sqrt, no pow).
    pw = re * re + im * im                                   # (tt, nf_pad)

    # mel projection (small vs. the DFT matmul; kept f32 for precision).
    mel = jnp.dot(pw, fb_ref[...], preferred_element_type=jnp.float32)
    x = jnp.log(mel + LOG_GUARD)                             # (tt, 128)

    start = pl.multiple_of(t * tt, tt)
    o_ref[0, pl.ds(start, tt), :] = x.astype(o_ref.dtype)

    # Finalize: per-feature normalization over valid frames + length mask.
    @pl.when(t == n_t - 1)
    def _finalize():
        sl = seq_ref[b]
        xf = o_ref[0]                                        # (T_k, 128), VMEM-resident
        t_k = xf.shape[0]
        t_idx = lax.broadcasted_iota(jnp.int32, (t_k, 1), 0)
        valid = t_idx < sl                                   # single (T_k, 1) mask, reused

        # Guard seq_len in {0, 1}: original module raises; here we clamp the
        # denominators so the output stays finite (frames are masked to 0 anyway).
        cnt = jnp.maximum(sl, 1).astype(jnp.float32)
        inv_cnt = 1.0 / cnt                                  # scalar
        inv_dof = 1.0 / jnp.maximum(cnt - 1.0, 1.0)          # scalar

        mean = jnp.sum(jnp.where(valid, xf, 0.0), axis=0, keepdims=True) * inv_cnt
        diff = jnp.where(valid, xf - mean, 0.0)
        var = jnp.sum(diff * diff, axis=0, keepdims=True) * inv_dof
        inv_std = pl.reciprocal(jnp.sqrt(var) + CONSTANT, approx=False)  # (1, 128) row
        y = (xf - mean) * inv_std                            # VPU multiplies, no per-elem div

        o_ref[0] = jnp.where(valid, y, 0.0).astype(o_ref.dtype)


# ----------------------------------------------------------------------------
# Wrapper (glue in plain JAX; hot path in the kernel)
# ----------------------------------------------------------------------------
def filterbank_features(x, lengths,
                        sample_rate=16000, win_length=320, hop_length=160,
                        n_fft=512, nfilt=64, preemph=0.97,
                        lowfreq=0.0, highfreq=None, pad_to=16,
                        t_tile=256, matmul_dtype=jnp.bfloat16):
    B, L = x.shape
    n_freq = n_fft // 2 + 1
    highfreq = highfreq or sample_rate / 2.0
    assert t_tile % 8 == 0

    nf_pad = _round_up(n_freq, 128)          # 257 -> 384 (lane-aligned)
    nmel_pad = _round_up(nfilt, 128)         # 64  -> 128 (lane-dense output)

    # get_seq_len (center=True path: pad_amount = 2 * (n_fft // 2))
    seq_len = (lengths + 2 * (n_fft // 2) - n_fft) // hop_length + 1
    seq_len = jnp.where(lengths == 0, jnp.zeros_like(seq_len), seq_len).astype(jnp.int32)

    # preemphasis
    x = jnp.concatenate([x[:, :1], x[:, 1:] - preemph * x[:, :-1]], axis=1)

    # torch.stft(center=True): reflect pad by n_fft // 2 on each side
    pad = n_fft // 2
    xp = jnp.pad(x, ((0, 0), (pad, pad)), mode="reflect")

    # framing (gather glue)
    # TODO(synk): on v5e, building frames in-kernel from the waveform (manual
    # pl.ds copies) would cut the ~3.2x HBM read amplification of this gather.
    T = 1 + (xp.shape[1] - n_fft) // hop_length
    starts = np.arange(T) * hop_length
    idx = starts[:, None] + np.arange(n_fft)[None, :]
    frames = xp[:, idx]                                      # (B, T, n_fft) f32

    # module output time length (pad_to), and kernel time length (time tile).
    T_out = _round_up(T, pad_to) if pad_to > 0 else T
    T_k = _round_up(T_out, t_tile)
    frames = jnp.pad(frames, ((0, 0), (0, T_k - T), (0, 0)))
    frames = frames.astype(matmul_dtype)

    # deterministic parameters: window folded into concatenated [cos | sin] DFT
    win = _hann_window_padded(win_length, n_fft)[:, None]    # (n_fft, 1)
    cos_m, sin_m = _dft_matrices(n_fft)                      # (n_fft, n_freq)
    W = np.zeros((n_fft, 2 * nf_pad), dtype=np.float64)
    W[:, :n_freq] = win * cos_m
    W[:, nf_pad:nf_pad + n_freq] = win * sin_m
    W = jnp.asarray(W.astype(np.float32), dtype=matmul_dtype)  # (n_fft, 2*nf_pad)

    fb = _mel_filterbank_slaney(sample_rate, n_fft, nfilt, lowfreq, highfreq)
    fb_pad = np.zeros((nf_pad, nmel_pad), dtype=np.float32)
    fb_pad[:n_freq, :nfilt] = fb.T.astype(np.float32)
    fb_pad = jnp.asarray(fb_pad)                             # (nf_pad, nmel_pad) f32

    grid = (B, T_k // t_tile)
    grid_spec = pltpu.PrefetchScalarGridSpec(
        num_scalar_prefetch=1,
        grid=grid,
        in_specs=[
            pl.BlockSpec((1, t_tile, n_fft), lambda b, t, seq: (b, t, 0)),
            # NOTE: constant-index operands (W, fb) could be single-buffered
            # (pipeline_mode=pl.Buffered(1)) for ~1 MiB extra VMEM headroom.
            pl.BlockSpec((n_fft, 2 * nf_pad), lambda b, t, seq: (0, 0)),
            pl.BlockSpec((nf_pad, nmel_pad), lambda b, t, seq: (0, 0)),
        ],
        # Lane-dense output block, resident across the time-tile axis.
        out_specs=pl.BlockSpec((1, T_k, nmel_pad), lambda b, t, seq: (b, 0, 0)),
    )

    out = pl.pallas_call(
        _fbank_kernel,
        out_shape=jax.ShapeDtypeStruct((B, T_k, nmel_pad), jnp.float32),
        grid_spec=grid_spec,
        compiler_params=pltpu.CompilerParams(
            dimension_semantics=("parallel", "arbitrary"),
            vmem_limit_bytes=48 * 1024 * 1024,
        ),
    )(seq_len, frames, W, fb_pad)

    # slice away lane/time padding, back to PyTorch convention (B, n_mels, T)
    feats = jnp.transpose(out[:, :T_out, :nfilt], (0, 2, 1))
    return feats, seq_len


if __name__ == "__main__":
    key = jax.random.PRNGKey(0)
    B, L = 2, 3200                      # 0.2 s of 16 kHz audio per example
    x = 0.1 * jax.random.normal(key, (B, L), dtype=jnp.float32)
    lengths = jnp.array([3200, 2560], dtype=jnp.int32)

    fn = jax.jit(lambda x, l: filterbank_features(x, l))
    feats, out_len = fn(x, lengths)
    feats = jax.block_until_ready(feats)
    out_len = jax.block_until_ready(out_len)

    assert feats.shape == (B, 64, 32), feats.shape   # T=21 padded to 32 (pad_to=16)
    assert feats.dtype == jnp.float32
    assert bool(jnp.all(jnp.isfinite(feats)))
    assert bool(jnp.all(out_len == jnp.array([21, 17], dtype=jnp.int32)))
    print("KERNEL_OK")
</pallas_src>

<mosaic_0001>
module attributes {stable_mosaic.version = 11 : i64} {
  func.func @_fbank_kernel(%arg0: i32, %arg1: i32, %arg2: memref<2xi32, #tpu.memory_space<smem>>, %arg3: memref<1x256x512xbf16, #tpu.memory_space<vmem>>, %arg4: memref<512x768xbf16, #tpu.memory_space<vmem>>, %arg5: memref<384x128xf32, #tpu.memory_space<vmem>>, %arg6: memref<1x256x128xf32, #tpu.memory_space<vmem>>) attributes {dimension_semantics = [#tpu.dimension_semantics<parallel>, #tpu.dimension_semantics<arbitrary>], iteration_bounds = array<i64: 2, 1>, scalar_prefetch = 1 : i64, scratch_operands = 0 : i64, tpu.core_type = #tpu.core_type<tc>, window_params = [{transform_indices = @transform_0, window_bounds = array<i64: 1, 256, 512>}, {pipeline_mode = #tpu.pipeline_mode<synchronous>, transform_indices = @transform_1, window_bounds = array<i64: 512, 768>}, {pipeline_mode = #tpu.pipeline_mode<synchronous>, transform_indices = @transform_2, window_bounds = array<i64: 384, 128>}, {transform_indices = @transform_3, window_bounds = array<i64: 1, 256, 128>}]} {
    %c0 = arith.constant 0 : index
    %c0_0 = arith.constant 0 : index
    %c0_1 = arith.constant 0 : index
    %0 = vector.load %arg3[%c0, %c0_0, %c0_1] : memref<1x256x512xbf16, #tpu.memory_space<vmem>>, vector<1x256x512xbf16>
    %1 = vector.shape_cast %0 : vector<1x256x512xbf16> to vector<256x512xbf16>
    %c0_2 = arith.constant 0 : index
    %c0_3 = arith.constant 0 : index
    %2 = vector.load %arg4[%c0_2, %c0_3] : memref<512x768xbf16, #tpu.memory_space<vmem>>, vector<512x768xbf16>
    %cst = arith.constant dense<0.000000e+00> : vector<256x768xf32>
    %3 = tpu.matmul %1, %2, %cst {dimension_numbers = #tpu.dot_dimension_numbers<[1], [0], [0], [1], [0, 0, 1, 1], [], []>} : vector<256x512xbf16>, vector<512x768xbf16>, vector<256x768xf32> -> vector<256x768xf32>
    %4 = vector.extract_strided_slice %3 {offsets = [0, 0], sizes = [256, 384], strides = [1, 1]} : vector<256x768xf32> to vector<256x384xf32>
    %5 = vector.extract_strided_slice %3 {offsets = [0, 384], sizes = [256, 384], strides = [1, 1]} : vector<256x768xf32> to vector<256x384xf32>
    %6 = arith.mulf %4, %4 : vector<256x384xf32>
    %7 = arith.mulf %5, %5 : vector<256x384xf32>
    %8 = arith.addf %6, %7 : vector<256x384xf32>
    %c0_4 = arith.constant 0 : index
    %c0_5 = arith.constant 0 : index
    %9 = vector.load %arg5[%c0_4, %c0_5] : memref<384x128xf32, #tpu.memory_space<vmem>>, vector<384x128xf32>
    %cst_6 = arith.constant dense<0.000000e+00> : vector<256x128xf32>
    %10 = tpu.matmul %8, %9, %cst_6 {dimension_numbers = #tpu.dot_dimension_numbers<[1], [0], [0], [1], [0, 0, 1, 1], [], []>} : vector<256x384xf32>, vector<384x128xf32>, vector<256x128xf32> -> vector<256x128xf32>
    %cst_7 = arith.constant 5.96046448E-8 : f32
    %11 = vector.broadcast %cst_7 : f32 to vector<256x128xf32>
    %12 = arith.addf %10, %11 : vector<256x128xf32>
    %13 = math.log %12 : vector<256x128xf32>
    %c256_i32 = arith.constant 256 : i32
    %14 = arith.muli %arg1, %c256_i32 : i32
    %15 = tpu.assume_multiple %14, 256 : i32
    %c0_8 = arith.constant 0 : index
    %16 = arith.index_cast %15 : i32 to index
    %c0_9 = arith.constant 0 : index
    %17 = vector.load %arg6[%c0_8, %16, %c0_9] : memref<1x256x128xf32, #tpu.memory_space<vmem>>, vector<1x256x128xf32>
    %18 = vector.shape_cast %17 : vector<1x256x128xf32> to vector<256x128xf32>
    %19 = vector.shape_cast %13 : vector<256x128xf32> to vector<1x256x128xf32>
    tpu.vector_store %arg6[%c0_8, %16, %c0_9], %19 {strides = array<i32>} : memref<1x256x128xf32, #tpu.memory_space<vmem>>, vector<1x256x128xf32>,
    %c0_i32 = arith.constant 0 : i32
    %20 = arith.cmpi eq, %arg1, %c0_i32 : i32
    %21 = arith.extui %20 : i1 to i32
    %c0_i32_10 = arith.constant 0 : i32
    %22 = arith.cmpi ne, %21, %c0_i32_10 : i32
    scf.if %22 {
      %23 = arith.index_cast %arg0 : i32 to index
      %24 = memref.load %arg2[%23] : memref<2xi32, #tpu.memory_space<smem>>
      %c0_11 = arith.constant 0 : index
      %c0_12 = arith.constant 0 : index
      %c0_13 = arith.constant 0 : index
      %25 = vector.load %arg6[%c0_11, %c0_12, %c0_13] : memref<1x256x128xf32, #tpu.memory_space<vmem>>, vector<1x256x128xf32>
      %26 = vector.shape_cast %25 : vector<1x256x128xf32> to vector<256x128xf32>
      %27 = tpu.iota {dimensions = array<i32: 0>} : vector<256x1xi32>
      %28 = vector.broadcast %24 : i32 to vector<256x1xi32>
      %29 = arith.cmpi slt, %27, %28 : vector<256x1xi32>
      %c1_i32 = arith.constant 1 : i32
      %30 = arith.maxsi %24, %c1_i32 : i32
      %31 = arith.sitofp %30 : i32 to f32
      %cst_14 = arith.constant 1.000000e+00 : f32
      %32 = arith.divf %cst_14, %31 : f32
      %cst_15 = arith.constant 1.000000e+00 : f32
      %33 = arith.subf %31, %cst_15 : f32
      %cst_16 = arith.constant 1.000000e+00 : f32
      %34 = arith.maximumf %33, %cst_16 : f32
      %cst_17 = arith.constant 1.000000e+00 : f32
      %35 = arith.divf %cst_17, %34 : f32
      %cst_18 = arith.constant 0.000000e+00 : f32
      %36 = vector.shape_cast %29 : vector<256x1xi1> to vector<256x1xi1>
      %37 = vector.broadcast %36 : vector<256x1xi1> to vector<256x128xi1>
      %38 = vector.broadcast %cst_18 : f32 to vector<256x128xf32>
      %39 = arith.select %37, %26, %38 : vector<256x128xi1>, vector<256x128xf32>
      %cst_19 = arith.constant dense<0.000000e+00> : vector<128xf32>
      %40 = vector.multi_reduction <add>, %39, %cst_19 [0] : vector<256x128xf32> to vector<128xf32>
      %41 = vector.shape_cast %40 : vector<128xf32> to vector<1x128xf32>
      %42 = vector.broadcast %32 : f32 to vector<1x128xf32>
      %43 = arith.mulf %41, %42 : vector<1x128xf32>
      %44 = vector.broadcast %43 : vector<1x128xf32> to vector<256x128xf32>
      %45 = arith.subf %26, %44 : vector<256x128xf32>
      %cst_20 = arith.constant 0.000000e+00 : f32
      %46 = vector.shape_cast %29 : vector<256x1xi1> to vector<256x1xi1>
      %47 = vector.broadcast %46 : vector<256x1xi1> to vector<256x128xi1>
      %48 = vector.broadcast %cst_20 : f32 to vector<256x128xf32>
      %49 = arith.select %47, %45, %48 : vector<256x128xi1>, vector<256x128xf32>
      %50 = arith.mulf %49, %49 : vector<256x128xf32>
      %cst_21 = arith.constant dense<0.000000e+00> : vector<128xf32>
      %51 = vector.multi_reduction <add>, %50, %cst_21 [0] : vector<256x128xf32> to vector<128xf32>
      %52 = vector.shape_cast %51 : vector<128xf32> to vector<1x128xf32>
      %53 = vector.broadcast %35 : f32 to vector<1x128xf32>
      %54 = arith.mulf %52, %53 : vector<1x128xf32>
      %55 = math.sqrt %54 : vector<1x128xf32>
      %cst_22 = arith.constant 9.99999974E-6 : f32
      %56 = vector.broadcast %cst_22 : f32 to vector<1x128xf32>
      %57 = arith.addf %55, %56 : vector<1x128xf32>
      %58 = tpu.reciprocal %57 : vector<1x128xf32> -> vector<1x128xf32>
      %59 = vector.broadcast %43 : vector<1x128xf32> to vector<256x128xf32>
      %60 = arith.subf %26, %59 : vector<256x128xf32>
      %61 = vector.broadcast %58 : vector<1x128xf32> to vector<256x128xf32>
      %62 = arith.mulf %60, %61 : vector<256x128xf32>
      %cst_23 = arith.constant 0.000000e+00 : f32
      %63 = vector.shape_cast %29 : vector<256x1xi1> to vector<256x1xi1>
      %64 = vector.broadcast %63 : vector<256x1xi1> to vector<256x128xi1>
      %65 = vector.broadcast %cst_23 : f32 to vector<256x128xf32>
      %66 = arith.select %64, %62, %65 : vector<256x128xi1>, vector<256x128xf32>
      %c0_24 = arith.constant 0 : index
      %c0_25 = arith.constant 0 : index
      %c0_26 = arith.constant 0 : index
      %67 = vector.load %arg6[%c0_24, %c0_25, %c0_26] : memref<1x256x128xf32, #tpu.memory_space<vmem>>, vector<1x256x128xf32>
      %68 = vector.shape_cast %67 : vector<1x256x128xf32> to vector<256x128xf32>
      %69 = vector.shape_cast %66 : vector<256x128xf32> to vector<1x256x128xf32>
      tpu.vector_store %arg6[%c0_24, %c0_25, %c0_26], %69 {strides = array<i32>} : memref<1x256x128xf32, #tpu.memory_space<vmem>>, vector<1x256x128xf32>,
    } else {
    }
    return
  }
  func.func @transform_0(%arg0: i32, %arg1: i32, %arg2: memref<2xi32, #tpu.memory_space<smem>>) -> (i32, i32, i32) {
    %c0_i32 = arith.constant 0 : i32
    %c0_i32_0 = arith.constant 0 : i32
    return %arg0, %arg1, %c0_i32 : i32, i32, i32
  }
  func.func @transform_1(%arg0: i32, %arg1: i32, %arg2: memref<2xi32, #tpu.memory_space<smem>>) -> (i32, i32) {
    %c0_i32 = arith.constant 0 : i32
    %c0_i32_0 = arith.constant 0 : i32
    %c0_i32_1 = arith.constant 0 : i32
    return %c0_i32, %c0_i32_0 : i32, i32
  }
  func.func @transform_2(%arg0: i32, %arg1: i32, %arg2: memref<2xi32, #tpu.memory_space<smem>>) -> (i32, i32) {
    %c0_i32 = arith.constant 0 : i32
    %c0_i32_0 = arith.constant 0 : i32
    %c0_i32_1 = arith.constant 0 : i32
    return %c0_i32, %c0_i32_0 : i32, i32
  }
  func.func @transform_3(%arg0: i32, %arg1: i32, %arg2: memref<2xi32, #tpu.memory_space<smem>>) -> (i32, i32, i32) {
    %c0_i32 = arith.constant 0 : i32
    %c0_i32_0 = arith.constant 0 : i32
    %c0_i32_1 = arith.constant 0 : i32
    return %arg0, %c0_i32, %c0_i32_0 : i32, i32, i32
  }
}

</mosaic_0001>

<bundles_post_ra>
// kernel: _lambda_.1
= control target key start
LH: loop header
LB: loop body
LE: loop exit
PB: predicated region body
PF: predicated region fallthrough
CT: control target
= control target key end

     0   :  { %s6721_s18 = smov [#allocation3]   ;;  %s11609_s0 = inlined_call_operand.vmem [shape: s32[2], index: 0, kind: input, shape index: {}]   ;;  %s11610_s1 = inlined_call_operand.vmem [shape: bf16[2,256,512], index: 1, kind: input, shape index: {}]   ;;  %s11611_s2 = inlined_call_operand.vmem [shape: bf16[512,768], index: 2, kind: input, shape index: {}]   ;;  %s11612_s3 = inlined_call_operand.vmem [shape: f32[384,128], index: 3, kind: input, shape index: {}]   ;;  %s11613_s4 = inlined_call_operand.vmem [shape: f32[2,256,128], index: 4, kind: output, shape index: {}]  }
   0x1   :  { %s10_s17 = sshll.u32 %s11609_s0, 4  ;;  %s11_s17 = int_to_ptr.vmem [resolvable:$true] %s10_s17 }
   0x2   :  { %13 = dma.vmem_to_smem %s11_s17, 16, %s6721_s18, [#allocation2] }
   0x3   :  { %6707 = dma.done.wait [#allocation2], 16 }
   0x4   :  { %6708 = vsyncadd [#allocation2], 4294967280 }
   0x5   :  { %16 = sfence }
   0x6   :  { %s6751_s19 = smov 0   ;;  %s6753_s20 = smov 0  }
   0x7   :  { %s6755_s21 = smov 0  }
   0x8 LB: > { %s34_s0 = sadd.s32 1, %s6715_s20  ;;  %p5267_p0 = scmp.ge.s32.totalorder %s6719_s21, 1  ;;  %s6719_s21 = sphi %s6755_s21, %s22_s21   ;;  %s6715_s20 = sphi %s6753_s20, %s12536_s20   ;;  %s6711_s19 = sphi %s6751_s19, %s12535_s19  }
   0x9   : > { %p36_p1 = scmp.ge.s32.totalorder %s34_s0, 2  ;;  %p166_p2 = scmp.lt.s32.totalorder %s6719_s21, 3 }
   0xb   : > { %s12538_s0 = smov (%p36_p1, %s34_s0), 0  ;;  %p167_p3 = pnand %p5267_p0, %p166_p2 }
   0xd   : > { %170 = sbr.rel (%p167_p3) target bundleno = 2226 (0x8b2), region = 32 }
  0x12   : > { %v5698_v0 = vld [vmem:[%s11611_s2 + $0x150] sm:$0xf]  ;;  %v6410_v1 = vld [vmem:[%s11611_s2 + $0x164] sm:$0xf0]  ;;  %v5674_v5 = vld [vmem:[%s11611_s2 + $0x120] sm:$0xf] }
  0x13   : > { %v5890_v2 = vld [vmem:[%s11611_s2 + $0x2d0] sm:$0xf]  ;;  %v5699_v3 = vor.u32 %v6410_v1, %v5698_v0  ;;  %v6458_v4 = vld [vmem:[%s11611_s2 + $0x2e4] sm:$0xf0]  ;;  %v6404_v6 = vld [vmem:[%s11611_s2 + $0x134] sm:$0xf0] }
  0x14   : > { %v6789_v7 = vor.u32 %v6458_v4, %v5890_v2  ;;  %v5866_v8 = vld [vmem:[%s11611_s2 + $0x2a0] sm:$0xf]  ;;  %v6452_v9 = vld [vmem:[%s11611_s2 + $0x2b4] sm:$0xf0]  ;;  %v5675_v10 = vor.u32 %v6404_v6, %v5674_v5  ;;  %v5650_v12 = vld [vmem:[%s11611_s2 + $0xf0] sm:$0xf] }
  0x15   : > { %1747 = vmatpush.bf16.msra.mxu0 %v5699_v3  ;;  %6557 = vmatpush.bf16.msra.mxu3 %v5699_v3  ;;  %v6798_v11 = vor.u32 %v6452_v9, %v5866_v8  ;;  %v6398_v13 = vld [vmem:[%s11611_s2 + $0x104] sm:$0xf0]  ;;  %v5842_v14 = vld [vmem:[%s11611_s2 + $0x270] sm:$0xf]  ;;  %v5626_v18 = vld [vmem:[%s11611_s2 + $0xc0] sm:$0xf] }
  0x16   : > { %1836 = vmatpush.bf16.msra.mxu1 %v6789_v7  ;;  %v6446_v15 = vld [vmem:[%s11611_s2 + $0x284] sm:$0xf0]  ;;  %v5651_v16 = vor.u32 %v6398_v13, %v5650_v12  ;;  %v6392_v19 = vld [vmem:[%s11611_s2 + $0xd4] sm:$0xf0]  ;;  %v5818_v20 = vld [vmem:[%s11611_s2 + $0x240] sm:$0xf] }
  0x17   : > { %v6813_v17 = vor.u32 %v6446_v15, %v5842_v14  ;;  %v6440_v21 = vld [vmem:[%s11611_s2 + $0x254] sm:$0xf0]  ;;  %v5627_v22 = vor.u32 %v6392_v19, %v5626_v18  ;;  %v5602_v24 = vld [vmem:[%s11611_s2 + $0x90] sm:$0xf]  ;;  %v6386_v25 = vld [vmem:[%s11611_s2 + $0xa4] sm:$0xf0] }
  0x18   : > { %v6828_v23 = vor.u32 %v6440_v21, %v5818_v20  ;;  %p196_p4 = scmp.lt.s32.totalorder %s6711_s19, 1  ;;  %v5794_v26 = vld [vmem:[%s11611_s2 + $0x210] sm:$0xf]  ;;  %v6434_v27 = vld [vmem:[%s11611_s2 + $0x224] sm:$0xf0]  ;;  %v5603_v28 = vor.u32 %v6386_v25, %v5602_v24  ;;  %s10676_s22 = sld [smem:[#allocation3 + %s6711_s19]] }
  0x19   : > { %1748 = vmatpush.bf16.msra.mxu0 %v5675_v10  ;;  %6558 = vmatpush.bf16.msra.mxu3 %v5675_v10  ;;  %v5795_v29 = vor.u32 %v6434_v27, %v5794_v26  ;;  %v5578_v30 = vld [vmem:[%s11611_s2 + $0x60] sm:$0xf]  ;;  %v6380_v31 = vld [vmem:[%s11611_s2 + $0x74] sm:$0xf0]  ;;  %v5554_v36 = vld [vmem:[%s11611_s2 + $0x30] sm:$0xf] }
  0x1a   : > { %1837 = vmatpush.bf16.msra.mxu1 %v6798_v11  ;;  %s6851_s17 = scalar_select %p196_p4, %s6711_s19, 1  ;;  %v5770_v32 = vld [vmem:[%s11611_s2 + $0x1e0] sm:$0xf]  ;;  %v6428_v33 = vld [vmem:[%s11611_s2 + $0x1f4] sm:$0xf0]  ;;  %v5579_v34 = vor.u32 %v6380_v31, %v5578_v30 }
  0x1b   : > { %v5771_v35 = vor.u32 %v6428_v33, %v5770_v32  ;;  %v6374_v37 = vld [vmem:[%s11611_s2 + $0x44] sm:$0xf0]  ;;  %v5746_v38 = vld [vmem:[%s11611_s2 + $0x1b0] sm:$0xf]  ;;  %v5530_v42 = vld [vmem:[%s11611_s2] sm:$0xf] }
  0x1c   : > { %s6299_s29 = sshll.u32 %s6851_s17, 9  ;;  %v6422_v39 = vld [vmem:[%s11611_s2 + $0x1c4] sm:$0xf0]  ;;  %v5555_v40 = vor.u32 %v6374_v37, %v5554_v36  ;;  %v6368_v43 = vld [vmem:[%s11611_s2 + $0x14] sm:$0xf0]  ;;  %s6722_s25 = smov 1.0  }
  0x1d   : > { %1749 = vmatpush.bf16.msra.mxu0 %v5651_v16  ;;  %6559 = vmatpush.bf16.msra.mxu3 %v5651_v16  ;;  %s6875_s10 = scalar_lea.vmem %s11610_s1, %s6299_s29  ;;  %v5747_v41 = vor.u32 %v6422_v39, %v5746_v38  ;;  %v5722_v44 = vld [vmem:[%s11611_s2 + $0x180] sm:$0xf]  ;;  %v6416_v45 = vld [vmem:[%s11611_s2 + $0x194] sm:$0xf0]  ;;  %v5531_v47 = vor.u32 %v6368_v43, %v5530_v42  ;;  %v6506_v12 = vld [vmem:[%s11611_s2 + $0x464] sm:$0xf0] }
  0x1e   : > { %1838 = vmatpush.bf16.msra.mxu1 %v6813_v17  ;;  %v5274_v46 = vld [vmem:[%s6875_s10] sm:$0xf]  ;;  %v6303_v48 = vld [vmem:[%s6875_s10 + $0xc] sm:$0xf0]  ;;  %v5723_v51 = vor.u32 %v6416_v45, %v5722_v44  ;;  %v6301_v52 = vld [vmem:[%s6875_s10 + $0x4] sm:$0xf] }
  0x1f   : > { %v5466_v49 = vld [vmem:[%s6875_s10 + $0x180] sm:$0xf]  ;;  %v6351_v50 = vld [vmem:[%s6875_s10 + $0x18c] sm:$0xf0]  ;;  %v5276_v53 = vld [vmem:[%s6875_s10 + $0x10] sm:$0xf0]  ;;  %v6895_v54 = vor.u32 %v6303_v48, %v5274_v46 }
  0x20   : > { %v6897_v55 = vor.u32 %v6351_v50, %v5466_v49  ;;  %v6899_v56 = vor.u32 %v6301_v52, %v5276_v53  ;;  %v5290_v57 = vld [vmem:[%s6875_s10 + $0x20] sm:$0xf]  ;;  %v6307_v58 = vld [vmem:[%s6875_s10 + $0x2c] sm:$0xf0]  ;;  %v6305_v61 = vld [vmem:[%s6875_s10 + $0x24] sm:$0xf] }
  0x21   : > { %1750 = vmatpush.bf16.msra.mxu0 %v5627_v22  ;;  %6560 = vmatpush.bf16.msra.mxu3 %v5627_v22  ;;  %11801 = vst [vmem:[#allocation5_spill] sm:$0xff] %v6895_v54  ;;  %v5482_v59 = vld [vmem:[%s6875_s10 + $0x1a0] sm:$0xf]  ;;  %v6355_v60 = vld [vmem:[%s6875_s10 + $0x1ac] sm:$0xf0]  ;;  %v6914_v63 = vor.u32 %v6307_v58, %v5290_v57  ;;  %p4759_p5 = scmp.gt.s32.totalorder %s10676_s22, 1 }
  0x22   : > { %1839 = vmatpush.bf16.msra.mxu1 %v6828_v23  ;;  %11802 = vst [vmem:[#allocation6_spill] sm:$0xff] %v6897_v55  ;;  %v5292_v62 = vld [vmem:[%s6875_s10 + $0x30] sm:$0xf0]  ;;  %v6916_v0 = vor.u32 %v6355_v60, %v5482_v59  ;;  %v5306_v2 = vld [vmem:[%s6875_s10 + $0x40] sm:$0xf]  ;;  %s6300_s29 = sshll.u32 %s6851_s17, 8 }
  0x23   : > { %11803 = vst [vmem:[#allocation7_spill] sm:$0xff] %v6899_v56  ;;  %v6918_v1 = vor.u32 %v6305_v61, %v5292_v62  ;;  %v6311_v3 = vld [vmem:[%s6875_s10 + $0x4c] sm:$0xf0]  ;;  %v5498_v4 = vld [vmem:[%s6875_s10 + $0x1c0] sm:$0xf]  ;;  %s10687_s23 = scalar_select %p4759_p5, %s10676_s22, 1 }
  0x24   : > { %11804 = vst [vmem:[#allocation8_spill] sm:$0xff] %v6914_v63  ;;  %v6359_v5 = vld [vmem:[%s6875_s10 + $0x1cc] sm:$0xf0]  ;;  %v6309_v6 = vld [vmem:[%s6875_s10 + $0x44] sm:$0xf]  ;;  %v6929_v8 = vor.u32 %v6311_v3, %v5306_v2  ;;  %s11414_s5 = scalar_lea.vmem %s11613_s4, %s6300_s29 }
  0x25   : > { %1751 = vmatpush.bf16.msra.mxu0 %v5603_v28  ;;  %6561 = vmatpush.bf16.msra.mxu3 %v5603_v28  ;;  %11805 = vst [vmem:[#allocation9_spill] sm:$0xff] %v6916_v0  ;;  %v6931_v9 = vor.u32 %v6359_v5, %v5498_v4  ;;  %v6058_v13 = vld [vmem:[%s11611_s2 + $0x420] sm:$0xf]  ;;  %v6500_v15 = vld [vmem:[%s11611_s2 + $0x434] sm:$0xf0]  ;;  %s4761_s19 = scvt.s32.f32 %s10687_s23 }
  0x26   : > { %1840 = vmatpush.bf16.msra.mxu1 %v5795_v29  ;;  %11806 = vst [vmem:[#allocation10_spill] sm:$0xff] %v6918_v1  ;;  %v6059_v16 = vor.u32 %v6500_v15, %v6058_v13  ;;  %v6315_v18 = vld [vmem:[%s6875_s10 + $0x6c] sm:$0xf0]  ;;  %v5514_v19 = vld [vmem:[%s6875_s10 + $0x1e0] sm:$0xf] }
  0x27   : > { %11807 = vst [vmem:[#allocation11_spill] sm:$0xff] %v6929_v8  ;;  %v6363_v20 = vld [vmem:[%s6875_s10 + $0x1ec] sm:$0xf0]  ;;  %v6313_v21 = vld [vmem:[%s6875_s10 + $0x64] sm:$0xf]  ;;  %s6296_s24 = sadd.f32 -1.0, %s4761_s19 }
  0x28   : > { %11808 = vst [vmem:[#allocation12_spill] sm:$0xff] %v6931_v9  ;;  %v5324_v22 = vld [vmem:[%s6875_s10 + $0x70] sm:$0xf0]  ;;  %v6958_v24 = vor.u32 %v6363_v20, %v5514_v19  ;;  %v6034_v26 = vld [vmem:[%s11611_s2 + $0x3f0] sm:$0xf] }
  0x29   : > { %1752 = vmatpush.bf16.msra.mxu0 %v5579_v34  ;;  %6562 = vmatpush.bf16.msra.mxu3 %v5579_v34  ;;  %v6960_v25 = vor.u32 %v6313_v21, %v5324_v22  ;;  %v6494_v27 = vld [vmem:[%s11611_s2 + $0x404] sm:$0xf0]  ;;  %v6010_v28 = vld [vmem:[%s11611_s2 + $0x3c0] sm:$0xf]  ;;  %v6488_v30 = vld [vmem:[%s11611_s2 + $0x3d4] sm:$0xf0]  ;;  %s4779_s26 = smax.f32 %s6722_s25, %s6296_s24 }
  0x2a   : > { %1841 = vmatpush.bf16.msra.mxu1 %v5771_v35  ;;  %11811 = vst [vmem:[#allocation15_spill] sm:$0xff] %v6958_v24  ;;  %v6011_v31 = vor.u32 %v6488_v30, %v6010_v28  ;;  %v5338_v32 = vld [vmem:[%s6875_s10 + $0x80] sm:$0xf]  ;;  %v6319_v33 = vld [vmem:[%s6875_s10 + $0x8c] sm:$0xf0] }
  0x2b   : > { %11812 = vst [vmem:[#allocation16_spill] sm:$0xff] %v6960_v25  ;;  %v6349_v34 = vld [vmem:[%s6875_s10 + $0x184] sm:$0xf]  ;;  %v5340_v37 = vld [vmem:[%s6875_s10 + $0x90] sm:$0xf0]  ;;  %v6983_v38 = vor.u32 %v6319_v33, %v5338_v32 }
  0x2c   : > { %v6317_v36 = vld [vmem:[%s6875_s10 + $0x84] sm:$0xf]  ;;  %v6482_v42 = vld [vmem:[%s11611_s2 + $0x3a4] sm:$0xf0]  ;;  %v5962_v43 = vld [vmem:[%s11611_s2 + $0x360] sm:$0xf] }
  0x2d   : > { %1753 = vmatpush.bf16.msra.mxu0 %v5555_v40  ;;  %6563 = vmatpush.bf16.msra.mxu3 %v5555_v40  ;;  %11813 = vst [vmem:[#allocation17_spill] sm:$0xff] %v6983_v38  ;;  %v6987_v40 = vor.u32 %v6317_v36, %v5340_v37  ;;  %v6476_v45 = vld [vmem:[%s11611_s2 + $0x374] sm:$0xf0]  ;;  %v6323_v48 = vld [vmem:[%s6875_s10 + $0xac] sm:$0xf0] }
  0x2e   : > { %1842 = vmatpush.bf16.msra.mxu1 %v5747_v41  ;;  %v5963_v46 = vor.u32 %v6476_v45, %v5962_v43  ;;  %v6353_v49 = vld [vmem:[%s6875_s10 + $0x1a4] sm:$0xf]  ;;  %v5484_v50 = vld [vmem:[%s6875_s10 + $0x1b0] sm:$0xf0]  ;;  %v5938_v59 = vld [vmem:[%s11611_s2 + $0x330] sm:$0xf] }
  0x2f   : > { %11815 = vst [vmem:[#allocation19_spill] sm:$0xff] %v6987_v40  ;;  %v5356_v52 = vld [vmem:[%s6875_s10 + $0xb0] sm:$0xf0]  ;;  %v7012_v57 = vor.u32 %v6353_v49, %v5484_v50  ;;  %v6470_v60 = vld [vmem:[%s11611_s2 + $0x344] sm:$0xf0] }
  0x30   : > { %v5914_v61 = vld [vmem:[%s11611_s2 + $0x300] sm:$0xf]  ;;  %v5939_v62 = vor.u32 %v6470_v60, %v5938_v59  ;;  %v6464_v2 = vld [vmem:[%s11611_s2 + $0x314] sm:$0xf0]  ;;  %v6327_v5 = vld [vmem:[%s6875_s10 + $0xcc] sm:$0xf0] }
  0x31   : > { %1754 = vmatpush.bf16.msra.mxu0 %v5531_v47  ;;  %6564 = vmatpush.bf16.msra.mxu3 %v5531_v47  ;;  %v5354_v47 = vld [vmem:[%s6875_s10 + $0xa0] sm:$0xf]  ;;  %11817 = vst [vmem:[#allocation21_spill] sm:$0xff] %v7012_v57  ;;  %v5915_v3 = vor.u32 %v6464_v2, %v5914_v61  ;;  %v6274_v19 = vld [vmem:[%s11611_s2 + $0x5d0] sm:$0xf] }
  0x32   : > { %1843 = vmatpush.bf16.msra.mxu1 %v5723_v51  ;;  %v7010_v53 = vor.u32 %v6323_v48, %v5354_v47  ;;  %v5370_v4 = vld [vmem:[%s6875_s10 + $0xc0] sm:$0xf]  ;;  %v6554_v20 = vld [vmem:[%s11611_s2 + $0x5e4] sm:$0xf0]  ;;  %v6084_v30 = vld [vmem:[%s11611_s2 + $0x468] sm:$0xf0] }
  0x33   : > { %v7037_v13 = vor.u32 %v6327_v5, %v5370_v4  ;;  %v6275_v21 = vor.u32 %v6554_v20, %v6274_v19  ;;  %v6250_v22 = vld [vmem:[%s11611_s2 + $0x5a0] sm:$0xf]  ;;  %v6361_v32 = vld [vmem:[%s6875_s10 + $0x1e4] sm:$0xf]  ;;  %v5516_v33 = vld [vmem:[%s6875_s10 + $0x1f0] sm:$0xf0] }
  0x34   : > { %1755 = vmatmul.bf16.vlgmr.msra.gmra.mxu0 %v6895_v54  ;;  %1815 = vmatmul.bf16.vlgmr.msra.gmra.mxu3 %v6897_v55  ;;  %11816 = vst [vmem:[#allocation20_spill] sm:$0xff] %v7010_v53  ;;  %v5386_v28 = vld [vmem:[%s6875_s10 + $0xe0] sm:$0xf]  ;;  %v5388_v36 = vld [vmem:[%s6875_s10 + $0xf0] sm:$0xf0]  ;;  %v7083_v43 = vor.u32 %v6361_v32, %v5516_v33 }
  0x35   : > { %6565 = vmatpush.bf16.msrb.mxu3 %v6789_v7  ;;  %1844 = vmatmul.bf16.vlgmr.msra.gmra.mxu1 %v6899_v56  ;;  %v5308_v7 = vld [vmem:[%s6875_s10 + $0x50] sm:$0xf0]  ;;  %11819 = vst [vmem:[#allocation23_spill] sm:$0xff] %v7037_v13  ;;  %v5892_v47 = vld [vmem:[%s11611_s2 + $0x2e8] sm:$0xf0] }
  0x36   : > { %v6933_v10 = vor.u32 %v6309_v6, %v5308_v7  ;;  %v6357_v6 = vld [vmem:[%s6875_s10 + $0x1c4] sm:$0xf]  ;;  %v5500_v7 = vld [vmem:[%s6875_s10 + $0x1d0] sm:$0xf0]  ;;  %11824 = vst [vmem:[#allocation28_spill] sm:$0xff] %v7083_v43 }
  0x37   : > { %v6407_v37 = vld [vmem:[%s11611_s2 + $0x154] sm:$0xf]  ;;  %v5298_v49 = vld [vmem:[%s6875_s10 + $0x28] sm:$0xf]  ;;  %v6308_v50 = vld [vmem:[%s6875_s10 + $0x34] sm:$0xf0] }
  0x38   : > { %11809 = vst [vmem:[#allocation13_spill] sm:$0xff] %v6933_v10  ;;  %v6542_v59 = vld [vmem:[%s11611_s2 + $0x584] sm:$0xf0]  ;;  %v6202_v61 = vld [vmem:[%s11611_s2 + $0x540] sm:$0xf] }
  0x39   : > { %6566 = vmatpush.bf16.msrb.mxu3 %v6798_v11  ;;  %v6082_v11 = vld [vmem:[%s11611_s2 + $0x450] sm:$0xf]  ;;  %v5402_v2 = vld [vmem:[%s6875_s10 + $0x100] sm:$0xf]  ;;  %v5474_v5 = vld [vmem:[%s6875_s10 + $0x188] sm:$0xf] }
  0x3a   : > { %v6083_v14 = vor.u32 %v6506_v12, %v6082_v11  ;;  %v6325_v11 = vld [vmem:[%s6875_s10 + $0xc4] sm:$0xf]  ;;  %v5372_v12 = vld [vmem:[%s6875_s10 + $0xd0] sm:$0xf0]  ;;  %v6335_v4 = vld [vmem:[%s6875_s10 + $0x10c] sm:$0xf0] }
  0x3b   : > { %v7041_v15 = vor.u32 %v6325_v11, %v5372_v12  ;;  %v5404_v11 = vld [vmem:[%s6875_s10 + $0x110] sm:$0xf0]  ;;  %v7119_v12 = vor.u32 %v6335_v4, %v5402_v2  ;;  %v6060_v32 = vld [vmem:[%s11611_s2 + $0x438] sm:$0xf0]  ;;  %v6339_v4 = vld [vmem:[%s6875_s10 + $0x12c] sm:$0xf0] }
  0x3c   : > { %1925 = vmatpush.bf16.msra.mxu2 %v6083_v14  ;;  %v6443_v2 = vld [vmem:[%s11611_s2 + $0x274] sm:$0xf] }
  0x3d   : > { %6567 = vmatpush.bf16.msrb.mxu3 %v6813_v17  ;;  %v5322_v17 = vld [vmem:[%s6875_s10 + $0x60] sm:$0xf]  ;;  %11821 = vst [vmem:[#allocation25_spill] sm:$0xff] %v7041_v15 }
  0x3e   : > { %11827 = vst [vmem:[#allocation31_spill] sm:$0xff] %v7119_v12 }
  0x40   : > { %1926 = vmatpush.bf16.msra.mxu2 %v6059_v16 }
  0x41   : > { %6568 = vmatpush.bf16.msrb.mxu3 %v6828_v23  ;;  %v6956_v23 = vor.u32 %v6315_v18, %v5322_v17  ;;  %v6304_v17 = vld [vmem:[%s6875_s10 + $0x14] sm:$0xf0] }
  0x43   : > { %11810 = vst [vmem:[#allocation14_spill] sm:$0xff] %v6956_v23 }
  0x44   : > { %1760 = vmatmul.bf16.gmra.mxu0 %v6914_v63  ;;  %1820 = vmatmul.bf16.gmra.mxu3 %v6916_v0  ;;  %v6340_v0 = vld [vmem:[%s6875_s10 + $0x134] sm:$0xf0] }
  0x45   : > { %6569 = vmatpush.bf16.msrb.mxu3 %v5795_v29  ;;  %1849 = vmatmul.bf16.gmra.mxu1 %v6918_v1  ;;  %v6035_v29 = vor.u32 %v6494_v27, %v6034_v26  ;;  %v6548_v26 = vld [vmem:[%s11611_s2 + $0x5b4] sm:$0xf0]  ;;  %v6503_v27 = vld [vmem:[%s11611_s2 + $0x454] sm:$0xf] }
  0x47   : > { %1927 = vmatpush.bf16.msra.mxu2 %v6035_v29 }
  0x49   : > { %6570 = vmatpush.bf16.msrb.mxu3 %v5771_v35  ;;  %v5468_v35 = vld [vmem:[%s6875_s10 + $0x190] sm:$0xf0] }
  0x4a   : > { %v6985_v39 = vor.u32 %v6349_v34, %v5468_v35  ;;  %v6087_v34 = vor.u32 %v6503_v27, %v6084_v30  ;;  %v6329_v35 = vld [vmem:[%s6875_s10 + $0xe4] sm:$0xf] }
  0x4b   : > { %1928 = vmatpush.bf16.msra.mxu2 %v6011_v31  ;;  %v7085_v45 = vor.u32 %v6329_v35, %v5388_v36  ;;  %v6497_v30 = vld [vmem:[%s11611_s2 + $0x424] sm:$0xf]  ;;  %v5676_v36 = vld [vmem:[%s11611_s2 + $0x138] sm:$0xf0] }
  0x4c   : > { %11814 = vst [vmem:[#allocation18_spill] sm:$0xff] %v6985_v39  ;;  %v6401_v35 = vld [vmem:[%s11611_s2 + $0x124] sm:$0xf] }
  0x4d   : > { %6571 = vmatpush.bf16.msrb.mxu3 %v5747_v41  ;;  %v5986_v41 = vld [vmem:[%s11611_s2 + $0x390] sm:$0xf]  ;;  %11825 = vst [vmem:[#allocation29_spill] sm:$0xff] %v7085_v45 }
  0x4e   : > { %v5987_v44 = vor.u32 %v6482_v42, %v5986_v41  ;;  %v5700_v41 = vld [vmem:[%s11611_s2 + $0x168] sm:$0xf0] }
  0x50   : > { %1929 = vmatpush.bf16.msra.mxu2 %v5987_v44 }
  0x51   : > { %6572 = vmatpush.bf16.msrb.mxu3 %v5723_v51  ;;  %v6321_v51 = vld [vmem:[%s6875_s10 + $0xa4] sm:$0xf] }
  0x52   : > { %v7014_v58 = vor.u32 %v6321_v51, %v5356_v52  ;;  %v7098_v51 = vor.u32 %v6308_v50, %v5298_v49  ;;  %v6226_v52 = vld [vmem:[%s11611_s2 + $0x570] sm:$0xf]  ;;  %v5418_v50 = vld [vmem:[%s6875_s10 + $0x120] sm:$0xf] }
  0x53   : > { %v6227_v60 = vor.u32 %v6542_v59, %v6226_v52  ;;  %v6154_v52 = vld [vmem:[%s11611_s2 + $0x4e0] sm:$0xf]  ;;  %v6524_v59 = vld [vmem:[%s11611_s2 + $0x4f4] sm:$0xf0] }
  0x54   : > { %1765 = vmatmul.bf16.gmra.mxu0 %v6929_v8  ;;  %1825 = vmatmul.bf16.gmra.mxu3 %v6931_v9  ;;  %11818 = vst [vmem:[#allocation22_spill] sm:$0xff] %v7014_v58 }
  0x55   : > { %1854 = vmatmul.bf16.gmra.mxu1 %v6933_v10  ;;  %6573 = vmatpush.bf16.msra.mxu3 %v6083_v14  ;;  %v7039_v14 = vor.u32 %v6357_v6, %v5500_v7  ;;  %11826 = vst [vmem:[#allocation30_spill] sm:$0xff] %v7098_v51  ;;  %v6352_v6 = vld [vmem:[%s6875_s10 + $0x194] sm:$0xf0]  ;;  %v6333_v7 = vld [vmem:[%s6875_s10 + $0x104] sm:$0xf] }
  0x56   : > { %1930 = vmatpush.bf16.msra.mxu2 %v5963_v46  ;;  %v7123_v19 = vor.u32 %v6333_v7, %v5404_v11 }
  0x57   : > { %11820 = vst [vmem:[#allocation24_spill] sm:$0xff] %v7039_v14 }
  0x58   : > { %11829 = vst [vmem:[#allocation33_spill] sm:$0xff] %v7123_v19 }
  0x59   : > { %6574 = vmatpush.bf16.msra.mxu3 %v6059_v16  ;;  %v5282_v16 = vld [vmem:[%s6875_s10 + $0x8] sm:$0xf] }
  0x5a   : > { %1931 = vmatpush.bf16.msra.mxu2 %v5939_v62  ;;  %v7047_v18 = vor.u32 %v6304_v17, %v5282_v16  ;;  %v7121_v16 = vor.u32 %v6352_v6, %v5474_v5  ;;  %v5490_v5 = vld [vmem:[%s6875_s10 + $0x1a8] sm:$0xf]  ;;  %v6356_v6 = vld [vmem:[%s6875_s10 + $0x1b4] sm:$0xf0] }
  0x5c   : > { %11822 = vst [vmem:[#allocation26_spill] sm:$0xff] %v7047_v18 }
  0x5d   : > { %6575 = vmatpush.bf16.msra.mxu3 %v6035_v29  ;;  %v6251_v29 = vor.u32 %v6548_v26, %v6250_v22  ;;  %11828 = vst [vmem:[#allocation32_spill] sm:$0xff] %v7121_v16  ;;  %v5314_v22 = vld [vmem:[%s6875_s10 + $0x48] sm:$0xf]  ;;  %v6312_v26 = vld [vmem:[%s6875_s10 + $0x54] sm:$0xf0] }
  0x5e   : > { %1932 = vmatpush.bf16.msra.mxu2 %v5915_v3  ;;  %v7131_v27 = vor.u32 %v6312_v26, %v5314_v22  ;;  %v6389_v26 = vld [vmem:[%s11611_s2 + $0xc4] sm:$0xf] }
  0x60   : > { %11830 = vst [vmem:[#allocation34_spill] sm:$0xff] %v7131_v27 }
  0x61   : > { %6576 = vmatpush.bf16.msra.mxu3 %v6011_v31  ;;  %1933 = vmatmul.bf16.vlgmr.msra.gmra.mxu2 %v7047_v18  ;;  %v6331_v31 = vld [vmem:[%s6875_s10 + $0xec] sm:$0xf0] }
  0x62   : > { %2281 = vmatpush.bf16.msrb.mxu2 %v6087_v34  ;;  %v7081_v42 = vor.u32 %v6331_v31, %v5386_v28  ;;  %v6178_v28 = vld [vmem:[%s11611_s2 + $0x510] sm:$0xf]  ;;  %v6063_v34 = vor.u32 %v6497_v30, %v6060_v32  ;;  %v7198_v30 = vor.u32 %v6339_v4, %v5418_v50  ;;  %v6383_v50 = vld [vmem:[%s11611_s2 + $0x94] sm:$0xf] }
  0x64   : > { %1770 = vmatmul.bf16.gmra.mxu0 %v6956_v23  ;;  %1830 = vmatmul.bf16.gmra.mxu3 %v6958_v24  ;;  %11823 = vst [vmem:[#allocation27_spill] sm:$0xff] %v7081_v42  ;;  %v6328_v24 = vld [vmem:[%s6875_s10 + $0xd4] sm:$0xf0] }
  0x65   : > { %1859 = vmatmul.bf16.gmra.mxu1 %v6960_v25  ;;  %6577 = vmatpush.bf16.msra.mxu3 %v5987_v44  ;;  %v5703_v44 = vor.u32 %v6407_v37, %v5700_v41  ;;  %v6449_v37 = vld [vmem:[%s11611_s2 + $0x2a4] sm:$0xf]  ;;  %v5679_v41 = vor.u32 %v6401_v35, %v5676_v36  ;;  %11831 = vst [vmem:[#allocation35_spill] sm:$0xff] %v7198_v30 }
  0x66   : > { %2282 = vmatpush.bf16.msrb.mxu2 %v6063_v34  ;;  %v5820_v34 = vld [vmem:[%s11611_s2 + $0x258] sm:$0xf0] }
  0x67   : > { %2103 = vmatpush.bf16.msrb.mxu0 %v5703_v44  ;;  %v5868_v44 = vld [vmem:[%s11611_s2 + $0x2b8] sm:$0xf0] }
  0x69   : > { %6578 = vmatpush.bf16.msra.mxu3 %v5963_v46  ;;  %v6455_v46 = vld [vmem:[%s11611_s2 + $0x2d4] sm:$0xf] }
  0x6a   : > { %v5895_v48 = vor.u32 %v6455_v46, %v5892_v47  ;;  %v5871_v47 = vor.u32 %v6449_v37, %v5868_v44 }
  0x6b   : > { %2104 = vmatpush.bf16.msrb.mxu0 %v5679_v41 }
  0x6c   : > { %2192 = vmatpush.bf16.msrb.mxu1 %v5895_v48 }
  0x6d   : > { %6579 = vmatpush.bf16.msra.mxu3 %v5939_v62  ;;  %v6536_v62 = vld [vmem:[%s11611_s2 + $0x554] sm:$0xf0] }
  0x70   : > { %2193 = vmatpush.bf16.msrb.mxu1 %v5871_v47  ;;  %v6316_v47 = vld [vmem:[%s6875_s10 + $0x74] sm:$0xf0] }
  0x71   : > { %6580 = vmatpush.bf16.msra.mxu3 %v5915_v3  ;;  %1938 = vmatmul.bf16.gmra.mxu2 %v7098_v51  ;;  %v6203_v3 = vor.u32 %v6536_v62, %v6202_v61  ;;  %v6155_v61 = vor.u32 %v6524_v59, %v6154_v52  ;;  %v5652_v62 = vld [vmem:[%s11611_s2 + $0x108] sm:$0xf0]  ;;  %v6130_v52 = vld [vmem:[%s11611_s2 + $0x4b0] sm:$0xf]  ;;  %v6518_v59 = vld [vmem:[%s11611_s2 + $0x4c4] sm:$0xf0] }
  0x74   : > { %1775 = vmatmul.bf16.gmra.mxu0 %v6983_v38  ;;  %1904 = vmatmul.bf16.vlgmr.msrb.gmra.mxu3 %v6985_v39 }
  0x75   : > { %1864 = vmatmul.bf16.gmra.mxu1 %v6987_v40  ;;  %2014 = vmatpush.bf16.msrb.mxu3 %v6275_v21 }
  0x79   : > { %2015 = vmatpush.bf16.msrb.mxu3 %v6251_v29  ;;  %v6530_v29 = vld [vmem:[%s11611_s2 + $0x524] sm:$0xf0] }
  0x7a   : > { %v6179_v31 = vor.u32 %v6530_v29, %v6178_v28  ;;  %v5628_v28 = vld [vmem:[%s11611_s2 + $0xd8] sm:$0xf0]  ;;  %v6437_v29 = vld [vmem:[%s11611_s2 + $0x244] sm:$0xf] }
  0x7b   : > { %v5631_v32 = vor.u32 %v6389_v26, %v5628_v28  ;;  %v5823_v37 = vor.u32 %v6437_v29, %v5820_v34  ;;  %v5434_v34 = vld [vmem:[%s6875_s10 + $0x140] sm:$0xf] }
  0x7d   : > { %2016 = vmatpush.bf16.msrb.mxu3 %v6227_v60  ;;  %v6395_v60 = vld [vmem:[%s11611_s2 + $0xf4] sm:$0xf] }
  0x7e   : > { %v5655_v7 = vor.u32 %v6395_v60, %v5652_v62  ;;  %v5604_v60 = vld [vmem:[%s11611_s2 + $0xa8] sm:$0xf0] }
  0x7f   : > { %v5607_v62 = vor.u32 %v6383_v50, %v5604_v60  ;;  %v5748_v60 = vld [vmem:[%s11611_s2 + $0x1c8] sm:$0xf0] }
  0x80   : > { %2105 = vmatpush.bf16.msrb.mxu0 %v5655_v7  ;;  %v5580_v7 = vld [vmem:[%s11611_s2 + $0x78] sm:$0xf0] }
  0x81   : > { %2017 = vmatpush.bf16.msrb.mxu3 %v6203_v3  ;;  %1943 = vmatmul.bf16.gmra.mxu2 %v7131_v27  ;;  %v5844_v3 = vld [vmem:[%s11611_s2 + $0x288] sm:$0xf0] }
  0x82   : > { %v5847_v11 = vor.u32 %v6443_v2, %v5844_v3  ;;  %v6431_v2 = vld [vmem:[%s11611_s2 + $0x214] sm:$0xf]  ;;  %v5796_v3 = vld [vmem:[%s11611_s2 + $0x228] sm:$0xf0] }
  0x84   : > { %1780 = vmatmul.bf16.gmra.mxu0 %v7010_v53  ;;  %1909 = vmatmul.bf16.gmra.mxu3 %v7012_v57 }
  0x85   : > { %1869 = vmatmul.bf16.gmra.mxu1 %v7014_v58  ;;  %2018 = vmatpush.bf16.msrb.mxu3 %v6179_v31  ;;  %v7200_v31 = vor.u32 %v6356_v6, %v5490_v5  ;;  %v5799_v5 = vor.u32 %v6431_v2, %v5796_v3  ;;  %v6377_v6 = vld [vmem:[%s11611_s2 + $0x64] sm:$0xf]  ;;  %v6491_v3 = vld [vmem:[%s11611_s2 + $0x3f4] sm:$0xf] }
  0x86   : > { %2194 = vmatpush.bf16.msrb.mxu1 %v5847_v11  ;;  %2106 = vmatpush.bf16.msrb.mxu0 %v5631_v32  ;;  %v6425_v11 = vld [vmem:[%s11611_s2 + $0x1e4] sm:$0xf] }
  0x87   : > { %11832 = vst [vmem:[#allocation36_spill] sm:$0xff] %v7200_v31 }
  0x89   : > { %2019 = vmatpush.bf16.msrb.mxu3 %v6155_v61  ;;  %v6131_v61 = vor.u32 %v6518_v59, %v6130_v52  ;;  %v5556_v52 = vld [vmem:[%s11611_s2 + $0x48] sm:$0xf0]  ;;  %v6419_v59 = vld [vmem:[%s11611_s2 + $0x1b4] sm:$0xf] }
  0x8a   : > { %2195 = vmatpush.bf16.msrb.mxu1 %v5823_v37  ;;  %2107 = vmatpush.bf16.msrb.mxu0 %v5607_v62  ;;  %v5506_v37 = vld [vmem:[%s6875_s10 + $0x1c8] sm:$0xf]  ;;  %v5751_v2 = vor.u32 %v6419_v59, %v5748_v60 }
  0x8d   : > { %2020 = vmatpush.bf16.msrb.mxu3 %v6131_v61  ;;  %v6360_v61 = vld [vmem:[%s6875_s10 + $0x1d4] sm:$0xf0] }
  0x8e   : > { %2196 = vmatpush.bf16.msrb.mxu1 %v5799_v5  ;;  %v6036_v5 = vld [vmem:[%s11611_s2 + $0x408] sm:$0xf0] }
  0x94   : > { %1785 = vmatmul.bf16.gmra.mxu0 %v7037_v13  ;;  %1914 = vmatmul.bf16.gmra.mxu3 %v7039_v14  ;;  %v6332_v14 = vld [vmem:[%s6875_s10 + $0xf4] sm:$0xf0] }
  0x95   : > { %1874 = vmatmul.bf16.gmra.mxu1 %v7041_v15 }
  0xa4   : > { %1790 = vmatmul.bf16.gmra.mxu0 %v7081_v42  ;;  %1919 = vmatmul.bf16.gmra.mxu3 %v7083_v43  ;;  %v5378_v43 = vld [vmem:[%s6875_s10 + $0xc8] sm:$0xf] }
  0xa5   : > { %1879 = vmatmul.bf16.gmra.mxu1 %v7085_v45 }
  0xb1   : > { %v1756_v17 = vpop.f32.mrf.mxu0 }
  0xb2   : > { %v1845_v20 = vpop.f32.mrf.mxu1 }
  0xb3   : > { %v7125_v21 = vadd.f32 %v1845_v20, %v1756_v17  ;;  %v6337_v17 = vld [vmem:[%s6875_s10 + $0x124] sm:$0xf]  ;;  %v5420_v20 = vld [vmem:[%s6875_s10 + $0x130] sm:$0xf0] }
  0xb4   : > { %1795 = vmatmul.bf16.gmra.mxu0 %v7119_v12  ;;  %1993 = vmatmul.bf16.vlgmr.msra.gmra.mxu3 %v7121_v16  ;;  %v7205_v36 = vor.u32 %v6337_v17, %v5420_v20  ;;  %v5583_v17 = vor.u32 %v6377_v6, %v5580_v7  ;;  %v5772_v20 = vld [vmem:[%s11611_s2 + $0x1f8] sm:$0xf0]  ;;  %v6341_v6 = vld [vmem:[%s6875_s10 + $0x144] sm:$0xf]  ;;  %v5436_v7 = vld [vmem:[%s6875_s10 + $0x150] sm:$0xf0] }
  0xb5   : > { %1884 = vmatmul.bf16.gmra.mxu1 %v7123_v19  ;;  %v5775_v28 = vor.u32 %v6425_v11, %v5772_v20  ;;  %v6039_v11 = vor.u32 %v6491_v3, %v6036_v5  ;;  %v6365_v20 = vld [vmem:[%s11611_s2 + $0x4] sm:$0xf]  ;;  %v5346_v3 = vld [vmem:[%s6875_s10 + $0x88] sm:$0xf]  ;;  %v6320_v5 = vld [vmem:[%s6875_s10 + $0x94] sm:$0xf0] }
  0xb6   : > { %11833 = vst [vmem:[#allocation37_spill] sm:$0xff] %v7205_v36  ;;  %2108 = vmatpush.bf16.msrb.mxu0 %v5583_v17 }
  0xb7   : > { %v7146_v33 = vpop.f32.mrf.mxu3  ;;  %2197 = vmatpush.bf16.msrb.mxu1 %v5775_v28  ;;  %v6413_v28 = vld [vmem:[%s11611_s2 + $0x184] sm:$0xf]  ;;  %2283 = vmatpush.bf16.msrb.mxu2 %v6039_v11  ;;  %v5450_v11 = vld [vmem:[%s6875_s10 + $0x160] sm:$0xf] }
  0xb9   : > { %v1758_v46 = vpop.f32.mrf.mxu0 }
  0xba   : > { %v1847_v48 = vpop.f32.mrf.mxu1 }
  0xbb   : > { %v7161_v49 = vadd.f32 %v1847_v48, %v1758_v46  ;;  %v5330_v46 = vld [vmem:[%s6875_s10 + $0x68] sm:$0xf]  ;;  %2198 = vmatpush.bf16.msrb.mxu1 %v5751_v2 }
  0xbc   : > { %v7213_v48 = vor.u32 %v6316_v47, %v5330_v46  ;;  %v6512_v46 = vld [vmem:[%s11611_s2 + $0x494] sm:$0xf0]  ;;  %v6371_v47 = vld [vmem:[%s11611_s2 + $0x34] sm:$0xf] }
  0xbd   : > { %v5559_v62 = vor.u32 %v6371_v47, %v5556_v52 }
  0xbe   : > { %11834 = vst [vmem:[#allocation38_spill] sm:$0xff] %v7213_v48  ;;  %1948 = vmatmul.bf16.gmra.mxu2 %v7213_v48 }
  0xbf   : > { %v7187_v22 = vpop.f32.mrf.mxu3  ;;  %2109 = vmatpush.bf16.msrb.mxu0 %v5559_v62 }
  0xc1   : > { %v1761_v35 = vpop.f32.mrf.mxu0 }
  0xc2   : > { %v1850_v41 = vpop.f32.mrf.mxu1 }
  0xc3   : > { %v7207_v44 = vadd.f32 %v1850_v41, %v1761_v35  ;;  %v6343_v35 = vld [vmem:[%s6875_s10 + $0x14c] sm:$0xf0]  ;;  %v6106_v41 = vld [vmem:[%s11611_s2 + $0x480] sm:$0xf] }
  0xc4   : > { %1800 = vmatmul.bf16.gmra.mxu0 %v7198_v30  ;;  %1998 = vmatmul.bf16.gmra.mxu3 %v7200_v31  ;;  %v6107_v50 = vor.u32 %v6512_v46, %v6106_v41  ;;  %v7294_v41 = vor.u32 %v6360_v61, %v5506_v37  ;;  %v5724_v46 = vld [vmem:[%s11611_s2 + $0x198] sm:$0xf0]  ;;  %v6276_v37 = vld [vmem:[%s11611_s2 + $0x5e8] sm:$0xf0] }
  0xc5   : > { %1889 = vmatmul.bf16.gmra.mxu1 %v7205_v36  ;;  %v5727_v60 = vor.u32 %v6413_v28, %v5724_v46  ;;  %v6364_v28 = vld [vmem:[%s6875_s10 + $0x1f4] sm:$0xf0]  ;;  %v6345_v46 = vld [vmem:[%s6875_s10 + $0x164] sm:$0xf] }
  0xc6   : > { %2021 = vmatpush.bf16.msrb.mxu3 %v6107_v50  ;;  %11835 = vst [vmem:[#allocation39_spill] sm:$0xff] %v7294_v41  ;;  %v7299_v50 = vor.u32 %v6341_v6, %v5436_v7 }
  0xc7   : > { %v7234_v4 = vpop.f32.mrf.mxu3  ;;  %2199 = vmatpush.bf16.msrb.mxu1 %v5727_v60 }
  0xc9   : > { %v1763_v26 = vpop.f32.mrf.mxu0 }
  0xca   : > { %v1852_v29 = vpop.f32.mrf.mxu1 }
  0xcb   : > { %v7249_v32 = vadd.f32 %v1852_v29, %v1763_v26  ;;  %v5532_v26 = vld [vmem:[%s11611_s2 + $0x18] sm:$0xf0]  ;;  %v7292_v29 = vor.u32 %v6343_v35, %v5434_v34  ;;  %v7305_v34 = vor.u32 %v6320_v5, %v5346_v3  ;;  %v6551_v35 = vld [vmem:[%s11611_s2 + $0x5d4] sm:$0xf] }
  0xcc   : > { %v5535_v52 = vor.u32 %v6365_v20, %v5532_v26  ;;  %v6279_v61 = vor.u32 %v6551_v35, %v6276_v37  ;;  %v6347_v20 = vld [vmem:[%s6875_s10 + $0x16c] sm:$0xf0]  ;;  %v5522_v26 = vld [vmem:[%s6875_s10 + $0x1e8] sm:$0xf] }
  0xcd   : > { %v7331_v60 = vor.u32 %v6364_v28, %v5522_v26  ;;  %v5362_v37 = vld [vmem:[%s6875_s10 + $0xa8] sm:$0xf] }
  0xce   : > { %2110 = vmatpush.bf16.msrb.mxu0 %v5535_v52  ;;  %1953 = vmatmul.bf16.gmra.mxu2 %v7305_v34 }
  0xcf   : > { %v7281_v17 = vpop.f32.mrf.mxu3  ;;  %2370 = vmatpush.bf16.msra.mxu3 %v6279_v61  ;;  %11837 = vst [vmem:[#allocation41_spill] sm:$0xff] %v7331_v60  ;;  %v6324_v61 = vld [vmem:[%s6875_s10 + $0xb4] sm:$0xf0] }
  0xd1   : > { %v1766_v47 = vpop.f32.mrf.mxu0 }
  0xd2   : > { %v1855_v59 = vpop.f32.mrf.mxu1 }
  0xd3   : > { %v7303_v31 = vadd.f32 %v1855_v59, %v1766_v47  ;;  %v5452_v47 = vld [vmem:[%s6875_s10 + $0x170] sm:$0xf0]  ;;  %v7329_v59 = vor.u32 %v6347_v20, %v5450_v11  ;;  %v6485_v11 = vld [vmem:[%s11611_s2 + $0x3c4] sm:$0xf]  ;;  %v6012_v20 = vld [vmem:[%s11611_s2 + $0x3d8] sm:$0xf0] }
  0xd4   : > { %1805 = vmatmul.bf16.gmra.mxu0 %v7292_v29  ;;  %2003 = vmatmul.bf16.gmra.mxu3 %v7294_v41  ;;  %v7333_v5 = vor.u32 %v6345_v46, %v5452_v47  ;;  %v6015_v26 = vor.u32 %v6485_v11, %v6012_v20  ;;  %v7365_v20 = vor.u32 %v6328_v24, %v5378_v43 }
  0xd5   : > { %1894 = vmatmul.bf16.gmra.mxu1 %v7299_v50  ;;  %11836 = vst [vmem:[#allocation40_spill] sm:$0xff] %v7329_v59 }
  0xd6   : > { %11838 = vst [vmem:[#allocation42_spill] sm:$0xff] %v7333_v5  ;;  %2284 = vmatpush.bf16.msrb.mxu2 %v6015_v26  ;;  %v6545_v26 = vld [vmem:[%s11611_s2 + $0x5a4] sm:$0xf] }
  0xd7   : > { %v7316_v62 = vpop.f32.mrf.mxu3  ;;  %11841 = vst [vmem:[#allocation45_spill] sm:$0xff] %v7365_v20 }
  0xd9   : > { %v1768_v2 = vpop.f32.mrf.mxu0 }
  0xda   : > { %v1857_v6 = vpop.f32.mrf.mxu1 }
  0xdb   : > { %v7319_v7 = vadd.f32 %v1857_v6, %v1768_v2  ;;  %v7339_v6 = vor.u32 %v6324_v61, %v5362_v37  ;;  %v5284_v37 = vld [vmem:[%s6875_s10 + $0x18] sm:$0xf0] }
  0xdd   : > { %11839 = vst [vmem:[#allocation43_spill] sm:$0xff] %v7339_v6 }
  0xde   : > { %1958 = vmatmul.bf16.gmra.mxu2 %v7339_v6 }
  0xdf   : > { %v7327_v52 = vpop.f32.mrf.mxu3 }
  0xe1   : > { %v1771_v3 = vpop.f32.mrf.mxu0 }
  0xe2   : > { %v1860_v35 = vpop.f32.mrf.mxu1 }
  0xe3   : > { %v7337_v2 = vadd.f32 %v1860_v35, %v1771_v3  ;;  %v6302_v35 = vld [vmem:[%s6875_s10 + $0xc] sm:$0xf] }
  0xe4   : > { %1810 = vmatmul.bf16.gmra.mxu0 %v7329_v59  ;;  %2008 = vmatmul.bf16.gmra.mxu3 %v7331_v60  ;;  %v7359_v60 = vor.u32 %v6302_v35, %v5284_v37  ;;  %v6479_v37 = vld [vmem:[%s11611_s2 + $0x394] sm:$0xf] }
  0xe5   : > { %1899 = vmatmul.bf16.gmra.mxu1 %v7333_v5 }
  0xe6   : > { %11840 = vst [vmem:[#allocation44_spill] sm:$0xff] %v7359_v60 }
  0xe7   : > { %v7350_v28 = vpop.f32.mrf.mxu3 }
  0xe9   : > { %v1773_v46 = vpop.f32.mrf.mxu0 }
  0xea   : > { %v1862_v47 = vpop.f32.mrf.mxu1 }
  0xeb   : > { %v7353_v3 = vadd.f32 %v1862_v47, %v1773_v46  ;;  %v6252_v46 = vld [vmem:[%s11611_s2 + $0x5b8] sm:$0xf0] }
  0xee   : > { %1963 = vmatmul.bf16.gmra.mxu2 %v7365_v20 }
  0xef   : > { %v7357_v61 = vpop.f32.mrf.mxu3 }
  0xf1   : > { %v1776_v41 = vpop.f32.mrf.mxu0 }
  0xf2   : > { %v1865_v16 = vpop.f32.mrf.mxu1 }
  0xf3   : > { %v7363_v11 = vadd.f32 %v1865_v16, %v1776_v41  ;;  %v6255_v16 = vor.u32 %v6545_v26, %v6252_v46  ;;  %v5988_v26 = vld [vmem:[%s11611_s2 + $0x3a8] sm:$0xf0] }
  0xf4   : > { %2022 = vmatmul.bf16.vlgmr.msrb.gmra.mxu3 %v7359_v60  ;;  %2111 = vmatmul.bf16.vlgmr.msrb.gmra.mxu0 %v6895_v54  ;;  %v5991_v46 = vor.u32 %v6479_v37, %v5988_v26  ;;  %v5300_v54 = vld [vmem:[%s6875_s10 + $0x38] sm:$0xf0]  ;;  %v5394_v60 = vld [vmem:[%s6875_s10 + $0xe8] sm:$0xf] }
  0xf5   : > { %2200 = vmatmul.bf16.vlgmr.msrb.gmra.mxu1 %v6899_v56  ;;  %2371 = vmatpush.bf16.msra.mxu3 %v6255_v16  ;;  %v6306_v56 = vld [vmem:[%s6875_s10 + $0x2c] sm:$0xf]  ;;  %v7399_v57 = vor.u32 %v6332_v14, %v5394_v60  ;;  %v5316_v60 = vld [vmem:[%s6875_s10 + $0x58] sm:$0xf0] }
  0xf6   : > { %2285 = vmatpush.bf16.msrb.mxu2 %v5991_v46  ;;  %v6310_v14 = vld [vmem:[%s6875_s10 + $0x4c] sm:$0xf] }
  0xf7   : > { %v1905_v41 = vpop.f32.mrf.mxu3  ;;  %11843 = vst [vmem:[#allocation47_spill] sm:$0xff] %v7399_v57 }
  0xf8   : > { %v7378_v24 = vadd.f32 %v1905_v41, %v7146_v33  ;;  %v7393_v41 = vor.u32 %v6306_v56, %v5300_v54 }
  0xf9   : > { %v1778_v43 = vpop.f32.mrf.mxu0 }
  0xfa   : > { %v1867_v47 = vpop.f32.mrf.mxu1  ;;  %11842 = vst [vmem:[#allocation46_spill] sm:$0xff] %v7393_v41 }
  0xfb   : > { %v7380_v35 = vadd.f32 %v1867_v47, %v1778_v43 }
  0xfe   : > { %1968 = vmatmul.bf16.gmra.mxu2 %v7399_v57 }
  0xff   : > { %v1907_v33 = vpop.f32.mrf.mxu3 }
 0x100   : > { %v7391_v16 = vadd.f32 %v1907_v33, %v7187_v22 }
 0x101   : > { %v1781_v43 = vpop.f32.mrf.mxu0 }
 0x102   : > { %v1870_v47 = vpop.f32.mrf.mxu1 }
 0x103   : > { %v7397_v9 = vadd.f32 %v1870_v47, %v1781_v43  ;;  %v7415_v43 = vor.u32 %v6310_v14, %v5316_v60 }
 0x104   : > { %2027 = vmatmul.bf16.gmra.mxu3 %v7393_v41  ;;  %2116 = vmatmul.bf16.gmra.mxu0 %v6914_v63  ;;  %v5410_v63 = vld [vmem:[%s6875_s10 + $0x108] sm:$0xf]  ;;  %v6336_v41 = vld [vmem:[%s6875_s10 + $0x114] sm:$0xf0] }
 0x105   : > { %2205 = vmatmul.bf16.gmra.mxu1 %v6918_v1  ;;  %11844 = vst [vmem:[#allocation48_spill] sm:$0xff] %v7415_v43 }
 0x107   : > { %v1910_v54 = vpop.f32.mrf.mxu3 }
 0x108   : > { %v7406_v56 = vadd.f32 %v1910_v54, %v7234_v4  ;;  %v7421_v4 = vor.u32 %v6336_v41, %v5410_v63  ;;  %v6228_v54 = vld [vmem:[%s11611_s2 + $0x588] sm:$0xf0]  ;;  %v6473_v63 = vld [vmem:[%s11611_s2 + $0x364] sm:$0xf]  ;;  %v5964_v41 = vld [vmem:[%s11611_s2 + $0x378] sm:$0xf0] }
 0x109   : > { %v1783_v22 = vpop.f32.mrf.mxu0 }
 0x10a   : > { %v1872_v37 = vpop.f32.mrf.mxu1  ;;  %11845 = vst [vmem:[#allocation49_spill] sm:$0xff] %v7421_v4 }
 0x10b   : > { %v7408_v26 = vadd.f32 %v1872_v37, %v1783_v22  ;;  %v5967_v37 = vor.u32 %v6473_v63, %v5964_v41 }
 0x10d   : > { %2286 = vmatpush.bf16.msrb.mxu2 %v5967_v37 }
 0x10e   : > { %1973 = vmatmul.bf16.gmra.mxu2 %v7421_v4  ;;  %v5426_v4 = vld [vmem:[%s6875_s10 + $0x128] sm:$0xf] }
 0x10f   : > { %v1912_v46 = vpop.f32.mrf.mxu3 }
 0x110   : > { %v7413_v33 = vadd.f32 %v1912_v46, %v7281_v17  ;;  %v6539_v17 = vld [vmem:[%s11611_s2 + $0x574] sm:$0xf]  ;;  %v1934_v46 = vpop.f32.mrf.mxu2 }
 0x111   : > { %v1786_v47 = vpop.f32.mrf.mxu0 }
 0x112   : > { %v1875_v1 = vpop.f32.mrf.mxu1 }
 0x113   : > { %v7419_v57 = vadd.f32 %v1875_v1, %v1786_v47  ;;  %v6231_v1 = vor.u32 %v6539_v17, %v6228_v54  ;;  %v7443_v17 = vadd.f32 %v1934_v46, %v7125_v21  ;;  %v6467_v46 = vld [vmem:[%s11611_s2 + $0x334] sm:$0xf] }
 0x114   : > { %2032 = vmatmul.bf16.gmra.mxu3 %v7415_v43  ;;  %2121 = vmatmul.bf16.gmra.mxu0 %v6929_v8  ;;  %v5332_v8 = vld [vmem:[%s6875_s10 + $0x78] sm:$0xf0] }
 0x115   : > { %2210 = vmatmul.bf16.gmra.mxu1 %v6933_v10  ;;  %2372 = vmatpush.bf16.msra.mxu3 %v6231_v1  ;;  %v6314_v10 = vld [vmem:[%s6875_s10 + $0x6c] sm:$0xf] }
 0x117   : > { %v1915_v22 = vpop.f32.mrf.mxu3 }
 0x118   : > { %v7440_v14 = vadd.f32 %v1915_v22, %v7316_v62  ;;  %v7452_v62 = vor.u32 %v6314_v10, %v5332_v8  ;;  %v1936_v41 = vpop.f32.mrf.mxu2 }
 0x119   : > { %v1788_v60 = vpop.f32.mrf.mxu0  ;;  %v7455_v37 = vadd.f32 %v1936_v41, %v7161_v49  ;;  %v5348_v41 = vld [vmem:[%s6875_s10 + $0x98] sm:$0xf0] }
 0x11a   : > { %v1877_v47 = vpop.f32.mrf.mxu1  ;;  %11846 = vst [vmem:[#allocation50_spill] sm:$0xff] %v7452_v62 }
 0x11b   : > { %v7445_v54 = vadd.f32 %v1877_v47, %v1788_v60  ;;  %v7461_v60 = vor.u32 %v6340_v0, %v5426_v4  ;;  %v5940_v47 = vld [vmem:[%s11611_s2 + $0x348] sm:$0xf0] }
 0x11d   : > { %11847 = vst [vmem:[#allocation51_spill] sm:$0xff] %v7461_v60 }
 0x11e   : > { %1978 = vmatmul.bf16.gmra.mxu2 %v7461_v60 }
 0x11f   : > { %v1917_v43 = vpop.f32.mrf.mxu3 }
 0x120   : > { %v7450_v63 = vadd.f32 %v1917_v43, %v7327_v52  ;;  %v1939_v43 = vpop.f32.mrf.mxu2 }
 0x121   : > { %v1791_v1 = vpop.f32.mrf.mxu0  ;;  %v7473_v4 = vadd.f32 %v1939_v43, %v7207_v44 }
 0x122   : > { %v1880_v22 = vpop.f32.mrf.mxu1 }
 0x123   : > { %v7459_v21 = vadd.f32 %v1880_v22, %v1791_v1  ;;  %v6318_v1 = vld [vmem:[%s6875_s10 + $0x8c] sm:$0xf] }
 0x124   : > { %2037 = vmatmul.bf16.gmra.mxu3 %v7452_v62  ;;  %2126 = vmatmul.bf16.gmra.mxu0 %v6956_v23  ;;  %v6344_v23 = vld [vmem:[%s6875_s10 + $0x154] sm:$0xf0] }
 0x125   : > { %2215 = vmatmul.bf16.gmra.mxu1 %v6960_v25  ;;  %v5442_v25 = vld [vmem:[%s6875_s10 + $0x148] sm:$0xf] }
 0x127   : > { %v1920_v8 = vpop.f32.mrf.mxu3 }
 0x128   : > { %v7468_v10 = vadd.f32 %v1920_v8, %v7350_v28  ;;  %v5943_v28 = vor.u32 %v6467_v46, %v5940_v47  ;;  %v1941_v43 = vpop.f32.mrf.mxu2  ;;  %v7495_v46 = vor.u32 %v6344_v23, %v5442_v25  ;;  %v6204_v47 = vld [vmem:[%s11611_s2 + $0x558] sm:$0xf0] }
 0x129   : > { %v1793_v49 = vpop.f32.mrf.mxu0  ;;  %v7493_v60 = vadd.f32 %v1941_v43, %v7249_v32  ;;  %v5364_v43 = vld [vmem:[%s6875_s10 + $0xb8] sm:$0xf0] }
 0x12a   : > { %v1882_v52 = vpop.f32.mrf.mxu1  ;;  %2287 = vmatpush.bf16.msrb.mxu2 %v5943_v28  ;;  %11849 = vst [vmem:[#allocation53_spill] sm:$0xff] %v7495_v46 }
 0x12b   : > { %v7470_v0 = vadd.f32 %v1882_v52, %v1793_v49  ;;  %v7486_v49 = vor.u32 %v6318_v1, %v5348_v41 }
 0x12d   : > { %11848 = vst [vmem:[#allocation52_spill] sm:$0xff] %v7486_v49 }
 0x12e   : > { %1983 = vmatmul.bf16.gmra.mxu2 %v7495_v46 }
 0x12f   : > { %v1922_v22 = vpop.f32.mrf.mxu3 }
 0x130   : > { %v7484_v8 = vadd.f32 %v1922_v22, %v7357_v61  ;;  %v6533_v61 = vld [vmem:[%s11611_s2 + $0x544] sm:$0xf]  ;;  %v1944_v41 = vpop.f32.mrf.mxu2 }
 0x131   : > { %v1796_v44 = vpop.f32.mrf.mxu0  ;;  %v6207_v32 = vor.u32 %v6533_v61, %v6204_v47 }
 0x132   : > { %v1885_v52 = vpop.f32.mrf.mxu1 }
 0x133   : > { %v7490_v62 = vadd.f32 %v1885_v52, %v1796_v44  ;;  %2373 = vmatpush.bf16.msra.mxu3 %v6207_v32  ;;  %v7513_v44 = vadd.f32 %v1944_v41, %v7303_v31  ;;  %v6322_v52 = vld [vmem:[%s6875_s10 + $0xac] sm:$0xf]  ;;  %v5458_v32 = vld [vmem:[%s6875_s10 + $0x168] sm:$0xf] }
 0x134   : > { %2042 = vmatmul.bf16.gmra.mxu3 %v7486_v49  ;;  %2131 = vmatmul.bf16.gmra.mxu0 %v6983_v38  ;;  %v6348_v38 = vld [vmem:[%s6875_s10 + $0x174] sm:$0xf0] }
 0x135   : > { %2220 = vmatmul.bf16.gmra.mxu1 %v6987_v40  ;;  %v7520_v40 = vor.u32 %v6322_v52, %v5364_v43  ;;  %v7529_v31 = vor.u32 %v6348_v38, %v5458_v32  ;;  %v5380_v32 = vld [vmem:[%s6875_s10 + $0xd8] sm:$0xf0] }
 0x137   : > { %v1994_v28 = vpop.f32.mrf.mxu3  ;;  %11851 = vst [vmem:[#allocation55_spill] sm:$0xff] %v7520_v40 }
 0x138   : > { %v7508_v23 = vadd.f32 %v1994_v28, %v7378_v24  ;;  %11852 = vst [vmem:[#allocation56_spill] sm:$0xff] %v7529_v31 }
 0x139   : > { %v1798_v25 = vpop.f32.mrf.mxu0 }
 0x13a   : > { %11850 = vst [vmem:[#allocation54_spill] sm:$0xff] %v7508_v23  ;;  %v1887_v1 = vpop.f32.mrf.mxu1  ;;  %v1946_v23 = vpop.f32.mrf.mxu2 }
 0x13b   : > { %v7510_v22 = vadd.f32 %v1887_v1, %v1798_v25  ;;  %v7527_v25 = vadd.f32 %v1946_v23, %v7319_v7  ;;  %v5916_v1 = vld [vmem:[%s11611_s2 + $0x318] sm:$0xf0] }
 0x13e   : > { %1988 = vmatmul.bf16.gmra.mxu2 %v7529_v31 }
 0x13f   : > { %v1996_v61 = vpop.f32.mrf.mxu3 }
 0x140   : > { %v7518_v47 = vadd.f32 %v1996_v61, %v7391_v16  ;;  %v6461_v16 = vld [vmem:[%s11611_s2 + $0x304] sm:$0xf] }
 0x141   : > { %v1801_v24 = vpop.f32.mrf.mxu0  ;;  %v5919_v7 = vor.u32 %v6461_v16, %v5916_v1 }
 0x142   : > { %v1890_v28 = vpop.f32.mrf.mxu1  ;;  %v1949_v43 = vpop.f32.mrf.mxu2 }
 0x143   : > { %v7524_v49 = vadd.f32 %v1890_v28, %v1801_v24  ;;  %2288 = vmatpush.bf16.msrb.mxu2 %v5919_v7  ;;  %v7547_v24 = vadd.f32 %v1949_v43, %v7337_v2  ;;  %v6326_v28 = vld [vmem:[%s6875_s10 + $0xcc] sm:$0xf] }
 0x144   : > { %2047 = vmatmul.bf16.gmra.mxu3 %v7520_v40  ;;  %2136 = vmatmul.bf16.gmra.mxu0 %v7010_v53  ;;  %v7554_v1 = vor.u32 %v6326_v28, %v5380_v32 }
 0x145   : > { %2225 = vmatmul.bf16.gmra.mxu1 %v7014_v58 }
 0x147   : > { %v1999_v23 = vpop.f32.mrf.mxu3 }
 0x148   : > { %v7542_v38 = vadd.f32 %v1999_v23, %v7406_v56 }
 0x149   : > { %v1803_v41 = vpop.f32.mrf.mxu0 }
 0x14a   : > { %11853 = vst [vmem:[#allocation57_spill] sm:$0xff] %v7542_v38  ;;  %v1892_v52 = vpop.f32.mrf.mxu1  ;;  %v1951_v23 = vpop.f32.mrf.mxu2 }
 0x14b   : > { %v7544_v61 = vadd.f32 %v1892_v52, %v1803_v41  ;;  %v7559_v38 = vadd.f32 %v1951_v23, %v7353_v3  ;;  %v6507_v23 = vld [vmem:[%s11611_s2 + $0x46c] sm:$0xf0] }
 0x14e   : > { %2289 = vmatmul.bf16.vlgmr.msrb.gmra.mxu2 %v7047_v18 }
 0x14f   : > { %v2001_v58 = vpop.f32.mrf.mxu3 }
 0x150   : > { %v7552_v16 = vadd.f32 %v2001_v58, %v7413_v33  ;;  %v6527_v58 = vld [vmem:[%s11611_s2 + $0x514] sm:$0xf] }
 0x151   : > { %v1806_v53 = vpop.f32.mrf.mxu0 }
 0x152   : > { %v1895_v56 = vpop.f32.mrf.mxu1  ;;  %v1954_v43 = vpop.f32.mrf.mxu2 }
 0x153   : > { %v7556_v7 = vadd.f32 %v1895_v56, %v1806_v53  ;;  %v6180_v53 = vld [vmem:[%s11611_s2 + $0x528] sm:$0xf0]  ;;  %v7577_v32 = vadd.f32 %v1954_v43, %v7363_v11  ;;  %v6090_v56 = vld [vmem:[%s11611_s2 + $0x458] sm:$0xf] }
 0x154   : > { %2052 = vmatmul.bf16.gmra.mxu3 %v7554_v1  ;;  %2141 = vmatmul.bf16.gmra.mxu0 %v7037_v13  ;;  %v6183_v2 = vor.u32 %v6527_v58, %v6180_v53  ;;  %v6091_v58 = vor.u32 %v6507_v23, %v6090_v56  ;;  %v5396_v53 = vld [vmem:[%s6875_s10 + $0xf8] sm:$0xf0]  ;;  %v6411_v56 = vld [vmem:[%s11611_s2 + $0x16c] sm:$0xf0] }
 0x155   : > { %2230 = vmatmul.bf16.gmra.mxu1 %v7041_v15 }
 0x156   : > { %2374 = vmatpush.bf16.msra.mxu3 %v6183_v2  ;;  %2637 = vmatpush.bf16.msra.mxu2 %v6091_v58 }
 0x157   : > { %v2004_v33 = vpop.f32.mrf.mxu3 }
 0x158   : > { %v7572_v3 = vadd.f32 %v2004_v33, %v7440_v14  ;;  %v6330_v14 = vld [vmem:[%s6875_s10 + $0xec] sm:$0xf] }
 0x159   : > { %v1808_v41 = vpop.f32.mrf.mxu0 }
 0x15a   : > { %11854 = vst [vmem:[#allocation58_spill] sm:$0xff] %v7572_v3  ;;  %v1897_v52 = vpop.f32.mrf.mxu1  ;;  %v1956_v43 = vpop.f32.mrf.mxu2  ;;  %v5706_v3 = vld [vmem:[%s11611_s2 + $0x158] sm:$0xf] }
 0x15b   : > { %v7574_v28 = vadd.f32 %v1897_v52, %v1808_v41  ;;  %v7590_v41 = vor.u32 %v6330_v14, %v5396_v53  ;;  %v7601_v58 = vadd.f32 %v1956_v43, %v7380_v35  ;;  %v5898_v14 = vld [vmem:[%s11611_s2 + $0x2d8] sm:$0xf]  ;;  %v6459_v53 = vld [vmem:[%s11611_s2 + $0x2ec] sm:$0xf0] }
 0x15d   : > { %11855 = vst [vmem:[#allocation59_spill] sm:$0xff] %v7590_v41 }
 0x15e   : > { %2294 = vmatmul.bf16.gmra.mxu2 %v7098_v51 }
 0x15f   : > { %v2006_v2 = vpop.f32.mrf.mxu3 }
 0x160   : > { %v7588_v33 = vadd.f32 %v2006_v2, %v7450_v63  ;;  %v5707_v63 = vor.u32 %v6411_v56, %v5706_v3  ;;  %v5899_v2 = vor.u32 %v6459_v53, %v5898_v14  ;;  %v5412_v14 = vld [vmem:[%s6875_s10 + $0x118] sm:$0xf0] }
 0x161   : > { %v1811_v11 = vpop.f32.mrf.mxu0 }
 0x162   : > { %v1900_v52 = vpop.f32.mrf.mxu1  ;;  %2459 = vmatpush.bf16.msra.mxu0 %v5707_v63  ;;  %2548 = vmatpush.bf16.msra.mxu1 %v5899_v2  ;;  %v1959_v43 = vpop.f32.mrf.mxu2 }
 0x163   : > { %v7598_v23 = vadd.f32 %v1900_v52, %v1811_v11 }
 0x164   : > { %2057 = vmatmul.bf16.gmra.mxu3 %v7590_v41  ;;  %2146 = vmatmul.bf16.gmra.mxu0 %v7081_v42  ;;  %v7619_v41 = vadd.f32 %v1959_v43, %v7397_v9  ;;  %v6334_v42 = vld [vmem:[%s6875_s10 + $0x10c] sm:$0xf]  ;;  %v6521_v9 = vld [vmem:[%s11611_s2 + $0x4e4] sm:$0xf] }
 0x165   : > { %2235 = vmatmul.bf16.gmra.mxu1 %v7085_v45  ;;  %v7626_v2 = vor.u32 %v6334_v42, %v5412_v14  ;;  %v6156_v42 = vld [vmem:[%s11611_s2 + $0x4f8] sm:$0xf0] }
 0x167   : > { %v2009_v35 = vpop.f32.mrf.mxu3  ;;  %11857 = vst [vmem:[#allocation61_spill] sm:$0xff] %v7626_v2 }
 0x168   : > { %v7614_v3 = vadd.f32 %v2009_v35, %v7468_v10 }
 0x169   : > { %v1813_v11 = vpop.f32.mrf.mxu0 }
 0x16a   : > { %11856 = vst [vmem:[#allocation60_spill] sm:$0xff] %v7614_v3  ;;  %v1902_v52 = vpop.f32.mrf.mxu1  ;;  %v1961_v10 = vpop.f32.mrf.mxu2 }
 0x16b   : > { %v7616_v56 = vadd.f32 %v1902_v52, %v1813_v11  ;;  %v7631_v3 = vadd.f32 %v1961_v10, %v7408_v26  ;;  %v6501_v10 = vld [vmem:[%s11611_s2 + $0x43c] sm:$0xf0] }
 0x16e   : > { %2299 = vmatmul.bf16.gmra.mxu2 %v7131_v27 }
 0x16f   : > { %v2011_v53 = vpop.f32.mrf.mxu3 }
 0x170   : > { %v7624_v63 = vadd.f32 %v2011_v53, %v7484_v8  ;;  %v6066_v53 = vld [vmem:[%s11611_s2 + $0x428] sm:$0xf] }
 0x171   : > { %v2112_v51 = vpop.f32.mrf.mxu0 }
 0x172   : > { %v2201_v45 = vpop.f32.mrf.mxu1  ;;  %v1964_v52 = vpop.f32.mrf.mxu2 }
 0x173   : > { %v7628_v35 = vadd.f32 %v2201_v45, %v2112_v51  ;;  %v6159_v45 = vor.u32 %v6521_v9, %v6156_v42  ;;  %v7649_v14 = vadd.f32 %v1964_v52, %v7419_v57  ;;  %v6067_v9 = vor.u32 %v6501_v10, %v6066_v53  ;;  %v5428_v42 = vld [vmem:[%s6875_s10 + $0x138] sm:$0xf0]  ;;  %v6405_v53 = vld [vmem:[%s11611_s2 + $0x13c] sm:$0xf0] }
 0x174   : > { %2062 = vmatmul.bf16.gmra.mxu3 %v7626_v2  ;;  %2151 = vmatmul.bf16.gmra.mxu0 %v7119_v12 }
 0x175   : > { %2240 = vmatmul.bf16.gmra.mxu1 %v7123_v19  ;;  %2375 = vmatpush.bf16.msra.mxu3 %v6159_v45 }
 0x176   : > { %2638 = vmatpush.bf16.msra.mxu2 %v6067_v9 }
 0x177   : > { %v2023_v51 = vpop.f32.mrf.mxu3 }
 0x178   : > { %v7644_v26 = vadd.f32 %v2023_v51, %v7443_v17  ;;  %v6338_v17 = vld [vmem:[%s6875_s10 + $0x12c] sm:$0xf] }
 0x179   : > { %v2114_v8 = vpop.f32.mrf.mxu0 }
 0x17a   : > { %11858 = vst [vmem:[#allocation62_spill] sm:$0xff] %v7644_v26  ;;  %v2203_v11 = vpop.f32.mrf.mxu1  ;;  %v1966_v52 = vpop.f32.mrf.mxu2  ;;  %v5682_v26 = vld [vmem:[%s11611_s2 + $0x128] sm:$0xf] }
 0x17b   : > { %v7646_v43 = vadd.f32 %v2203_v11, %v2114_v8  ;;  %v7662_v8 = vor.u32 %v6338_v17, %v5428_v42  ;;  %v7673_v9 = vadd.f32 %v1966_v52, %v7445_v54  ;;  %v5874_v17 = vld [vmem:[%s11611_s2 + $0x2a8] sm:$0xf]  ;;  %v6453_v42 = vld [vmem:[%s11611_s2 + $0x2bc] sm:$0xf0] }
 0x17d   : > { %11860 = vst [vmem:[#allocation64_spill] sm:$0xff] %v7662_v8 }
 0x17e   : > { %2304 = vmatmul.bf16.gmra.mxu2 %v7213_v48 }
 0x17f   : > { %v2025_v45 = vpop.f32.mrf.mxu3 }
 0x180   : > { %v7660_v51 = vadd.f32 %v2025_v45, %v7455_v37  ;;  %v5683_v37 = vor.u32 %v6405_v53, %v5682_v26  ;;  %v5875_v45 = vor.u32 %v6453_v42, %v5874_v17  ;;  %v5444_v17 = vld [vmem:[%s6875_s10 + $0x158] sm:$0xf0] }
 0x181   : > { %v2117_v57 = vpop.f32.mrf.mxu0 }
 0x182   : > { %11859 = vst [vmem:[#allocation63_spill] sm:$0xff] %v7660_v51  ;;  %v2206_v11 = vpop.f32.mrf.mxu1  ;;  %2460 = vmatpush.bf16.msra.mxu0 %v5683_v37  ;;  %2549 = vmatpush.bf16.msra.mxu1 %v5875_v45  ;;  %v1969_v52 = vpop.f32.mrf.mxu2 }
 0x183   : > { %v7670_v10 = vadd.f32 %v2206_v11, %v2117_v57  ;;  %v7691_v51 = vadd.f32 %v1969_v52, %v7459_v21 }
 0x184   : > { %2067 = vmatmul.bf16.gmra.mxu3 %v7662_v8  ;;  %2156 = vmatmul.bf16.gmra.mxu0 %v7198_v30  ;;  %v6342_v30 = vld [vmem:[%s6875_s10 + $0x14c] sm:$0xf] }
 0x185   : > { %2245 = vmatmul.bf16.gmra.mxu1 %v7205_v36  ;;  %v7698_v45 = vor.u32 %v6342_v30, %v5444_v17  ;;  %v6515_v30 = vld [vmem:[%s11611_s2 + $0x4b4] sm:$0xf] }
 0x187   : > { %v2028_v54 = vpop.f32.mrf.mxu3 }
 0x188   : > { %v7686_v26 = vadd.f32 %v2028_v54, %v7473_v4 }
 0x189   : > { %v2119_v57 = vpop.f32.mrf.mxu0 }
 0x18a   : > { %11861 = vst [vmem:[#allocation65_spill] sm:$0xff] %v7686_v26  ;;  %v2208_v11 = vpop.f32.mrf.mxu1  ;;  %v1971_v4 = vpop.f32.mrf.mxu2 }
 0x18b   : > { %v7688_v53 = vadd.f32 %v2208_v11, %v2119_v57  ;;  %v7703_v26 = vadd.f32 %v1971_v4, %v7470_v0  ;;  %v6495_v4 = vld [vmem:[%s11611_s2 + $0x40c] sm:$0xf0] }
 0x18e   : > { %2309 = vmatmul.bf16.gmra.mxu2 %v7305_v34 }
 0x18f   : > { %v2030_v42 = vpop.f32.mrf.mxu3 }
 0x190   : > { %v7696_v37 = vadd.f32 %v2030_v42, %v7493_v60  ;;  %v6042_v42 = vld [vmem:[%s11611_s2 + $0x3f8] sm:$0xf] }
 0x191   : > { %v2122_v48 = vpop.f32.mrf.mxu0 }
 0x192   : > { %11862 = vst [vmem:[#allocation66_spill] sm:$0xff] %v7696_v37  ;;  %v2211_v36 = vpop.f32.mrf.mxu1  ;;  %v1974_v11 = vpop.f32.mrf.mxu2  ;;  %v6350_v37 = vld [vmem:[%s6875_s10 + $0x18c] sm:$0xf] }
 0x193   : > { %v7700_v54 = vadd.f32 %v2211_v36, %v2122_v48  ;;  %v6132_v36 = vld [vmem:[%s11611_s2 + $0x4c8] sm:$0xf0]  ;;  %v7721_v17 = vadd.f32 %v1974_v11, %v7490_v62 }
 0x194   : > { %2072 = vmatmul.bf16.gmra.mxu3 %v7698_v45  ;;  %2161 = vmatmul.bf16.gmra.mxu0 %v7292_v29  ;;  %v6135_v48 = vor.u32 %v6515_v30, %v6132_v36  ;;  %v6043_v30 = vor.u32 %v6495_v4, %v6042_v42  ;;  %v5460_v36 = vld [vmem:[%s6875_s10 + $0x178] sm:$0xf0]  ;;  %v6399_v42 = vld [vmem:[%s11611_s2 + $0x10c] sm:$0xf0] }
 0x195   : > { %2250 = vmatmul.bf16.gmra.mxu1 %v7299_v50 }
 0x196   : > { %2376 = vmatpush.bf16.msra.mxu3 %v6135_v48  ;;  %2639 = vmatpush.bf16.msra.mxu2 %v6043_v30 }
 0x197   : > { %v2033_v21 = vpop.f32.mrf.mxu3 }
 0x198   : > { %v7716_v60 = vadd.f32 %v2033_v21, %v7513_v44  ;;  %v6346_v44 = vld [vmem:[%s6875_s10 + $0x16c] sm:$0xf] }
 0x199   : > { %v2124_v0 = vpop.f32.mrf.mxu0 }
 0x19a   : > { %11863 = vst [vmem:[#allocation67_spill] sm:$0xff] %v7716_v60  ;;  %v2213_v57 = vpop.f32.mrf.mxu1  ;;  %v1976_v11 = vpop.f32.mrf.mxu2  ;;  %v5658_v60 = vld [vmem:[%s11611_s2 + $0xf8] sm:$0xf] }
 0x19b   : > { %v7718_v52 = vadd.f32 %v2213_v57, %v2124_v0  ;;  %v7734_v0 = vor.u32 %v6346_v44, %v5460_v36  ;;  %v7745_v30 = vadd.f32 %v1976_v11, %v7510_v22  ;;  %v5850_v44 = vld [vmem:[%s11611_s2 + $0x278] sm:$0xf]  ;;  %v6447_v36 = vld [vmem:[%s11611_s2 + $0x28c] sm:$0xf0] }
 0x19d   : > { %11865 = vst [vmem:[#allocation69_spill] sm:$0xff] %v7734_v0 }
 0x19e   : > { %2314 = vmatmul.bf16.gmra.mxu2 %v7339_v6 }
 0x19f   : > { %v2035_v48 = vpop.f32.mrf.mxu3 }
 0x1a0   : > { %v7732_v21 = vadd.f32 %v2035_v48, %v7527_v25  ;;  %v5659_v25 = vor.u32 %v6399_v42, %v5658_v60  ;;  %v5851_v48 = vor.u32 %v6447_v36, %v5850_v44  ;;  %v5476_v44 = vld [vmem:[%s6875_s10 + $0x198] sm:$0xf0] }
 0x1a1   : > { %v2127_v62 = vpop.f32.mrf.mxu0 }
 0x1a2   : > { %11864 = vst [vmem:[#allocation68_spill] sm:$0xff] %v7732_v21  ;;  %v2216_v57 = vpop.f32.mrf.mxu1  ;;  %2461 = vmatpush.bf16.msra.mxu0 %v5659_v25  ;;  %2550 = vmatpush.bf16.msra.mxu1 %v5851_v48  ;;  %v1979_v11 = vpop.f32.mrf.mxu2  ;;  %v7770_v48 = vor.u32 %v6350_v37, %v5476_v44 }
 0x1a3   : > { %v7742_v4 = vadd.f32 %v2216_v57, %v2127_v62  ;;  %v7763_v21 = vadd.f32 %v1979_v11, %v7524_v49  ;;  %v6509_v49 = vld [vmem:[%s11611_s2 + $0x484] sm:$0xf] }
 0x1a4   : > { %2077 = vmatmul.bf16.gmra.mxu3 %v7734_v0  ;;  %2166 = vmatmul.bf16.gmra.mxu0 %v7329_v59  ;;  %11868 = vst [vmem:[#allocation72_spill] sm:$0xff] %v7770_v48 }
 0x1a5   : > { %2255 = vmatmul.bf16.gmra.mxu1 %v7333_v5 }
 0x1a7   : > { %v2038_v22 = vpop.f32.mrf.mxu3 }
 0x1a8   : > { %v7758_v60 = vadd.f32 %v2038_v22, %v7547_v24 }
 0x1a9   : > { %v2129_v62 = vpop.f32.mrf.mxu0 }
 0x1aa   : > { %11866 = vst [vmem:[#allocation70_spill] sm:$0xff] %v7758_v60  ;;  %v2218_v57 = vpop.f32.mrf.mxu1  ;;  %v1981_v24 = vpop.f32.mrf.mxu2 }
 0x1ab   : > { %v7760_v42 = vadd.f32 %v2218_v57, %v2129_v62  ;;  %v7775_v60 = vadd.f32 %v1981_v24, %v7544_v61  ;;  %v6489_v24 = vld [vmem:[%s11611_s2 + $0x3dc] sm:$0xf0] }
 0x1ae   : > { %2319 = vmatmul.bf16.gmra.mxu2 %v7365_v20 }
 0x1af   : > { %v2040_v36 = vpop.f32.mrf.mxu3 }
 0x1b0   : > { %v7768_v25 = vadd.f32 %v2040_v36, %v7559_v38  ;;  %v6018_v36 = vld [vmem:[%s11611_s2 + $0x3c8] sm:$0xf] }
 0x1b1   : > { %v2132_v6 = vpop.f32.mrf.mxu0 }
 0x1b2   : > { %11867 = vst [vmem:[#allocation71_spill] sm:$0xff] %v7768_v25  ;;  %v2221_v5 = vpop.f32.mrf.mxu1  ;;  %v1984_v57 = vpop.f32.mrf.mxu2 }
 0x1b3   : > { %v7772_v22 = vadd.f32 %v2221_v5, %v2132_v6  ;;  %v6108_v5 = vld [vmem:[%s11611_s2 + $0x498] sm:$0xf0]  ;;  %v7793_v44 = vadd.f32 %v1984_v57, %v7556_v7  ;;  %v6393_v7 = vld [vmem:[%s11611_s2 + $0xdc] sm:$0xf0] }
 0x1b4   : > { %2082 = vmatmul.bf16.gmra.mxu3 %v7770_v48  ;;  %2171 = vmatmul.bf16.gmra.mxu0 %v6897_v55  ;;  %v6111_v6 = vor.u32 %v6509_v49, %v6108_v5  ;;  %v6019_v49 = vor.u32 %v6489_v24, %v6018_v36  ;;  %v5492_v5 = vld [vmem:[%s6875_s10 + $0x1b8] sm:$0xf0]  ;;  %v6441_v24 = vld [vmem:[%s11611_s2 + $0x25c] sm:$0xf0] }
 0x1b5   : > { %2260 = vmatmul.bf16.gmra.mxu1 %v6985_v39 }
 0x1b6   : > { %2377 = vmatpush.bf16.msra.mxu3 %v6111_v6  ;;  %2640 = vmatpush.bf16.msra.mxu2 %v6019_v49 }
 0x1b7   : > { %v2043_v38 = vpop.f32.mrf.mxu3 }
 0x1b8   : > { %v7788_v61 = vadd.f32 %v2043_v38, %v7577_v32  ;;  %v6354_v32 = vld [vmem:[%s6875_s10 + $0x1ac] sm:$0xf]  ;;  %v5634_v38 = vld [vmem:[%s11611_s2 + $0xc8] sm:$0xf] }
 0x1b9   : > { %v2134_v37 = vpop.f32.mrf.mxu0  ;;  %v7815_v57 = vor.u32 %v6354_v32, %v5492_v5  ;;  %v5635_v36 = vor.u32 %v6393_v7, %v5634_v38  ;;  %v6387_v32 = vld [vmem:[%s11611_s2 + $0xac] sm:$0xf0]  ;;  %v5802_v5 = vld [vmem:[%s11611_s2 + $0x218] sm:$0xf] }
 0x1ba   : > { %11869 = vst [vmem:[#allocation73_spill] sm:$0xff] %v7788_v61  ;;  %v2223_v62 = vpop.f32.mrf.mxu1  ;;  %v1986_v20 = vpop.f32.mrf.mxu2  ;;  %v11874_v7 = vld [vmem:[#allocation47_spill] sm:$0xff] }
 0x1bb   : > { %v7790_v11 = vadd.f32 %v2223_v62, %v2134_v37  ;;  %v5826_v37 = vld [vmem:[%s11611_s2 + $0x248] sm:$0xf]  ;;  %11871 = vst [vmem:[#allocation75_spill] sm:$0xff] %v7815_v57  ;;  %2462 = vmatpush.bf16.msra.mxu0 %v5635_v36  ;;  %v7823_v55 = vadd.f32 %v1986_v20, %v7574_v28  ;;  %v6435_v20 = vld [vmem:[%s11611_s2 + $0x22c] sm:$0xf0]  ;;  %v11873_v28 = vld [vmem:[#allocation21_spill] sm:$0xff] }
 0x1bc   : > { %v5827_v61 = vor.u32 %v6441_v24, %v5826_v37  ;;  %v5586_v37 = vld [vmem:[%s11611_s2 + $0x68] sm:$0xf]  ;;  %v6381_v36 = vld [vmem:[%s11611_s2 + $0x7c] sm:$0xf0] }
 0x1bd   : > { %v5778_v24 = vld [vmem:[%s11611_s2 + $0x1e8] sm:$0xf] }
 0x1be   : > { %2551 = vmatpush.bf16.msra.mxu1 %v5827_v61  ;;  %v5803_v61 = vor.u32 %v6435_v20, %v5802_v5  ;;  %2324 = vmatmul.bf16.gmra.mxu2 %v11874_v7 }
 0x1bf   : > { %v2045_v6 = vpop.f32.mrf.mxu3 }
 0x1c0   : > { %v7813_v62 = vadd.f32 %v2045_v6, %v7601_v58  ;;  %v5610_v58 = vld [vmem:[%s11611_s2 + $0x98] sm:$0xf] }
 0x1c1   : > { %v2137_v49 = vpop.f32.mrf.mxu0  ;;  %v5611_v6 = vor.u32 %v6387_v32, %v5610_v58  ;;  %v5587_v58 = vor.u32 %v6381_v36, %v5586_v37  ;;  %v6429_v32 = vld [vmem:[%s11611_s2 + $0x1fc] sm:$0xf0]  ;;  %v5754_v37 = vld [vmem:[%s11611_s2 + $0x1b8] sm:$0xf] }
 0x1c2   : > { %11870 = vst [vmem:[#allocation74_spill] sm:$0xff] %v7813_v62  ;;  %v2226_v25 = vpop.f32.mrf.mxu1  ;;  %2552 = vmatpush.bf16.msra.mxu1 %v5803_v61  ;;  %v1989_v61 = vpop.f32.mrf.mxu2 }
 0x1c3   : > { %v7820_v39 = vadd.f32 %v2226_v25, %v2137_v49  ;;  %v11872_v25 = vld [vmem:[#allocation9_spill] sm:$0xff]  ;;  %2463 = vmatpush.bf16.msra.mxu0 %v5611_v6  ;;  %v5779_v6 = vor.u32 %v6429_v32, %v5778_v24  ;;  %v7859_v7 = vadd.f32 %v1989_v61, %v7598_v23  ;;  %v6423_v24 = vld [vmem:[%s11611_s2 + $0x1cc] sm:$0xf0]  ;;  %v6358_v23 = vld [vmem:[%s6875_s10 + $0x1cc] sm:$0xf] }
 0x1c4   : > { %2087 = vmatmul.bf16.gmra.mxu3 %v7815_v57  ;;  %2176 = vmatmul.bf16.gmra.mxu0 %v11872_v25  ;;  %v5755_v32 = vor.u32 %v6423_v24, %v5754_v37  ;;  %v5730_v61 = vld [vmem:[%s11611_s2 + $0x188] sm:$0xf] }
 0x1c5   : > { %2265 = vmatmul.bf16.gmra.mxu1 %v11873_v28 }
 0x1c6   : > { %2553 = vmatpush.bf16.msra.mxu1 %v5779_v6  ;;  %v5538_v6 = vld [vmem:[%s11611_s2 + $0x8] sm:$0xf] }
 0x1c7   : > { %v2048_v38 = vpop.f32.mrf.mxu3  ;;  %2464 = vmatpush.bf16.msra.mxu0 %v5587_v58  ;;  %v5508_v58 = vld [vmem:[%s6875_s10 + $0x1d8] sm:$0xf0] }
 0x1c8   : > { %v7851_v49 = vadd.f32 %v2048_v38, %v7619_v41  ;;  %v5562_v41 = vld [vmem:[%s11611_s2 + $0x38] sm:$0xf]  ;;  %v6375_v38 = vld [vmem:[%s11611_s2 + $0x4c] sm:$0xf0] }
 0x1c9   : > { %v2139_v5 = vpop.f32.mrf.mxu0  ;;  %v5563_v36 = vor.u32 %v6375_v38, %v5562_v41  ;;  %v7887_v38 = vor.u32 %v6358_v23, %v5508_v58  ;;  %v11879_v23 = vld [vmem:[#allocation24_spill] sm:$0xff] }
 0x1ca   : > { %11875 = vst [vmem:[#allocation76_spill] sm:$0xff] %v7851_v49  ;;  %v2228_v20 = vpop.f32.mrf.mxu1  ;;  %2554 = vmatpush.bf16.msra.mxu1 %v5755_v32  ;;  %v1991_v28 = vpop.f32.mrf.mxu2  ;;  %v6282_v58 = vld [vmem:[%s11611_s2 + $0x5d8] sm:$0xf] }
 0x1cb   : > { %v7856_v62 = vadd.f32 %v2228_v20, %v2139_v5  ;;  %2465 = vmatpush.bf16.msra.mxu0 %v5563_v36  ;;  %v6369_v20 = vld [vmem:[%s11611_s2 + $0x1c] sm:$0xf0]  ;;  %11877 = vst [vmem:[#allocation78_spill] sm:$0xff] %v7887_v38  ;;  %v7895_v57 = vadd.f32 %v1991_v28, %v7616_v56 }
 0x1cc   : > { %v5539_v37 = vor.u32 %v6369_v20, %v5538_v6  ;;  %v6417_v36 = vld [vmem:[%s11611_s2 + $0x19c] sm:$0xf0] }
 0x1cd   : > { %v5731_v32 = vor.u32 %v6417_v36, %v5730_v61  ;;  %v11880_v28 = vld [vmem:[#allocation49_spill] sm:$0xff] }
 0x1ce   : > { %2329 = vmatmul.bf16.gmra.mxu2 %v11880_v28 }
 0x1cf   : > { %v2050_v5 = vpop.f32.mrf.mxu3  ;;  %2466 = vmatpush.bf16.msra.mxu0 %v5539_v37  ;;  %2555 = vmatpush.bf16.msra.mxu1 %v5731_v32  ;;  %v5994_v32 = vld [vmem:[%s11611_s2 + $0x398] sm:$0xf] }
 0x1d0   : > { %v7885_v41 = vadd.f32 %v2050_v5, %v7631_v3  ;;  %v11878_v3 = vld [vmem:[#allocation12_spill] sm:$0xff] }
 0x1d1   : > { %v2142_v24 = vpop.f32.mrf.mxu0 }
 0x1d2   : > { %11876 = vst [vmem:[#allocation77_spill] sm:$0xff] %v7885_v41  ;;  %v2231_v49 = vpop.f32.mrf.mxu1  ;;  %v2290_v37 = vpop.f32.mrf.mxu2 }
 0x1d3   : > { %v7892_v25 = vadd.f32 %v2231_v49, %v2142_v24  ;;  %v6555_v49 = vld [vmem:[%s11611_s2 + $0x5ec] sm:$0xf0]  ;;  %v7913_v24 = vadd.f32 %v2290_v37, %v7628_v35 }
 0x1d4   : > { %2092 = vmatmul.bf16.gmra.mxu3 %v7887_v38  ;;  %2181 = vmatmul.bf16.gmra.mxu0 %v11878_v3  ;;  %v6283_v5 = vor.u32 %v6555_v49, %v6282_v58  ;;  %v6483_v58 = vld [vmem:[%s11611_s2 + $0x3ac] sm:$0xf0] }
 0x1d5   : > { %2270 = vmatmul.bf16.gmra.mxu1 %v11879_v23  ;;  %v5995_v49 = vor.u32 %v6483_v58, %v5994_v32  ;;  %v11884_v32 = vld [vmem:[#allocation15_spill] sm:$0xff]  ;;  %v11885_v58 = vld [vmem:[#allocation28_spill] sm:$0xff] }
 0x1d6   : > { %2726 = vmatpush.bf16.msrb.mxu3 %v6283_v5  ;;  %v11886_v23 = vld [vmem:[#allocation51_spill] sm:$0xff] }
 0x1d7   : > { %v2053_v56 = vpop.f32.mrf.mxu3  ;;  %2641 = vmatpush.bf16.msra.mxu2 %v5995_v49 }
 0x1d8   : > { %v7908_v6 = vadd.f32 %v2053_v56, %v7649_v14  ;;  %v6362_v14 = vld [vmem:[%s6875_s10 + $0x1ec] sm:$0xf]  ;;  %v5524_v56 = vld [vmem:[%s6875_s10 + $0x1f8] sm:$0xf0] }
 0x1d9   : > { %v2144_v20 = vpop.f32.mrf.mxu0 }
 0x1da   : > { %11881 = vst [vmem:[#allocation79_spill] sm:$0xff] %v7908_v6  ;;  %v2233_v61 = vpop.f32.mrf.mxu1  ;;  %v2292_v37 = vpop.f32.mrf.mxu2 }
 0x1db   : > { %v7910_v36 = vadd.f32 %v2233_v61, %v2144_v20  ;;  %v7926_v20 = vor.u32 %v6362_v14, %v5524_v56  ;;  %v7931_v28 = vadd.f32 %v2292_v37, %v7646_v43 }
 0x1dd   : > { %11883 = vst [vmem:[#allocation81_spill] sm:$0xff] %v7926_v20 }
 0x1de   : > { %2334 = vmatmul.bf16.gmra.mxu2 %v11886_v23 }
 0x1df   : > { %v2055_v5 = vpop.f32.mrf.mxu3 }
 0x1e0   : > { %v7924_v6 = vadd.f32 %v2055_v5, %v7673_v9 }
 0x1e1   : > { %v2147_v35 = vpop.f32.mrf.mxu0 }
 0x1e2   : > { %11882 = vst [vmem:[#allocation80_spill] sm:$0xff] %v7924_v6  ;;  %v2236_v61 = vpop.f32.mrf.mxu1  ;;  %v2295_v5 = vpop.f32.mrf.mxu2 }
 0x1e3   : > { %v7928_v41 = vadd.f32 %v2236_v61, %v2147_v35  ;;  %v7943_v43 = vadd.f32 %v2295_v5, %v7670_v10  ;;  %v6258_v10 = vld [vmem:[%s11611_s2 + $0x5a8] sm:$0xf] }
 0x1e4   : > { %2097 = vmatmul.bf16.gmra.mxu3 %v7926_v20  ;;  %2186 = vmatmul.bf16.gmra.mxu0 %v11884_v32 }
 0x1e5   : > { %2275 = vmatmul.bf16.gmra.mxu1 %v11885_v58 }
 0x1e7   : > { %v2058_v49 = vpop.f32.mrf.mxu3 }
 0x1e8   : > { %v7938_v9 = vadd.f32 %v2058_v49, %v7691_v51  ;;  %v11889_v49 = vld [vmem:[#allocation44_spill] sm:$0xff] }
 0x1e9   : > { %v2149_v14 = vpop.f32.mrf.mxu0 }
 0x1ea   : > { %11887 = vst [vmem:[#allocation82_spill] sm:$0xff] %v7938_v9  ;;  %v2238_v56 = vpop.f32.mrf.mxu1  ;;  %v2297_v32 = vpop.f32.mrf.mxu2  ;;  %v11890_v9 = vld [vmem:[#allocation5_spill] sm:$0xff] }
 0x1eb   : > { %v7940_v35 = vadd.f32 %v2238_v56, %v2149_v14  ;;  %v7951_v51 = vadd.f32 %v2297_v32, %v7688_v53  ;;  %v11891_v14 = vld [vmem:[#allocation7_spill] sm:$0xff] }
 0x1ee   : > { %2339 = vmatmul.bf16.gmra.mxu2 %v7495_v46  ;;  %v11895_v46 = vld [vmem:[#allocation8_spill] sm:$0xff] }
 0x1ef   : > { %v2060_v61 = vpop.f32.mrf.mxu3 }
 0x1f0   : > { %v7946_v37 = vadd.f32 %v2060_v61, %v7703_v26  ;;  %v6549_v26 = vld [vmem:[%s11611_s2 + $0x5bc] sm:$0xf0] }
 0x1f1   : > { %v2152_v6 = vpop.f32.mrf.mxu0  ;;  %v6259_v56 = vor.u32 %v6549_v26, %v6258_v10  ;;  %v6477_v10 = vld [vmem:[%s11611_s2 + $0x37c] sm:$0xf0] }
 0x1f2   : > { %11888 = vst [vmem:[#allocation83_spill] sm:$0xff] %v7946_v37  ;;  %v2241_v58 = vpop.f32.mrf.mxu1  ;;  %v2300_v5 = vpop.f32.mrf.mxu2 }
 0x1f3   : > { %v7948_v20 = vadd.f32 %v2241_v58, %v2152_v6  ;;  %2727 = vmatpush.bf16.msrb.mxu3 %v6259_v56  ;;  %v7969_v37 = vadd.f32 %v2300_v5, %v7700_v54  ;;  %v11894_v5 = vld [vmem:[#allocation46_spill] sm:$0xff] }
 0x1f4   : > { %2378 = vmatmul.bf16.vlgmr.msra.gmra.mxu3 %v11889_v49  ;;  %2467 = vmatmul.bf16.vlgmr.msra.gmra.mxu0 %v11890_v9  ;;  %v11896_v9 = vld [vmem:[#allocation10_spill] sm:$0xff] }
 0x1f5   : > { %2556 = vmatmul.bf16.vlgmr.msra.gmra.mxu1 %v11891_v14  ;;  %v5970_v14 = vld [vmem:[%s11611_s2 + $0x368] sm:$0xf] }
 0x1f6   : > { %v5971_v26 = vor.u32 %v6477_v10, %v5970_v14 }
 0x1f7   : > { %v2063_v6 = vpop.f32.mrf.mxu3 }
 0x1f8   : > { %v7964_v53 = vadd.f32 %v2063_v6, %v7721_v17  ;;  %2642 = vmatpush.bf16.msra.mxu2 %v5971_v26 }
 0x1f9   : > { %v2154_v32 = vpop.f32.mrf.mxu0 }
 0x1fa   : > { %11892 = vst [vmem:[#allocation84_spill] sm:$0xff] %v7964_v53  ;;  %v2243_v58 = vpop.f32.mrf.mxu1 }
 0x1fb   : > { %v7966_v61 = vadd.f32 %v2243_v58, %v2154_v32  ;;  %v2302_v58 = vpop.f32.mrf.mxu2 }
 0x1fc   : > { %v7983_v54 = vadd.f32 %v2302_v58, %v7718_v52 }
 0x1fe   : > { %2344 = vmatmul.bf16.gmra.mxu2 %v7529_v31 }
 0x1ff   : > { %v2065_v17 = vpop.f32.mrf.mxu3 }
 0x200   : > { %v7978_v56 = vadd.f32 %v2065_v17, %v7745_v30 }
 0x201   : > { %v2157_v6 = vpop.f32.mrf.mxu0 }
 0x202   : > { %11893 = vst [vmem:[#allocation85_spill] sm:$0xff] %v7978_v56  ;;  %v2246_v32 = vpop.f32.mrf.mxu1 }
 0x203   : > { %v7980_v53 = vadd.f32 %v2246_v32, %v2157_v6  ;;  %v2305_v17 = vpop.f32.mrf.mxu2 }
 0x204   : > { %2383 = vmatmul.bf16.gmra.mxu3 %v11894_v5  ;;  %2472 = vmatmul.bf16.gmra.mxu0 %v11895_v46  ;;  %v7995_v52 = vadd.f32 %v2305_v17, %v7742_v4  ;;  %v6234_v4 = vld [vmem:[%s11611_s2 + $0x578] sm:$0xf] }
 0x205   : > { %2561 = vmatmul.bf16.gmra.mxu1 %v11896_v9 }
 0x207   : > { %v2068_v14 = vpop.f32.mrf.mxu3 }
 0x208   : > { %v7990_v30 = vadd.f32 %v2068_v14, %v7763_v21  ;;  %v11899_v14 = vld [vmem:[#allocation48_spill] sm:$0xff] }
 0x209   : > { %v2159_v10 = vpop.f32.mrf.mxu0 }
 0x20a   : > { %11897 = vst [vmem:[#allocation86_spill] sm:$0xff] %v7990_v30  ;;  %v2248_v26 = vpop.f32.mrf.mxu1  ;;  %v11900_v30 = vld [vmem:[#allocation11_spill] sm:$0xff] }
 0x20b   : > { %v7992_v6 = vadd.f32 %v2248_v26, %v2159_v10  ;;  %v2307_v46 = vpop.f32.mrf.mxu2  ;;  %v11901_v10 = vld [vmem:[#allocation13_spill] sm:$0xff] }
 0x20c   : > { %v8003_v21 = vadd.f32 %v2307_v46, %v7760_v42 }
 0x20f   : > { %v2070_v32 = vpop.f32.mrf.mxu3 }
 0x210   : > { %v7998_v58 = vadd.f32 %v2070_v32, %v7775_v60  ;;  %v6543_v60 = vld [vmem:[%s11611_s2 + $0x58c] sm:$0xf0] }
 0x211   : > { %v2162_v56 = vpop.f32.mrf.mxu0  ;;  %v6235_v26 = vor.u32 %v6543_v60, %v6234_v4  ;;  %v6471_v4 = vld [vmem:[%s11611_s2 + $0x34c] sm:$0xf0] }
 0x212   : > { %11898 = vst [vmem:[#allocation87_spill] sm:$0xff] %v7998_v58  ;;  %v2251_v9 = vpop.f32.mrf.mxu1 }
 0x213   : > { %v8000_v5 = vadd.f32 %v2251_v9, %v2162_v56  ;;  %v11902_v56 = vld [vmem:[#allocation32_spill] sm:$0xff]  ;;  %2728 = vmatpush.bf16.msrb.mxu3 %v6235_v26  ;;  %v2310_v32 = vpop.f32.mrf.mxu2 }
 0x214   : > { %2388 = vmatmul.bf16.gmra.mxu3 %v11899_v14  ;;  %2477 = vmatmul.bf16.gmra.mxu0 %v11900_v30  ;;  %v5946_v30 = vld [vmem:[%s11611_s2 + $0x338] sm:$0xf] }
 0x215   : > { %2566 = vmatmul.bf16.gmra.mxu1 %v11901_v10  ;;  %2349 = vmatmul.bf16.gmra.mxu2 %v11902_v56  ;;  %v8021_v10 = vadd.f32 %v2310_v32, %v7772_v22  ;;  %v5947_v60 = vor.u32 %v6471_v4, %v5946_v30  ;;  %v11905_v32 = vld [vmem:[#allocation50_spill] sm:$0xff]  ;;  %v11907_v14 = vld [vmem:[#allocation16_spill] sm:$0xff] }
 0x216   : > { %v11906_v56 = vld [vmem:[#allocation14_spill] sm:$0xff]  ;;  %v11908_v4 = vld [vmem:[#allocation36_spill] sm:$0xff] }
 0x217   : > { %v2073_v9 = vpop.f32.mrf.mxu3  ;;  %2643 = vmatpush.bf16.msra.mxu2 %v5947_v60 }
 0x218   : > { %v8016_v46 = vadd.f32 %v2073_v9, %v7793_v44 }
 0x219   : > { %v2164_v42 = vpop.f32.mrf.mxu0 }
 0x21a   : > { %11903 = vst [vmem:[#allocation88_spill] sm:$0xff] %v8016_v46  ;;  %v2253_v17 = vpop.f32.mrf.mxu1 }
 0x21b   : > { %v8018_v58 = vadd.f32 %v2253_v17, %v2164_v42  ;;  %v2312_v17 = vpop.f32.mrf.mxu2 }
 0x21c   : > { %v8035_v22 = vadd.f32 %v2312_v17, %v7790_v11 }
 0x21f   : > { %v2075_v44 = vpop.f32.mrf.mxu3 }
 0x220   : > { %v8030_v26 = vadd.f32 %v2075_v44, %v7823_v55 }
 0x221   : > { %v2167_v9 = vpop.f32.mrf.mxu0 }
 0x222   : > { %11904 = vst [vmem:[#allocation89_spill] sm:$0xff] %v8030_v26  ;;  %v2256_v42 = vpop.f32.mrf.mxu1 }
 0x223   : > { %v8032_v46 = vadd.f32 %v2256_v42, %v2167_v9  ;;  %v2315_v26 = vpop.f32.mrf.mxu2 }
 0x224   : > { %2393 = vmatmul.bf16.gmra.mxu3 %v11905_v32  ;;  %2482 = vmatmul.bf16.gmra.mxu0 %v11906_v56  ;;  %v8047_v11 = vadd.f32 %v2315_v26, %v7820_v39  ;;  %v6210_v39 = vld [vmem:[%s11611_s2 + $0x548] sm:$0xf] }
 0x225   : > { %2571 = vmatmul.bf16.gmra.mxu1 %v11907_v14  ;;  %2354 = vmatmul.bf16.gmra.mxu2 %v11908_v4 }
 0x227   : > { %v2078_v30 = vpop.f32.mrf.mxu3 }
 0x228   : > { %v8042_v55 = vadd.f32 %v2078_v30, %v7859_v7  ;;  %v11911_v30 = vld [vmem:[#allocation52_spill] sm:$0xff] }
 0x229   : > { %v2169_v60 = vpop.f32.mrf.mxu0 }
 0x22a   : > { %11909 = vst [vmem:[#allocation90_spill] sm:$0xff] %v8042_v55  ;;  %v2258_v44 = vpop.f32.mrf.mxu1  ;;  %v11912_v55 = vld [vmem:[#allocation17_spill] sm:$0xff] }
 0x22b   : > { %v8044_v9 = vadd.f32 %v2258_v44, %v2169_v60  ;;  %v2317_v32 = vpop.f32.mrf.mxu2  ;;  %v11913_v60 = vld [vmem:[#allocation19_spill] sm:$0xff] }
 0x22c   : > { %v8055_v7 = vadd.f32 %v2317_v32, %v7856_v62  ;;  %v11915_v62 = vld [vmem:[#allocation54_spill] sm:$0xff] }
 0x22f   : > { %v2080_v42 = vpop.f32.mrf.mxu3 }
 0x230   : > { %v8050_v17 = vadd.f32 %v2080_v42, %v7895_v57  ;;  %v6537_v57 = vld [vmem:[%s11611_s2 + $0x55c] sm:$0xf0] }
 0x231   : > { %v2172_v56 = vpop.f32.mrf.mxu0  ;;  %v6211_v26 = vor.u32 %v6537_v57, %v6210_v39  ;;  %v6465_v39 = vld [vmem:[%s11611_s2 + $0x31c] sm:$0xf0] }
 0x232   : > { %11910 = vst [vmem:[#allocation91_spill] sm:$0xff] %v8050_v17  ;;  %v2261_v14 = vpop.f32.mrf.mxu1 }
 0x233   : > { %v8052_v31 = vadd.f32 %v2261_v14, %v2172_v56  ;;  %v11914_v56 = vld [vmem:[#allocation39_spill] sm:$0xff]  ;;  %2729 = vmatpush.bf16.msrb.mxu3 %v6211_v26  ;;  %v2320_v17 = vpop.f32.mrf.mxu2 }
 0x234   : > { %2398 = vmatmul.bf16.gmra.mxu3 %v11911_v30  ;;  %2487 = vmatmul.bf16.gmra.mxu0 %v11912_v55  ;;  %v8073_v55 = vadd.f32 %v2320_v17, %v7892_v25  ;;  %v5922_v30 = vld [vmem:[%s11611_s2 + $0x308] sm:$0xf]  ;;  %v11918_v17 = vld [vmem:[#allocation20_spill] sm:$0xff] }
 0x235   : > { %2576 = vmatmul.bf16.gmra.mxu1 %v11913_v60  ;;  %2359 = vmatmul.bf16.gmra.mxu2 %v11914_v56  ;;  %v5923_v57 = vor.u32 %v6465_v39, %v5922_v30  ;;  %v11919_v56 = vld [vmem:[#allocation22_spill] sm:$0xff]  ;;  %v11920_v39 = vld [vmem:[#allocation41_spill] sm:$0xff] }
 0x237   : > { %v2083_v14 = vpop.f32.mrf.mxu3  ;;  %2644 = vmatpush.bf16.msra.mxu2 %v5923_v57  ;;  %v11921_v57 = vld [vmem:[#allocation57_spill] sm:$0xff] }
 0x238   : > { %v8068_v32 = vadd.f32 %v2083_v14, %v11915_v62 }
 0x239   : > { %v2174_v44 = vpop.f32.mrf.mxu0 }
 0x23a   : > { %11916 = vst [vmem:[#allocation54_spill] sm:$0xff] %v8068_v32  ;;  %v2263_v42 = vpop.f32.mrf.mxu1 }
 0x23b   : > { %v8070_v60 = vadd.f32 %v2263_v42, %v2174_v44  ;;  %v2322_v42 = vpop.f32.mrf.mxu2 }
 0x23c   : > { %v8087_v25 = vadd.f32 %v2322_v42, %v7910_v36 }
 0x23f   : > { %v2085_v14 = vpop.f32.mrf.mxu3 }
 0x240   : > { %v8082_v26 = vadd.f32 %v2085_v14, %v7518_v47 }
 0x241   : > { %v2177_v62 = vpop.f32.mrf.mxu0 }
 0x242   : > { %11917 = vst [vmem:[#allocation92_spill] sm:$0xff] %v8082_v26  ;;  %v2266_v44 = vpop.f32.mrf.mxu1 }
 0x243   : > { %v8084_v32 = vadd.f32 %v2266_v44, %v2177_v62  ;;  %v2325_v4 = vpop.f32.mrf.mxu2 }
 0x244   : > { %2403 = vmatmul.bf16.gmra.mxu3 %v7520_v40  ;;  %2492 = vmatmul.bf16.gmra.mxu0 %v11918_v17  ;;  %v8099_v36 = vadd.f32 %v2325_v4, %v7928_v41  ;;  %v6186_v41 = vld [vmem:[%s11611_s2 + $0x518] sm:$0xf] }
 0x245   : > { %2581 = vmatmul.bf16.gmra.mxu1 %v11919_v56  ;;  %2364 = vmatmul.bf16.gmra.mxu2 %v11920_v39 }
 0x247   : > { %v2088_v30 = vpop.f32.mrf.mxu3 }
 0x248   : > { %v8094_v47 = vadd.f32 %v2088_v30, %v11921_v57 }
 0x249   : > { %v2179_v14 = vpop.f32.mrf.mxu0 }
 0x24a   : > { %11922 = vst [vmem:[#allocation57_spill] sm:$0xff] %v8094_v47  ;;  %v2268_v26 = vpop.f32.mrf.mxu1 }
 0x24b   : > { %v8096_v62 = vadd.f32 %v2268_v26, %v2179_v14  ;;  %v2327_v40 = vpop.f32.mrf.mxu2 }
 0x24c   : > { %v8107_v30 = vadd.f32 %v2327_v40, %v7940_v35  ;;  %v11924_v40 = vld [vmem:[#allocation58_spill] sm:$0xff] }
 0x24f   : > { %v2090_v44 = vpop.f32.mrf.mxu3 }
 0x250   : > { %v8102_v42 = vadd.f32 %v2090_v44, %v7552_v16  ;;  %v6531_v16 = vld [vmem:[%s11611_s2 + $0x52c] sm:$0xf0] }
 0x251   : > { %v2182_v17 = vpop.f32.mrf.mxu0  ;;  %v6187_v4 = vor.u32 %v6531_v16, %v6186_v41  ;;  %v6092_v41 = vld [vmem:[%s11611_s2 + $0x470] sm:$0xf0] }
 0x252   : > { %11923 = vst [vmem:[#allocation93_spill] sm:$0xff] %v8102_v42  ;;  %v2271_v56 = vpop.f32.mrf.mxu1  ;;  %v6504_v42 = vld [vmem:[%s11611_s2 + $0x45c] sm:$0xf] }
 0x253   : > { %v8104_v49 = vadd.f32 %v2271_v56, %v2182_v17  ;;  %2730 = vmatpush.bf16.msrb.mxu3 %v6187_v4  ;;  %v2330_v57 = vpop.f32.mrf.mxu2  ;;  %v6095_v16 = vor.u32 %v6504_v42, %v6092_v41 }
 0x254   : > { %2408 = vmatmul.bf16.gmra.mxu3 %v7554_v1  ;;  %2497 = vmatmul.bf16.gmra.mxu0 %v7037_v13  ;;  %v8125_v44 = vadd.f32 %v2330_v57, %v7948_v20  ;;  %v6408_v20 = vld [vmem:[%s11611_s2 + $0x15c] sm:$0xf]  ;;  %v5708_v57 = vld [vmem:[%s11611_s2 + $0x170] sm:$0xf0] }
 0x255   : > { %2586 = vmatmul.bf16.gmra.mxu1 %v7041_v15  ;;  %2645 = vmatmul.bf16.vlgmr.msra.gmra.mxu2 %v7047_v18  ;;  %v5711_v41 = vor.u32 %v6408_v20, %v5708_v57  ;;  %v11929_v18 = vld [vmem:[#allocation29_spill] sm:$0xff] }
 0x256   : > { %2993 = vmatpush.bf16.msrb.mxu2 %v6095_v16  ;;  %v5900_v16 = vld [vmem:[%s11611_s2 + $0x2f0] sm:$0xf0] }
 0x257   : > { %v2093_v56 = vpop.f32.mrf.mxu3  ;;  %2815 = vmatpush.bf16.msrb.mxu0 %v5711_v41 }
 0x258   : > { %v8120_v35 = vadd.f32 %v2093_v56, %v11924_v40 }
 0x259   : > { %v2184_v26 = vpop.f32.mrf.mxu0 }
 0x25a   : > { %11925 = vst [vmem:[#allocation58_spill] sm:$0xff] %v8120_v35  ;;  %v2273_v17 = vpop.f32.mrf.mxu1 }
 0x25b   : > { %v8122_v14 = vadd.f32 %v2273_v17, %v2184_v26  ;;  %v2332_v17 = vpop.f32.mrf.mxu2 }
 0x25c   : > { %v8145_v42 = vadd.f32 %v2332_v17, %v7966_v61 }
 0x25f   : > { %v2095_v56 = vpop.f32.mrf.mxu3 }
 0x260   : > { %v8134_v4 = vadd.f32 %v2095_v56, %v7588_v33  ;;  %v6456_v33 = vld [vmem:[%s11611_s2 + $0x2dc] sm:$0xf]  ;;  %v11927_v56 = vld [vmem:[#allocation59_spill] sm:$0xff] }
 0x261   : > { %v2187_v40 = vpop.f32.mrf.mxu0  ;;  %v5903_v47 = vor.u32 %v6456_v33, %v5900_v16 }
 0x262   : > { %11926 = vst [vmem:[#allocation94_spill] sm:$0xff] %v8134_v4  ;;  %v2276_v26 = vpop.f32.mrf.mxu1  ;;  %v11928_v4 = vld [vmem:[#allocation27_spill] sm:$0xff] }
 0x263   : > { %v8142_v35 = vadd.f32 %v2276_v26, %v2187_v40  ;;  %2904 = vmatpush.bf16.msrb.mxu1 %v5903_v47  ;;  %v11930_v40 = vld [vmem:[#allocation30_spill] sm:$0xff]  ;;  %v11931_v26 = vld [vmem:[#allocation60_spill] sm:$0xff]  ;;  %v2335_v15 = vpop.f32.mrf.mxu2 }
 0x264   : > { %2413 = vmatmul.bf16.gmra.mxu3 %v11927_v56  ;;  %2502 = vmatmul.bf16.gmra.mxu0 %v11928_v4  ;;  %v8163_v56 = vadd.f32 %v2335_v15, %v7980_v53  ;;  %v6162_v15 = vld [vmem:[%s11611_s2 + $0x4e8] sm:$0xf] }
 0x265   : > { %2591 = vmatmul.bf16.gmra.mxu1 %v11929_v18  ;;  %2650 = vmatmul.bf16.gmra.mxu2 %v11930_v40 }
 0x267   : > { %v2098_v61 = vpop.f32.mrf.mxu3 }
 0x268   : > { %v8158_v17 = vadd.f32 %v2098_v61, %v11931_v26 }
 0x269   : > { %v2189_v20 = vpop.f32.mrf.mxu0 }
 0x26a   : > { %11932 = vst [vmem:[#allocation30_spill] sm:$0xff] %v8158_v17  ;;  %v2278_v57 = vpop.f32.mrf.mxu1 }
 0x26b   : > { %v8160_v13 = vadd.f32 %v2278_v57, %v2189_v20  ;;  %v2337_v16 = vpop.f32.mrf.mxu2 }
 0x26c   : > { %v8171_v61 = vadd.f32 %v2337_v16, %v7992_v6  ;;  %v6498_v16 = vld [vmem:[%s11611_s2 + $0x42c] sm:$0xf] }
 0x26f   : > { %v2100_v4 = vpop.f32.mrf.mxu3 }
 0x270   : > { %v8166_v33 = vadd.f32 %v2100_v4, %v7624_v63  ;;  %v6525_v63 = vld [vmem:[%s11611_s2 + $0x4fc] sm:$0xf0] }
 0x271   : > { %v2468_v41 = vpop.f32.mrf.mxu0  ;;  %v6163_v53 = vor.u32 %v6525_v63, %v6162_v15  ;;  %v6068_v15 = vld [vmem:[%s11611_s2 + $0x440] sm:$0xf0] }
 0x272   : > { %11933 = vst [vmem:[#allocation60_spill] sm:$0xff] %v8166_v33  ;;  %v2557_v47 = vpop.f32.mrf.mxu1  ;;  %v6071_v63 = vor.u32 %v6498_v16, %v6068_v15  ;;  %v11937_v33 = vld [vmem:[#allocation37_spill] sm:$0xff] }
 0x273   : > { %v8168_v18 = vadd.f32 %v2557_v47, %v2468_v41  ;;  %2731 = vmatpush.bf16.msrb.mxu3 %v6163_v53  ;;  %v2340_v57 = vpop.f32.mrf.mxu2 }
 0x274   : > { %2418 = vmatmul.bf16.gmra.mxu3 %v7626_v2  ;;  %2507 = vmatmul.bf16.gmra.mxu0 %v7119_v12  ;;  %v8189_v47 = vadd.f32 %v2340_v57, %v8000_v5  ;;  %v6402_v5 = vld [vmem:[%s11611_s2 + $0x12c] sm:$0xf]  ;;  %v5684_v57 = vld [vmem:[%s11611_s2 + $0x140] sm:$0xf0] }
 0x275   : > { %2596 = vmatmul.bf16.gmra.mxu1 %v7123_v19  ;;  %2655 = vmatmul.bf16.gmra.mxu2 %v7131_v27  ;;  %v5687_v15 = vor.u32 %v6402_v5, %v5684_v57 }
 0x276   : > { %2994 = vmatpush.bf16.msrb.mxu2 %v6071_v63  ;;  %v5876_v63 = vld [vmem:[%s11611_s2 + $0x2c0] sm:$0xf0] }
 0x277   : > { %v2379_v4 = vpop.f32.mrf.mxu3  ;;  %2816 = vmatpush.bf16.msrb.mxu0 %v5687_v15 }
 0x278   : > { %v8184_v6 = vadd.f32 %v2379_v4, %v7913_v24 }
 0x279   : > { %v2470_v26 = vpop.f32.mrf.mxu0 }
 0x27a   : > { %11934 = vst [vmem:[#allocation95_spill] sm:$0xff] %v8184_v6  ;;  %v2559_v20 = vpop.f32.mrf.mxu1 }
 0x27b   : > { %v8186_v41 = vadd.f32 %v2559_v20, %v2470_v26  ;;  %v2342_v20 = vpop.f32.mrf.mxu2 }
 0x27c   : > { %v8209_v16 = vadd.f32 %v2342_v20, %v8018_v58 }
 0x27f   : > { %v2381_v24 = vpop.f32.mrf.mxu3 }
 0x280   : > { %v8198_v53 = vadd.f32 %v2381_v24, %v7931_v28  ;;  %v6450_v28 = vld [vmem:[%s11611_s2 + $0x2ac] sm:$0xf]  ;;  %v11936_v24 = vld [vmem:[#allocation35_spill] sm:$0xff] }
 0x281   : > { %v2473_v4 = vpop.f32.mrf.mxu0 }
 0x282   : > { %11935 = vst [vmem:[#allocation96_spill] sm:$0xff] %v8198_v53  ;;  %v2562_v26 = vpop.f32.mrf.mxu1  ;;  %v5879_v53 = vor.u32 %v6450_v28, %v5876_v63 }
 0x283   : > { %v8206_v6 = vadd.f32 %v2562_v26, %v2473_v4  ;;  %v11938_v4 = vld [vmem:[#allocation38_spill] sm:$0xff]  ;;  %v2345_v57 = vpop.f32.mrf.mxu2 }
 0x284   : > { %2423 = vmatmul.bf16.gmra.mxu3 %v7662_v8  ;;  %2512 = vmatmul.bf16.gmra.mxu0 %v11936_v24  ;;  %v8227_v8 = vadd.f32 %v2345_v57, %v8032_v46  ;;  %v6138_v46 = vld [vmem:[%s11611_s2 + $0x4b8] sm:$0xf] }
 0x285   : > { %2601 = vmatmul.bf16.gmra.mxu1 %v11937_v33  ;;  %2660 = vmatmul.bf16.gmra.mxu2 %v11938_v4 }
 0x286   : > { %2905 = vmatpush.bf16.msrb.mxu1 %v5879_v53 }
 0x287   : > { %v2384_v58 = vpop.f32.mrf.mxu3 }
 0x288   : > { %v8222_v26 = vadd.f32 %v2384_v58, %v7943_v43 }
 0x289   : > { %v2475_v20 = vpop.f32.mrf.mxu0 }
 0x28a   : > { %11939 = vst [vmem:[#allocation38_spill] sm:$0xff] %v8222_v26  ;;  %v2564_v5 = vpop.f32.mrf.mxu1 }
 0x28b   : > { %v8224_v17 = vadd.f32 %v2564_v5, %v2475_v20  ;;  %v2347_v63 = vpop.f32.mrf.mxu2 }
 0x28c   : > { %v8235_v43 = vadd.f32 %v2347_v63, %v8044_v9  ;;  %v6492_v63 = vld [vmem:[%s11611_s2 + $0x3fc] sm:$0xf] }
 0x28f   : > { %v2386_v24 = vpop.f32.mrf.mxu3 }
 0x290   : > { %v8230_v28 = vadd.f32 %v2386_v24, %v7951_v51  ;;  %v6519_v51 = vld [vmem:[%s11611_s2 + $0x4cc] sm:$0xf0] }
 0x291   : > { %v2478_v15 = vpop.f32.mrf.mxu0  ;;  %v6139_v24 = vor.u32 %v6519_v51, %v6138_v46  ;;  %v6044_v46 = vld [vmem:[%s11611_s2 + $0x410] sm:$0xf0] }
 0x292   : > { %11940 = vst [vmem:[#allocation97_spill] sm:$0xff] %v8230_v28  ;;  %v2567_v53 = vpop.f32.mrf.mxu1  ;;  %v6047_v51 = vor.u32 %v6492_v63, %v6044_v46 }
 0x293   : > { %v8232_v33 = vadd.f32 %v2567_v53, %v2478_v15  ;;  %2732 = vmatpush.bf16.msrb.mxu3 %v6139_v24 }
 0x294   : > { %2428 = vmatmul.bf16.gmra.mxu3 %v7698_v45  ;;  %2517 = vmatmul.bf16.gmra.mxu0 %v7292_v29 }
 0x295   : > { %2606 = vmatmul.bf16.gmra.mxu1 %v7299_v50  ;;  %2665 = vmatmul.bf16.gmra.mxu2 %v7305_v34 }
 0x296   : > { %2995 = vmatpush.bf16.msrb.mxu2 %v6047_v51  ;;  %v5852_v51 = vld [vmem:[%s11611_s2 + $0x290] sm:$0xf0] }
 0x297   : > { %v2389_v58 = vpop.f32.mrf.mxu3 }
 0x298   : > { %v8248_v9 = vadd.f32 %v2389_v58, %v7969_v37  ;;  %v2350_v57 = vpop.f32.mrf.mxu2 }
 0x299   : > { %v2480_v20 = vpop.f32.mrf.mxu0  ;;  %v8253_v53 = vadd.f32 %v2350_v57, %v8052_v31  ;;  %v6396_v31 = vld [vmem:[%s11611_s2 + $0xfc] sm:$0xf]  ;;  %v5660_v57 = vld [vmem:[%s11611_s2 + $0x110] sm:$0xf0] }
 0x29a   : > { %11941 = vst [vmem:[#allocation98_spill] sm:$0xff] %v8248_v9  ;;  %v2569_v5 = vpop.f32.mrf.mxu1  ;;  %v5663_v46 = vor.u32 %v6396_v31, %v5660_v57 }
 0x29b   : > { %v8250_v15 = vadd.f32 %v2569_v5, %v2480_v20 }
 0x29c   : > { %2817 = vmatpush.bf16.msrb.mxu0 %v5663_v46 }
 0x29f   : > { %v2391_v37 = vpop.f32.mrf.mxu3 }
 0x2a0   : > { %v8262_v24 = vadd.f32 %v2391_v37, %v7983_v54  ;;  %v2352_v5 = vpop.f32.mrf.mxu2  ;;  %v6444_v54 = vld [vmem:[%s11611_s2 + $0x27c] sm:$0xf] }
 0x2a1   : > { %v2483_v58 = vpop.f32.mrf.mxu0  ;;  %v8273_v63 = vadd.f32 %v2352_v5, %v8070_v60  ;;  %v5855_v37 = vor.u32 %v6444_v54, %v5852_v51 }
 0x2a2   : > { %11942 = vst [vmem:[#allocation99_spill] sm:$0xff] %v8262_v24  ;;  %v2572_v20 = vpop.f32.mrf.mxu1  ;;  %v11943_v24 = vld [vmem:[#allocation42_spill] sm:$0xff] }
 0x2a3   : > { %v8270_v9 = vadd.f32 %v2572_v20, %v2483_v58  ;;  %2906 = vmatpush.bf16.msrb.mxu1 %v5855_v37  ;;  %v11944_v58 = vld [vmem:[#allocation43_spill] sm:$0xff] }
 0x2a4   : > { %2433 = vmatmul.bf16.gmra.mxu3 %v7734_v0  ;;  %2522 = vmatmul.bf16.gmra.mxu0 %v7329_v59 }
 0x2a5   : > { %2611 = vmatmul.bf16.gmra.mxu1 %v11943_v24  ;;  %2670 = vmatmul.bf16.gmra.mxu2 %v11944_v58 }
 0x2a7   : > { %v2394_v60 = vpop.f32.mrf.mxu3 }
 0x2a8   : > { %v8286_v20 = vadd.f32 %v2394_v60, %v7995_v52  ;;  %v2355_v57 = vpop.f32.mrf.mxu2  ;;  %v11947_v60 = vld [vmem:[#allocation6_spill] sm:$0xff] }
 0x2a9   : > { %v2485_v5 = vpop.f32.mrf.mxu0  ;;  %v8291_v26 = vadd.f32 %v2355_v57, %v8084_v32  ;;  %v6114_v32 = vld [vmem:[%s11611_s2 + $0x488] sm:$0xf]  ;;  %v11949_v57 = vld [vmem:[#allocation45_spill] sm:$0xff] }
 0x2aa   : > { %11945 = vst [vmem:[#allocation43_spill] sm:$0xff] %v8286_v20  ;;  %v2574_v31 = vpop.f32.mrf.mxu1 }
 0x2ab   : > { %v8288_v28 = vadd.f32 %v2574_v31, %v2485_v5  ;;  %v11948_v5 = vld [vmem:[#allocation18_spill] sm:$0xff] }
 0x2af   : > { %v2396_v59 = vpop.f32.mrf.mxu3 }
 0x2b0   : > { %v8294_v54 = vadd.f32 %v2396_v59, %v8003_v21  ;;  %v2357_v37 = vpop.f32.mrf.mxu2  ;;  %v6513_v59 = vld [vmem:[%s11611_s2 + $0x49c] sm:$0xf0] }
 0x2b1   : > { %v2488_v46 = vpop.f32.mrf.mxu0  ;;  %v8299_v52 = vadd.f32 %v2357_v37, %v8096_v62  ;;  %v6115_v21 = vor.u32 %v6513_v59, %v6114_v32  ;;  %v6020_v32 = vld [vmem:[%s11611_s2 + $0x3e0] sm:$0xf0] }
 0x2b2   : > { %11946 = vst [vmem:[#allocation100_spill] sm:$0xff] %v8294_v54  ;;  %v2577_v51 = vpop.f32.mrf.mxu1 }
 0x2b3   : > { %v8296_v24 = vadd.f32 %v2577_v51, %v2488_v46  ;;  %2733 = vmatpush.bf16.msrb.mxu3 %v6115_v21  ;;  %v6390_v21 = vld [vmem:[%s11611_s2 + $0xcc] sm:$0xf] }
 0x2b4   : > { %2438 = vmatmul.bf16.gmra.mxu3 %v7770_v48  ;;  %2527 = vmatmul.bf16.gmra.mxu0 %v11947_v60 }
 0x2b5   : > { %2616 = vmatmul.bf16.gmra.mxu1 %v11948_v5  ;;  %2675 = vmatmul.bf16.gmra.mxu2 %v11949_v57  ;;  %v6486_v5 = vld [vmem:[%s11611_s2 + $0x3cc] sm:$0xf] }
 0x2b6   : > { %v6023_v59 = vor.u32 %v6486_v5, %v6020_v32  ;;  %v5828_v5 = vld [vmem:[%s11611_s2 + $0x260] sm:$0xf0] }
 0x2b7   : > { %v2399_v31 = vpop.f32.mrf.mxu3 }
 0x2b8   : > { %v8312_v62 = vadd.f32 %v2399_v31, %v8021_v10  ;;  %v2360_v37 = vpop.f32.mrf.mxu2  ;;  %2996 = vmatpush.bf16.msrb.mxu2 %v6023_v59  ;;  %v6438_v31 = vld [vmem:[%s11611_s2 + $0x24c] sm:$0xf] }
 0x2b9   : > { %v2490_v46 = vpop.f32.mrf.mxu0  ;;  %v8317_v20 = vadd.f32 %v2360_v37, %v8104_v49  ;;  %v5636_v49 = vld [vmem:[%s11611_s2 + $0xe0] sm:$0xf0]  ;;  %v5831_v32 = vor.u32 %v6438_v31, %v5828_v5 }
 0x2ba   : > { %11950 = vst [vmem:[#allocation101_spill] sm:$0xff] %v8312_v62  ;;  %v2579_v51 = vpop.f32.mrf.mxu1  ;;  %v11953_v31 = vld [vmem:[#allocation9_spill] sm:$0xff] }
 0x2bb   : > { %v8314_v54 = vadd.f32 %v2579_v51, %v2490_v46  ;;  %v5639_v51 = vor.u32 %v6390_v21, %v5636_v49  ;;  %2907 = vmatpush.bf16.msrb.mxu1 %v5831_v32  ;;  %v6432_v21 = vld [vmem:[%s11611_s2 + $0x21c] sm:$0xf]  ;;  %v11952_v49 = vld [vmem:[#allocation75_spill] sm:$0xff] }
 0x2bc   : > { %v11955_v32 = vld [vmem:[#allocation47_spill] sm:$0xff] }
 0x2bd   : > { %2818 = vmatpush.bf16.msrb.mxu0 %v5639_v51 }
 0x2bf   : > { %v2401_v10 = vpop.f32.mrf.mxu3 }
 0x2c0   : > { %v8335_v46 = vadd.f32 %v2401_v10, %v8035_v22  ;;  %v2362_v62 = vpop.f32.mrf.mxu2  ;;  %v6384_v22 = vld [vmem:[%s11611_s2 + $0x9c] sm:$0xf]  ;;  %v5612_v10 = vld [vmem:[%s11611_s2 + $0xb0] sm:$0xf0] }
 0x2c1   : > { %v2493_v37 = vpop.f32.mrf.mxu0  ;;  %v8343_v60 = vadd.f32 %v2362_v62, %v8122_v14  ;;  %v5615_v51 = vor.u32 %v6384_v22, %v5612_v10  ;;  %v5804_v14 = vld [vmem:[%s11611_s2 + $0x230] sm:$0xf0]  ;;  %v11954_v62 = vld [vmem:[#allocation21_spill] sm:$0xff]  ;;  %v6426_v10 = vld [vmem:[%s11611_s2 + $0x1ec] sm:$0xf] }
 0x2c2   : > { %11951 = vst [vmem:[#allocation102_spill] sm:$0xff] %v8335_v46  ;;  %v2582_v59 = vpop.f32.mrf.mxu1  ;;  %v5807_v5 = vor.u32 %v6432_v21, %v5804_v14  ;;  %v5588_v22 = vld [vmem:[%s11611_s2 + $0x80] sm:$0xf0] }
 0x2c3   : > { %v8340_v57 = vadd.f32 %v2582_v59, %v2493_v37  ;;  %2819 = vmatpush.bf16.msrb.mxu0 %v5615_v51  ;;  %v6378_v59 = vld [vmem:[%s11611_s2 + $0x6c] sm:$0xf]  ;;  %v5780_v51 = vld [vmem:[%s11611_s2 + $0x200] sm:$0xf0] }
 0x2c4   : > { %2443 = vmatmul.bf16.gmra.mxu3 %v11952_v49  ;;  %2532 = vmatmul.bf16.gmra.mxu0 %v11953_v31  ;;  %v5591_v21 = vor.u32 %v6378_v59, %v5588_v22  ;;  %v6420_v59 = vld [vmem:[%s11611_s2 + $0x1bc] sm:$0xf] }
 0x2c5   : > { %2621 = vmatmul.bf16.gmra.mxu1 %v11954_v62  ;;  %2680 = vmatmul.bf16.gmra.mxu2 %v11955_v32 }
 0x2c6   : > { %2908 = vmatpush.bf16.msrb.mxu1 %v5807_v5  ;;  %v5783_v5 = vor.u32 %v6426_v10, %v5780_v51  ;;  %v6366_v10 = vld [vmem:[%s11611_s2 + $0xc] sm:$0xf] }
 0x2c7   : > { %v2404_v37 = vpop.f32.mrf.mxu3  ;;  %2820 = vmatpush.bf16.msrb.mxu0 %v5591_v21  ;;  %v5540_v21 = vld [vmem:[%s11611_s2 + $0x20] sm:$0xf0]  ;;  %v6414_v51 = vld [vmem:[%s11611_s2 + $0x18c] sm:$0xf] }
 0x2c8   : > { %v8371_v46 = vadd.f32 %v2404_v37, %v8047_v11  ;;  %v2365_v62 = vpop.f32.mrf.mxu2  ;;  %v6372_v11 = vld [vmem:[%s11611_s2 + $0x3c] sm:$0xf]  ;;  %v5564_v37 = vld [vmem:[%s11611_s2 + $0x50] sm:$0xf0] }
 0x2c9   : > { %v2495_v14 = vpop.f32.mrf.mxu0  ;;  %v8379_v49 = vadd.f32 %v2365_v62, %v8142_v35  ;;  %v5567_v22 = vor.u32 %v6372_v11, %v5564_v37  ;;  %v5732_v11 = vld [vmem:[%s11611_s2 + $0x1a0] sm:$0xf0] }
 0x2ca   : > { %11956 = vst [vmem:[#allocation103_spill] sm:$0xff] %v8371_v46  ;;  %v2584_v32 = vpop.f32.mrf.mxu1  ;;  %2909 = vmatpush.bf16.msrb.mxu1 %v5783_v5  ;;  %v5543_v5 = vor.u32 %v6366_v10, %v5540_v21  ;;  %v6284_v10 = vld [vmem:[%s11611_s2 + $0x5f0] sm:$0xf0] }
 0x2cb   : > { %v8376_v31 = vadd.f32 %v2584_v32, %v2495_v14  ;;  %v5756_v32 = vld [vmem:[%s11611_s2 + $0x1d0] sm:$0xf0]  ;;  %2821 = vmatpush.bf16.msrb.mxu0 %v5567_v22 }
 0x2cc   : > { %v5759_v35 = vor.u32 %v6420_v59, %v5756_v32  ;;  %v5735_v59 = vor.u32 %v6414_v51, %v5732_v11 }
 0x2ce   : > { %2910 = vmatpush.bf16.msrb.mxu1 %v5759_v35 }
 0x2cf   : > { %v2406_v62 = vpop.f32.mrf.mxu3  ;;  %2822 = vmatpush.bf16.msrb.mxu0 %v5543_v5  ;;  %v11959_v5 = vld [vmem:[#allocation49_spill] sm:$0xff] }
 0x2d0   : > { %v8403_v14 = vadd.f32 %v2406_v62, %v8055_v7  ;;  %v2367_v32 = vpop.f32.mrf.mxu2  ;;  %v11958_v7 = vld [vmem:[#allocation24_spill] sm:$0xff] }
 0x2d1   : > { %v2498_v37 = vpop.f32.mrf.mxu0  ;;  %v8411_v46 = vadd.f32 %v2367_v32, %v8160_v13  ;;  %v6552_v62 = vld [vmem:[%s11611_s2 + $0x5dc] sm:$0xf] }
 0x2d2   : > { %11957 = vst [vmem:[#allocation104_spill] sm:$0xff] %v8403_v14  ;;  %v2587_v22 = vpop.f32.mrf.mxu1  ;;  %2911 = vmatpush.bf16.msrb.mxu1 %v5735_v59  ;;  %v6287_v21 = vor.u32 %v6552_v62, %v6284_v10  ;;  %v6480_v14 = vld [vmem:[%s11611_s2 + $0x39c] sm:$0xf]  ;;  %v5996_v62 = vld [vmem:[%s11611_s2 + $0x3b0] sm:$0xf0] }
 0x2d3   : > { %v8408_v35 = vadd.f32 %v2587_v22, %v2498_v37  ;;  %v5999_v10 = vor.u32 %v6480_v14, %v5996_v62 }
 0x2d4   : > { %2448 = vmatmul.bf16.gmra.mxu3 %v7887_v38  ;;  %2537 = vmatmul.bf16.gmra.mxu0 %v11878_v3 }
 0x2d5   : > { %2626 = vmatmul.bf16.gmra.mxu1 %v11958_v7  ;;  %2685 = vmatmul.bf16.gmra.mxu2 %v11959_v5  ;;  %v11963_v5 = vld [vmem:[#allocation15_spill] sm:$0xff]  ;;  %v11964_v7 = vld [vmem:[#allocation28_spill] sm:$0xff] }
 0x2d6   : > { %3082 = vmatpush.bf16.msra.mxu3 %v6287_v21  ;;  %2997 = vmatpush.bf16.msrb.mxu2 %v5999_v10 }
 0x2d7   : > { %v2409_v51 = vpop.f32.mrf.mxu3 }
 0x2d8   : > { %v8424_v13 = vadd.f32 %v2409_v51, %v8073_v55  ;;  %v2646_v59 = vpop.f32.mrf.mxu2 }
 0x2d9   : > { %v2500_v11 = vpop.f32.mrf.mxu0  ;;  %v8429_v32 = vadd.f32 %v2646_v59, %v8168_v18  ;;  %v11962_v59 = vld [vmem:[#allocation81_spill] sm:$0xff] }
 0x2da   : > { %11960 = vst [vmem:[#allocation105_spill] sm:$0xff] %v8424_v13  ;;  %v2589_v37 = vpop.f32.mrf.mxu1 }
 0x2db   : > { %v8426_v22 = vadd.f32 %v2589_v37, %v2500_v11 }
 0x2df   : > { %v2411_v55 = vpop.f32.mrf.mxu3 }
 0x2e0   : > { %v8438_v21 = vadd.f32 %v2411_v55, %v8087_v25  ;;  %v2648_v37 = vpop.f32.mrf.mxu2 }
 0x2e1   : > { %v2503_v51 = vpop.f32.mrf.mxu0  ;;  %v8443_v18 = vadd.f32 %v2648_v37, %v8186_v41 }
 0x2e2   : > { %11961 = vst [vmem:[#allocation106_spill] sm:$0xff] %v8438_v21  ;;  %v2592_v11 = vpop.f32.mrf.mxu1 }
 0x2e3   : > { %v8440_v13 = vadd.f32 %v2592_v11, %v2503_v51 }
 0x2e4   : > { %2453 = vmatmul.bf16.gmra.mxu3 %v11962_v59  ;;  %2542 = vmatmul.bf16.gmra.mxu0 %v11963_v5 }
 0x2e5   : > { %2631 = vmatmul.bf16.gmra.mxu1 %v11964_v7  ;;  %2690 = vmatmul.bf16.gmra.mxu2 %v11886_v23 }
 0x2e7   : > { %v2414_v14 = vpop.f32.mrf.mxu3 }
 0x2e8   : > { %v8450_v25 = vadd.f32 %v2414_v14, %v8099_v36  ;;  %v2651_v55 = vpop.f32.mrf.mxu2  ;;  %v11967_v14 = vld [vmem:[#allocation44_spill] sm:$0xff] }
 0x2e9   : > { %v2505_v62 = vpop.f32.mrf.mxu0  ;;  %v8455_v41 = vadd.f32 %v2651_v55, %v8206_v6  ;;  %v6546_v6 = vld [vmem:[%s11611_s2 + $0x5ac] sm:$0xf] }
 0x2ea   : > { %11965 = vst [vmem:[#allocation107_spill] sm:$0xff] %v8450_v25  ;;  %v2594_v10 = vpop.f32.mrf.mxu1  ;;  %v11968_v25 = vld [vmem:[#allocation5_spill] sm:$0xff] }
 0x2eb   : > { %v8452_v51 = vadd.f32 %v2594_v10, %v2505_v62  ;;  %v11969_v62 = vld [vmem:[#allocation7_spill] sm:$0xff] }
 0x2ef   : > { %v2416_v11 = vpop.f32.mrf.mxu3 }
 0x2f0   : > { %v8458_v37 = vadd.f32 %v2416_v11, %v8107_v30  ;;  %v2653_v5 = vpop.f32.mrf.mxu2  ;;  %v6260_v30 = vld [vmem:[%s11611_s2 + $0x5c0] sm:$0xf0] }
 0x2f1   : > { %v2508_v21 = vpop.f32.mrf.mxu0  ;;  %v8463_v36 = vadd.f32 %v2653_v5, %v8224_v17  ;;  %v6263_v10 = vor.u32 %v6546_v6, %v6260_v30  ;;  %v5972_v6 = vld [vmem:[%s11611_s2 + $0x380] sm:$0xf0] }
 0x2f2   : > { %11966 = vst [vmem:[#allocation108_spill] sm:$0xff] %v8458_v37  ;;  %v2597_v7 = vpop.f32.mrf.mxu1 }
 0x2f3   : > { %v8460_v59 = vadd.f32 %v2597_v7, %v2508_v21  ;;  %v11970_v21 = vld [vmem:[#allocation53_spill] sm:$0xff]  ;;  %3083 = vmatpush.bf16.msra.mxu3 %v6263_v10 }
 0x2f4   : > { %2734 = vmatmul.bf16.vlgmr.msrb.gmra.mxu3 %v11967_v14  ;;  %2823 = vmatmul.bf16.vlgmr.msrb.gmra.mxu0 %v11968_v25  ;;  %v6474_v25 = vld [vmem:[%s11611_s2 + $0x36c] sm:$0xf] }
 0x2f5   : > { %2912 = vmatmul.bf16.vlgmr.msrb.gmra.mxu1 %v11969_v62  ;;  %2695 = vmatmul.bf16.gmra.mxu2 %v11970_v21  ;;  %v5975_v30 = vor.u32 %v6474_v25, %v5972_v6  ;;  %v11974_v21 = vld [vmem:[#allocation8_spill] sm:$0xff]  ;;  %v11975_v14 = vld [vmem:[#allocation10_spill] sm:$0xff] }
 0x2f6   : > { %v11976_v6 = vld [vmem:[#allocation56_spill] sm:$0xff] }
 0x2f7   : > { %v2419_v7 = vpop.f32.mrf.mxu3  ;;  %2998 = vmatpush.bf16.msrb.mxu2 %v5975_v30 }
 0x2f8   : > { %v8476_v17 = vadd.f32 %v2419_v7, %v8125_v44  ;;  %v2656_v11 = vpop.f32.mrf.mxu2 }
 0x2f9   : > { %v2510_v5 = vpop.f32.mrf.mxu0  ;;  %v8481_v62 = vadd.f32 %v2656_v11, %v8232_v33  ;;  %v11973_v11 = vld [vmem:[#allocation46_spill] sm:$0xff] }
 0x2fa   : > { %11971 = vst [vmem:[#allocation109_spill] sm:$0xff] %v8476_v17  ;;  %v2599_v55 = vpop.f32.mrf.mxu1 }
 0x2fb   : > { %v8478_v37 = vadd.f32 %v2599_v55, %v2510_v5 }
 0x2ff   : > { %v2421_v44 = vpop.f32.mrf.mxu3 }
 0x300   : > { %v8490_v10 = vadd.f32 %v2421_v44, %v8145_v42  ;;  %v2658_v55 = vpop.f32.mrf.mxu2 }
 0x301   : > { %v2513_v7 = vpop.f32.mrf.mxu0  ;;  %v8495_v33 = vadd.f32 %v2658_v55, %v8250_v15 }
 0x302   : > { %11972 = vst [vmem:[#allocation110_spill] sm:$0xff] %v8490_v10  ;;  %v2602_v5 = vpop.f32.mrf.mxu1 }
 0x303   : > { %v8492_v17 = vadd.f32 %v2602_v5, %v2513_v7 }
 0x304   : > { %2739 = vmatmul.bf16.gmra.mxu3 %v11973_v11  ;;  %2828 = vmatmul.bf16.gmra.mxu0 %v11974_v21 }
 0x305   : > { %2917 = vmatmul.bf16.gmra.mxu1 %v11975_v14  ;;  %2700 = vmatmul.bf16.gmra.mxu2 %v11976_v6 }
 0x307   : > { %v2424_v25 = vpop.f32.mrf.mxu3 }
 0x308   : > { %v8502_v42 = vadd.f32 %v2424_v25, %v8163_v56  ;;  %v2661_v10 = vpop.f32.mrf.mxu2  ;;  %v11979_v25 = vld [vmem:[#allocation48_spill] sm:$0xff] }
 0x309   : > { %v2515_v30 = vpop.f32.mrf.mxu0  ;;  %v8507_v15 = vadd.f32 %v2661_v10, %v8270_v9  ;;  %v6540_v9 = vld [vmem:[%s11611_s2 + $0x57c] sm:$0xf] }
 0x30a   : > { %11977 = vst [vmem:[#allocation111_spill] sm:$0xff] %v8502_v42  ;;  %v2604_v44 = vpop.f32.mrf.mxu1  ;;  %v11980_v42 = vld [vmem:[#allocation11_spill] sm:$0xff] }
 0x30b   : > { %v8504_v7 = vadd.f32 %v2604_v44, %v2515_v30  ;;  %v11981_v30 = vld [vmem:[#allocation13_spill] sm:$0xff] }
 0x30f   : > { %v2426_v5 = vpop.f32.mrf.mxu3 }
 0x310   : > { %v8510_v55 = vadd.f32 %v2426_v5, %v8171_v61  ;;  %v2663_v11 = vpop.f32.mrf.mxu2  ;;  %v6236_v61 = vld [vmem:[%s11611_s2 + $0x590] sm:$0xf0] }
 0x311   : > { %v2518_v21 = vpop.f32.mrf.mxu0  ;;  %v8515_v56 = vadd.f32 %v2663_v11, %v8288_v28  ;;  %v6239_v10 = vor.u32 %v6540_v9, %v6236_v61  ;;  %v5948_v9 = vld [vmem:[%s11611_s2 + $0x350] sm:$0xf0] }
 0x312   : > { %11978 = vst [vmem:[#allocation112_spill] sm:$0xff] %v8510_v55  ;;  %v2607_v14 = vpop.f32.mrf.mxu1 }
 0x313   : > { %v8512_v23 = vadd.f32 %v2607_v14, %v2518_v21  ;;  %v11982_v21 = vld [vmem:[#allocation32_spill] sm:$0xff]  ;;  %3084 = vmatpush.bf16.msra.mxu3 %v6239_v10 }
 0x314   : > { %2744 = vmatmul.bf16.gmra.mxu3 %v11979_v25  ;;  %2833 = vmatmul.bf16.gmra.mxu0 %v11980_v42  ;;  %v6468_v42 = vld [vmem:[%s11611_s2 + $0x33c] sm:$0xf] }
 0x315   : > { %2922 = vmatmul.bf16.gmra.mxu1 %v11981_v30  ;;  %2705 = vmatmul.bf16.gmra.mxu2 %v11982_v21  ;;  %v5951_v61 = vor.u32 %v6468_v42, %v5948_v9  ;;  %v11986_v21 = vld [vmem:[#allocation14_spill] sm:$0xff]  ;;  %v11987_v25 = vld [vmem:[#allocation16_spill] sm:$0xff] }
 0x316   : > { %v11988_v9 = vld [vmem:[#allocation36_spill] sm:$0xff] }
 0x317   : > { %v2429_v14 = vpop.f32.mrf.mxu3  ;;  %2999 = vmatpush.bf16.msrb.mxu2 %v5951_v61 }
 0x318   : > { %v8528_v28 = vadd.f32 %v2429_v14, %v8189_v47  ;;  %v2666_v5 = vpop.f32.mrf.mxu2 }
 0x319   : > { %v2520_v11 = vpop.f32.mrf.mxu0  ;;  %v8533_v30 = vadd.f32 %v2666_v5, %v8296_v24  ;;  %v11985_v5 = vld [vmem:[#allocation50_spill] sm:$0xff] }
 0x31a   : > { %11983 = vst [vmem:[#allocation113_spill] sm:$0xff] %v8528_v28  ;;  %v2609_v44 = vpop.f32.mrf.mxu1 }
 0x31b   : > { %v8530_v55 = vadd.f32 %v2609_v44, %v2520_v11 }
 0x31f   : > { %v2431_v47 = vpop.f32.mrf.mxu3 }
 0x320   : > { %v8542_v10 = vadd.f32 %v2431_v47, %v8209_v16  ;;  %v2668_v44 = vpop.f32.mrf.mxu2 }
 0x321   : > { %v2523_v14 = vpop.f32.mrf.mxu0  ;;  %v8547_v24 = vadd.f32 %v2668_v44, %v8314_v54 }
 0x322   : > { %11984 = vst [vmem:[#allocation114_spill] sm:$0xff] %v8542_v10  ;;  %v2612_v11 = vpop.f32.mrf.mxu1 }
 0x323   : > { %v8544_v28 = vadd.f32 %v2612_v11, %v2523_v14 }
 0x324   : > { %2749 = vmatmul.bf16.gmra.mxu3 %v11985_v5  ;;  %2838 = vmatmul.bf16.gmra.mxu0 %v11986_v21 }
 0x325   : > { %2927 = vmatmul.bf16.gmra.mxu1 %v11987_v25  ;;  %2710 = vmatmul.bf16.gmra.mxu2 %v11988_v9 }
 0x327   : > { %v2434_v42 = vpop.f32.mrf.mxu3 }
 0x328   : > { %v8554_v16 = vadd.f32 %v2434_v42, %v8227_v8  ;;  %v2671_v10 = vpop.f32.mrf.mxu2  ;;  %v11991_v42 = vld [vmem:[#allocation52_spill] sm:$0xff] }
 0x329   : > { %v2525_v61 = vpop.f32.mrf.mxu0  ;;  %v8559_v54 = vadd.f32 %v2671_v10, %v8340_v57  ;;  %v6534_v57 = vld [vmem:[%s11611_s2 + $0x54c] sm:$0xf] }
 0x32a   : > { %11989 = vst [vmem:[#allocation115_spill] sm:$0xff] %v8554_v16  ;;  %v2614_v47 = vpop.f32.mrf.mxu1  ;;  %v11992_v16 = vld [vmem:[#allocation17_spill] sm:$0xff] }
 0x32b   : > { %v8556_v14 = vadd.f32 %v2614_v47, %v2525_v61  ;;  %v11993_v61 = vld [vmem:[#allocation19_spill] sm:$0xff] }
 0x32f   : > { %v2436_v11 = vpop.f32.mrf.mxu3 }
 0x330   : > { %v8562_v44 = vadd.f32 %v2436_v11, %v8235_v43  ;;  %v2673_v5 = vpop.f32.mrf.mxu2  ;;  %v6212_v43 = vld [vmem:[%s11611_s2 + $0x560] sm:$0xf0] }
 0x331   : > { %v2528_v21 = vpop.f32.mrf.mxu0  ;;  %v8567_v8 = vadd.f32 %v2673_v5, %v8376_v31  ;;  %v6215_v10 = vor.u32 %v6534_v57, %v6212_v43  ;;  %v5924_v57 = vld [vmem:[%s11611_s2 + $0x320] sm:$0xf0] }
 0x332   : > { %11990 = vst [vmem:[#allocation116_spill] sm:$0xff] %v8562_v44  ;;  %v2617_v25 = vpop.f32.mrf.mxu1 }
 0x333   : > { %v8564_v6 = vadd.f32 %v2617_v25, %v2528_v21  ;;  %v11994_v21 = vld [vmem:[#allocation39_spill] sm:$0xff]  ;;  %3085 = vmatpush.bf16.msra.mxu3 %v6215_v10 }
 0x334   : > { %2754 = vmatmul.bf16.gmra.mxu3 %v11991_v42  ;;  %2843 = vmatmul.bf16.gmra.mxu0 %v11992_v16  ;;  %v6462_v16 = vld [vmem:[%s11611_s2 + $0x30c] sm:$0xf] }
 0x335   : > { %2932 = vmatmul.bf16.gmra.mxu1 %v11993_v61  ;;  %2715 = vmatmul.bf16.gmra.mxu2 %v11994_v21  ;;  %v5927_v43 = vor.u32 %v6462_v16, %v5924_v57  ;;  %v11998_v21 = vld [vmem:[#allocation20_spill] sm:$0xff]  ;;  %v11999_v42 = vld [vmem:[#allocation22_spill] sm:$0xff] }
 0x337   : > { %v2439_v25 = vpop.f32.mrf.mxu3  ;;  %3000 = vmatpush.bf16.msrb.mxu2 %v5927_v43 }
 0x338   : > { %v8580_v31 = vadd.f32 %v2439_v25, %v8253_v53  ;;  %v2676_v11 = vpop.f32.mrf.mxu2 }
 0x339   : > { %v2530_v5 = vpop.f32.mrf.mxu0  ;;  %v8585_v61 = vadd.f32 %v2676_v11, %v8408_v35  ;;  %v11997_v11 = vld [vmem:[#allocation55_spill] sm:$0xff] }
 0x33a   : > { %11995 = vst [vmem:[#allocation117_spill] sm:$0xff] %v8580_v31  ;;  %v2619_v47 = vpop.f32.mrf.mxu1 }
 0x33b   : > { %v8582_v44 = vadd.f32 %v2619_v47, %v2530_v5 }
 0x33f   : > { %v2441_v53 = vpop.f32.mrf.mxu3 }
 0x340   : > { %v8594_v10 = vadd.f32 %v2441_v53, %v8273_v63  ;;  %v2678_v47 = vpop.f32.mrf.mxu2 }
 0x341   : > { %v2533_v25 = vpop.f32.mrf.mxu0  ;;  %v8599_v35 = vadd.f32 %v2678_v47, %v8426_v22 }
 0x342   : > { %11996 = vst [vmem:[#allocation118_spill] sm:$0xff] %v8594_v10  ;;  %v2622_v5 = vpop.f32.mrf.mxu1 }
 0x343   : > { %v8596_v31 = vadd.f32 %v2622_v5, %v2533_v25 }
 0x344   : > { %2759 = vmatmul.bf16.gmra.mxu3 %v11997_v11  ;;  %2848 = vmatmul.bf16.gmra.mxu0 %v11998_v21 }
 0x345   : > { %2937 = vmatmul.bf16.gmra.mxu1 %v11999_v42  ;;  %2720 = vmatmul.bf16.gmra.mxu2 %v11920_v39 }
 0x347   : > { %v2444_v16 = vpop.f32.mrf.mxu3 }
 0x348   : > { %v8606_v63 = vadd.f32 %v2444_v16, %v8291_v26  ;;  %v2681_v53 = vpop.f32.mrf.mxu2  ;;  %v12002_v16 = vld [vmem:[#allocation23_spill] sm:$0xff] }
 0x349   : > { %v2535_v57 = vpop.f32.mrf.mxu0  ;;  %v8611_v22 = vadd.f32 %v2681_v53, %v8440_v13  ;;  %v6528_v13 = vld [vmem:[%s11611_s2 + $0x51c] sm:$0xf] }
 0x34a   : > { %12000 = vst [vmem:[#allocation119_spill] sm:$0xff] %v8606_v63  ;;  %v2624_v43 = vpop.f32.mrf.mxu1 }
 0x34b   : > { %v8608_v25 = vadd.f32 %v2624_v43, %v2535_v57  ;;  %v12003_v57 = vld [vmem:[#allocation25_spill] sm:$0xff] }
 0x34f   : > { %v2446_v5 = vpop.f32.mrf.mxu3 }
 0x350   : > { %v8614_v47 = vadd.f32 %v2446_v5, %v8299_v52  ;;  %v2683_v21 = vpop.f32.mrf.mxu2  ;;  %v6188_v52 = vld [vmem:[%s11611_s2 + $0x530] sm:$0xf0] }
 0x351   : > { %v2538_v10 = vpop.f32.mrf.mxu0  ;;  %v8619_v26 = vadd.f32 %v2683_v21, %v8452_v51  ;;  %v6191_v43 = vor.u32 %v6528_v13, %v6188_v52  ;;  %v6508_v13 = vld [vmem:[%s11611_s2 + $0x474] sm:$0xf0] }
 0x352   : > { %12001 = vst [vmem:[#allocation120_spill] sm:$0xff] %v8614_v47  ;;  %v2627_v42 = vpop.f32.mrf.mxu1 }
 0x353   : > { %v8616_v11 = vadd.f32 %v2627_v42, %v2538_v10  ;;  %v12004_v10 = vld [vmem:[#allocation26_spill] sm:$0xff]  ;;  %3086 = vmatpush.bf16.msra.mxu3 %v6191_v43 }
 0x354   : > { %2764 = vmatmul.bf16.gmra.mxu3 %v7554_v1  ;;  %2853 = vmatmul.bf16.gmra.mxu0 %v12002_v16  ;;  %v12009_v16 = vld [vmem:[#allocation29_spill] sm:$0xff] }
 0x355   : > { %2942 = vmatmul.bf16.gmra.mxu1 %v12003_v57  ;;  %3001 = vmatmul.bf16.vlgmr.msrb.gmra.mxu2 %v12004_v10  ;;  %v6098_v57 = vld [vmem:[%s11611_s2 + $0x460] sm:$0xf] }
 0x356   : > { %v6099_v52 = vor.u32 %v6508_v13, %v6098_v57 }
 0x357   : > { %v2449_v42 = vpop.f32.mrf.mxu3 }
 0x358   : > { %v8632_v51 = vadd.f32 %v2449_v42, %v8317_v20  ;;  %v2686_v5 = vpop.f32.mrf.mxu2  ;;  %3349 = vmatpush.bf16.msra.mxu2 %v6099_v52  ;;  %v6460_v52 = vld [vmem:[%s11611_s2 + $0x2f4] sm:$0xf0] }
 0x359   : > { %v2540_v21 = vpop.f32.mrf.mxu0  ;;  %v8637_v63 = vadd.f32 %v2686_v5, %v8460_v59  ;;  %v5714_v59 = vld [vmem:[%s11611_s2 + $0x160] sm:$0xf]  ;;  %v6412_v5 = vld [vmem:[%s11611_s2 + $0x174] sm:$0xf0] }
 0x35a   : > { %12005 = vst [vmem:[#allocation121_spill] sm:$0xff] %v8632_v51  ;;  %v2629_v53 = vpop.f32.mrf.mxu1  ;;  %v5715_v13 = vor.u32 %v6412_v5, %v5714_v59 }
 0x35b   : > { %v8634_v47 = vadd.f32 %v2629_v53, %v2540_v21 }
 0x35c   : > { %3171 = vmatpush.bf16.msra.mxu0 %v5715_v13 }
 0x35f   : > { %v2451_v20 = vpop.f32.mrf.mxu3 }
 0x360   : > { %v8646_v43 = vadd.f32 %v2451_v20, %v8343_v60  ;;  %v2688_v53 = vpop.f32.mrf.mxu2  ;;  %v5906_v60 = vld [vmem:[%s11611_s2 + $0x2e0] sm:$0xf]  ;;  %v12007_v20 = vld [vmem:[#allocation59_spill] sm:$0xff] }
 0x361   : > { %v2543_v42 = vpop.f32.mrf.mxu0  ;;  %v8657_v57 = vadd.f32 %v2688_v53, %v8478_v37  ;;  %v5907_v10 = vor.u32 %v6460_v52, %v5906_v60 }
 0x362   : > { %12006 = vst [vmem:[#allocation122_spill] sm:$0xff] %v8646_v43  ;;  %v2632_v21 = vpop.f32.mrf.mxu1  ;;  %v12008_v43 = vld [vmem:[#allocation27_spill] sm:$0xff] }
 0x363   : > { %v8654_v51 = vadd.f32 %v2632_v21, %v2543_v42  ;;  %3260 = vmatpush.bf16.msra.mxu1 %v5907_v10 }
 0x364   : > { %2769 = vmatmul.bf16.gmra.mxu3 %v12007_v20  ;;  %2858 = vmatmul.bf16.gmra.mxu0 %v12008_v43 }
 0x365   : > { %2947 = vmatmul.bf16.gmra.mxu1 %v12009_v16  ;;  %3006 = vmatmul.bf16.gmra.mxu2 %v11930_v40 }
 0x367   : > { %v2454_v37 = vpop.f32.mrf.mxu3 }
 0x368   : > { %v8670_v42 = vadd.f32 %v2454_v37, %v8379_v49  ;;  %v2691_v59 = vpop.f32.mrf.mxu2 }
 0x369   : > { %v2545_v21 = vpop.f32.mrf.mxu0  ;;  %v8675_v20 = vadd.f32 %v2691_v59, %v8492_v17  ;;  %v6522_v17 = vld [vmem:[%s11611_s2 + $0x4ec] sm:$0xf] }
 0x36a   : > { %12010 = vst [vmem:[#allocation123_spill] sm:$0xff] %v8670_v42  ;;  %v2634_v53 = vpop.f32.mrf.mxu1  ;;  %v12016_v42 = vld [vmem:[#allocation37_spill] sm:$0xff] }
 0x36b   : > { %v8672_v5 = vadd.f32 %v2634_v53, %v2545_v21 }
 0x36f   : > { %v2456_v43 = vpop.f32.mrf.mxu3 }
 0x370   : > { %v8678_v60 = vadd.f32 %v2456_v43, %v8411_v46  ;;  %v2693_v52 = vpop.f32.mrf.mxu2  ;;  %v6164_v46 = vld [vmem:[%s11611_s2 + $0x500] sm:$0xf0] }
 0x371   : > { %v2824_v13 = vpop.f32.mrf.mxu0  ;;  %v8683_v49 = vadd.f32 %v2693_v52, %v8504_v7  ;;  %v6167_v43 = vor.u32 %v6522_v17, %v6164_v46  ;;  %v6074_v52 = vld [vmem:[%s11611_s2 + $0x430] sm:$0xf]  ;;  %v6502_v17 = vld [vmem:[%s11611_s2 + $0x444] sm:$0xf0] }
 0x372   : > { %12011 = vst [vmem:[#allocation124_spill] sm:$0xff] %v8678_v60  ;;  %v2913_v10 = vpop.f32.mrf.mxu1  ;;  %v6075_v46 = vor.u32 %v6502_v17, %v6074_v52 }
 0x373   : > { %v8680_v16 = vadd.f32 %v2913_v10, %v2824_v13  ;;  %3087 = vmatpush.bf16.msra.mxu3 %v6167_v43 }
 0x374   : > { %2774 = vmatmul.bf16.gmra.mxu3 %v7626_v2  ;;  %2863 = vmatmul.bf16.gmra.mxu0 %v7119_v12 }
 0x375   : > { %2952 = vmatmul.bf16.gmra.mxu1 %v7123_v19  ;;  %3011 = vmatmul.bf16.gmra.mxu2 %v7131_v27 }
 0x376   : > { %3350 = vmatpush.bf16.msra.mxu2 %v6075_v46  ;;  %v6454_v46 = vld [vmem:[%s11611_s2 + $0x2c4] sm:$0xf0] }
 0x377   : > { %v2735_v37 = vpop.f32.mrf.mxu3 }
 0x378   : > { %v8696_v7 = vadd.f32 %v2735_v37, %v8429_v32  ;;  %v2696_v59 = vpop.f32.mrf.mxu2 }
 0x379   : > { %v2826_v21 = vpop.f32.mrf.mxu0  ;;  %v8701_v10 = vadd.f32 %v2696_v59, %v8512_v23  ;;  %v5690_v23 = vld [vmem:[%s11611_s2 + $0x130] sm:$0xf]  ;;  %v6406_v59 = vld [vmem:[%s11611_s2 + $0x144] sm:$0xf0] }
 0x37a   : > { %12012 = vst [vmem:[#allocation125_spill] sm:$0xff] %v8696_v7  ;;  %v2915_v53 = vpop.f32.mrf.mxu1  ;;  %v5691_v17 = vor.u32 %v6406_v59, %v5690_v23 }
 0x37b   : > { %v8698_v13 = vadd.f32 %v2915_v53, %v2826_v21 }
 0x37c   : > { %3172 = vmatpush.bf16.msra.mxu0 %v5691_v17 }
 0x37f   : > { %v2737_v32 = vpop.f32.mrf.mxu3 }
 0x380   : > { %v8710_v43 = vadd.f32 %v2737_v32, %v8443_v18  ;;  %v2698_v53 = vpop.f32.mrf.mxu2  ;;  %v5882_v18 = vld [vmem:[%s11611_s2 + $0x2b0] sm:$0xf]  ;;  %v12014_v32 = vld [vmem:[#allocation64_spill] sm:$0xff] }
 0x381   : > { %v2829_v37 = vpop.f32.mrf.mxu0  ;;  %v8721_v52 = vadd.f32 %v2698_v53, %v8530_v55  ;;  %v5883_v60 = vor.u32 %v6454_v46, %v5882_v18 }
 0x382   : > { %12013 = vst [vmem:[#allocation126_spill] sm:$0xff] %v8710_v43  ;;  %v2918_v21 = vpop.f32.mrf.mxu1  ;;  %v12015_v43 = vld [vmem:[#allocation35_spill] sm:$0xff] }
 0x383   : > { %v8718_v7 = vadd.f32 %v2918_v21, %v2829_v37  ;;  %3261 = vmatpush.bf16.msra.mxu1 %v5883_v60 }
 0x384   : > { %2779 = vmatmul.bf16.gmra.mxu3 %v12014_v32  ;;  %2868 = vmatmul.bf16.gmra.mxu0 %v12015_v43 }
 0x385   : > { %2957 = vmatmul.bf16.gmra.mxu1 %v12016_v42  ;;  %3016 = vmatmul.bf16.gmra.mxu2 %v11938_v4 }
 0x387   : > { %v2740_v55 = vpop.f32.mrf.mxu3 }
 0x388   : > { %v8734_v37 = vadd.f32 %v2740_v55, %v8455_v41  ;;  %v2701_v23 = vpop.f32.mrf.mxu2 }
 0x389   : > { %v2831_v21 = vpop.f32.mrf.mxu0  ;;  %v8739_v32 = vadd.f32 %v2701_v23, %v8544_v28  ;;  %v6516_v28 = vld [vmem:[%s11611_s2 + $0x4bc] sm:$0xf] }
 0x38a   : > { %12017 = vst [vmem:[#allocation127_spill] sm:$0xff] %v8734_v37  ;;  %v2920_v53 = vpop.f32.mrf.mxu1 }
 0x38b   : > { %v8736_v59 = vadd.f32 %v2920_v53, %v2831_v21 }
 0x38f   : > { %v2742_v43 = vpop.f32.mrf.mxu3 }
 0x390   : > { %v8742_v18 = vadd.f32 %v2742_v43, %v8463_v36  ;;  %v2703_v46 = vpop.f32.mrf.mxu2  ;;  %v6140_v36 = vld [vmem:[%s11611_s2 + $0x4d0] sm:$0xf0] }
 0x391   : > { %v2834_v17 = vpop.f32.mrf.mxu0  ;;  %v8747_v41 = vadd.f32 %v2703_v46, %v8556_v14  ;;  %v6143_v43 = vor.u32 %v6516_v28, %v6140_v36  ;;  %v6050_v46 = vld [vmem:[%s11611_s2 + $0x400] sm:$0xf]  ;;  %v6496_v28 = vld [vmem:[%s11611_s2 + $0x414] sm:$0xf0] }
 0x392   : > { %12018 = vst [vmem:[#allocation128_spill] sm:$0xff] %v8742_v18  ;;  %v2923_v60 = vpop.f32.mrf.mxu1  ;;  %v6051_v36 = vor.u32 %v6496_v28, %v6050_v46  ;;  %v12022_v18 = vld [vmem:[#allocation42_spill] sm:$0xff] }
 0x393   : > { %v8744_v42 = vadd.f32 %v2923_v60, %v2834_v17  ;;  %3088 = vmatpush.bf16.msra.mxu3 %v6143_v43 }
 0x394   : > { %2784 = vmatmul.bf16.gmra.mxu3 %v7698_v45  ;;  %2873 = vmatmul.bf16.gmra.mxu0 %v7292_v29 }
 0x395   : > { %2962 = vmatmul.bf16.gmra.mxu1 %v7299_v50  ;;  %3021 = vmatmul.bf16.gmra.mxu2 %v7305_v34 }
 0x396   : > { %3351 = vmatpush.bf16.msra.mxu2 %v6051_v36  ;;  %v6448_v36 = vld [vmem:[%s11611_s2 + $0x294] sm:$0xf0] }
 0x397   : > { %v2745_v55 = vpop.f32.mrf.mxu3 }
 0x398   : > { %v8760_v14 = vadd.f32 %v2745_v55, %v8481_v62  ;;  %v2706_v23 = vpop.f32.mrf.mxu2 }
 0x399   : > { %v2836_v21 = vpop.f32.mrf.mxu0  ;;  %v8765_v60 = vadd.f32 %v2706_v23, %v8564_v6  ;;  %v5666_v6 = vld [vmem:[%s11611_s2 + $0x100] sm:$0xf]  ;;  %v6400_v23 = vld [vmem:[%s11611_s2 + $0x114] sm:$0xf0] }
 0x39a   : > { %12019 = vst [vmem:[#allocation129_spill] sm:$0xff] %v8760_v14  ;;  %v2925_v53 = vpop.f32.mrf.mxu1  ;;  %v5667_v28 = vor.u32 %v6400_v23, %v5666_v6 }
 0x39b   : > { %v8762_v17 = vadd.f32 %v2925_v53, %v2836_v21 }
 0x39c   : > { %3173 = vmatpush.bf16.msra.mxu0 %v5667_v28 }
 0x39f   : > { %v2747_v62 = vpop.f32.mrf.mxu3 }
 0x3a0   : > { %v8774_v43 = vadd.f32 %v2747_v62, %v8495_v33  ;;  %v2708_v53 = vpop.f32.mrf.mxu2  ;;  %v5858_v33 = vld [vmem:[%s11611_s2 + $0x280] sm:$0xf]  ;;  %v12021_v62 = vld [vmem:[#allocation40_spill] sm:$0xff] }
 0x3a1   : > { %v2839_v55 = vpop.f32.mrf.mxu0  ;;  %v8785_v46 = vadd.f32 %v2708_v53, %v8582_v44 }
 0x3a2   : > { %12020 = vst [vmem:[#allocation130_spill] sm:$0xff] %v8774_v43  ;;  %v2928_v21 = vpop.f32.mrf.mxu1  ;;  %v5859_v43 = vor.u32 %v6448_v36, %v5858_v33 }
 0x3a3   : > { %v8782_v14 = vadd.f32 %v2928_v21, %v2839_v55 }
 0x3a4   : > { %2789 = vmatmul.bf16.gmra.mxu3 %v7734_v0  ;;  %2878 = vmatmul.bf16.gmra.mxu0 %v12021_v62 }
 0x3a5   : > { %2967 = vmatmul.bf16.gmra.mxu1 %v12022_v18  ;;  %3026 = vmatmul.bf16.gmra.mxu2 %v11944_v58 }
 0x3a6   : > { %3262 = vmatpush.bf16.msra.mxu1 %v5859_v43 }
 0x3a7   : > { %v2750_v44 = vpop.f32.mrf.mxu3 }
 0x3a8   : > { %v8798_v55 = vadd.f32 %v2750_v44, %v8507_v15  ;;  %v2711_v6 = vpop.f32.mrf.mxu2  ;;  %v12025_v44 = vld [vmem:[#allocation6_spill] sm:$0xff] }
 0x3a9   : > { %v2841_v21 = vpop.f32.mrf.mxu0  ;;  %v8803_v37 = vadd.f32 %v2711_v6, %v8596_v31  ;;  %v6510_v31 = vld [vmem:[%s11611_s2 + $0x48c] sm:$0xf]  ;;  %v12027_v6 = vld [vmem:[#allocation45_spill] sm:$0xff] }
 0x3aa   : > { %12023 = vst [vmem:[#allocation131_spill] sm:$0xff] %v8798_v55  ;;  %v2930_v53 = vpop.f32.mrf.mxu1 }
 0x3ab   : > { %v8800_v23 = vadd.f32 %v2930_v53, %v2841_v21  ;;  %v12026_v21 = vld [vmem:[#allocation18_spill] sm:$0xff] }
 0x3af   : > { %v2752_v62 = vpop.f32.mrf.mxu3 }
 0x3b0   : > { %v8806_v33 = vadd.f32 %v2752_v62, %v8515_v56  ;;  %v2713_v36 = vpop.f32.mrf.mxu2  ;;  %v6116_v56 = vld [vmem:[%s11611_s2 + $0x4a0] sm:$0xf0] }
 0x3b1   : > { %v2844_v28 = vpop.f32.mrf.mxu0  ;;  %v8811_v15 = vadd.f32 %v2713_v36, %v8608_v25  ;;  %v6119_v62 = vor.u32 %v6510_v31, %v6116_v56  ;;  %v6490_v31 = vld [vmem:[%s11611_s2 + $0x3e4] sm:$0xf0] }
 0x3b2   : > { %12024 = vst [vmem:[#allocation132_spill] sm:$0xff] %v8806_v33  ;;  %v2933_v43 = vpop.f32.mrf.mxu1 }
 0x3b3   : > { %v8808_v18 = vadd.f32 %v2933_v43, %v2844_v28  ;;  %3089 = vmatpush.bf16.msra.mxu3 %v6119_v62  ;;  %v5642_v62 = vld [vmem:[%s11611_s2 + $0xd0] sm:$0xf] }
 0x3b4   : > { %2794 = vmatmul.bf16.gmra.mxu3 %v7770_v48  ;;  %2883 = vmatmul.bf16.gmra.mxu0 %v12025_v44 }
 0x3b5   : > { %2972 = vmatmul.bf16.gmra.mxu1 %v12026_v21  ;;  %3031 = vmatmul.bf16.gmra.mxu2 %v12027_v6  ;;  %v6026_v21 = vld [vmem:[%s11611_s2 + $0x3d0] sm:$0xf] }
 0x3b6   : > { %v6027_v56 = vor.u32 %v6490_v31, %v6026_v21  ;;  %v6442_v21 = vld [vmem:[%s11611_s2 + $0x264] sm:$0xf0] }
 0x3b7   : > { %v2755_v53 = vpop.f32.mrf.mxu3 }
 0x3b8   : > { %v8824_v25 = vadd.f32 %v2755_v53, %v8533_v30  ;;  %v2716_v36 = vpop.f32.mrf.mxu2  ;;  %3352 = vmatpush.bf16.msra.mxu2 %v6027_v56  ;;  %v5834_v53 = vld [vmem:[%s11611_s2 + $0x250] sm:$0xf] }
 0x3b9   : > { %v2846_v28 = vpop.f32.mrf.mxu0  ;;  %v8829_v55 = vadd.f32 %v2716_v36, %v8616_v11  ;;  %v6394_v11 = vld [vmem:[%s11611_s2 + $0xe4] sm:$0xf0]  ;;  %v5835_v31 = vor.u32 %v6442_v21, %v5834_v53  ;;  %v12031_v53 = vld [vmem:[#allocation9_spill] sm:$0xff] }
 0x3ba   : > { %12028 = vst [vmem:[#allocation133_spill] sm:$0xff] %v8824_v25  ;;  %v2935_v43 = vpop.f32.mrf.mxu1 }
 0x3bb   : > { %v8826_v33 = vadd.f32 %v2935_v43, %v2846_v28  ;;  %v5643_v43 = vor.u32 %v6394_v11, %v5642_v62  ;;  %3263 = vmatpush.bf16.msra.mxu1 %v5835_v31  ;;  %v5810_v62 = vld [vmem:[%s11611_s2 + $0x220] sm:$0xf]  ;;  %v12030_v11 = vld [vmem:[#allocation75_spill] sm:$0xff] }
 0x3bc   : > { %v12033_v31 = vld [vmem:[#allocation47_spill] sm:$0xff] }
 0x3bd   : > { %3174 = vmatpush.bf16.msra.mxu0 %v5643_v43 }
 0x3bf   : > { %v2757_v30 = vpop.f32.mrf.mxu3 }
 0x3c0   : > { %v8847_v28 = vadd.f32 %v2757_v30, %v8547_v24  ;;  %v2718_v25 = vpop.f32.mrf.mxu2  ;;  %v5618_v24 = vld [vmem:[%s11611_s2 + $0xa0] sm:$0xf]  ;;  %v6388_v30 = vld [vmem:[%s11611_s2 + $0xb4] sm:$0xf0] }
 0x3c1   : > { %v2849_v36 = vpop.f32.mrf.mxu0  ;;  %v8855_v44 = vadd.f32 %v2718_v25, %v8634_v47  ;;  %v5619_v43 = vor.u32 %v6388_v30, %v5618_v24  ;;  %v6436_v47 = vld [vmem:[%s11611_s2 + $0x234] sm:$0xf0]  ;;  %v12032_v25 = vld [vmem:[#allocation21_spill] sm:$0xff]  ;;  %v6382_v24 = vld [vmem:[%s11611_s2 + $0x84] sm:$0xf0] }
 0x3c2   : > { %12029 = vst [vmem:[#allocation134_spill] sm:$0xff] %v8847_v28  ;;  %v2938_v56 = vpop.f32.mrf.mxu1  ;;  %v5811_v21 = vor.u32 %v6436_v47, %v5810_v62  ;;  %v5786_v30 = vld [vmem:[%s11611_s2 + $0x1f0] sm:$0xf] }
 0x3c3   : > { %v8852_v6 = vadd.f32 %v2938_v56, %v2849_v36  ;;  %3175 = vmatpush.bf16.msra.mxu0 %v5619_v43  ;;  %v5594_v56 = vld [vmem:[%s11611_s2 + $0x70] sm:$0xf]  ;;  %v6430_v43 = vld [vmem:[%s11611_s2 + $0x204] sm:$0xf0] }
 0x3c4   : > { %2799 = vmatmul.bf16.gmra.mxu3 %v12030_v11  ;;  %2888 = vmatmul.bf16.gmra.mxu0 %v12031_v53  ;;  %v5595_v62 = vor.u32 %v6382_v24, %v5594_v56  ;;  %v5762_v56 = vld [vmem:[%s11611_s2 + $0x1c0] sm:$0xf] }
 0x3c5   : > { %2977 = vmatmul.bf16.gmra.mxu1 %v12032_v25  ;;  %3036 = vmatmul.bf16.gmra.mxu2 %v12033_v31 }
 0x3c6   : > { %3264 = vmatpush.bf16.msra.mxu1 %v5811_v21  ;;  %v5787_v21 = vor.u32 %v6430_v43, %v5786_v30  ;;  %v5546_v30 = vld [vmem:[%s11611_s2 + $0x10] sm:$0xf] }
 0x3c7   : > { %v2760_v36 = vpop.f32.mrf.mxu3  ;;  %3176 = vmatpush.bf16.msra.mxu0 %v5595_v62  ;;  %v6370_v62 = vld [vmem:[%s11611_s2 + $0x24] sm:$0xf0]  ;;  %v5738_v43 = vld [vmem:[%s11611_s2 + $0x190] sm:$0xf] }
 0x3c8   : > { %v8883_v28 = vadd.f32 %v2760_v36, %v8559_v54  ;;  %v2721_v25 = vpop.f32.mrf.mxu2  ;;  %v5570_v54 = vld [vmem:[%s11611_s2 + $0x40] sm:$0xf]  ;;  %v6376_v36 = vld [vmem:[%s11611_s2 + $0x54] sm:$0xf0] }
 0x3c9   : > { %v2851_v47 = vpop.f32.mrf.mxu0  ;;  %v8891_v11 = vadd.f32 %v2721_v25, %v8654_v51  ;;  %v5571_v24 = vor.u32 %v6376_v36, %v5570_v54  ;;  %v6418_v54 = vld [vmem:[%s11611_s2 + $0x1a4] sm:$0xf0] }
 0x3ca   : > { %12034 = vst [vmem:[#allocation135_spill] sm:$0xff] %v8883_v28  ;;  %v2940_v31 = vpop.f32.mrf.mxu1  ;;  %3265 = vmatpush.bf16.msra.mxu1 %v5787_v21  ;;  %v5547_v21 = vor.u32 %v6370_v62, %v5546_v30  ;;  %v6556_v30 = vld [vmem:[%s11611_s2 + $0x5f4] sm:$0xf0] }
 0x3cb   : > { %v8888_v53 = vadd.f32 %v2940_v31, %v2851_v47  ;;  %v6424_v31 = vld [vmem:[%s11611_s2 + $0x1d4] sm:$0xf0]  ;;  %3177 = vmatpush.bf16.msra.mxu0 %v5571_v24 }
 0x3cc   : > { %v5763_v51 = vor.u32 %v6424_v31, %v5762_v56  ;;  %v5739_v56 = vor.u32 %v6418_v54, %v5738_v43 }
 0x3ce   : > { %3266 = vmatpush.bf16.msra.mxu1 %v5763_v51 }
 0x3cf   : > { %v2762_v25 = vpop.f32.mrf.mxu3  ;;  %3178 = vmatpush.bf16.msra.mxu0 %v5547_v21  ;;  %v12037_v21 = vld [vmem:[#allocation49_spill] sm:$0xff] }
 0x3d0   : > { %v8915_v47 = vadd.f32 %v2762_v25, %v8567_v8  ;;  %v2723_v31 = vpop.f32.mrf.mxu2  ;;  %v12036_v8 = vld [vmem:[#allocation24_spill] sm:$0xff]  ;;  %v6290_v25 = vld [vmem:[%s11611_s2 + $0x5e0] sm:$0xf] }
 0x3d1   : > { %v2854_v36 = vpop.f32.mrf.mxu0  ;;  %v8923_v28 = vadd.f32 %v2723_v31, %v8672_v5  ;;  %v6291_v62 = vor.u32 %v6556_v30, %v6290_v25  ;;  %v6484_v25 = vld [vmem:[%s11611_s2 + $0x3b4] sm:$0xf0] }
 0x3d2   : > { %12035 = vst [vmem:[#allocation136_spill] sm:$0xff] %v8915_v47  ;;  %v2943_v24 = vpop.f32.mrf.mxu1  ;;  %3267 = vmatpush.bf16.msra.mxu1 %v5739_v56  ;;  %v6002_v47 = vld [vmem:[%s11611_s2 + $0x3a0] sm:$0xf] }
 0x3d3   : > { %v8920_v51 = vadd.f32 %v2943_v24, %v2854_v36  ;;  %3438 = vmatpush.bf16.msrb.mxu3 %v6291_v62  ;;  %v6003_v30 = vor.u32 %v6484_v25, %v6002_v47  ;;  %v12043_v25 = vld [vmem:[#allocation51_spill] sm:$0xff] }
 0x3d4   : > { %2804 = vmatmul.bf16.gmra.mxu3 %v7887_v38  ;;  %2893 = vmatmul.bf16.gmra.mxu0 %v11878_v3 }
 0x3d5   : > { %2982 = vmatmul.bf16.gmra.mxu1 %v12036_v8  ;;  %3041 = vmatmul.bf16.gmra.mxu2 %v12037_v21  ;;  %v12041_v21 = vld [vmem:[#allocation15_spill] sm:$0xff]  ;;  %v12042_v8 = vld [vmem:[#allocation28_spill] sm:$0xff] }
 0x3d6   : > { %3353 = vmatpush.bf16.msra.mxu2 %v6003_v30 }
 0x3d7   : > { %v2765_v43 = vpop.f32.mrf.mxu3 }
 0x3d8   : > { %v8936_v5 = vadd.f32 %v2765_v43, %v8585_v61  ;;  %v3002_v56 = vpop.f32.mrf.mxu2 }
 0x3d9   : > { %v2856_v54 = vpop.f32.mrf.mxu0  ;;  %v8941_v31 = vadd.f32 %v3002_v56, %v8680_v16  ;;  %v12040_v56 = vld [vmem:[#allocation81_spill] sm:$0xff] }
 0x3da   : > { %12038 = vst [vmem:[#allocation137_spill] sm:$0xff] %v8936_v5  ;;  %v2945_v36 = vpop.f32.mrf.mxu1 }
 0x3db   : > { %v8938_v24 = vadd.f32 %v2945_v36, %v2856_v54 }
 0x3df   : > { %v2767_v61 = vpop.f32.mrf.mxu3 }
 0x3e0   : > { %v8950_v62 = vadd.f32 %v2767_v61, %v8599_v35  ;;  %v3004_v36 = vpop.f32.mrf.mxu2 }
 0x3e1   : > { %v2859_v43 = vpop.f32.mrf.mxu0  ;;  %v8955_v16 = vadd.f32 %v3004_v36, %v8698_v13 }
 0x3e2   : > { %12039 = vst [vmem:[#allocation138_spill] sm:$0xff] %v8950_v62  ;;  %v2948_v54 = vpop.f32.mrf.mxu1 }
 0x3e3   : > { %v8952_v5 = vadd.f32 %v2948_v54, %v2859_v43 }
 0x3e4   : > { %2809 = vmatmul.bf16.gmra.mxu3 %v12040_v56  ;;  %2898 = vmatmul.bf16.gmra.mxu0 %v12041_v21 }
 0x3e5   : > { %2987 = vmatmul.bf16.gmra.mxu1 %v12042_v8  ;;  %3046 = vmatmul.bf16.gmra.mxu2 %v12043_v25 }
 0x3e7   : > { %v2770_v47 = vpop.f32.mrf.mxu3 }
 0x3e8   : > { %v8962_v35 = vadd.f32 %v2770_v47, %v8611_v22  ;;  %v3007_v62 = vpop.f32.mrf.mxu2  ;;  %v12046_v47 = vld [vmem:[#allocation44_spill] sm:$0xff] }
 0x3e9   : > { %v2861_v30 = vpop.f32.mrf.mxu0  ;;  %v8967_v13 = vadd.f32 %v3007_v62, %v8718_v7  ;;  %v6266_v7 = vld [vmem:[%s11611_s2 + $0x5b0] sm:$0xf] }
 0x3ea   : > { %12044 = vst [vmem:[#allocation139_spill] sm:$0xff] %v8962_v35  ;;  %v2950_v61 = vpop.f32.mrf.mxu1  ;;  %v12047_v35 = vld [vmem:[#allocation5_spill] sm:$0xff] }
 0x3eb   : > { %v8964_v43 = vadd.f32 %v2950_v61, %v2861_v30  ;;  %v12048_v30 = vld [vmem:[#allocation7_spill] sm:$0xff] }
 0x3ef   : > { %v2772_v54 = vpop.f32.mrf.mxu3 }
 0x3f0   : > { %v8970_v36 = vadd.f32 %v2772_v54, %v8619_v26  ;;  %v3009_v56 = vpop.f32.mrf.mxu2  ;;  %v6550_v26 = vld [vmem:[%s11611_s2 + $0x5c4] sm:$0xf0] }
 0x3f1   : > { %v2864_v21 = vpop.f32.mrf.mxu0  ;;  %v8975_v22 = vadd.f32 %v3009_v56, %v8736_v59  ;;  %v6267_v62 = vor.u32 %v6550_v26, %v6266_v7  ;;  %v6478_v7 = vld [vmem:[%s11611_s2 + $0x384] sm:$0xf0] }
 0x3f2   : > { %12045 = vst [vmem:[#allocation140_spill] sm:$0xff] %v8970_v36  ;;  %v2953_v8 = vpop.f32.mrf.mxu1 }
 0x3f3   : > { %v8972_v3 = vadd.f32 %v2953_v8, %v2864_v21  ;;  %v12049_v21 = vld [vmem:[#allocation53_spill] sm:$0xff]  ;;  %3439 = vmatpush.bf16.msrb.mxu3 %v6267_v62 }
 0x3f4   : > { %3090 = vmatmul.bf16.vlgmr.msra.gmra.mxu3 %v12046_v47  ;;  %3179 = vmatmul.bf16.vlgmr.msra.gmra.mxu0 %v12047_v35  ;;  %v5978_v35 = vld [vmem:[%s11611_s2 + $0x370] sm:$0xf]  ;;  %v12054_v47 = vld [vmem:[#allocation10_spill] sm:$0xff] }
 0x3f5   : > { %3268 = vmatmul.bf16.vlgmr.msra.gmra.mxu1 %v12048_v30  ;;  %3051 = vmatmul.bf16.gmra.mxu2 %v12049_v21  ;;  %v5979_v26 = vor.u32 %v6478_v7, %v5978_v35  ;;  %v12053_v21 = vld [vmem:[#allocation8_spill] sm:$0xff] }
 0x3f6   : > { %v12055_v7 = vld [vmem:[#allocation56_spill] sm:$0xff] }
 0x3f7   : > { %v2775_v8 = vpop.f32.mrf.mxu3  ;;  %3354 = vmatpush.bf16.msra.mxu2 %v5979_v26 }
 0x3f8   : > { %v8988_v59 = vadd.f32 %v2775_v8, %v8637_v63  ;;  %v3012_v54 = vpop.f32.mrf.mxu2 }
 0x3f9   : > { %v2866_v56 = vpop.f32.mrf.mxu0  ;;  %v8993_v30 = vadd.f32 %v3012_v54, %v8744_v42  ;;  %v12052_v54 = vld [vmem:[#allocation46_spill] sm:$0xff] }
 0x3fa   : > { %12050 = vst [vmem:[#allocation141_spill] sm:$0xff] %v8988_v59  ;;  %v2955_v61 = vpop.f32.mrf.mxu1 }
 0x3fb   : > { %v8990_v36 = vadd.f32 %v2955_v61, %v2866_v56 }
 0x3ff   : > { %v2777_v63 = vpop.f32.mrf.mxu3 }
 0x400   : > { %v9002_v62 = vadd.f32 %v2777_v63, %v8657_v57  ;;  %v3014_v61 = vpop.f32.mrf.mxu2 }
 0x401   : > { %v2869_v8 = vpop.f32.mrf.mxu0  ;;  %v9007_v42 = vadd.f32 %v3014_v61, %v8762_v17 }
 0x402   : > { %12051 = vst [vmem:[#allocation142_spill] sm:$0xff] %v9002_v62  ;;  %v2958_v56 = vpop.f32.mrf.mxu1 }
 0x403   : > { %v9004_v59 = vadd.f32 %v2958_v56, %v2869_v8 }
 0x404   : > { %3095 = vmatmul.bf16.gmra.mxu3 %v12052_v54  ;;  %3184 = vmatmul.bf16.gmra.mxu0 %v12053_v21 }
 0x405   : > { %3273 = vmatmul.bf16.gmra.mxu1 %v12054_v47  ;;  %3056 = vmatmul.bf16.gmra.mxu2 %v12055_v7 }
 0x407   : > { %v2780_v35 = vpop.f32.mrf.mxu3 }
 0x408   : > { %v9014_v57 = vadd.f32 %v2780_v35, %v8675_v20  ;;  %v3017_v62 = vpop.f32.mrf.mxu2  ;;  %v12058_v35 = vld [vmem:[#allocation48_spill] sm:$0xff] }
 0x409   : > { %v2871_v26 = vpop.f32.mrf.mxu0  ;;  %v9019_v17 = vadd.f32 %v3017_v62, %v8782_v14  ;;  %v6242_v14 = vld [vmem:[%s11611_s2 + $0x580] sm:$0xf] }
 0x40a   : > { %12056 = vst [vmem:[#allocation143_spill] sm:$0xff] %v9014_v57  ;;  %v2960_v63 = vpop.f32.mrf.mxu1  ;;  %v12059_v57 = vld [vmem:[#allocation11_spill] sm:$0xff] }
 0x40b   : > { %v9016_v8 = vadd.f32 %v2960_v63, %v2871_v26  ;;  %v12060_v26 = vld [vmem:[#allocation13_spill] sm:$0xff] }
 0x40f   : > { %v2782_v56 = vpop.f32.mrf.mxu3 }
 0x410   : > { %v9022_v61 = vadd.f32 %v2782_v56, %v8683_v49  ;;  %v3019_v54 = vpop.f32.mrf.mxu2  ;;  %v6544_v49 = vld [vmem:[%s11611_s2 + $0x594] sm:$0xf0] }
 0x411   : > { %v2874_v21 = vpop.f32.mrf.mxu0  ;;  %v9027_v20 = vadd.f32 %v3019_v54, %v8800_v23  ;;  %v6243_v62 = vor.u32 %v6544_v49, %v6242_v14  ;;  %v6472_v14 = vld [vmem:[%s11611_s2 + $0x354] sm:$0xf0] }
 0x412   : > { %12057 = vst [vmem:[#allocation144_spill] sm:$0xff] %v9022_v61  ;;  %v2963_v47 = vpop.f32.mrf.mxu1 }
 0x413   : > { %v9024_v25 = vadd.f32 %v2963_v47, %v2874_v21  ;;  %v12061_v21 = vld [vmem:[#allocation32_spill] sm:$0xff]  ;;  %3440 = vmatpush.bf16.msrb.mxu3 %v6243_v62 }
 0x414   : > { %3100 = vmatmul.bf16.gmra.mxu3 %v12058_v35  ;;  %3189 = vmatmul.bf16.gmra.mxu0 %v12059_v57  ;;  %v5954_v57 = vld [vmem:[%s11611_s2 + $0x340] sm:$0xf]  ;;  %v12066_v35 = vld [vmem:[#allocation16_spill] sm:$0xff] }
 0x415   : > { %3278 = vmatmul.bf16.gmra.mxu1 %v12060_v26  ;;  %3061 = vmatmul.bf16.gmra.mxu2 %v12061_v21  ;;  %v5955_v49 = vor.u32 %v6472_v14, %v5954_v57  ;;  %v12065_v21 = vld [vmem:[#allocation14_spill] sm:$0xff] }
 0x417   : > { %v2785_v47 = vpop.f32.mrf.mxu3  ;;  %3355 = vmatpush.bf16.msra.mxu2 %v5955_v49 }
 0x418   : > { %v9040_v23 = vadd.f32 %v2785_v47, %v8701_v10  ;;  %v3022_v56 = vpop.f32.mrf.mxu2 }
 0x419   : > { %v2876_v54 = vpop.f32.mrf.mxu0  ;;  %v9045_v26 = vadd.f32 %v3022_v56, %v8808_v18  ;;  %v12064_v56 = vld [vmem:[#allocation50_spill] sm:$0xff] }
 0x41a   : > { %12062 = vst [vmem:[#allocation145_spill] sm:$0xff] %v9040_v23  ;;  %v2965_v63 = vpop.f32.mrf.mxu1 }
 0x41b   : > { %v9042_v61 = vadd.f32 %v2965_v63, %v2876_v54 }
 0x41f   : > { %v2787_v10 = vpop.f32.mrf.mxu3 }
 0x420   : > { %v9054_v62 = vadd.f32 %v2787_v10, %v8721_v52  ;;  %v3024_v63 = vpop.f32.mrf.mxu2 }
 0x421   : > { %v2879_v47 = vpop.f32.mrf.mxu0  ;;  %v9059_v18 = vadd.f32 %v3024_v63, %v8826_v33 }
 0x422   : > { %12063 = vst [vmem:[#allocation146_spill] sm:$0xff] %v9054_v62  ;;  %v2968_v54 = vpop.f32.mrf.mxu1 }
 0x423   : > { %v9056_v23 = vadd.f32 %v2968_v54, %v2879_v47 }
 0x424   : > { %3105 = vmatmul.bf16.gmra.mxu3 %v12064_v56  ;;  %3194 = vmatmul.bf16.gmra.mxu0 %v12065_v21 }
 0x425   : > { %3283 = vmatmul.bf16.gmra.mxu1 %v12066_v35  ;;  %3066 = vmatmul.bf16.gmra.mxu2 %v11988_v9 }
 0x427   : > { %v2790_v57 = vpop.f32.mrf.mxu3 }
 0x428   : > { %v9066_v52 = vadd.f32 %v2790_v57, %v8739_v32  ;;  %v3027_v10 = vpop.f32.mrf.mxu2  ;;  %v12069_v57 = vld [vmem:[#allocation52_spill] sm:$0xff] }
 0x429   : > { %v2881_v14 = vpop.f32.mrf.mxu0  ;;  %v9071_v33 = vadd.f32 %v3027_v10, %v8852_v6  ;;  %v6218_v6 = vld [vmem:[%s11611_s2 + $0x550] sm:$0xf] }
 0x42a   : > { %12067 = vst [vmem:[#allocation147_spill] sm:$0xff] %v9066_v52  ;;  %v2970_v49 = vpop.f32.mrf.mxu1  ;;  %v12070_v52 = vld [vmem:[#allocation17_spill] sm:$0xff] }
 0x42b   : > { %v9068_v47 = vadd.f32 %v2970_v49, %v2881_v14  ;;  %v12071_v14 = vld [vmem:[#allocation19_spill] sm:$0xff] }
 0x42f   : > { %v2792_v54 = vpop.f32.mrf.mxu3 }
 0x430   : > { %v9074_v63 = vadd.f32 %v2792_v54, %v8747_v41  ;;  %v3029_v21 = vpop.f32.mrf.mxu2  ;;  %v6538_v41 = vld [vmem:[%s11611_s2 + $0x564] sm:$0xf0] }
 0x431   : > { %v2884_v62 = vpop.f32.mrf.mxu0  ;;  %v9079_v32 = vadd.f32 %v3029_v21, %v8888_v53  ;;  %v6219_v49 = vor.u32 %v6538_v41, %v6218_v6  ;;  %v6466_v6 = vld [vmem:[%s11611_s2 + $0x324] sm:$0xf0] }
 0x432   : > { %12068 = vst [vmem:[#allocation148_spill] sm:$0xff] %v9074_v63  ;;  %v2973_v35 = vpop.f32.mrf.mxu1 }
 0x433   : > { %v9076_v56 = vadd.f32 %v2973_v35, %v2884_v62  ;;  %v12072_v62 = vld [vmem:[#allocation39_spill] sm:$0xff]  ;;  %3441 = vmatpush.bf16.msrb.mxu3 %v6219_v49 }
 0x434   : > { %3110 = vmatmul.bf16.gmra.mxu3 %v12069_v57  ;;  %3199 = vmatmul.bf16.gmra.mxu0 %v12070_v52  ;;  %v5930_v52 = vld [vmem:[%s11611_s2 + $0x310] sm:$0xf]  ;;  %v12077_v57 = vld [vmem:[#allocation22_spill] sm:$0xff] }
 0x435   : > { %3288 = vmatmul.bf16.gmra.mxu1 %v12071_v14  ;;  %3071 = vmatmul.bf16.gmra.mxu2 %v12072_v62  ;;  %v5931_v41 = vor.u32 %v6466_v6, %v5930_v52  ;;  %v12076_v62 = vld [vmem:[#allocation20_spill] sm:$0xff] }
 0x437   : > { %v2795_v35 = vpop.f32.mrf.mxu3  ;;  %3356 = vmatpush.bf16.msra.mxu2 %v5931_v41 }
 0x438   : > { %v9092_v53 = vadd.f32 %v2795_v35, %v8765_v60  ;;  %v3032_v54 = vpop.f32.mrf.mxu2 }
 0x439   : > { %v2886_v21 = vpop.f32.mrf.mxu0  ;;  %v9097_v14 = vadd.f32 %v3032_v54, %v8920_v51  ;;  %v12075_v54 = vld [vmem:[#allocation55_spill] sm:$0xff] }
 0x43a   : > { %12073 = vst [vmem:[#allocation149_spill] sm:$0xff] %v9092_v53  ;;  %v2975_v10 = vpop.f32.mrf.mxu1 }
 0x43b   : > { %v9094_v63 = vadd.f32 %v2975_v10, %v2886_v21 }
 0x43f   : > { %v2797_v60 = vpop.f32.mrf.mxu3 }
 0x440   : > { %v9106_v49 = vadd.f32 %v2797_v60, %v8785_v46  ;;  %v3034_v10 = vpop.f32.mrf.mxu2 }
 0x441   : > { %v2889_v35 = vpop.f32.mrf.mxu0  ;;  %v9111_v51 = vadd.f32 %v3034_v10, %v8938_v24 }
 0x442   : > { %12074 = vst [vmem:[#allocation150_spill] sm:$0xff] %v9106_v49  ;;  %v2978_v21 = vpop.f32.mrf.mxu1 }
 0x443   : > { %v9108_v53 = vadd.f32 %v2978_v21, %v2889_v35 }
 0x444   : > { %3115 = vmatmul.bf16.gmra.mxu3 %v12075_v54  ;;  %3204 = vmatmul.bf16.gmra.mxu0 %v12076_v62 }
 0x445   : > { %3293 = vmatmul.bf16.gmra.mxu1 %v12077_v57  ;;  %3076 = vmatmul.bf16.gmra.mxu2 %v11920_v39 }
 0x447   : > { %v2800_v52 = vpop.f32.mrf.mxu3 }
 0x448   : > { %v9118_v46 = vadd.f32 %v2800_v52, %v8803_v37  ;;  %v3037_v60 = vpop.f32.mrf.mxu2  ;;  %v12080_v52 = vld [vmem:[#allocation23_spill] sm:$0xff] }
 0x449   : > { %v2891_v6 = vpop.f32.mrf.mxu0  ;;  %v9123_v24 = vadd.f32 %v3037_v60, %v8952_v5  ;;  %v6194_v5 = vld [vmem:[%s11611_s2 + $0x520] sm:$0xf] }
 0x44a   : > { %12078 = vst [vmem:[#allocation151_spill] sm:$0xff] %v9118_v46  ;;  %v2980_v41 = vpop.f32.mrf.mxu1 }
 0x44b   : > { %v9120_v35 = vadd.f32 %v2980_v41, %v2891_v6  ;;  %v12081_v6 = vld [vmem:[#allocation25_spill] sm:$0xff] }
 0x44f   : > { %v2802_v21 = vpop.f32.mrf.mxu3 }
 0x450   : > { %v9126_v10 = vadd.f32 %v2802_v21, %v8811_v15  ;;  %v3039_v62 = vpop.f32.mrf.mxu2  ;;  %v6532_v15 = vld [vmem:[%s11611_s2 + $0x534] sm:$0xf0] }
 0x451   : > { %v2894_v49 = vpop.f32.mrf.mxu0  ;;  %v9131_v37 = vadd.f32 %v3039_v62, %v8964_v43  ;;  %v6195_v41 = vor.u32 %v6532_v15, %v6194_v5  ;;  %v6100_v5 = vld [vmem:[%s11611_s2 + $0x478] sm:$0xf0] }
 0x452   : > { %12079 = vst [vmem:[#allocation152_spill] sm:$0xff] %v9126_v10  ;;  %v2983_v57 = vpop.f32.mrf.mxu1 }
 0x453   : > { %v9128_v54 = vadd.f32 %v2983_v57, %v2894_v49  ;;  %v12082_v49 = vld [vmem:[#allocation26_spill] sm:$0xff]  ;;  %3442 = vmatpush.bf16.msrb.mxu3 %v6195_v41 }
 0x454   : > { %3120 = vmatmul.bf16.gmra.mxu3 %v7554_v1  ;;  %3209 = vmatmul.bf16.gmra.mxu0 %v12080_v52  ;;  %v12087_v52 = vld [vmem:[#allocation29_spill] sm:$0xff] }
 0x455   : > { %3298 = vmatmul.bf16.gmra.mxu1 %v12081_v6  ;;  %3357 = vmatmul.bf16.vlgmr.msra.gmra.mxu2 %v12082_v49  ;;  %v6505_v6 = vld [vmem:[%s11611_s2 + $0x464] sm:$0xf] }
 0x456   : > { %v6103_v15 = vor.u32 %v6505_v6, %v6100_v5 }
 0x457   : > { %v2805_v57 = vpop.f32.mrf.mxu3 }
 0x458   : > { %v9144_v43 = vadd.f32 %v2805_v57, %v8829_v55  ;;  %v3042_v21 = vpop.f32.mrf.mxu2  ;;  %3705 = vmatpush.bf16.msrb.mxu2 %v6103_v15  ;;  %v5908_v15 = vld [vmem:[%s11611_s2 + $0x2f8] sm:$0xf0] }
 0x459   : > { %v2896_v62 = vpop.f32.mrf.mxu0  ;;  %v9149_v46 = vadd.f32 %v3042_v21, %v8972_v3  ;;  %v6409_v3 = vld [vmem:[%s11611_s2 + $0x164] sm:$0xf]  ;;  %v5716_v21 = vld [vmem:[%s11611_s2 + $0x178] sm:$0xf0] }
 0x45a   : > { %12083 = vst [vmem:[#allocation153_spill] sm:$0xff] %v9144_v43  ;;  %v2985_v60 = vpop.f32.mrf.mxu1  ;;  %v5719_v5 = vor.u32 %v6409_v3, %v5716_v21 }
 0x45b   : > { %v9146_v10 = vadd.f32 %v2985_v60, %v2896_v62 }
 0x45c   : > { %3527 = vmatpush.bf16.msrb.mxu0 %v5719_v5 }
 0x45f   : > { %v2807_v55 = vpop.f32.mrf.mxu3 }
 0x460   : > { %v9158_v41 = vadd.f32 %v2807_v55, %v8855_v44  ;;  %v3044_v60 = vpop.f32.mrf.mxu2  ;;  %v6457_v44 = vld [vmem:[%s11611_s2 + $0x2e4] sm:$0xf]  ;;  %v12085_v55 = vld [vmem:[#allocation59_spill] sm:$0xff] }
 0x461   : > { %v2899_v57 = vpop.f32.mrf.mxu0  ;;  %v9169_v6 = vadd.f32 %v3044_v60, %v8990_v36  ;;  %v5911_v49 = vor.u32 %v6457_v44, %v5908_v15 }
 0x462   : > { %12084 = vst [vmem:[#allocation154_spill] sm:$0xff] %v9158_v41  ;;  %v2988_v62 = vpop.f32.mrf.mxu1  ;;  %v12086_v41 = vld [vmem:[#allocation27_spill] sm:$0xff] }
 0x463   : > { %v9166_v43 = vadd.f32 %v2988_v62, %v2899_v57  ;;  %3616 = vmatpush.bf16.msrb.mxu1 %v5911_v49 }
 0x464   : > { %3125 = vmatmul.bf16.gmra.mxu3 %v12085_v55  ;;  %3214 = vmatmul.bf16.gmra.mxu0 %v12086_v41 }
 0x465   : > { %3303 = vmatmul.bf16.gmra.mxu1 %v12087_v52  ;;  %3362 = vmatmul.bf16.gmra.mxu2 %v11930_v40 }
 0x467   : > { %v2810_v36 = vpop.f32.mrf.mxu3 }
 0x468   : > { %v9182_v57 = vadd.f32 %v2810_v36, %v8891_v11  ;;  %v3047_v3 = vpop.f32.mrf.mxu2 }
 0x469   : > { %v2901_v62 = vpop.f32.mrf.mxu0  ;;  %v9187_v55 = vadd.f32 %v3047_v3, %v9004_v59  ;;  %v6170_v59 = vld [vmem:[%s11611_s2 + $0x4f0] sm:$0xf] }
 0x46a   : > { %12088 = vst [vmem:[#allocation155_spill] sm:$0xff] %v9182_v57  ;;  %v2990_v60 = vpop.f32.mrf.mxu1 }
 0x46b   : > { %v9184_v21 = vadd.f32 %v2990_v60, %v2901_v62  ;;  %v12090_v60 = vld [vmem:[#allocation62_spill] sm:$0xff] }
 0x46c   : > { %v3883_v3 = vmul.f32 %v12090_v60, %v12090_v60 }
 0x46f   : > { %v2812_v41 = vpop.f32.mrf.mxu3 }
 0x470   : > { %v9190_v44 = vadd.f32 %v2812_v41, %v8923_v28  ;;  %v3049_v15 = vpop.f32.mrf.mxu2  ;;  %v6526_v28 = vld [vmem:[%s11611_s2 + $0x504] sm:$0xf0] }
 0x471   : > { %v3180_v5 = vpop.f32.mrf.mxu0  ;;  %v9195_v11 = vadd.f32 %v3049_v15, %v9016_v8  ;;  %v6171_v41 = vor.u32 %v6526_v28, %v6170_v59  ;;  %v6499_v59 = vld [vmem:[%s11611_s2 + $0x434] sm:$0xf] }
 0x472   : > { %12089 = vst [vmem:[#allocation156_spill] sm:$0xff] %v9190_v44  ;;  %v3269_v49 = vpop.f32.mrf.mxu1 }
 0x473   : > { %v9192_v52 = vadd.f32 %v3269_v49, %v3180_v5  ;;  %3443 = vmatpush.bf16.msrb.mxu3 %v6171_v41 }
 0x474   : > { %3130 = vmatmul.bf16.gmra.mxu3 %v7626_v2  ;;  %3219 = vmatmul.bf16.gmra.mxu0 %v7119_v12 }
 0x475   : > { %3308 = vmatmul.bf16.gmra.mxu1 %v7123_v19  ;;  %3367 = vmatmul.bf16.gmra.mxu2 %v7131_v27 }
 0x477   : > { %v3091_v36 = vpop.f32.mrf.mxu3 }
 0x478   : > { %v3092_v8 = vadd.f32 %v3091_v36, %v8941_v31  ;;  %v3052_v15 = vpop.f32.mrf.mxu2  ;;  %v6076_v31 = vld [vmem:[%s11611_s2 + $0x448] sm:$0xf0] }
 0x479   : > { %v3182_v62 = vpop.f32.mrf.mxu0  ;;  %v9213_v57 = vadd.f32 %v3052_v15, %v9024_v25  ;;  %v6079_v28 = vor.u32 %v6499_v59, %v6076_v31  ;;  %v5692_v15 = vld [vmem:[%s11611_s2 + $0x148] sm:$0xf0] }
 0x47a   : > { %v3979_v5 = vmul.f32 %v3092_v8, %v3092_v8  ;;  %v3271_v49 = vpop.f32.mrf.mxu1 }
 0x47b   : > { %v9210_v44 = vadd.f32 %v3271_v49, %v3182_v62  ;;  %3706 = vmatpush.bf16.msrb.mxu2 %v6079_v28  ;;  %v12092_v62 = vld [vmem:[#allocation63_spill] sm:$0xff] }
 0x47c   : > { %v9215_v19 = vadd.f32 %v3979_v5, %v3883_v3  ;;  %v3886_v25 = vmul.f32 %v12092_v62, %v12092_v62  ;;  %v6403_v49 = vld [vmem:[%s11611_s2 + $0x134] sm:$0xf] }
 0x47d   : > { %v6451_v28 = vld [vmem:[%s11611_s2 + $0x2b4] sm:$0xf] }
 0x47e   : > { %12091 = vst [vmem:[#allocation62_spill] sm:$0xff] %v9215_v19  ;;  %v12094_v62 = vld [vmem:[#allocation35_spill] sm:$0xff] }
 0x47f   : > { %v3093_v41 = vpop.f32.mrf.mxu3 }
 0x480   : > { %v3094_v36 = vadd.f32 %v3093_v41, %v8955_v16  ;;  %v3054_v5 = vpop.f32.mrf.mxu2  ;;  %v5695_v16 = vor.u32 %v6403_v49, %v5692_v15  ;;  %v5884_v41 = vld [vmem:[%s11611_s2 + $0x2c8] sm:$0xf0]  ;;  %v12097_v49 = vld [vmem:[#allocation65_spill] sm:$0xff] }
 0x481   : > { %v3185_v8 = vpop.f32.mrf.mxu0  ;;  %v9235_v31 = vadd.f32 %v3054_v5, %v9042_v61  ;;  %v5887_v19 = vor.u32 %v6451_v28, %v5884_v41  ;;  %v3889_v15 = vmul.f32 %v12097_v49, %v12097_v49  ;;  %v12099_v41 = vld [vmem:[#allocation66_spill] sm:$0xff] }
 0x482   : > { %v3982_v60 = vmul.f32 %v3094_v36, %v3094_v36  ;;  %v3274_v3 = vpop.f32.mrf.mxu1  ;;  %v12093_v36 = vld [vmem:[#allocation64_spill] sm:$0xff]  ;;  %3528 = vmatpush.bf16.msrb.mxu0 %v5695_v16 }
 0x483   : > { %v9232_v59 = vadd.f32 %v3274_v3, %v3185_v8  ;;  %v12096_v8 = vld [vmem:[#allocation37_spill] sm:$0xff]  ;;  %3617 = vmatpush.bf16.msrb.mxu1 %v5887_v19 }
 0x484   : > { %3135 = vmatmul.bf16.gmra.mxu3 %v12093_v36  ;;  %3224 = vmatmul.bf16.gmra.mxu0 %v12094_v62  ;;  %v9245_v27 = vadd.f32 %v3982_v60, %v3886_v25 }
 0x485   : > { %3313 = vmatmul.bf16.gmra.mxu1 %v12096_v8  ;;  %3372 = vmatmul.bf16.gmra.mxu2 %v11938_v4 }
 0x486   : > { %12095 = vst [vmem:[#allocation63_spill] sm:$0xff] %v9245_v27 }
 0x487   : > { %v3096_v61 = vpop.f32.mrf.mxu3 }
 0x488   : > { %v3097_v3 = vadd.f32 %v3096_v61, %v8967_v13  ;;  %v3057_v2 = vpop.f32.mrf.mxu2  ;;  %v3892_v13 = vmul.f32 %v12099_v41, %v12099_v41 }
 0x489   : > { %v3187_v5 = vpop.f32.mrf.mxu0  ;;  %v9255_v25 = vadd.f32 %v3057_v2, %v9056_v23  ;;  %v6146_v2 = vld [vmem:[%s11611_s2 + $0x4c0] sm:$0xf] }
 0x48a   : > { %v3985_v12 = vmul.f32 %v3097_v3, %v3097_v3  ;;  %v3276_v36 = vpop.f32.mrf.mxu1 }
 0x48b   : > { %v9252_v62 = vadd.f32 %v3276_v36, %v3187_v5 }
 0x48c   : > { %v9257_v60 = vadd.f32 %v3985_v12, %v3889_v15  ;;  %v12101_v15 = vld [vmem:[#allocation67_spill] sm:$0xff] }
 0x48e   : > { %12098 = vst [vmem:[#allocation37_spill] sm:$0xff] %v9257_v60 }
 0x48f   : > { %v3098_v19 = vpop.f32.mrf.mxu3 }
 0x490   : > { %v3099_v16 = vadd.f32 %v3098_v19, %v8975_v22  ;;  %v3059_v49 = vpop.f32.mrf.mxu2  ;;  %v3895_v19 = vmul.f32 %v12101_v15, %v12101_v15 }
 0x491   : > { %v3190_v28 = vpop.f32.mrf.mxu0  ;;  %v9265_v36 = vadd.f32 %v3059_v49, %v9068_v47 }
 0x492   : > { %v3988_v61 = vmul.f32 %v3099_v16, %v3099_v16  ;;  %v3279_v27 = vpop.f32.mrf.mxu1 }
 0x493   : > { %v9262_v3 = vadd.f32 %v3279_v27, %v3190_v28  ;;  %v6520_v27 = vld [vmem:[%s11611_s2 + $0x4d4] sm:$0xf0] }
 0x494   : > { %3140 = vmatmul.bf16.gmra.mxu3 %v7698_v45  ;;  %3229 = vmatmul.bf16.gmra.mxu0 %v7292_v29  ;;  %v9269_v12 = vadd.f32 %v3988_v61, %v3892_v13  ;;  %v6147_v22 = vor.u32 %v6520_v27, %v6146_v2  ;;  %v6493_v2 = vld [vmem:[%s11611_s2 + $0x404] sm:$0xf] }
 0x495   : > { %3318 = vmatmul.bf16.gmra.mxu1 %v7299_v50  ;;  %3377 = vmatmul.bf16.gmra.mxu2 %v7305_v34 }
 0x496   : > { %12100 = vst [vmem:[#allocation65_spill] sm:$0xff] %v9269_v12  ;;  %3444 = vmatpush.bf16.msrb.mxu3 %v6147_v22 }
 0x497   : > { %v3101_v23 = vpop.f32.mrf.mxu3 }
 0x498   : > { %v3102_v47 = vadd.f32 %v3101_v23, %v8993_v30  ;;  %v3062_v41 = vpop.f32.mrf.mxu2  ;;  %v6052_v30 = vld [vmem:[%s11611_s2 + $0x418] sm:$0xf0] }
 0x499   : > { %v3192_v5 = vpop.f32.mrf.mxu0  ;;  %v9285_v61 = vadd.f32 %v3062_v41, %v9076_v56  ;;  %v6055_v27 = vor.u32 %v6493_v2, %v6052_v30  ;;  %v5668_v41 = vld [vmem:[%s11611_s2 + $0x118] sm:$0xf0] }
 0x49a   : > { %v3991_v16 = vmul.f32 %v3102_v47, %v3102_v47  ;;  %v3281_v28 = vpop.f32.mrf.mxu1 }
 0x49b   : > { %v9282_v13 = vadd.f32 %v3281_v28, %v3192_v5  ;;  %3707 = vmatpush.bf16.msrb.mxu2 %v6055_v27  ;;  %v12103_v5 = vld [vmem:[#allocation68_spill] sm:$0xff]  ;;  %v6397_v28 = vld [vmem:[%s11611_s2 + $0x104] sm:$0xf] }
 0x49c   : > { %v9287_v49 = vadd.f32 %v3991_v16, %v3895_v19  ;;  %v3898_v56 = vmul.f32 %v12103_v5, %v12103_v5  ;;  %v6445_v27 = vld [vmem:[%s11611_s2 + $0x284] sm:$0xf] }
 0x49e   : > { %12102 = vst [vmem:[#allocation66_spill] sm:$0xff] %v9287_v49 }
 0x49f   : > { %v3103_v22 = vpop.f32.mrf.mxu3 }
 0x4a0   : > { %v3104_v23 = vadd.f32 %v3103_v22, %v9007_v42  ;;  %v3064_v16 = vpop.f32.mrf.mxu2  ;;  %v5671_v42 = vor.u32 %v6397_v28, %v5668_v41  ;;  %v5860_v22 = vld [vmem:[%s11611_s2 + $0x298] sm:$0xf0]  ;;  %v12107_v28 = vld [vmem:[#allocation70_spill] sm:$0xff] }
 0x4a1   : > { %v3195_v47 = vpop.f32.mrf.mxu0  ;;  %v9307_v30 = vadd.f32 %v3064_v16, %v9094_v63  ;;  %v5863_v5 = vor.u32 %v6445_v27, %v5860_v22  ;;  %v3901_v41 = vmul.f32 %v12107_v28, %v12107_v28 }
 0x4a2   : > { %v3994_v15 = vmul.f32 %v3104_v23, %v3104_v23  ;;  %v3284_v19 = vpop.f32.mrf.mxu1  ;;  %v12104_v23 = vld [vmem:[#allocation40_spill] sm:$0xff]  ;;  %3529 = vmatpush.bf16.msrb.mxu0 %v5671_v42 }
 0x4a3   : > { %v9304_v2 = vadd.f32 %v3284_v19, %v3195_v47  ;;  %v12106_v47 = vld [vmem:[#allocation42_spill] sm:$0xff]  ;;  %3618 = vmatpush.bf16.msrb.mxu1 %v5863_v5  ;;  %v12109_v5 = vld [vmem:[#allocation71_spill] sm:$0xff] }
 0x4a4   : > { %3145 = vmatmul.bf16.gmra.mxu3 %v7734_v0  ;;  %3234 = vmatmul.bf16.gmra.mxu0 %v12104_v23  ;;  %v9317_v49 = vadd.f32 %v3994_v15, %v3898_v56 }
 0x4a5   : > { %3323 = vmatmul.bf16.gmra.mxu1 %v12106_v47  ;;  %3382 = vmatmul.bf16.gmra.mxu2 %v11944_v58 }
 0x4a6   : > { %12105 = vst [vmem:[#allocation67_spill] sm:$0xff] %v9317_v49 }
 0x4a7   : > { %v3106_v63 = vpop.f32.mrf.mxu3 }
 0x4a8   : > { %v3107_v19 = vadd.f32 %v3106_v63, %v9019_v17  ;;  %v3067_v0 = vpop.f32.mrf.mxu2  ;;  %v3904_v17 = vmul.f32 %v12109_v5, %v12109_v5 }
 0x4a9   : > { %v3197_v16 = vpop.f32.mrf.mxu0  ;;  %v9327_v56 = vadd.f32 %v3067_v0, %v9108_v53  ;;  %v12110_v0 = vld [vmem:[#allocation6_spill] sm:$0xff] }
 0x4aa   : > { %v3997_v12 = vmul.f32 %v3107_v19, %v3107_v19  ;;  %v3286_v60 = vpop.f32.mrf.mxu1 }
 0x4ab   : > { %v9324_v23 = vadd.f32 %v3286_v60, %v3197_v16 }
 0x4ac   : > { %v9329_v15 = vadd.f32 %v3997_v12, %v3901_v41  ;;  %v12112_v12 = vld [vmem:[#allocation18_spill] sm:$0xff] }
 0x4ae   : > { %12108 = vst [vmem:[#allocation68_spill] sm:$0xff] %v9329_v15 }
 0x4af   : > { %v3108_v42 = vpop.f32.mrf.mxu3 }
 0x4b0   : > { %v3109_v27 = vadd.f32 %v3108_v42, %v9027_v20  ;;  %v3069_v28 = vpop.f32.mrf.mxu2  ;;  %v6122_v20 = vld [vmem:[%s11611_s2 + $0x490] sm:$0xf] }
 0x4b1   : > { %v3200_v22 = vpop.f32.mrf.mxu0  ;;  %v9337_v60 = vadd.f32 %v3069_v28, %v9120_v35  ;;  %v12113_v35 = vld [vmem:[#allocation45_spill] sm:$0xff] }
 0x4b2   : > { %v4000_v63 = vmul.f32 %v3109_v27, %v3109_v27  ;;  %v3289_v49 = vpop.f32.mrf.mxu1 }
 0x4b3   : > { %v9334_v19 = vadd.f32 %v3289_v49, %v3200_v22  ;;  %v6514_v49 = vld [vmem:[%s11611_s2 + $0x4a4] sm:$0xf0]  ;;  %v12114_v22 = vld [vmem:[#allocation73_spill] sm:$0xff] }
 0x4b4   : > { %3150 = vmatmul.bf16.gmra.mxu3 %v7770_v48  ;;  %3239 = vmatmul.bf16.gmra.mxu0 %v12110_v0  ;;  %v9341_v53 = vadd.f32 %v4000_v63, %v3904_v17  ;;  %v6123_v16 = vor.u32 %v6514_v49, %v6122_v20  ;;  %v3907_v5 = vmul.f32 %v12114_v22, %v12114_v22  ;;  %v6487_v20 = vld [vmem:[%s11611_s2 + $0x3d4] sm:$0xf] }
 0x4b5   : > { %3328 = vmatmul.bf16.gmra.mxu1 %v12112_v12  ;;  %3387 = vmatmul.bf16.gmra.mxu2 %v12113_v35 }
 0x4b6   : > { %12111 = vst [vmem:[#allocation42_spill] sm:$0xff] %v9341_v53  ;;  %3445 = vmatpush.bf16.msrb.mxu3 %v6123_v16 }
 0x4b7   : > { %v3111_v41 = vpop.f32.mrf.mxu3 }
 0x4b8   : > { %v3112_v42 = vadd.f32 %v3111_v41, %v9045_v26  ;;  %v3072_v28 = vpop.f32.mrf.mxu2  ;;  %v6028_v26 = vld [vmem:[%s11611_s2 + $0x3e8] sm:$0xf0]  ;;  %v6391_v41 = vld [vmem:[%s11611_s2 + $0xd4] sm:$0xf] }
 0x4b9   : > { %v3202_v27 = vpop.f32.mrf.mxu0  ;;  %v9357_v15 = vadd.f32 %v3072_v28, %v9128_v54  ;;  %v6031_v49 = vor.u32 %v6487_v20, %v6028_v26  ;;  %v5644_v54 = vld [vmem:[%s11611_s2 + $0xe8] sm:$0xf0] }
 0x4ba   : > { %v4003_v17 = vmul.f32 %v3112_v42, %v3112_v42  ;;  %v3291_v63 = vpop.f32.mrf.mxu1  ;;  %v6439_v42 = vld [vmem:[%s11611_s2 + $0x254] sm:$0xf]  ;;  %v5647_v22 = vor.u32 %v6391_v41, %v5644_v54  ;;  %v12116_v28 = vld [vmem:[#allocation74_spill] sm:$0xff]  ;;  %v6433_v41 = vld [vmem:[%s11611_s2 + $0x224] sm:$0xf] }
 0x4bb   : > { %v9354_v53 = vadd.f32 %v3291_v63, %v3202_v27  ;;  %3708 = vmatpush.bf16.msrb.mxu2 %v6031_v49  ;;  %v3910_v20 = vmul.f32 %v12116_v28, %v12116_v28  ;;  %v12117_v54 = vld [vmem:[#allocation75_spill] sm:$0xff] }
 0x4bc   : > { %v9359_v12 = vadd.f32 %v4003_v17, %v3907_v5  ;;  %v5836_v5 = vld [vmem:[%s11611_s2 + $0x268] sm:$0xf0]  ;;  %3530 = vmatpush.bf16.msrb.mxu0 %v5647_v22  ;;  %v12120_v22 = vld [vmem:[#allocation21_spill] sm:$0xff]  ;;  %v6379_v28 = vld [vmem:[%s11611_s2 + $0x74] sm:$0xf] }
 0x4bd   : > { %v5839_v63 = vor.u32 %v6439_v42, %v5836_v5  ;;  %v12118_v42 = vld [vmem:[#allocation9_spill] sm:$0xff] }
 0x4be   : > { %12115 = vst [vmem:[#allocation70_spill] sm:$0xff] %v9359_v12 }
 0x4bf   : > { %v3113_v16 = vpop.f32.mrf.mxu3  ;;  %3619 = vmatpush.bf16.msrb.mxu1 %v5839_v63  ;;  %v12121_v63 = vld [vmem:[#allocation47_spill] sm:$0xff] }
 0x4c0   : > { %v3114_v27 = vadd.f32 %v3113_v16, %v9059_v18  ;;  %v3074_v12 = vpop.f32.mrf.mxu2  ;;  %v6385_v18 = vld [vmem:[%s11611_s2 + $0xa4] sm:$0xf]  ;;  %v5620_v16 = vld [vmem:[%s11611_s2 + $0xb8] sm:$0xf0] }
 0x4c1   : > { %v3205_v17 = vpop.f32.mrf.mxu0  ;;  %v9385_v0 = vadd.f32 %v3074_v12, %v9146_v10  ;;  %v5812_v10 = vld [vmem:[%s11611_s2 + $0x238] sm:$0xf0] }
 0x4c2   : > { %v4006_v26 = vmul.f32 %v3114_v27, %v3114_v27  ;;  %v3294_v49 = vpop.f32.mrf.mxu1  ;;  %v5623_v27 = vor.u32 %v6385_v18, %v5620_v16  ;;  %v5815_v5 = vor.u32 %v6433_v41, %v5812_v10  ;;  %v5788_v16 = vld [vmem:[%s11611_s2 + $0x208] sm:$0xf0]  ;;  %v12122_v10 = vld [vmem:[#allocation76_spill] sm:$0xff] }
 0x4c3   : > { %v9382_v35 = vadd.f32 %v3294_v49, %v3205_v17  ;;  %v5596_v49 = vld [vmem:[%s11611_s2 + $0x88] sm:$0xf0] }
 0x4c4   : > { %3155 = vmatmul.bf16.gmra.mxu3 %v12117_v54  ;;  %3244 = vmatmul.bf16.gmra.mxu0 %v12118_v42  ;;  %v9401_v12 = vadd.f32 %v4006_v26, %v3910_v20  ;;  %v6427_v20 = vld [vmem:[%s11611_s2 + $0x1f4] sm:$0xf]  ;;  %v5599_v18 = vor.u32 %v6379_v28, %v5596_v49  ;;  %v6421_v28 = vld [vmem:[%s11611_s2 + $0x1c4] sm:$0xf] }
 0x4c5   : > { %3333 = vmatmul.bf16.gmra.mxu1 %v12120_v22  ;;  %3531 = vmatpush.bf16.msrb.mxu0 %v5623_v27  ;;  %v5791_v27 = vor.u32 %v6427_v20, %v5788_v16 }
 0x4c6   : > { %12119 = vst [vmem:[#allocation71_spill] sm:$0xff] %v9401_v12  ;;  %3392 = vmatmul.bf16.gmra.mxu2 %v12121_v63  ;;  %3620 = vmatpush.bf16.msrb.mxu1 %v5815_v5  ;;  %v3913_v5 = vmul.f32 %v12122_v10, %v12122_v10 }
 0x4c7   : > { %v3116_v17 = vpop.f32.mrf.mxu3 }
 0x4c8   : > { %v3117_v26 = vadd.f32 %v3116_v17, %v9071_v33  ;;  %v3077_v22 = vpop.f32.mrf.mxu2  ;;  %v6373_v33 = vld [vmem:[%s11611_s2 + $0x44] sm:$0xf]  ;;  %v5572_v17 = vld [vmem:[%s11611_s2 + $0x58] sm:$0xf0] }
 0x4c9   : > { %v3207_v41 = vpop.f32.mrf.mxu0  ;;  %3532 = vmatpush.bf16.msrb.mxu0 %v5599_v18  ;;  %v9423_v54 = vadd.f32 %v3077_v22, %v9166_v43  ;;  %v5764_v43 = vld [vmem:[%s11611_s2 + $0x1d8] sm:$0xf0]  ;;  %v5548_v18 = vld [vmem:[%s11611_s2 + $0x28] sm:$0xf0] }
 0x4ca   : > { %v4009_v12 = vmul.f32 %v3117_v26, %v3117_v26  ;;  %v3296_v63 = vpop.f32.mrf.mxu1  ;;  %3621 = vmatpush.bf16.msrb.mxu1 %v5791_v27  ;;  %v5767_v22 = vor.u32 %v6421_v28, %v5764_v43  ;;  %v6367_v26 = vld [vmem:[%s11611_s2 + $0x14] sm:$0xf]  ;;  %v5740_v27 = vld [vmem:[%s11611_s2 + $0x1a8] sm:$0xf0] }
 0x4cb   : > { %v9420_v42 = vadd.f32 %v3296_v63, %v3207_v41  ;;  %v5575_v63 = vor.u32 %v6373_v33, %v5572_v17  ;;  %v5551_v41 = vor.u32 %v6367_v26, %v5548_v18  ;;  %v12124_v33 = vld [vmem:[#allocation77_spill] sm:$0xff]  ;;  %v12127_v26 = vld [vmem:[#allocation24_spill] sm:$0xff] }
 0x4cc   : > { %v9434_v49 = vadd.f32 %v4009_v12, %v3913_v5  ;;  %v6415_v12 = vld [vmem:[%s11611_s2 + $0x194] sm:$0xf]  ;;  %v3916_v17 = vmul.f32 %v12124_v33, %v12124_v33  ;;  %v6553_v18 = vld [vmem:[%s11611_s2 + $0x5e4] sm:$0xf] }
 0x4cd   : > { %3533 = vmatpush.bf16.msrb.mxu0 %v5575_v63  ;;  %v5743_v5 = vor.u32 %v6415_v12, %v5740_v27  ;;  %v6292_v12 = vld [vmem:[%s11611_s2 + $0x5f8] sm:$0xf0] }
 0x4ce   : > { %12123 = vst [vmem:[#allocation73_spill] sm:$0xff] %v9434_v49  ;;  %3622 = vmatpush.bf16.msrb.mxu1 %v5767_v22 }
 0x4cf   : > { %v3118_v20 = vpop.f32.mrf.mxu3 }
 0x4d0   : > { %v3119_v16 = vadd.f32 %v3118_v20, %v9079_v32  ;;  %v3079_v43 = vpop.f32.mrf.mxu2  ;;  %v12125_v32 = vld [vmem:[#allocation12_spill] sm:$0xff] }
 0x4d1   : > { %v3210_v10 = vpop.f32.mrf.mxu0  ;;  %3534 = vmatpush.bf16.msrb.mxu0 %v5551_v41  ;;  %v9457_v49 = vadd.f32 %v3079_v43, %v9184_v21  ;;  %v12128_v41 = vld [vmem:[#allocation49_spill] sm:$0xff] }
 0x4d2   : > { %v4012_v28 = vmul.f32 %v3119_v16, %v3119_v16  ;;  %v3299_v63 = vpop.f32.mrf.mxu1  ;;  %3623 = vmatpush.bf16.msrb.mxu1 %v5743_v5  ;;  %v6295_v16 = vor.u32 %v6553_v18, %v6292_v12  ;;  %v12129_v5 = vld [vmem:[#allocation79_spill] sm:$0xff]  ;;  %v6481_v18 = vld [vmem:[%s11611_s2 + $0x3a4] sm:$0xf] }
 0x4d3   : > { %v9454_v22 = vadd.f32 %v3299_v63, %v3210_v10  ;;  %v3919_v33 = vmul.f32 %v12129_v5, %v12129_v5 }
 0x4d4   : > { %3160 = vmatmul.bf16.gmra.mxu3 %v7887_v38  ;;  %3249 = vmatmul.bf16.gmra.mxu0 %v12125_v32  ;;  %v9461_v20 = vadd.f32 %v4012_v28, %v3916_v17 }
 0x4d5   : > { %3338 = vmatmul.bf16.gmra.mxu1 %v12127_v26  ;;  %3794 = vmatpush.bf16.msra.mxu3 %v6295_v16 }
 0x4d6   : > { %12126 = vst [vmem:[#allocation74_spill] sm:$0xff] %v9461_v20  ;;  %3397 = vmatmul.bf16.gmra.mxu2 %v12128_v41  ;;  %v12133_v41 = vld [vmem:[#allocation15_spill] sm:$0xff] }
 0x4d7   : > { %v3121_v21 = vpop.f32.mrf.mxu3 }
 0x4d8   : > { %v3122_v27 = vadd.f32 %v3121_v21, %v9097_v14  ;;  %v3358_v63 = vpop.f32.mrf.mxu2  ;;  %v6004_v14 = vld [vmem:[%s11611_s2 + $0x3b8] sm:$0xf0] }
 0x4d9   : > { %v3212_v10 = vpop.f32.mrf.mxu0  ;;  %v9479_v26 = vadd.f32 %v3358_v63, %v9192_v52  ;;  %v6007_v12 = vor.u32 %v6481_v18, %v6004_v14  ;;  %v12135_v14 = vld [vmem:[#allocation28_spill] sm:$0xff] }
 0x4da   : > { %v4015_v17 = vmul.f32 %v3122_v27, %v3122_v27  ;;  %v3301_v28 = vpop.f32.mrf.mxu1 }
 0x4db   : > { %v9474_v43 = vadd.f32 %v3301_v28, %v3212_v10  ;;  %3709 = vmatpush.bf16.msrb.mxu2 %v6007_v12  ;;  %v12131_v10 = vld [vmem:[#allocation80_spill] sm:$0xff]  ;;  %v12136_v12 = vld [vmem:[#allocation51_spill] sm:$0xff] }
 0x4dc   : > { %v9476_v20 = vadd.f32 %v4015_v17, %v3919_v33  ;;  %v3922_v5 = vmul.f32 %v12131_v10, %v12131_v10  ;;  %v12137_v10 = vld [vmem:[#allocation82_spill] sm:$0xff] }
 0x4de   : > { %12130 = vst [vmem:[#allocation76_spill] sm:$0xff] %v9476_v20  ;;  %v12132_v20 = vld [vmem:[#allocation81_spill] sm:$0xff] }
 0x4df   : > { %v3123_v16 = vpop.f32.mrf.mxu3 }
 0x4e0   : > { %v3124_v21 = vadd.f32 %v3123_v16, %v9111_v51  ;;  %v3360_v17 = vpop.f32.mrf.mxu2 }
 0x4e1   : > { %v3215_v27 = vpop.f32.mrf.mxu0  ;;  %v9493_v63 = vadd.f32 %v3360_v17, %v9210_v44 }
 0x4e2   : > { %v4018_v33 = vmul.f32 %v3124_v21, %v3124_v21  ;;  %v3304_v52 = vpop.f32.mrf.mxu1 }
 0x4e3   : > { %v9490_v28 = vadd.f32 %v3304_v52, %v3215_v27  ;;  %v3925_v27 = vmul.f32 %v12137_v10, %v12137_v10 }
 0x4e4   : > { %3165 = vmatmul.bf16.gmra.mxu3 %v12132_v20  ;;  %3254 = vmatmul.bf16.gmra.mxu0 %v12133_v41  ;;  %v9497_v18 = vadd.f32 %v4018_v33, %v3922_v5 }
 0x4e5   : > { %3343 = vmatmul.bf16.gmra.mxu1 %v12135_v14  ;;  %v12139_v14 = vld [vmem:[#allocation83_spill] sm:$0xff] }
 0x4e6   : > { %12134 = vst [vmem:[#allocation77_spill] sm:$0xff] %v9497_v18  ;;  %3402 = vmatmul.bf16.gmra.mxu2 %v12136_v12 }
 0x4e7   : > { %v3126_v51 = vpop.f32.mrf.mxu3 }
 0x4e8   : > { %v3127_v16 = vadd.f32 %v3126_v51, %v9123_v24  ;;  %v3363_v17 = vpop.f32.mrf.mxu2  ;;  %v3928_v24 = vmul.f32 %v12139_v14, %v12139_v14 }
 0x4e9   : > { %v3217_v21 = vpop.f32.mrf.mxu0  ;;  %v9509_v5 = vadd.f32 %v3363_v17, %v9232_v59 }
 0x4ea   : > { %v4021_v52 = vmul.f32 %v3127_v16, %v3127_v16  ;;  %v3306_v44 = vpop.f32.mrf.mxu1 }
 0x4eb   : > { %v9504_v32 = vadd.f32 %v3306_v44, %v3217_v21  ;;  %v12143_v44 = vld [vmem:[#allocation7_spill] sm:$0xff] }
 0x4ec   : > { %v9506_v20 = vadd.f32 %v4021_v52, %v3925_v27  ;;  %v12140_v27 = vld [vmem:[#allocation44_spill] sm:$0xff]  ;;  %v12141_v52 = vld [vmem:[#allocation5_spill] sm:$0xff] }
 0x4ee   : > { %12138 = vst [vmem:[#allocation79_spill] sm:$0xff] %v9506_v20 }
 0x4ef   : > { %v3128_v33 = vpop.f32.mrf.mxu3 }
 0x4f0   : > { %v3129_v18 = vadd.f32 %v3128_v33, %v9131_v37  ;;  %v3365_v10 = vpop.f32.mrf.mxu2  ;;  %v6547_v37 = vld [vmem:[%s11611_s2 + $0x5b4] sm:$0xf]  ;;  %v12145_v33 = vld [vmem:[#allocation84_spill] sm:$0xff] }
 0x4f1   : > { %v3220_v12 = vpop.f32.mrf.mxu0  ;;  %v9517_v21 = vadd.f32 %v3365_v10, %v9252_v62  ;;  %v12144_v62 = vld [vmem:[#allocation53_spill] sm:$0xff] }
 0x4f2   : > { %v4024_v51 = vmul.f32 %v3129_v18, %v3129_v18  ;;  %v3309_v41 = vpop.f32.mrf.mxu1 }
 0x4f3   : > { %v9514_v16 = vadd.f32 %v3309_v41, %v3220_v12  ;;  %v6268_v41 = vld [vmem:[%s11611_s2 + $0x5c8] sm:$0xf0] }
 0x4f4   : > { %3446 = vmatmul.bf16.vlgmr.msrb.gmra.mxu3 %v12140_v27  ;;  %3535 = vmatmul.bf16.vlgmr.msrb.gmra.mxu0 %v12141_v52  ;;  %v9521_v59 = vadd.f32 %v4024_v51, %v3928_v24  ;;  %v6271_v18 = vor.u32 %v6547_v37, %v6268_v41  ;;  %v3931_v24 = vmul.f32 %v12145_v33, %v12145_v33  ;;  %v6475_v37 = vld [vmem:[%s11611_s2 + $0x374] sm:$0xf] }
 0x4f5   : > { %3624 = vmatmul.bf16.vlgmr.msrb.gmra.mxu1 %v12143_v44 }
 0x4f6   : > { %12142 = vst [vmem:[#allocation80_spill] sm:$0xff] %v9521_v59  ;;  %3407 = vmatmul.bf16.gmra.mxu2 %v12144_v62  ;;  %3795 = vmatpush.bf16.msra.mxu3 %v6271_v18  ;;  %v12149_v62 = vld [vmem:[#allocation8_spill] sm:$0xff] }
 0x4f7   : > { %v3131_v14 = vpop.f32.mrf.mxu3 }
 0x4f8   : > { %v3132_v12 = vadd.f32 %v3131_v14, %v9149_v46  ;;  %v3368_v52 = vpop.f32.mrf.mxu2  ;;  %v5980_v46 = vld [vmem:[%s11611_s2 + $0x388] sm:$0xf0] }
 0x4f9   : > { %v3222_v17 = vpop.f32.mrf.mxu0  ;;  %v9539_v20 = vadd.f32 %v3368_v52, %v9262_v3  ;;  %v5983_v41 = vor.u32 %v6475_v37, %v5980_v46  ;;  %v12151_v46 = vld [vmem:[#allocation10_spill] sm:$0xff] }
 0x4fa   : > { %v4027_v51 = vmul.f32 %v3132_v12, %v3132_v12  ;;  %v3311_v10 = vpop.f32.mrf.mxu1 }
 0x4fb   : > { %v9534_v44 = vadd.f32 %v3311_v10, %v3222_v17  ;;  %3710 = vmatpush.bf16.msrb.mxu2 %v5983_v41  ;;  %v12147_v17 = vld [vmem:[#allocation85_spill] sm:$0xff] }
 0x4fc   : > { %v9536_v59 = vadd.f32 %v4027_v51, %v3931_v24  ;;  %v3934_v33 = vmul.f32 %v12147_v17, %v12147_v17 }
 0x4fe   : > { %12146 = vst [vmem:[#allocation82_spill] sm:$0xff] %v9536_v59  ;;  %v12148_v59 = vld [vmem:[#allocation46_spill] sm:$0xff] }
 0x4ff   : > { %v3133_v18 = vpop.f32.mrf.mxu3 }
 0x500   : > { %v3134_v14 = vadd.f32 %v3133_v18, %v9169_v6  ;;  %v3370_v51 = vpop.f32.mrf.mxu2 }
 0x501   : > { %v3225_v12 = vpop.f32.mrf.mxu0  ;;  %v9553_v52 = vadd.f32 %v3370_v51, %v9282_v13 }
 0x502   : > { %v4030_v24 = vmul.f32 %v3134_v14, %v3134_v14  ;;  %v3314_v3 = vpop.f32.mrf.mxu1  ;;  %v12152_v14 = vld [vmem:[#allocation86_spill] sm:$0xff] }
 0x503   : > { %v9550_v10 = vadd.f32 %v3314_v3, %v3225_v12  ;;  %v3937_v12 = vmul.f32 %v12152_v14, %v12152_v14 }
 0x504   : > { %3451 = vmatmul.bf16.gmra.mxu3 %v12148_v59  ;;  %3540 = vmatmul.bf16.gmra.mxu0 %v12149_v62  ;;  %v9557_v37 = vadd.f32 %v4030_v24, %v3934_v33 }
 0x505   : > { %3629 = vmatmul.bf16.gmra.mxu1 %v12151_v46 }
 0x506   : > { %12150 = vst [vmem:[#allocation83_spill] sm:$0xff] %v9557_v37  ;;  %3412 = vmatmul.bf16.gmra.mxu2 %v12055_v7  ;;  %v12154_v37 = vld [vmem:[#allocation87_spill] sm:$0xff] }
 0x507   : > { %v3136_v6 = vpop.f32.mrf.mxu3 }
 0x508   : > { %v3137_v41 = vadd.f32 %v3136_v6, %v9187_v55  ;;  %v3373_v3 = vpop.f32.mrf.mxu2  ;;  %v3940_v55 = vmul.f32 %v12154_v37, %v12154_v37 }
 0x509   : > { %v3227_v18 = vpop.f32.mrf.mxu0  ;;  %v9569_v62 = vadd.f32 %v3373_v3, %v9304_v2 }
 0x50a   : > { %v4033_v17 = vmul.f32 %v3137_v41, %v3137_v41  ;;  %v3316_v13 = vpop.f32.mrf.mxu1 }
 0x50b   : > { %v9564_v51 = vadd.f32 %v3316_v13, %v3227_v18  ;;  %v12158_v13 = vld [vmem:[#allocation13_spill] sm:$0xff] }
 0x50c   : > { %v9566_v59 = vadd.f32 %v4033_v17, %v3937_v12  ;;  %v12155_v12 = vld [vmem:[#allocation48_spill] sm:$0xff]  ;;  %v12156_v17 = vld [vmem:[#allocation11_spill] sm:$0xff] }
 0x50e   : > { %12153 = vst [vmem:[#allocation44_spill] sm:$0xff] %v9566_v59 }
 0x50f   : > { %v3138_v33 = vpop.f32.mrf.mxu3 }
 0x510   : > { %v3139_v24 = vadd.f32 %v3138_v33, %v9195_v11  ;;  %v3375_v14 = vpop.f32.mrf.mxu2  ;;  %v6541_v11 = vld [vmem:[%s11611_s2 + $0x584] sm:$0xf] }
 0x511   : > { %v3230_v46 = vpop.f32.mrf.mxu0  ;;  %v9577_v18 = vadd.f32 %v3375_v14, %v9324_v23  ;;  %v12159_v23 = vld [vmem:[#allocation32_spill] sm:$0xff] }
 0x512   : > { %v4036_v6 = vmul.f32 %v3139_v24, %v3139_v24  ;;  %v3319_v7 = vpop.f32.mrf.mxu1 }
 0x513   : > { %v9574_v41 = vadd.f32 %v3319_v7, %v3230_v46  ;;  %v6244_v7 = vld [vmem:[%s11611_s2 + $0x598] sm:$0xf0] }
 0x514   : > { %3456 = vmatmul.bf16.gmra.mxu3 %v12155_v12  ;;  %3545 = vmatmul.bf16.gmra.mxu0 %v12156_v17  ;;  %v9581_v2 = vadd.f32 %v4036_v6, %v3940_v55  ;;  %v6247_v37 = vor.u32 %v6541_v11, %v6244_v7  ;;  %v12160_v46 = vld [vmem:[#allocation88_spill] sm:$0xff]  ;;  %v6469_v11 = vld [vmem:[%s11611_s2 + $0x344] sm:$0xf] }
 0x515   : > { %3634 = vmatmul.bf16.gmra.mxu1 %v12158_v13  ;;  %v3943_v55 = vmul.f32 %v12160_v46, %v12160_v46 }
 0x516   : > { %12157 = vst [vmem:[#allocation5_spill] sm:$0xff] %v9581_v2  ;;  %3417 = vmatmul.bf16.gmra.mxu2 %v12159_v23  ;;  %3796 = vmatpush.bf16.msra.mxu3 %v6247_v37  ;;  %v12164_v23 = vld [vmem:[#allocation14_spill] sm:$0xff] }
 0x517   : > { %v3141_v3 = vpop.f32.mrf.mxu3 }
 0x518   : > { %v3142_v33 = vadd.f32 %v3141_v3, %v9213_v57  ;;  %v3378_v17 = vpop.f32.mrf.mxu2  ;;  %v5956_v57 = vld [vmem:[%s11611_s2 + $0x358] sm:$0xf0] }
 0x519   : > { %v3232_v24 = vpop.f32.mrf.mxu0  ;;  %v9599_v59 = vadd.f32 %v3378_v17, %v9334_v19  ;;  %v5959_v7 = vor.u32 %v6469_v11, %v5956_v57  ;;  %v12166_v57 = vld [vmem:[#allocation16_spill] sm:$0xff] }
 0x51a   : > { %v4039_v6 = vmul.f32 %v3142_v33, %v3142_v33  ;;  %v3321_v14 = vpop.f32.mrf.mxu1 }
 0x51b   : > { %v9594_v13 = vadd.f32 %v3321_v14, %v3232_v24  ;;  %3711 = vmatpush.bf16.msrb.mxu2 %v5959_v7  ;;  %v12162_v24 = vld [vmem:[#allocation89_spill] sm:$0xff] }
 0x51c   : > { %v9596_v2 = vadd.f32 %v4039_v6, %v3943_v55  ;;  %v3946_v46 = vmul.f32 %v12162_v24, %v12162_v24 }
 0x51e   : > { %12161 = vst [vmem:[#allocation7_spill] sm:$0xff] %v9596_v2  ;;  %v12163_v2 = vld [vmem:[#allocation50_spill] sm:$0xff] }
 0x51f   : > { %v3143_v37 = vpop.f32.mrf.mxu3 }
 0x520   : > { %v3144_v3 = vadd.f32 %v3143_v37, %v9235_v31  ;;  %v3380_v6 = vpop.f32.mrf.mxu2 }
 0x521   : > { %v3235_v33 = vpop.f32.mrf.mxu0  ;;  %v9613_v17 = vadd.f32 %v3380_v6, %v9354_v53 }
 0x522   : > { %v4042_v55 = vmul.f32 %v3144_v3, %v3144_v3  ;;  %v3324_v19 = vpop.f32.mrf.mxu1  ;;  %v12167_v3 = vld [vmem:[#allocation90_spill] sm:$0xff] }
 0x523   : > { %v9610_v14 = vadd.f32 %v3324_v19, %v3235_v33  ;;  %v3949_v33 = vmul.f32 %v12167_v3, %v12167_v3 }
 0x524   : > { %3461 = vmatmul.bf16.gmra.mxu3 %v12163_v2  ;;  %3550 = vmatmul.bf16.gmra.mxu0 %v12164_v23  ;;  %v9617_v11 = vadd.f32 %v4042_v55, %v3946_v46 }
 0x525   : > { %3639 = vmatmul.bf16.gmra.mxu1 %v12166_v57 }
 0x526   : > { %12165 = vst [vmem:[#allocation84_spill] sm:$0xff] %v9617_v11  ;;  %3422 = vmatmul.bf16.gmra.mxu2 %v11988_v9  ;;  %v12169_v11 = vld [vmem:[#allocation91_spill] sm:$0xff] }
 0x527   : > { %v3146_v31 = vpop.f32.mrf.mxu3 }
 0x528   : > { %v3147_v7 = vadd.f32 %v3146_v31, %v9255_v25  ;;  %v3383_v19 = vpop.f32.mrf.mxu2  ;;  %v3952_v25 = vmul.f32 %v12169_v11, %v12169_v11 }
 0x529   : > { %v3237_v37 = vpop.f32.mrf.mxu0  ;;  %v9629_v23 = vadd.f32 %v3383_v19, %v9382_v35 }
 0x52a   : > { %v4045_v24 = vmul.f32 %v3147_v7, %v3147_v7  ;;  %v3326_v53 = vpop.f32.mrf.mxu1 }
 0x52b   : > { %v9624_v6 = vadd.f32 %v3326_v53, %v3237_v37  ;;  %v12173_v53 = vld [vmem:[#allocation19_spill] sm:$0xff] }
 0x52c   : > { %v9626_v2 = vadd.f32 %v4045_v24, %v3949_v33  ;;  %v12170_v33 = vld [vmem:[#allocation52_spill] sm:$0xff]  ;;  %v12171_v24 = vld [vmem:[#allocation17_spill] sm:$0xff] }
 0x52e   : > { %12168 = vst [vmem:[#allocation85_spill] sm:$0xff] %v9626_v2 }
 0x52f   : > { %v3148_v46 = vpop.f32.mrf.mxu3 }
 0x530   : > { %v3149_v55 = vadd.f32 %v3148_v46, %v9265_v36  ;;  %v3385_v3 = vpop.f32.mrf.mxu2  ;;  %v6535_v36 = vld [vmem:[%s11611_s2 + $0x554] sm:$0xf] }
 0x531   : > { %v3240_v57 = vpop.f32.mrf.mxu0  ;;  %v9637_v37 = vadd.f32 %v3385_v3, %v9420_v42  ;;  %v12174_v42 = vld [vmem:[#allocation39_spill] sm:$0xff] }
 0x532   : > { %v4048_v31 = vmul.f32 %v3149_v55, %v3149_v55  ;;  %v3329_v9 = vpop.f32.mrf.mxu1 }
 0x533   : > { %v9634_v7 = vadd.f32 %v3329_v9, %v3240_v57  ;;  %v6220_v9 = vld [vmem:[%s11611_s2 + $0x568] sm:$0xf0] }
 0x534   : > { %3466 = vmatmul.bf16.gmra.mxu3 %v12170_v33  ;;  %3555 = vmatmul.bf16.gmra.mxu0 %v12171_v24  ;;  %v9641_v35 = vadd.f32 %v4048_v31, %v3952_v25  ;;  %v6223_v11 = vor.u32 %v6535_v36, %v6220_v9  ;;  %v12175_v57 = vld [vmem:[#allocation54_spill] sm:$0xff]  ;;  %v6463_v36 = vld [vmem:[%s11611_s2 + $0x314] sm:$0xf] }
 0x535   : > { %3644 = vmatmul.bf16.gmra.mxu1 %v12173_v53  ;;  %v3955_v25 = vmul.f32 %v12175_v57, %v12175_v57 }
 0x536   : > { %12172 = vst [vmem:[#allocation8_spill] sm:$0xff] %v9641_v35  ;;  %3427 = vmatmul.bf16.gmra.mxu2 %v12174_v42  ;;  %3797 = vmatpush.bf16.msra.mxu3 %v6223_v11  ;;  %v12179_v42 = vld [vmem:[#allocation20_spill] sm:$0xff] }
 0x537   : > { %v3151_v19 = vpop.f32.mrf.mxu3 }
 0x538   : > { %v3152_v46 = vadd.f32 %v3151_v19, %v9285_v61  ;;  %v3388_v24 = vpop.f32.mrf.mxu2  ;;  %v5932_v61 = vld [vmem:[%s11611_s2 + $0x328] sm:$0xf0] }
 0x539   : > { %v3242_v55 = vpop.f32.mrf.mxu0  ;;  %v9659_v2 = vadd.f32 %v3388_v24, %v9454_v22  ;;  %v5935_v9 = vor.u32 %v6463_v36, %v5932_v61  ;;  %v12181_v61 = vld [vmem:[#allocation22_spill] sm:$0xff] }
 0x53a   : > { %v4051_v31 = vmul.f32 %v3152_v46, %v3152_v46  ;;  %v3331_v3 = vpop.f32.mrf.mxu1 }
 0x53b   : > { %v9654_v53 = vadd.f32 %v3331_v3, %v3242_v55  ;;  %3712 = vmatpush.bf16.msrb.mxu2 %v5935_v9  ;;  %v12177_v55 = vld [vmem:[#allocation92_spill] sm:$0xff] }
 0x53c   : > { %v9656_v35 = vadd.f32 %v4051_v31, %v3955_v25  ;;  %v3958_v57 = vmul.f32 %v12177_v55, %v12177_v55 }
 0x53e   : > { %12176 = vst [vmem:[#allocation10_spill] sm:$0xff] %v9656_v35  ;;  %v12178_v35 = vld [vmem:[#allocation55_spill] sm:$0xff] }
 0x53f   : > { %v3153_v11 = vpop.f32.mrf.mxu3 }
 0x540   : > { %v3154_v19 = vadd.f32 %v3153_v11, %v9307_v30  ;;  %v3390_v31 = vpop.f32.mrf.mxu2 }
 0x541   : > { %v3245_v46 = vpop.f32.mrf.mxu0  ;;  %v9673_v24 = vadd.f32 %v3390_v31, %v9474_v43 }
 0x542   : > { %v4054_v25 = vmul.f32 %v3154_v19, %v3154_v19  ;;  %v3334_v22 = vpop.f32.mrf.mxu1  ;;  %v12182_v19 = vld [vmem:[#allocation57_spill] sm:$0xff] }
 0x543   : > { %v9670_v3 = vadd.f32 %v3334_v22, %v3245_v46  ;;  %v3961_v46 = vmul.f32 %v12182_v19, %v12182_v19 }
 0x544   : > { %3471 = vmatmul.bf16.gmra.mxu3 %v12178_v35  ;;  %3560 = vmatmul.bf16.gmra.mxu0 %v12179_v42  ;;  %v9677_v36 = vadd.f32 %v4054_v25, %v3958_v57 }
 0x545   : > { %3649 = vmatmul.bf16.gmra.mxu1 %v12181_v61 }
 0x546   : > { %12180 = vst [vmem:[#allocation86_spill] sm:$0xff] %v9677_v36  ;;  %3432 = vmatmul.bf16.gmra.mxu2 %v11920_v39  ;;  %v12184_v36 = vld [vmem:[#allocation93_spill] sm:$0xff] }
 0x547   : > { %v3156_v30 = vpop.f32.mrf.mxu3 }
 0x548   : > { %v3157_v9 = vadd.f32 %v3156_v30, %v9327_v56  ;;  %v3964_v56 = vmul.f32 %v12184_v36, %v12184_v36 }
 0x549   : > { %v3247_v11 = vpop.f32.mrf.mxu0  ;;  %v3393_v22 = vpop.f32.mrf.mxu2 }
 0x54a   : > { %v4057_v55 = vmul.f32 %v3157_v9, %v3157_v9  ;;  %v3336_v43 = vpop.f32.mrf.mxu1  ;;  %v9689_v42 = vadd.f32 %v3393_v22, %v9490_v28 }
 0x54b   : > { %v9684_v31 = vadd.f32 %v3336_v43, %v3247_v11 }
 0x54c   : > { %v9686_v35 = vadd.f32 %v4057_v55, %v3961_v46  ;;  %v12185_v46 = vld [vmem:[#allocation23_spill] sm:$0xff]  ;;  %v12187_v55 = vld [vmem:[#allocation25_spill] sm:$0xff] }
 0x54e   : > { %12183 = vst [vmem:[#allocation87_spill] sm:$0xff] %v9686_v35 }
 0x54f   : > { %v3158_v57 = vpop.f32.mrf.mxu3 }
 0x550   : > { %v3159_v25 = vadd.f32 %v3158_v57, %v9337_v60  ;;  %v6529_v60 = vld [vmem:[%s11611_s2 + $0x524] sm:$0xf] }
 0x551   : > { %v3250_v61 = vpop.f32.mrf.mxu0  ;;  %v3395_v19 = vpop.f32.mrf.mxu2 }
 0x552   : > { %v4060_v30 = vmul.f32 %v3159_v25, %v3159_v25  ;;  %v3339_v39 = vpop.f32.mrf.mxu1  ;;  %v9697_v11 = vadd.f32 %v3395_v19, %v9504_v32  ;;  %v12188_v32 = vld [vmem:[#allocation26_spill] sm:$0xff] }
 0x553   : > { %v9694_v9 = vadd.f32 %v3339_v39, %v3250_v61  ;;  %v6196_v39 = vld [vmem:[%s11611_s2 + $0x538] sm:$0xf0]  ;;  %v12189_v25 = vld [vmem:[#allocation58_spill] sm:$0xff] }
 0x554   : > { %3476 = vmatmul.bf16.gmra.mxu3 %v7554_v1  ;;  %3565 = vmatmul.bf16.gmra.mxu0 %v12185_v46  ;;  %v9701_v28 = vadd.f32 %v4060_v30, %v3964_v56  ;;  %v6199_v36 = vor.u32 %v6529_v60, %v6196_v39  ;;  %v3967_v61 = vmul.f32 %v12189_v25, %v12189_v25  ;;  %v4218_v60 = vld [vmem:[%s11612_s3 + $0x178] sm:$0xff] }
 0x555   : > { %3654 = vmatmul.bf16.gmra.mxu1 %v12187_v55  ;;  %4445 = vmatpush.msra.mxu2 %v4218_v60 }
 0x556   : > { %12186 = vst [vmem:[#allocation48_spill] sm:$0xff] %v9701_v28  ;;  %3713 = vmatmul.bf16.vlgmr.msrb.gmra.mxu2 %v12188_v32  ;;  %3798 = vmatpush.bf16.msra.mxu3 %v6199_v36 }
 0x557   : > { %v3161_v43 = vpop.f32.mrf.mxu3 }
 0x558   : > { %v3162_v22 = vadd.f32 %v3161_v43, %v9357_v15  ;;  %v12191_v43 = vld [vmem:[#allocation94_spill] sm:$0xff] }
 0x559   : > { %v3252_v57 = vpop.f32.mrf.mxu0  ;;  %v3398_v19 = vpop.f32.mrf.mxu2  ;;  %v3970_v32 = vmul.f32 %v12191_v43, %v12191_v43  ;;  %v12196_v43 = vld [vmem:[#allocation30_spill] sm:$0xff] }
 0x55a   : > { %v4063_v56 = vmul.f32 %v3162_v22, %v3162_v22  ;;  %v3341_v30 = vpop.f32.mrf.mxu1  ;;  %v9717_v55 = vadd.f32 %v3398_v19, %v9514_v16  ;;  %v4186_v16 = vld [vmem:[%s11612_s3 + $0x78] sm:$0xff]  ;;  %v12193_v19 = vld [vmem:[#allocation27_spill] sm:$0xff] }
 0x55b   : > { %v9714_v46 = vadd.f32 %v3341_v30, %v3252_v57  ;;  %4219 = vmatpush.msra.mxu0 %v4186_v16  ;;  %v12192_v30 = vld [vmem:[#allocation59_spill] sm:$0xff] }
 0x55c   : > { %v9719_v28 = vadd.f32 %v4063_v56, %v3967_v61 }
 0x55e   : > { %12190 = vst [vmem:[#allocation11_spill] sm:$0xff] %v9719_v28 }
 0x55f   : > { %v3163_v15 = vpop.f32.mrf.mxu3 }
 0x560   : > { %v3164_v39 = vadd.f32 %v3163_v15, %v9385_v0  ;;  %v4202_v0 = vld [vmem:[%s11612_s3 + $0xf8] sm:$0xff]  ;;  %v12195_v15 = vld [vmem:[#allocation29_spill] sm:$0xff] }
 0x561   : > { %v3255_v36 = vpop.f32.mrf.mxu0  ;;  %v3400_v25 = vpop.f32.mrf.mxu2  ;;  %4332 = vmatpush.msra.mxu1 %v4202_v0 }
 0x562   : > { %v4066_v22 = vmul.f32 %v3164_v39, %v3164_v39  ;;  %v3344_v57 = vpop.f32.mrf.mxu1  ;;  %v9733_v56 = vadd.f32 %v3400_v25, %v9534_v44 }
 0x563   : > { %v9730_v61 = vadd.f32 %v3344_v57, %v3255_v36  ;;  %v3973_v57 = vmul.f32 %v12196_v43, %v12196_v43 }
 0x564   : > { %3481 = vmatmul.bf16.gmra.mxu3 %v12192_v30  ;;  %3570 = vmatmul.bf16.gmra.mxu0 %v12193_v19  ;;  %v9740_v60 = vadd.f32 %v4066_v22, %v3970_v32 }
 0x565   : > { %3659 = vmatmul.bf16.gmra.mxu1 %v12195_v15  ;;  %v12198_v15 = vld [vmem:[#allocation60_spill] sm:$0xff] }
 0x566   : > { %12194 = vst [vmem:[#allocation13_spill] sm:$0xff] %v9740_v60  ;;  %3718 = vmatmul.bf16.gmra.mxu2 %v11930_v40  ;;  %v4217_v40 = vld [vmem:[%s11612_s3 + $0x170] sm:$0xff] }
 0x567   : > { %v3166_v39 = vpop.f32.mrf.mxu3  ;;  %4446 = vmatpush.msra.mxu2 %v4217_v40 }
 0x568   : > { %v3167_v44 = vadd.f32 %v3166_v39, %v9423_v54  ;;  %v3976_v39 = vmul.f32 %v12198_v15, %v12198_v15 }
 0x569   : > { %v3257_v36 = vpop.f32.mrf.mxu0  ;;  %v3403_v28 = vpop.f32.mrf.mxu2 }
 0x56a   : > { %v4069_v25 = vmul.f32 %v3167_v44, %v3167_v44  ;;  %v3346_v16 = vpop.f32.mrf.mxu1  ;;  %v9750_v32 = vadd.f32 %v3403_v28, %v9550_v10  ;;  %v4185_v10 = vld [vmem:[%s11612_s3 + $0x70] sm:$0xff] }
 0x56b   : > { %v9747_v35 = vadd.f32 %v3346_v16, %v3257_v36  ;;  %4220 = vmatpush.msra.mxu0 %v4185_v10  ;;  %v12200_v16 = vld [vmem:[#allocation31_spill] sm:$0xff] }
 0x56c   : > { %v9752_v22 = vadd.f32 %v4069_v25, %v3973_v57  ;;  %v12199_v25 = vld [vmem:[#allocation61_spill] sm:$0xff] }
 0x56e   : > { %12197 = vst [vmem:[#allocation88_spill] sm:$0xff] %v9752_v22 }
 0x56f   : > { %v3168_v54 = vpop.f32.mrf.mxu3 }
 0x570   : > { %v3169_v0 = vadd.f32 %v3168_v54, %v9457_v49  ;;  %v4201_v49 = vld [vmem:[%s11612_s3 + $0xf0] sm:$0xff]  ;;  %v12202_v54 = vld [vmem:[#allocation33_spill] sm:$0xff] }
 0x571   : > { %v3536_v19 = vpop.f32.mrf.mxu0  ;;  %v3405_v43 = vpop.f32.mrf.mxu2  ;;  %4333 = vmatpush.msra.mxu1 %v4201_v49 }
 0x572   : > { %v4072_v44 = vmul.f32 %v3169_v0, %v3169_v0  ;;  %v3625_v36 = vpop.f32.mrf.mxu1  ;;  %v9766_v57 = vadd.f32 %v3405_v43, %v9564_v51  ;;  %v6523_v0 = vld [vmem:[%s11611_s2 + $0x4f4] sm:$0xf]  ;;  %v6172_v51 = vld [vmem:[%s11611_s2 + $0x508] sm:$0xf0] }
 0x573   : > { %v9763_v28 = vadd.f32 %v3625_v36, %v3536_v19  ;;  %v6175_v19 = vor.u32 %v6523_v0, %v6172_v51  ;;  %v12203_v36 = vld [vmem:[#allocation34_spill] sm:$0xff] }
 0x574   : > { %3486 = vmatmul.bf16.gmra.mxu3 %v12199_v25  ;;  %3575 = vmatmul.bf16.gmra.mxu0 %v12200_v16  ;;  %v9773_v40 = vadd.f32 %v4072_v44, %v3976_v39  ;;  %v12204_v44 = vld [vmem:[#allocation95_spill] sm:$0xff]  ;;  %v4216_v0 = vld [vmem:[%s11612_s3 + $0x168] sm:$0xff] }
 0x575   : > { %3664 = vmatmul.bf16.gmra.mxu1 %v12202_v54  ;;  %3799 = vmatpush.bf16.msra.mxu3 %v6175_v19  ;;  %v3884_v10 = vmul.f32 %v12204_v44, %v12204_v44 }
 0x576   : > { %12201 = vst [vmem:[#allocation89_spill] sm:$0xff] %v9773_v40  ;;  %3723 = vmatmul.bf16.gmra.mxu2 %v12203_v36 }
 0x577   : > { %v3447_v15 = vpop.f32.mrf.mxu3  ;;  %4447 = vmatpush.msra.mxu2 %v4216_v0 }
 0x578   : > { %v3448_v43 = vadd.f32 %v3447_v15, %v9479_v26  ;;  %v12205_v15 = vld [vmem:[#allocation96_spill] sm:$0xff] }
 0x579   : > { %v3538_v39 = vpop.f32.mrf.mxu0  ;;  %v3408_v40 = vpop.f32.mrf.mxu2  ;;  %v3887_v36 = vmul.f32 %v12205_v15, %v12205_v15 }
 0x57a   : > { %v3980_v16 = vmul.f32 %v3448_v43, %v3448_v43  ;;  %v3627_v54 = vpop.f32.mrf.mxu1  ;;  %v9789_v60 = vadd.f32 %v3408_v40, %v9574_v41  ;;  %v4184_v41 = vld [vmem:[%s11612_s3 + $0x68] sm:$0xff] }
 0x57b   : > { %v9786_v22 = vadd.f32 %v3627_v54, %v3538_v39  ;;  %4221 = vmatpush.msra.mxu0 %v4184_v41  ;;  %v12207_v54 = vld [vmem:[#allocation35_spill] sm:$0xff] }
 0x57c   : > { %v9791_v49 = vadd.f32 %v3980_v16, %v3884_v10  ;;  %v12206_v16 = vld [vmem:[#allocation64_spill] sm:$0xff] }
 0x57f   : > { %v3449_v26 = vpop.f32.mrf.mxu3 }
 0x580   : > { %v3450_v51 = vadd.f32 %v3449_v26, %v9493_v63  ;;  %v4200_v63 = vld [vmem:[%s11612_s3 + $0xe8] sm:$0xff] }
 0x581   : > { %v3541_v19 = vpop.f32.mrf.mxu0  ;;  %v3410_v44 = vpop.f32.mrf.mxu2  ;;  %4334 = vmatpush.msra.mxu1 %v4200_v63 }
 0x582   : > { %v3983_v43 = vmul.f32 %v3450_v51, %v3450_v51  ;;  %v3630_v39 = vpop.f32.mrf.mxu1  ;;  %v9805_v10 = vadd.f32 %v3410_v44, %v9594_v13 }
 0x583   : > { %v9802_v40 = vadd.f32 %v3630_v39, %v3541_v19  ;;  %v12208_v19 = vld [vmem:[#allocation38_spill] sm:$0xff] }
 0x584   : > { %3491 = vmatmul.bf16.gmra.mxu3 %v12206_v16  ;;  %3580 = vmatmul.bf16.gmra.mxu0 %v12207_v54  ;;  %v9812_v0 = vadd.f32 %v3983_v43, %v3887_v36  ;;  %v3890_v15 = vmul.f32 %v12208_v19, %v12208_v19  ;;  %v12209_v54 = vld [vmem:[#allocation97_spill] sm:$0xff] }
 0x585   : > { %3669 = vmatmul.bf16.gmra.mxu1 %v12096_v8 }
 0x586   : > { %3728 = vmatmul.bf16.gmra.mxu2 %v11938_v4  ;;  %v4215_v4 = vld [vmem:[%s11612_s3 + $0x160] sm:$0xff] }
 0x587   : > { %v3452_v26 = vpop.f32.mrf.mxu3  ;;  %4448 = vmatpush.msra.mxu2 %v4215_v4 }
 0x588   : > { %v3453_v13 = vadd.f32 %v3452_v26, %v9509_v5  ;;  %v3893_v26 = vmul.f32 %v12209_v54, %v12209_v54 }
 0x589   : > { %v3543_v51 = vpop.f32.mrf.mxu0  ;;  %v3413_v41 = vpop.f32.mrf.mxu2 }
 0x58a   : > { %v3986_v39 = vmul.f32 %v3453_v13, %v3453_v13  ;;  %v3632_v44 = vpop.f32.mrf.mxu1  ;;  %v9822_v36 = vadd.f32 %v3413_v41, %v9610_v14  ;;  %v4183_v14 = vld [vmem:[%s11612_s3 + $0x60] sm:$0xff] }
 0x58b   : > { %v9819_v16 = vadd.f32 %v3632_v44, %v3543_v51  ;;  %4222 = vmatpush.msra.mxu0 %v4183_v14  ;;  %v6517_v41 = vld [vmem:[%s11611_s2 + $0x4c4] sm:$0xf] }
 0x58c   : > { %v9824_v43 = vadd.f32 %v3986_v39, %v3890_v15 }
 0x58f   : > { %v3454_v8 = vpop.f32.mrf.mxu3 }
 0x590   : > { %v3455_v5 = vadd.f32 %v3454_v8, %v9517_v21  ;;  %v4199_v21 = vld [vmem:[%s11612_s3 + $0xe0] sm:$0xff] }
 0x591   : > { %v3546_v63 = vpop.f32.mrf.mxu0  ;;  %v3415_v19 = vpop.f32.mrf.mxu2  ;;  %4335 = vmatpush.msra.mxu1 %v4199_v21 }
 0x592   : > { %v3989_v13 = vmul.f32 %v3455_v5, %v3455_v5  ;;  %v3635_v51 = vpop.f32.mrf.mxu1  ;;  %v9838_v39 = vadd.f32 %v3415_v19, %v9624_v6  ;;  %v6148_v6 = vld [vmem:[%s11611_s2 + $0x4d8] sm:$0xf0] }
 0x593   : > { %v9835_v15 = vadd.f32 %v3635_v51, %v3546_v63  ;;  %v6151_v4 = vor.u32 %v6517_v41, %v6148_v6  ;;  %v12210_v63 = vld [vmem:[#allocation98_spill] sm:$0xff]  ;;  %v12211_v6 = vld [vmem:[#allocation99_spill] sm:$0xff] }
 0x594   : > { %3496 = vmatmul.bf16.gmra.mxu3 %v7698_v45  ;;  %3585 = vmatmul.bf16.gmra.mxu0 %v7292_v29  ;;  %v9845_v44 = vadd.f32 %v3989_v13, %v3893_v26 }
 0x595   : > { %3674 = vmatmul.bf16.gmra.mxu1 %v7299_v50  ;;  %3800 = vmatpush.bf16.msra.mxu3 %v6151_v4  ;;  %v3896_v50 = vmul.f32 %v12210_v63, %v12210_v63  ;;  %v3899_v4 = vmul.f32 %v12211_v6, %v12211_v6 }
 0x596   : > { %3733 = vmatmul.bf16.gmra.mxu2 %v7305_v34  ;;  %v4214_v34 = vld [vmem:[%s11612_s3 + $0x158] sm:$0xff] }
 0x597   : > { %v3457_v8 = vpop.f32.mrf.mxu3  ;;  %4449 = vmatpush.msra.mxu2 %v4214_v34 }
 0x598   : > { %v3458_v5 = vadd.f32 %v3457_v8, %v9539_v20 }
 0x599   : > { %v3548_v29 = vpop.f32.mrf.mxu0  ;;  %v3418_v13 = vpop.f32.mrf.mxu2 }
 0x59a   : > { %v3992_v54 = vmul.f32 %v3458_v5, %v3458_v5  ;;  %v3637_v26 = vpop.f32.mrf.mxu1  ;;  %v9861_v19 = vadd.f32 %v3418_v13, %v9634_v7  ;;  %v4182_v7 = vld [vmem:[%s11612_s3 + $0x58] sm:$0xff] }
 0x59b   : > { %v9858_v51 = vadd.f32 %v3637_v26, %v3548_v29  ;;  %4223 = vmatpush.msra.mxu0 %v4182_v7  ;;  %v12213_v26 = vld [vmem:[#allocation40_spill] sm:$0xff] }
 0x59c   : > { %v9863_v14 = vadd.f32 %v3992_v54, %v3896_v50  ;;  %v12212_v54 = vld [vmem:[#allocation69_spill] sm:$0xff] }
 0x59f   : > { %v3459_v20 = vpop.f32.mrf.mxu3 }
 0x5a0   : > { %v3460_v21 = vadd.f32 %v3459_v20, %v9553_v52  ;;  %v4198_v52 = vld [vmem:[%s11612_s3 + $0xd8] sm:$0xff] }
 0x5a1   : > { %v3551_v41 = vpop.f32.mrf.mxu0  ;;  %v3420_v29 = vpop.f32.mrf.mxu2  ;;  %4336 = vmatpush.msra.mxu1 %v4198_v52 }
 0x5a2   : > { %v3995_v8 = vmul.f32 %v3460_v21, %v3460_v21  ;;  %v3640_v5 = vpop.f32.mrf.mxu1  ;;  %v9877_v50 = vadd.f32 %v3420_v29, %v9654_v53  ;;  %v12214_v21 = vld [vmem:[#allocation43_spill] sm:$0xff] }
 0x5a3   : > { %v9874_v63 = vadd.f32 %v3640_v5, %v3551_v41  ;;  %v3902_v41 = vmul.f32 %v12214_v21, %v12214_v21  ;;  %v4181_v21 = vld [vmem:[%s11612_s3 + $0x50] sm:$0xff] }
 0x5a4   : > { %3501 = vmatmul.bf16.gmra.mxu3 %v12212_v54  ;;  %3590 = vmatmul.bf16.gmra.mxu0 %v12213_v26  ;;  %v9884_v13 = vadd.f32 %v3995_v8, %v3899_v4  ;;  %v12215_v26 = vld [vmem:[#allocation100_spill] sm:$0xff] }
 0x5a5   : > { %3679 = vmatmul.bf16.gmra.mxu1 %v12106_v47  ;;  %4224 = vmatpush.msra.mxu0 %v4181_v21 }
 0x5a6   : > { %3738 = vmatmul.bf16.gmra.mxu2 %v11944_v58  ;;  %v4213_v58 = vld [vmem:[%s11612_s3 + $0x150] sm:$0xff] }
 0x5a7   : > { %v3462_v34 = vpop.f32.mrf.mxu3  ;;  %4450 = vmatpush.msra.mxu2 %v4213_v58  ;;  %v6511_v58 = vld [vmem:[%s11611_s2 + $0x494] sm:$0xf] }
 0x5a8   : > { %v3463_v53 = vadd.f32 %v3462_v34, %v9569_v62  ;;  %v3905_v34 = vmul.f32 %v12215_v26, %v12215_v26  ;;  %v12219_v26 = vld [vmem:[#allocation45_spill] sm:$0xff] }
 0x5a9   : > { %v3553_v20 = vpop.f32.mrf.mxu0  ;;  %v3423_v29 = vpop.f32.mrf.mxu2 }
 0x5aa   : > { %v3998_v6 = vmul.f32 %v3463_v53, %v3463_v53  ;;  %v3642_v5 = vpop.f32.mrf.mxu1  ;;  %v9894_v4 = vadd.f32 %v3423_v29, %v9670_v3  ;;  %v12218_v29 = vld [vmem:[#allocation18_spill] sm:$0xff] }
 0x5ab   : > { %v9891_v7 = vadd.f32 %v3642_v5, %v3553_v20 }
 0x5ac   : > { %v9896_v8 = vadd.f32 %v3998_v6, %v3902_v41  ;;  %v12217_v6 = vld [vmem:[#allocation6_spill] sm:$0xff] }
 0x5af   : > { %v3464_v47 = vpop.f32.mrf.mxu3 }
 0x5b0   : > { %v3465_v62 = vadd.f32 %v3464_v47, %v9577_v18  ;;  %v4197_v18 = vld [vmem:[%s11612_s3 + $0xd0] sm:$0xff] }
 0x5b1   : > { %v9902_v52 = vpop.f32.mrf.mxu0  ;;  %v3425_v3 = vpop.f32.mrf.mxu2  ;;  %4337 = vmatpush.msra.mxu1 %v4197_v18 }
 0x5b2   : > { %v4001_v53 = vmul.f32 %v3465_v62, %v3465_v62  ;;  %v9906_v20 = vpop.f32.mrf.mxu1  ;;  %v9912_v41 = vadd.f32 %v3425_v3, %v9684_v31  ;;  %v6124_v31 = vld [vmem:[%s11611_s2 + $0x4a8] sm:$0xf0] }
 0x5b3   : > { %12216 = vst [vmem:[#allocation14_spill] sm:$0xff] %v9906_v20  ;;  %v6127_v47 = vor.u32 %v6511_v58, %v6124_v31  ;;  %v4212_v58 = vld [vmem:[%s11612_s3 + $0x148] sm:$0xff] }
 0x5b4   : > { %3506 = vmatmul.bf16.gmra.mxu3 %v7770_v48  ;;  %3595 = vmatmul.bf16.gmra.mxu0 %v12217_v6  ;;  %v9919_v5 = vadd.f32 %v4001_v53, %v3905_v34  ;;  %v12220_v53 = vld [vmem:[#allocation101_spill] sm:$0xff] }
 0x5b5   : > { %3684 = vmatmul.bf16.gmra.mxu1 %v12218_v29  ;;  %3801 = vmatpush.bf16.msra.mxu3 %v6127_v47  ;;  %v3908_v21 = vmul.f32 %v12220_v53, %v12220_v53 }
 0x5b6   : > { %3743 = vmatmul.bf16.gmra.mxu2 %v12219_v26 }
 0x5b7   : > { %v3467_v62 = vpop.f32.mrf.mxu3  ;;  %4451 = vmatpush.msra.mxu2 %v4212_v58  ;;  %v4195_v58 = vld [vmem:[%s11612_s3 + $0xc0] sm:$0xff] }
 0x5b8   : > { %v3468_v3 = vadd.f32 %v3467_v62, %v9599_v59  ;;  %v4180_v62 = vld [vmem:[%s11612_s3 + $0x48] sm:$0xff] }
 0x5b9   : > { %v9930_v34 = vpop.f32.mrf.mxu0  ;;  %v3428_v48 = vpop.f32.mrf.mxu2  ;;  %4225 = vmatpush.msra.mxu0 %v4180_v62  ;;  %v4194_v62 = vld [vmem:[%s11612_s3 + $0xb8] sm:$0xff] }
 0x5ba   : > { %v4004_v6 = vmul.f32 %v3468_v3, %v3468_v3  ;;  %v9934_v29 = vpop.f32.mrf.mxu1  ;;  %v9937_v20 = vadd.f32 %v3428_v48, %v9694_v9  ;;  %v4196_v48 = vld [vmem:[%s11612_s3 + $0xc8] sm:$0xff] }
 0x5bb   : > { %12221 = vst [vmem:[#allocation16_spill] sm:$0xff] %v9934_v29  ;;  %v12223_v9 = vld [vmem:[#allocation102_spill] sm:$0xff]  ;;  %4338 = vmatpush.msra.mxu1 %v4196_v48 }
 0x5bc   : > { %v9939_v18 = vadd.f32 %v4004_v6, %v3908_v21  ;;  %v3911_v26 = vmul.f32 %v12223_v9, %v12223_v9  ;;  %v4179_v6 = vld [vmem:[%s11612_s3 + $0x40] sm:$0xff] }
 0x5bd   : > { %v12226_v9 = vld [vmem:[#allocation9_spill] sm:$0xff]  ;;  %4226 = vmatpush.msra.mxu0 %v4179_v6  ;;  %4339 = vmatpush.msra.mxu1 %v4195_v58  ;;  %v4176_v58 = vld [vmem:[%s11612_s3 + $0x28] sm:$0xff] }
 0x5bf   : > { %v3469_v59 = vpop.f32.mrf.mxu3  ;;  %4340 = vmatpush.msra.mxu1 %v4194_v62  ;;  %v4175_v62 = vld [vmem:[%s11612_s3 + $0x20] sm:$0xff] }
 0x5c0   : > { %v3470_v31 = vadd.f32 %v3469_v59, %v9613_v17  ;;  %v12225_v59 = vld [vmem:[#allocation75_spill] sm:$0xff] }
 0x5c1   : > { %v9945_v47 = vpop.f32.mrf.mxu0  ;;  %v3430_v21 = vpop.f32.mrf.mxu2 }
 0x5c2   : > { %12222 = vst [vmem:[#allocation90_spill] sm:$0xff] %v9945_v47  ;;  %v4007_v3 = vmul.f32 %v3470_v31, %v3470_v31  ;;  %v9955_v53 = vpop.f32.mrf.mxu1  ;;  %v9958_v17 = vadd.f32 %v3430_v21, %v9714_v46  ;;  %v4178_v46 = vld [vmem:[%s11612_s3 + $0x38] sm:$0xff]  ;;  %v12228_v21 = vld [vmem:[#allocation47_spill] sm:$0xff] }
 0x5c3   : > { %12224 = vst [vmem:[#allocation91_spill] sm:$0xff] %v9955_v53  ;;  %v12227_v53 = vld [vmem:[#allocation21_spill] sm:$0xff]  ;;  %4227 = vmatpush.msra.mxu0 %v4178_v46  ;;  %v12230_v46 = vld [vmem:[#allocation103_spill] sm:$0xff] }
 0x5c4   : > { %3511 = vmatmul.bf16.gmra.mxu3 %v12225_v59  ;;  %3600 = vmatmul.bf16.gmra.mxu0 %v12226_v9  ;;  %v9968_v31 = vadd.f32 %v4007_v3, %v3911_v26  ;;  %v4177_v26 = vld [vmem:[%s11612_s3 + $0x30] sm:$0xff]  ;;  %v4192_v9 = vld [vmem:[%s11612_s3 + $0xa8] sm:$0xff] }
 0x5c5   : > { %3689 = vmatmul.bf16.gmra.mxu1 %v12227_v53  ;;  %v4193_v3 = vld [vmem:[%s11612_s3 + $0xb0] sm:$0xff]  ;;  %4228 = vmatpush.msra.mxu0 %v4177_v26 }
 0x5c6   : > { %3748 = vmatmul.bf16.gmra.mxu2 %v12228_v21  ;;  %v3914_v21 = vmul.f32 %v12230_v46, %v12230_v46  ;;  %4341 = vmatpush.msra.mxu1 %v4193_v3 }
 0x5c7   : > { %v3472_v48 = vpop.f32.mrf.mxu3  ;;  %4229 = vmatpush.msra.mxu0 %v4176_v58  ;;  %v4189_v58 = vld [vmem:[%s11612_s3 + $0x90] sm:$0xff] }
 0x5c8   : > { %v3473_v53 = vadd.f32 %v3472_v48, %v9629_v23  ;;  %v4191_v48 = vld [vmem:[%s11612_s3 + $0xa0] sm:$0xff]  ;;  %4342 = vmatpush.msra.mxu1 %v4192_v9 }
 0x5c9   : > { %v9985_v6 = vpop.f32.mrf.mxu0  ;;  %v3433_v29 = vpop.f32.mrf.mxu2  ;;  %4230 = vmatpush.msra.mxu0 %v4175_v62  ;;  %v12233_v62 = vld [vmem:[#allocation104_spill] sm:$0xff] }
 0x5ca   : > { %12229 = vst [vmem:[#allocation52_spill] sm:$0xff] %v9985_v6  ;;  %v4010_v59 = vmul.f32 %v3473_v53, %v3473_v53  ;;  %v9995_v47 = vpop.f32.mrf.mxu1  ;;  %v9998_v23 = vadd.f32 %v3433_v29, %v9730_v61  ;;  %v4174_v53 = vld [vmem:[%s11612_s3 + $0x18] sm:$0xff]  ;;  %v4211_v61 = vld [vmem:[%s11612_s3 + $0x140] sm:$0xff]  ;;  %4343 = vmatpush.msra.mxu1 %v4191_v48  ;;  %v3917_v48 = vmul.f32 %v12233_v62, %v12233_v62 }
 0x5cb   : > { %12231 = vst [vmem:[#allocation17_spill] sm:$0xff] %v9995_v47  ;;  %v4190_v29 = vld [vmem:[%s11612_s3 + $0x98] sm:$0xff]  ;;  %4452 = vmatpush.msra.mxu2 %v4211_v61  ;;  %4231 = vmatpush.msra.mxu0 %v4174_v53 }
 0x5cc   : > { %v10006_v26 = vadd.f32 %v4010_v59, %v3914_v21  ;;  %v4173_v59 = vld [vmem:[%s11612_s3 + $0x10] sm:$0xff]  ;;  %4344 = vmatpush.msra.mxu1 %v4190_v29  ;;  %v4172_v21 = vld [vmem:[%s11612_s3 + $0x8] sm:$0xff]  ;;  %v4171_v29 = vld [vmem:[%s11612_s3] sm:$0xff] }
 0x5cd   : > { %4232 = vmatpush.msra.mxu0 %v4173_v59 }
 0x5ce   : > { %4345 = vmatpush.msra.mxu1 %v4189_v58  ;;  %v12237_v58 = vld [vmem:[#allocation49_spill] sm:$0xff] }
 0x5cf   : > { %v3474_v3 = vpop.f32.mrf.mxu3  ;;  %4233 = vmatpush.msra.mxu0 %v4172_v21 }
 0x5d0   : > { %v3475_v9 = vadd.f32 %v3474_v3, %v9637_v37  ;;  %v4188_v37 = vld [vmem:[%s11612_s3 + $0x88] sm:$0xff]  ;;  %v12235_v3 = vld [vmem:[#allocation12_spill] sm:$0xff] }
 0x5d1   : > { %v10024_v46 = vpop.f32.mrf.mxu0  ;;  %v3435_v47 = vpop.f32.mrf.mxu2  ;;  %4234 = vmatpush.msra.mxu0 %v4171_v29  ;;  %4346 = vmatpush.msra.mxu1 %v4188_v37  ;;  %v4210_v37 = vld [vmem:[%s11612_s3 + $0x138] sm:$0xff] }
 0x5d2   : > { %12232 = vst [vmem:[#allocation19_spill] sm:$0xff] %v10024_v46  ;;  %v4013_v53 = vmul.f32 %v3475_v9, %v3475_v9  ;;  %v10031_v61 = vpop.f32.mrf.mxu1  ;;  %v10034_v6 = vadd.f32 %v3435_v47, %v9747_v35  ;;  %v12236_v9 = vld [vmem:[#allocation24_spill] sm:$0xff]  ;;  %v4187_v35 = vld [vmem:[%s11612_s3 + $0x80] sm:$0xff]  ;;  %4453 = vmatpush.msra.mxu2 %v4210_v37 }
 0x5d3   : > { %12234 = vst [vmem:[#allocation54_spill] sm:$0xff] %v10031_v61  ;;  %4347 = vmatpush.msra.mxu1 %v4187_v35 }
 0x5d4   : > { %3516 = vmatmul.bf16.gmra.mxu3 %v7887_v38  ;;  %3605 = vmatmul.bf16.gmra.mxu0 %v12235_v3  ;;  %v10044_v59 = vadd.f32 %v4013_v53, %v3917_v48  ;;  %v12239_v38 = vld [vmem:[#allocation105_spill] sm:$0xff] }
 0x5d5   : > { %3694 = vmatmul.bf16.gmra.mxu1 %v12236_v9  ;;  %v3920_v48 = vmul.f32 %v12239_v38, %v12239_v38  ;;  %v12242_v38 = vld [vmem:[#allocation106_spill] sm:$0xff] }
 0x5d6   : > { %3753 = vmatmul.bf16.gmra.mxu2 %v12237_v58  ;;  %v3923_v58 = vmul.f32 %v12242_v38, %v12242_v38 }
 0x5d7   : > { %v3477_v47 = vpop.f32.mrf.mxu3 }
 0x5d8   : > { %v3478_v21 = vadd.f32 %v3477_v47, %v9659_v2 }
 0x5d9   : > { %v10052_v62 = vpop.f32.mrf.mxu0  ;;  %v3714_v29 = vpop.f32.mrf.mxu2 }
 0x5da   : > { %12238 = vst [vmem:[#allocation92_spill] sm:$0xff] %v10052_v62  ;;  %v4016_v53 = vmul.f32 %v3478_v21, %v3478_v21  ;;  %v10056_v3 = vpop.f32.mrf.mxu1  ;;  %v10061_v61 = vadd.f32 %v3714_v29, %v9763_v28  ;;  %v12245_v29 = vld [vmem:[#allocation15_spill] sm:$0xff]  ;;  %v12246_v62 = vld [vmem:[#allocation28_spill] sm:$0xff] }
 0x5db   : > { %12240 = vst [vmem:[#allocation20_spill] sm:$0xff] %v10056_v3 }
 0x5dc   : > { %v10058_v9 = vadd.f32 %v4016_v53, %v3920_v48  ;;  %v12244_v53 = vld [vmem:[#allocation81_spill] sm:$0xff] }
 0x5df   : > { %v3479_v2 = vpop.f32.mrf.mxu3 }
 0x5e0   : > { %v3480_v35 = vadd.f32 %v3479_v2, %v9673_v24  ;;  %v12247_v2 = vld [vmem:[#allocation51_spill] sm:$0xff] }
 0x5e1   : > { %v10067_v47 = vpop.f32.mrf.mxu0  ;;  %v3716_v48 = vpop.f32.mrf.mxu2 }
 0x5e2   : > { %12241 = vst [vmem:[#allocation22_spill] sm:$0xff] %v10067_v47  ;;  %v4019_v21 = vmul.f32 %v3480_v35, %v3480_v35  ;;  %v10071_v3 = vpop.f32.mrf.mxu1  ;;  %v10074_v28 = vadd.f32 %v3716_v48, %v9786_v22 }
 0x5e3   : > { %12243 = vst [vmem:[#allocation57_spill] sm:$0xff] %v10071_v3  ;;  %v12248_v3 = vld [vmem:[#allocation107_spill] sm:$0xff] }
 0x5e4   : > { %3521 = vmatmul.bf16.gmra.mxu3 %v12244_v53  ;;  %3610 = vmatmul.bf16.gmra.mxu0 %v12245_v29  ;;  %v10078_v37 = vadd.f32 %v4019_v21, %v3923_v58  ;;  %v3926_v47 = vmul.f32 %v12248_v3, %v12248_v3  ;;  %v12250_v3 = vld [vmem:[#allocation108_spill] sm:$0xff] }
 0x5e5   : > { %3699 = vmatmul.bf16.gmra.mxu1 %v12246_v62  ;;  %v4209_v62 = vld [vmem:[%s11612_s3 + $0x130] sm:$0xff] }
 0x5e6   : > { %3758 = vmatmul.bf16.gmra.mxu2 %v12247_v2 }
 0x5e7   : > { %v3482_v24 = vpop.f32.mrf.mxu3  ;;  %4454 = vmatpush.msra.mxu2 %v4209_v62  ;;  %v12253_v62 = vld [vmem:[#allocation53_spill] sm:$0xff] }
 0x5e8   : > { %v3483_v38 = vadd.f32 %v3482_v24, %v9689_v42  ;;  %v3929_v24 = vmul.f32 %v12250_v3, %v12250_v3  ;;  %v12254_v3 = vld [vmem:[#allocation109_spill] sm:$0xff] }
 0x5e9   : > { %v10083_v35 = vpop.f32.mrf.mxu0  ;;  %v3719_v53 = vpop.f32.mrf.mxu2 }
 0x5ea   : > { %v4022_v22 = vmul.f32 %v3483_v38, %v3483_v38  ;;  %v10087_v48 = vpop.f32.mrf.mxu1  ;;  %v10092_v58 = vadd.f32 %v3719_v53, %v9802_v40  ;;  %v12252_v53 = vld [vmem:[#allocation62_spill] sm:$0xff] }
 0x5ec   : > { %v10089_v46 = vadd.f32 %v4022_v22, %v3926_v47 }
 0x5ef   : > { %v3484_v42 = vpop.f32.mrf.mxu3 }
 0x5f0   : > { %v3485_v21 = vadd.f32 %v3484_v42, %v9697_v11 }
 0x5f1   : > { %v10098_v29 = vpop.f32.mrf.mxu0  ;;  %v3721_v47 = vpop.f32.mrf.mxu2 }
 0x5f2   : > { %12249 = vst [vmem:[#allocation93_spill] sm:$0xff] %v10098_v29  ;;  %v4025_v2 = vmul.f32 %v3485_v21, %v3485_v21  ;;  %v10102_v38 = vpop.f32.mrf.mxu1  ;;  %v10105_v40 = vadd.f32 %v3721_v47, %v9819_v16 }
 0x5f3   : > { %12251 = vst [vmem:[#allocation23_spill] sm:$0xff] %v10102_v38  ;;  %v3932_v38 = vmul.f32 %v12254_v3, %v12254_v3 }
 0x5f4   : > { %3802 = vmatmul.bf16.vlgmr.msra.gmra.mxu3 %v12140_v27  ;;  %4235 = vmatmul.f32.vlgmr.msra.gmra.mxu0 %v12252_v53  ;;  %v10109_v22 = vadd.f32 %v4025_v2, %v3929_v24  ;;  %v12255_v24 = vld [vmem:[#allocation63_spill] sm:$0xff] }
 0x5f5   : > { %4348 = vmatmul.f32.vlgmr.msra.gmra.mxu1 %v9791_v49 }
 0x5f6   : > { %3763 = vmatmul.bf16.gmra.mxu2 %v12253_v62  ;;  %v12257_v62 = vld [vmem:[#allocation110_spill] sm:$0xff] }
 0x5f7   : > { %v3487_v11 = vpop.f32.mrf.mxu3 }
 0x5f8   : > { %v3488_v42 = vadd.f32 %v3487_v11, %v9717_v55  ;;  %v4208_v55 = vld [vmem:[%s11612_s3 + $0x128] sm:$0xff] }
 0x5f9   : > { %v10114_v21 = vpop.f32.mrf.mxu0  ;;  %v3724_v27 = vpop.f32.mrf.mxu2  ;;  %4455 = vmatpush.msra.mxu2 %v4208_v55  ;;  %v12261_v55 = vld [vmem:[#allocation56_spill] sm:$0xff] }
 0x5fa   : > { %v4028_v16 = vmul.f32 %v3488_v42, %v3488_v42  ;;  %v10118_v47 = vpop.f32.mrf.mxu1  ;;  %v10124_v49 = vadd.f32 %v3724_v27, %v9835_v15  ;;  %v12260_v27 = vld [vmem:[#allocation37_spill] sm:$0xff] }
 0x5fc   : > { %v10120_v29 = vadd.f32 %v4028_v16, %v3932_v38  ;;  %4238 = vmatmul.f32.gmra.mxu0 %v12255_v24  ;;  %v3935_v38 = vmul.f32 %v12257_v62, %v12257_v62  ;;  %v12262_v62 = vld [vmem:[#allocation111_spill] sm:$0xff] }
 0x5fd   : > { %4351 = vmatmul.f32.gmra.mxu1 %v9812_v0  ;;  %v12259_v0 = vld [vmem:[#allocation46_spill] sm:$0xff] }
 0x5ff   : > { %v3489_v2 = vpop.f32.mrf.mxu3 }
 0x600   : > { %v3490_v53 = vadd.f32 %v3489_v2, %v9733_v56 }
 0x601   : > { %v10131_v11 = vpop.f32.mrf.mxu0  ;;  %v3726_v15 = vpop.f32.mrf.mxu2 }
 0x602   : > { %12256 = vst [vmem:[#allocation25_spill] sm:$0xff] %v10131_v11  ;;  %v4031_v42 = vmul.f32 %v3490_v53, %v3490_v53  ;;  %v10135_v3 = vpop.f32.mrf.mxu1  ;;  %v10138_v16 = vadd.f32 %v3726_v15, %v9858_v51 }
 0x603   : > { %12258 = vst [vmem:[#allocation26_spill] sm:$0xff] %v10135_v3  ;;  %v3938_v3 = vmul.f32 %v12262_v62, %v12262_v62 }
 0x604   : > { %3807 = vmatmul.bf16.gmra.mxu3 %v12259_v0  ;;  %4241 = vmatmul.f32.gmra.mxu0 %v12260_v27  ;;  %v10142_v24 = vadd.f32 %v4031_v42, %v3935_v38  ;;  %v12263_v38 = vld [vmem:[#allocation65_spill] sm:$0xff] }
 0x605   : > { %4354 = vmatmul.f32.gmra.mxu1 %v9824_v43 }
 0x606   : > { %3768 = vmatmul.bf16.gmra.mxu2 %v12261_v55  ;;  %v12264_v55 = vld [vmem:[#allocation112_spill] sm:$0xff] }
 0x607   : > { %v3492_v56 = vpop.f32.mrf.mxu3 }
 0x608   : > { %v3493_v2 = vadd.f32 %v3492_v56, %v9750_v32  ;;  %v4207_v32 = vld [vmem:[%s11612_s3 + $0x120] sm:$0xff] }
 0x609   : > { %v10147_v53 = vpop.f32.mrf.mxu0  ;;  %v3729_v0 = vpop.f32.mrf.mxu2  ;;  %4456 = vmatpush.msra.mxu2 %v4207_v32 }
 0x60a   : > { %v4034_v51 = vmul.f32 %v3493_v2, %v3493_v2  ;;  %v10151_v15 = vpop.f32.mrf.mxu1  ;;  %v10157_v43 = vadd.f32 %v3729_v0, %v9874_v63 }
 0x60c   : > { %v10153_v11 = vadd.f32 %v4034_v51, %v3938_v3  ;;  %4244 = vmatmul.f32.gmra.mxu0 %v12263_v38  ;;  %v3941_v3 = vmul.f32 %v12264_v55, %v12264_v55  ;;  %v12266_v38 = vld [vmem:[#allocation32_spill] sm:$0xff] }
 0x60d   : > { %4357 = vmatmul.f32.gmra.mxu1 %v9845_v44  ;;  %v12265_v44 = vld [vmem:[#allocation66_spill] sm:$0xff] }
 0x60f   : > { %v3494_v42 = vpop.f32.mrf.mxu3 }
 0x610   : > { %v3495_v27 = vadd.f32 %v3494_v42, %v9766_v57 }
 0x611   : > { %v10164_v56 = vpop.f32.mrf.mxu0  ;;  %v3731_v63 = vpop.f32.mrf.mxu2 }
 0x612   : > { %v4037_v2 = vmul.f32 %v3495_v27, %v3495_v27  ;;  %v10168_v62 = vpop.f32.mrf.mxu1  ;;  %v10171_v51 = vadd.f32 %v3731_v63, %v9891_v7  ;;  %v12268_v27 = vld [vmem:[#allocation113_spill] sm:$0xff] }
 0x613   : > { %v3944_v55 = vmul.f32 %v12268_v27, %v12268_v27 }
 0x614   : > { %3812 = vmatmul.bf16.gmra.mxu3 %v12155_v12  ;;  %4247 = vmatmul.f32.gmra.mxu0 %v12265_v44  ;;  %v10175_v0 = vadd.f32 %v4037_v2, %v3941_v3  ;;  %v12270_v3 = vld [vmem:[#allocation67_spill] sm:$0xff] }
 0x615   : > { %4360 = vmatmul.f32.gmra.mxu1 %v9863_v14 }
 0x616   : > { %3773 = vmatmul.bf16.gmra.mxu2 %v12266_v38  ;;  %v12272_v38 = vld [vmem:[#allocation114_spill] sm:$0xff] }
 0x617   : > { %v3497_v57 = vpop.f32.mrf.mxu3 }
 0x618   : > { %v3498_v32 = vadd.f32 %v3497_v57, %v9789_v60  ;;  %v4206_v60 = vld [vmem:[%s11612_s3 + $0x118] sm:$0xff] }
 0x619   : > { %v10180_v42 = vpop.f32.mrf.mxu0  ;;  %v10186_v12 = vpop.f32.mrf.mxu2  ;;  %4457 = vmatpush.msra.mxu2 %v4206_v60 }
 0x61a   : > { %12267 = vst [vmem:[#allocation58_spill] sm:$0xff] %v10180_v42  ;;  %v4040_v7 = vmul.f32 %v3498_v32, %v3498_v32  ;;  %v10184_v63 = vpop.f32.mrf.mxu1  ;;  %v3947_v32 = vmul.f32 %v12272_v38, %v12272_v38 }
 0x61b   : > { %12269 = vst [vmem:[#allocation94_spill] sm:$0xff] %v10184_v63 }
 0x61c   : > { %v10188_v44 = vadd.f32 %v4040_v7, %v3944_v55  ;;  %4250 = vmatmul.f32.gmra.mxu0 %v12270_v3  ;;  %v12274_v3 = vld [vmem:[#allocation50_spill] sm:$0xff] }
 0x61d   : > { %4363 = vmatmul.f32.gmra.mxu1 %v9884_v13  ;;  %v12275_v13 = vld [vmem:[#allocation68_spill] sm:$0xff] }
 0x61f   : > { %v3499_v14 = vpop.f32.mrf.mxu3 }
 0x620   : > { %v3500_v2 = vadd.f32 %v3499_v14, %v9805_v10  ;;  %v12276_v10 = vld [vmem:[#allocation36_spill] sm:$0xff] }
 0x621   : > { %v10196_v57 = vpop.f32.mrf.mxu0  ;;  %v10202_v7 = vpop.f32.mrf.mxu2 }
 0x622   : > { %12271 = vst [vmem:[#allocation59_spill] sm:$0xff] %v10196_v57  ;;  %v4043_v27 = vmul.f32 %v3500_v2, %v3500_v2  ;;  %v10200_v55 = vpop.f32.mrf.mxu1  ;;  %v12277_v2 = vld [vmem:[#allocation115_spill] sm:$0xff] }
 0x623   : > { %12273 = vst [vmem:[#allocation27_spill] sm:$0xff] %v10200_v55  ;;  %v3950_v38 = vmul.f32 %v12277_v2, %v12277_v2 }
 0x624   : > { %3817 = vmatmul.bf16.gmra.mxu3 %v12274_v3  ;;  %4253 = vmatmul.f32.gmra.mxu0 %v12275_v13  ;;  %v10206_v63 = vadd.f32 %v4043_v27, %v3947_v32  ;;  %v12279_v32 = vld [vmem:[#allocation42_spill] sm:$0xff] }
 0x625   : > { %4366 = vmatmul.f32.gmra.mxu1 %v9896_v8 }
 0x626   : > { %3778 = vmatmul.bf16.gmra.mxu2 %v12276_v10  ;;  %v12281_v10 = vld [vmem:[#allocation116_spill] sm:$0xff] }
 0x627   : > { %v3502_v60 = vpop.f32.mrf.mxu3 }
 0x628   : > { %v3503_v14 = vadd.f32 %v3502_v60, %v9822_v36  ;;  %v4205_v36 = vld [vmem:[%s11612_s3 + $0x110] sm:$0xff] }
 0x629   : > { %v10211_v57 = vpop.f32.mrf.mxu0  ;;  %v10217_v3 = vpop.f32.mrf.mxu2  ;;  %4458 = vmatpush.msra.mxu2 %v4205_v36 }
 0x62a   : > { %v4046_v55 = vmul.f32 %v3503_v14, %v3503_v14  ;;  %v10215_v42 = vpop.f32.mrf.mxu1  ;;  %v3953_v14 = vmul.f32 %v12281_v10, %v12281_v10 }
 0x62b   : > { %12278 = vst [vmem:[#allocation29_spill] sm:$0xff] %v10215_v42 }
 0x62c   : > { %v10219_v13 = vadd.f32 %v4046_v55, %v3950_v38  ;;  %4256 = vmatmul.f32.gmra.mxu0 %v12279_v32 }
 0x62d   : > { %4369 = vmatmul.f32.gmra.mxu1 %v9919_v5  ;;  %v12283_v5 = vld [vmem:[#allocation70_spill] sm:$0xff] }
 0x62f   : > { %v3504_v8 = vpop.f32.mrf.mxu3 }
 0x630   : > { %v3505_v27 = vadd.f32 %v3504_v8, %v9838_v39  ;;  %v12284_v39 = vld [vmem:[#allocation39_spill] sm:$0xff] }
 0x631   : > { %v10227_v60 = vpop.f32.mrf.mxu0  ;;  %v10233_v38 = vpop.f32.mrf.mxu2 }
 0x632   : > { %12280 = vst [vmem:[#allocation30_spill] sm:$0xff] %v10227_v60  ;;  %v4049_v2 = vmul.f32 %v3505_v27, %v3505_v27  ;;  %v10231_v55 = vpop.f32.mrf.mxu1  ;;  %v12285_v27 = vld [vmem:[#allocation117_spill] sm:$0xff] }
 0x633   : > { %12282 = vst [vmem:[#allocation60_spill] sm:$0xff] %v10231_v55  ;;  %v3956_v10 = vmul.f32 %v12285_v27, %v12285_v27 }
 0x634   : > { %3822 = vmatmul.bf16.gmra.mxu3 %v12170_v33  ;;  %4259 = vmatmul.f32.gmra.mxu0 %v12283_v5  ;;  %v10237_v32 = vadd.f32 %v4049_v2, %v3953_v14  ;;  %v12287_v14 = vld [vmem:[#allocation71_spill] sm:$0xff] }
 0x635   : > { %4372 = vmatmul.f32.gmra.mxu1 %v9939_v18 }
 0x636   : > { %3783 = vmatmul.bf16.gmra.mxu2 %v12284_v39  ;;  %v12289_v39 = vld [vmem:[#allocation118_spill] sm:$0xff] }
 0x637   : > { %v3507_v36 = vpop.f32.mrf.mxu3 }
 0x638   : > { %v3508_v8 = vadd.f32 %v3507_v36, %v9861_v19  ;;  %v4204_v19 = vld [vmem:[%s11612_s3 + $0x108] sm:$0xff] }
 0x639   : > { %v10242_v60 = vpop.f32.mrf.mxu0  ;;  %v10248_v33 = vpop.f32.mrf.mxu2  ;;  %4459 = vmatpush.msra.mxu2 %v4204_v19 }
 0x63a   : > { %v4052_v55 = vmul.f32 %v3508_v8, %v3508_v8  ;;  %v10246_v42 = vpop.f32.mrf.mxu1  ;;  %v3959_v8 = vmul.f32 %v12289_v39, %v12289_v39 }
 0x63b   : > { %12286 = vst [vmem:[#allocation61_spill] sm:$0xff] %v10246_v42 }
 0x63c   : > { %v10250_v5 = vadd.f32 %v4052_v55, %v3956_v10  ;;  %4262 = vmatmul.f32.gmra.mxu0 %v12287_v14  ;;  %v12291_v10 = vld [vmem:[#allocation55_spill] sm:$0xff]  ;;  %v12292_v14 = vld [vmem:[#allocation73_spill] sm:$0xff] }
 0x63d   : > { %4375 = vmatmul.f32.gmra.mxu1 %v9968_v31 }
 0x63f   : > { %v3509_v18 = vpop.f32.mrf.mxu3 }
 0x640   : > { %v3510_v2 = vadd.f32 %v3509_v18, %v9877_v50  ;;  %v12293_v50 = vld [vmem:[#allocation41_spill] sm:$0xff] }
 0x641   : > { %v10258_v36 = vpop.f32.mrf.mxu0  ;;  %v10269_v19 = vpop.f32.mrf.mxu2 }
 0x642   : > { %12288 = vst [vmem:[#allocation31_spill] sm:$0xff] %v10258_v36  ;;  %v4055_v27 = vmul.f32 %v3510_v2, %v3510_v2  ;;  %v10262_v55 = vpop.f32.mrf.mxu1  ;;  %v12295_v2 = vld [vmem:[#allocation119_spill] sm:$0xff] }
 0x643   : > { %12290 = vst [vmem:[#allocation33_spill] sm:$0xff] %v10262_v55  ;;  %v3962_v39 = vmul.f32 %v12295_v2, %v12295_v2 }
 0x644   : > { %3827 = vmatmul.bf16.gmra.mxu3 %v12291_v10  ;;  %4265 = vmatmul.f32.gmra.mxu0 %v12292_v14  ;;  %v10266_v31 = vadd.f32 %v4055_v27, %v3959_v8  ;;  %v12297_v8 = vld [vmem:[#allocation74_spill] sm:$0xff] }
 0x645   : > { %4378 = vmatmul.f32.gmra.mxu1 %v10006_v26  ;;  %v4203_v26 = vld [vmem:[%s11612_s3 + $0x100] sm:$0xff] }
 0x646   : > { %3788 = vmatmul.bf16.gmra.mxu2 %v12293_v50 }
 0x647   : > { %v3512_v42 = vpop.f32.mrf.mxu3  ;;  %4460 = vmatpush.msra.mxu2 %v4203_v26 }
 0x648   : > { %v3513_v18 = vadd.f32 %v3512_v42, %v9894_v4 }
 0x649   : > { %v10273_v36 = vpop.f32.mrf.mxu0  ;;  %v10286_v42 = vpop.f32.mrf.mxu2 }
 0x64a   : > { %12294 = vst [vmem:[#allocation34_spill] sm:$0xff] %v10273_v36  ;;  %v4058_v55 = vmul.f32 %v3513_v18, %v3513_v18  ;;  %v10277_v10 = vpop.f32.mrf.mxu1  ;;  %v12299_v18 = vld [vmem:[#allocation120_spill] sm:$0xff] }
 0x64b   : > { %12296 = vst [vmem:[#allocation95_spill] sm:$0xff] %v10277_v10 }
 0x64c   : > { %v10279_v14 = vadd.f32 %v4058_v55, %v3962_v39  ;;  %4268 = vmatmul.f32.gmra.mxu0 %v12297_v8  ;;  %v3965_v55 = vmul.f32 %v12299_v18, %v12299_v18 }
 0x64d   : > { %4381 = vmatmul.f32.gmra.mxu1 %v10044_v59  ;;  %v12301_v59 = vld [vmem:[#allocation76_spill] sm:$0xff] }
 0x64f   : > { %v3514_v4 = vpop.f32.mrf.mxu3 }
 0x650   : > { %v3515_v27 = vadd.f32 %v3514_v4, %v9912_v41 }
 0x651   : > { %v10289_v50 = vpop.f32.mrf.mxu0  ;;  %v10303_v4 = vpop.f32.mrf.mxu2 }
 0x652   : > { %12298 = vst [vmem:[#allocation96_spill] sm:$0xff] %v10289_v50  ;;  %v4061_v2 = vmul.f32 %v3515_v27, %v3515_v27  ;;  %v10293_v39 = vpop.f32.mrf.mxu1  ;;  %v12303_v50 = vld [vmem:[#allocation121_spill] sm:$0xff] }
 0x653   : > { %12300 = vst [vmem:[#allocation35_spill] sm:$0xff] %v10293_v39  ;;  %v3968_v27 = vmul.f32 %v12303_v50, %v12303_v50  ;;  %v12307_v50 = vld [vmem:[#allocation79_spill] sm:$0xff] }
 0x654   : > { %3832 = vmatmul.bf16.gmra.mxu3 %v7554_v1  ;;  %4271 = vmatmul.f32.gmra.mxu0 %v12301_v59  ;;  %v10297_v8 = vadd.f32 %v4061_v2, %v3965_v55  ;;  %v12304_v59 = vld [vmem:[#allocation77_spill] sm:$0xff]  ;;  %v12305_v2 = vld [vmem:[#allocation122_spill] sm:$0xff] }
 0x655   : > { %4384 = vmatmul.f32.gmra.mxu1 %v10058_v9 }
 0x657   : > { %v3517_v26 = vpop.f32.mrf.mxu3 }
 0x658   : > { %v3518_v10 = vadd.f32 %v3517_v26, %v9937_v20  ;;  %v3971_v26 = vmul.f32 %v12305_v2, %v12305_v2 }
 0x659   : > { %v10301_v41 = vpop.f32.mrf.mxu0 }
 0x65a   : > { %12302 = vst [vmem:[#allocation38_spill] sm:$0xff] %v10301_v41  ;;  %v4064_v18 = vmul.f32 %v3518_v10, %v3518_v10  ;;  %v10307_v39 = vpop.f32.mrf.mxu1  ;;  %v10320_v10 = vpop.f32.mrf.mxu2 }
 0x65c   : > { %v10309_v1 = vadd.f32 %v4064_v18, %v3968_v27  ;;  %4274 = vmatmul.f32.gmra.mxu0 %v12304_v59  ;;  %v12308_v59 = vld [vmem:[#allocation123_spill] sm:$0xff] }
 0x65d   : > { %4387 = vmatmul.f32.gmra.mxu1 %v10078_v37 }
 0x65f   : > { %v3519_v9 = vpop.f32.mrf.mxu3 }
 0x660   : > { %v3520_v55 = vadd.f32 %v3519_v9, %v9958_v17  ;;  %v3974_v9 = vmul.f32 %v12308_v59, %v12308_v59 }
 0x661   : > { %v10314_v20 = vpop.f32.mrf.mxu0 }
 0x662   : > { %v4067_v41 = vmul.f32 %v3520_v55, %v3520_v55  ;;  %v10318_v36 = vpop.f32.mrf.mxu1 }
 0x663   : > { %12306 = vst [vmem:[#allocation97_spill] sm:$0xff] %v10318_v36 }
 0x664   : > { %3837 = vmatmul.bf16.gmra.mxu3 %v12192_v30  ;;  %4277 = vmatmul.f32.gmra.mxu0 %v12307_v50  ;;  %v10324_v27 = vadd.f32 %v4067_v41, %v3971_v26  ;;  %v12310_v30 = vld [vmem:[#allocation80_spill] sm:$0xff]  ;;  %v10338_v41 = vpop.f32.mrf.mxu2 }
 0x665   : > { %4390 = vmatmul.f32.gmra.mxu1 %v10089_v46  ;;  %v12312_v50 = vld [vmem:[#allocation124_spill] sm:$0xff] }
 0x667   : > { %v3522_v37 = vpop.f32.mrf.mxu3 }
 0x668   : > { %v3523_v17 = vadd.f32 %v3522_v37, %v9998_v23  ;;  %v3977_v37 = vmul.f32 %v12312_v50, %v12312_v50 }
 0x669   : > { %v10328_v18 = vpop.f32.mrf.mxu0 }
 0x66a   : > { %v4070_v55 = vmul.f32 %v3523_v17, %v3523_v17  ;;  %v10332_v2 = vpop.f32.mrf.mxu1 }
 0x66b   : > { %12309 = vst [vmem:[#allocation98_spill] sm:$0xff] %v10332_v2  ;;  %v12317_v2 = vld [vmem:[#allocation83_spill] sm:$0xff] }
 0x66c   : > { %v10334_v36 = vadd.f32 %v4070_v55, %v3974_v9  ;;  %4280 = vmatmul.f32.gmra.mxu0 %v12310_v30  ;;  %v12314_v9 = vld [vmem:[#allocation82_spill] sm:$0xff]  ;;  %v10352_v30 = vpop.f32.mrf.mxu2 }
 0x66d   : > { %4393 = vmatmul.f32.gmra.mxu1 %v10109_v22 }
 0x66f   : > { %v3524_v46 = vpop.f32.mrf.mxu3 }
 0x670   : > { %v3525_v26 = vadd.f32 %v3524_v46, %v10034_v6 }
 0x671   : > { %v10341_v23 = vpop.f32.mrf.mxu0 }
 0x672   : > { %12311 = vst [vmem:[#allocation99_spill] sm:$0xff] %v10341_v23  ;;  %v4073_v59 = vmul.f32 %v3525_v26, %v3525_v26  ;;  %v10345_v17 = vpop.f32.mrf.mxu1  ;;  %v12315_v23 = vld [vmem:[#allocation125_spill] sm:$0xff] }
 0x673   : > { %12313 = vst [vmem:[#allocation69_spill] sm:$0xff] %v10345_v17  ;;  %v3885_v26 = vmul.f32 %v12315_v23, %v12315_v23 }
 0x674   : > { %3842 = vmatmul.bf16.gmra.mxu3 %v12199_v25  ;;  %4283 = vmatmul.f32.gmra.mxu0 %v12314_v9  ;;  %v10349_v55 = vadd.f32 %v4073_v59, %v3977_v37  ;;  %v12319_v9 = vld [vmem:[#allocation126_spill] sm:$0xff] }
 0x675   : > { %4396 = vmatmul.f32.gmra.mxu1 %v10120_v29 }
 0x677   : > { %v3803_v22 = vpop.f32.mrf.mxu3 }
 0x678   : > { %v3804_v6 = vadd.f32 %v3803_v22, %v10061_v61  ;;  %v10366_v61 = vpop.f32.mrf.mxu2  ;;  %v3888_v22 = vmul.f32 %v12319_v9, %v12319_v9 }
 0x679   : > { %v10355_v46 = vpop.f32.mrf.mxu0 }
 0x67a   : > { %v3981_v50 = vmul.f32 %v3804_v6, %v3804_v6  ;;  %v10359_v17 = vpop.f32.mrf.mxu1 }
 0x67b   : > { %12316 = vst [vmem:[#allocation40_spill] sm:$0xff] %v10359_v17  ;;  %v12321_v17 = vld [vmem:[#allocation64_spill] sm:$0xff] }
 0x67c   : > { %v4077_v25 = vadd.f32 %v3981_v50, %v3885_v26  ;;  %4286 = vmatmul.f32.gmra.mxu0 %v12317_v2  ;;  %v12322_v26 = vld [vmem:[#allocation44_spill] sm:$0xff] }
 0x67d   : > { %4399 = vmatmul.f32.gmra.mxu1 %v10142_v24 }
 0x67e   : > { %4461 = vmatmul.f32.vlgmr.msra.gmra.mxu2 %v4077_v25  ;;  %v12323_v25 = vld [vmem:[#allocation127_spill] sm:$0xff] }
 0x67f   : > { %v3805_v29 = vpop.f32.mrf.mxu3 }
 0x680   : > { %v3806_v37 = vadd.f32 %v3805_v29, %v10074_v28  ;;  %v3891_v29 = vmul.f32 %v12323_v25, %v12323_v25 }
 0x681   : > { %v10364_v59 = vpop.f32.mrf.mxu0 }
 0x682   : > { %12318 = vst [vmem:[#allocation43_spill] sm:$0xff] %v10364_v59  ;;  %v3984_v23 = vmul.f32 %v3806_v37, %v3806_v37  ;;  %v10370_v6 = vpop.f32.mrf.mxu1  ;;  %v12324_v59 = vld [vmem:[#allocation5_spill] sm:$0xff] }
 0x683   : > { %12320 = vst [vmem:[#allocation100_spill] sm:$0xff] %v10370_v6  ;;  %v10382_v6 = vpop.f32.mrf.mxu2 }
 0x684   : > { %3847 = vmatmul.bf16.gmra.mxu3 %v12321_v17  ;;  %4289 = vmatmul.f32.gmra.mxu0 %v12322_v26  ;;  %v4080_v2 = vadd.f32 %v3984_v23, %v3888_v22  ;;  %v12325_v23 = vld [vmem:[#allocation128_spill] sm:$0xff] }
 0x685   : > { %4402 = vmatmul.f32.gmra.mxu1 %v10153_v11  ;;  %v3894_v26 = vmul.f32 %v12325_v23, %v12325_v23  ;;  %v12330_v23 = vld [vmem:[#allocation84_spill] sm:$0xff] }
 0x686   : > { %4464 = vmatmul.f32.gmra.mxu2 %v4080_v2 }
 0x687   : > { %v3808_v24 = vpop.f32.mrf.mxu3 }
 0x688   : > { %v3809_v28 = vadd.f32 %v3808_v24, %v10092_v58 }
 0x689   : > { %v10376_v50 = vpop.f32.mrf.mxu0 }
 0x68a   : > { %v3987_v9 = vmul.f32 %v3809_v28, %v3809_v28  ;;  %v10380_v37 = vpop.f32.mrf.mxu1  ;;  %v12327_v28 = vld [vmem:[#allocation7_spill] sm:$0xff] }
 0x68c   : > { %v4083_v17 = vadd.f32 %v3987_v9, %v3891_v29  ;;  %4292 = vmatmul.f32.gmra.mxu0 %v12324_v59  ;;  %v12328_v9 = vld [vmem:[#allocation129_spill] sm:$0xff] }
 0x68d   : > { %4405 = vmatmul.f32.gmra.mxu1 %v10175_v0  ;;  %v10396_v0 = vpop.f32.mrf.mxu2 }
 0x68e   : > { %4467 = vmatmul.f32.gmra.mxu2 %v4083_v17  ;;  %v3897_v17 = vmul.f32 %v12328_v9, %v12328_v9  ;;  %v12333_v9 = vld [vmem:[#allocation85_spill] sm:$0xff] }
 0x68f   : > { %v3810_v11 = vpop.f32.mrf.mxu3 }
 0x690   : > { %v3811_v22 = vadd.f32 %v3810_v11, %v10105_v40 }
 0x691   : > { %v10387_v58 = vpop.f32.mrf.mxu0 }
 0x692   : > { %v3990_v2 = vmul.f32 %v3811_v22, %v3811_v22  ;;  %v10391_v24 = vpop.f32.mrf.mxu1 }
 0x693   : > { %12326 = vst [vmem:[#allocation6_spill] sm:$0xff] %v10391_v24 }
 0x694   : > { %3852 = vmatmul.bf16.gmra.mxu3 %v7698_v45  ;;  %4295 = vmatmul.f32.gmra.mxu0 %v12327_v28  ;;  %v4086_v25 = vadd.f32 %v3990_v2, %v3894_v26  ;;  %v12331_v28 = vld [vmem:[#allocation130_spill] sm:$0xff] }
 0x695   : > { %4408 = vmatmul.f32.gmra.mxu1 %v10188_v44  ;;  %v10407_v26 = vpop.f32.mrf.mxu2 }
 0x696   : > { %4470 = vmatmul.f32.gmra.mxu2 %v4086_v25  ;;  %v3900_v25 = vmul.f32 %v12331_v28, %v12331_v28 }
 0x697   : > { %v3813_v59 = vpop.f32.mrf.mxu3 }
 0x698   : > { %v3814_v40 = vadd.f32 %v3813_v59, %v10124_v49 }
 0x699   : > { %v10399_v29 = vpop.f32.mrf.mxu0 }
 0x69a   : > { %v3993_v11 = vmul.f32 %v3814_v40, %v3814_v40  ;;  %v10403_v22 = vpop.f32.mrf.mxu1 }
 0x69b   : > { %12329 = vst [vmem:[#allocation18_spill] sm:$0xff] %v10403_v22 }
 0x69c   : > { %v4089_v45 = vadd.f32 %v3993_v11, %v3897_v17  ;;  %4298 = vmatmul.f32.gmra.mxu0 %v12330_v23  ;;  %v12334_v23 = vld [vmem:[#allocation131_spill] sm:$0xff] }
 0x69d   : > { %4411 = vmatmul.f32.gmra.mxu1 %v10206_v63 }
 0x69e   : > { %4473 = vmatmul.f32.gmra.mxu2 %v4089_v45  ;;  %v10422_v45 = vpop.f32.mrf.mxu2 }
 0x69f   : > { %v3815_v44 = vpop.f32.mrf.mxu3 }
 0x6a0   : > { %v3816_v2 = vadd.f32 %v3815_v44, %v10138_v16  ;;  %v3903_v44 = vmul.f32 %v12334_v23, %v12334_v23 }
 0x6a1   : > { %v10410_v49 = vpop.f32.mrf.mxu0 }
 0x6a2   : > { %v3996_v59 = vmul.f32 %v3816_v2, %v3816_v2  ;;  %v10414_v40 = vpop.f32.mrf.mxu1 }
 0x6a3   : > { %12332 = vst [vmem:[#allocation45_spill] sm:$0xff] %v10414_v40  ;;  %v12336_v40 = vld [vmem:[#allocation8_spill] sm:$0xff] }
 0x6a4   : > { %3857 = vmatmul.bf16.gmra.mxu3 %v12212_v54  ;;  %4301 = vmatmul.f32.gmra.mxu0 %v12333_v9  ;;  %v4092_v17 = vadd.f32 %v3996_v59, %v3900_v25  ;;  %v12337_v59 = vld [vmem:[#allocation132_spill] sm:$0xff] }
 0x6a5   : > { %4414 = vmatmul.f32.gmra.mxu1 %v10219_v13  ;;  %v3906_v9 = vmul.f32 %v12337_v59, %v12337_v59  ;;  %v12342_v59 = vld [vmem:[#allocation16_spill] sm:$0xff] }
 0x6a6   : > { %4476 = vmatmul.f32.gmra.mxu2 %v4092_v17  ;;  %v12338_v17 = vld [vmem:[#allocation14_spill] sm:$0xff] }
 0x6a7   : > { %v3818_v63 = vpop.f32.mrf.mxu3 }
 0x6a8   : > { %v3819_v11 = vadd.f32 %v3818_v63, %v10157_v43  ;;  %v3646_v63 = vadd.f32 %v12338_v17, %v9902_v52 }
 0x6a9   : > { %v10420_v16 = vpop.f32.mrf.mxu0 }
 0x6aa   : > { %v3999_v2 = vmul.f32 %v3819_v11, %v3819_v11  ;;  %v10426_v28 = vpop.f32.mrf.mxu1 }
 0x6ab   : > { %12335 = vst [vmem:[#allocation101_spill] sm:$0xff] %v10426_v28  ;;  %v10435_v28 = vpop.f32.mrf.mxu2 }
 0x6ac   : > { %v4095_v54 = vadd.f32 %v3999_v2, %v3903_v44  ;;  %4304 = vmatmul.f32.gmra.mxu0 %v12336_v40  ;;  %v12339_v40 = vld [vmem:[#allocation72_spill] sm:$0xff] }
 0x6ad   : > { %4417 = vmatmul.f32.gmra.mxu1 %v10237_v32  ;;  %v12340_v32 = vld [vmem:[#allocation10_spill] sm:$0xff] }
 0x6ae   : > { %4479 = vmatmul.f32.gmra.mxu2 %v4095_v54 }
 0x6af   : > { %v3820_v13 = vpop.f32.mrf.mxu3 }
 0x6b0   : > { %v3821_v25 = vadd.f32 %v3820_v13, %v10171_v51  ;;  %v3735_v51 = vadd.f32 %v10186_v12, %v3646_v63 }
 0x6b1   : > { %v4260_v43 = vpop.f32.mrf.mxu0 }
 0x6b2   : > { %v4002_v23 = vmul.f32 %v3821_v25, %v3821_v25  ;;  %v4261_v11 = vadd.f32 5.9604645e-08, %v4260_v43  ;;  %v4373_v22 = vpop.f32.mrf.mxu1  ;;  %v12341_v25 = vld [vmem:[#allocation133_spill] sm:$0xff] }
 0x6b3   : > { %v3909_v43 = vmul.f32 %v12341_v25, %v12341_v25  ;;  %v10451_v12 = vpop.f32.mrf.mxu2 }
 0x6b4   : > { %v10437_v44 = vadd.f32 %v4373_v22, %v4261_v11  ;;  %3862 = vmatmul.bf16.gmra.mxu3 %v12339_v40  ;;  %4307 = vmatmul.f32.gmra.mxu0 %v12340_v32  ;;  %v4098_v2 = vadd.f32 %v4002_v23, %v3906_v9  ;;  %v3648_v22 = vadd.f32 %v12342_v59, %v9930_v34  ;;  %v12343_v9 = vld [vmem:[#allocation86_spill] sm:$0xff] }
 0x6b5   : > { %4420 = vmatmul.f32.gmra.mxu1 %v10250_v5 }
 0x6b6   : > { %4482 = vmatmul.f32.gmra.mxu2 %v4098_v2  ;;  %v3737_v5 = vadd.f32 %v10202_v7, %v3648_v22 }
 0x6b7   : > { %v3823_v54 = vpop.f32.mrf.mxu3 }
 0x6b8   : > { %v3824_v13 = vadd.f32 %v3823_v54, %v3735_v51  ;;  %v12344_v51 = vld [vmem:[#allocation134_spill] sm:$0xff] }
 0x6b9   : > { %v4263_v52 = vpop.f32.mrf.mxu0  ;;  %v3912_v34 = vmul.f32 %v12344_v51, %v12344_v51  ;;  %v12345_v54 = vld [vmem:[#allocation90_spill] sm:$0xff]  ;;  %v12351_v51 = vld [vmem:[#allocation17_spill] sm:$0xff] }
 0x6ba   : > { %v4005_v17 = vmul.f32 %v3824_v13, %v3824_v13  ;;  %v4264_v11 = vadd.f32 5.9604645e-08, %v4263_v52  ;;  %v4376_v40 = vpop.f32.mrf.mxu1  ;;  %v12346_v13 = vld [vmem:[#allocation91_spill] sm:$0xff] }
 0x6bb   : > { %v3651_v52 = vadd.f32 %v12346_v13, %v12345_v54 }
 0x6bc   : > { %v4101_v24 = vadd.f32 %v4005_v17, %v3909_v43  ;;  %v10447_v32 = vadd.f32 %v4376_v40, %v4264_v11  ;;  %4310 = vmatmul.f32.gmra.mxu0 %v12343_v9  ;;  %v12348_v40 = vld [vmem:[#allocation87_spill] sm:$0xff] }
 0x6bd   : > { %4423 = vmatmul.f32.gmra.mxu1 %v10266_v31  ;;  %v12347_v31 = vld [vmem:[#allocation75_spill] sm:$0xff]  ;;  %v3740_v7 = vadd.f32 %v10217_v3, %v3651_v52 }
 0x6be   : > { %4485 = vmatmul.f32.gmra.mxu2 %v4101_v24  ;;  %v10464_v24 = vpop.f32.mrf.mxu2 }
 0x6bf   : > { %v3825_v63 = vpop.f32.mrf.mxu3 }
 0x6c0   : > { %v3826_v23 = vadd.f32 %v3825_v63, %v3737_v5  ;;  %v12349_v63 = vld [vmem:[#allocation135_spill] sm:$0xff] }
 0x6c1   : > { %v4266_v2 = vpop.f32.mrf.mxu0 }
 0x6c2   : > { %v4008_v25 = vmul.f32 %v3826_v23, %v3826_v23  ;;  %v4267_v43 = vadd.f32 5.9604645e-08, %v4266_v2  ;;  %v4379_v59 = vpop.f32.mrf.mxu1  ;;  %v3915_v23 = vmul.f32 %v12349_v63, %v12349_v63  ;;  %v12350_v2 = vld [vmem:[#allocation52_spill] sm:$0xff] }
 0x6c4   : > { %v4104_v17 = vadd.f32 %v4008_v25, %v3912_v34  ;;  %v10458_v11 = vadd.f32 %v4379_v59, %v4267_v43  ;;  %3867 = vmatmul.bf16.gmra.mxu3 %v12347_v31  ;;  %4313 = vmatmul.f32.gmra.mxu0 %v12348_v40  ;;  %v3653_v34 = vadd.f32 %v12351_v51, %v12350_v2 }
 0x6c5   : > { %4426 = vmatmul.f32.gmra.mxu1 %v10279_v14  ;;  %v12352_v14 = vld [vmem:[#allocation48_spill] sm:$0xff] }
 0x6c6   : > { %4488 = vmatmul.f32.gmra.mxu2 %v4104_v17  ;;  %v3742_v3 = vadd.f32 %v10233_v38, %v3653_v34  ;;  %v10475_v31 = vpop.f32.mrf.mxu2  ;;  %v12357_v38 = vld [vmem:[#allocation11_spill] sm:$0xff] }
 0x6c7   : > { %v3828_v22 = vpop.f32.mrf.mxu3 }
 0x6c8   : > { %v3829_v9 = vadd.f32 %v3828_v22, %v3740_v7  ;;  %v12353_v7 = vld [vmem:[#allocation136_spill] sm:$0xff] }
 0x6c9   : > { %v4269_v5 = vpop.f32.mrf.mxu0  ;;  %v3918_v22 = vmul.f32 %v12353_v7, %v12353_v7 }
 0x6ca   : > { %v4011_v54 = vmul.f32 %v3829_v9, %v3829_v9  ;;  %v4270_v13 = vadd.f32 5.9604645e-08, %v4269_v5  ;;  %v4382_v25 = vpop.f32.mrf.mxu1  ;;  %v12354_v9 = vld [vmem:[#allocation19_spill] sm:$0xff]  ;;  %v12355_v5 = vld [vmem:[#allocation54_spill] sm:$0xff] }
 0x6cb   : > { %v3656_v63 = vadd.f32 %v12355_v5, %v12354_v9 }
 0x6cc   : > { %v4107_v43 = vadd.f32 %v4011_v54, %v3915_v23  ;;  %v10470_v59 = vadd.f32 %v4382_v25, %v4270_v13  ;;  %4316 = vmatmul.f32.gmra.mxu0 %v12352_v14 }
 0x6cd   : > { %4429 = vmatmul.f32.gmra.mxu1 %v10297_v8  ;;  %v12356_v8 = vld [vmem:[#allocation78_spill] sm:$0xff]  ;;  %v3745_v34 = vadd.f32 %v10248_v33, %v3656_v63 }
 0x6ce   : > { %4491 = vmatmul.f32.gmra.mxu2 %v4107_v43 }
 0x6cf   : > { %v3830_v52 = vpop.f32.mrf.mxu3 }
 0x6d0   : > { %v3831_v17 = vadd.f32 %v3830_v52, %v3742_v3  ;;  %v12358_v3 = vld [vmem:[#allocation137_spill] sm:$0xff] }
 0x6d1   : > { %v4272_v40 = vpop.f32.mrf.mxu0  ;;  %v3921_v52 = vmul.f32 %v12358_v3, %v12358_v3 }
 0x6d2   : > { %v4014_v23 = vmul.f32 %v3831_v17, %v3831_v17  ;;  %v4273_v2 = vadd.f32 5.9604645e-08, %v4272_v40  ;;  %v4385_v51 = vpop.f32.mrf.mxu1  ;;  %v12359_v17 = vld [vmem:[#allocation92_spill] sm:$0xff] }
 0x6d3   : > { %v12360_v40 = vld [vmem:[#allocation20_spill] sm:$0xff] }
 0x6d4   : > { %v4110_v54 = vadd.f32 %v4014_v23, %v3918_v22  ;;  %v10481_v13 = vadd.f32 %v4385_v51, %v4273_v2  ;;  %3872 = vmatmul.bf16.gmra.mxu3 %v12356_v8  ;;  %4319 = vmatmul.f32.gmra.mxu0 %v12357_v38  ;;  %v3658_v7 = vadd.f32 %v12360_v40, %v12359_v17  ;;  %v10491_v23 = vpop.f32.mrf.mxu2  ;;  %v12362_v38 = vld [vmem:[#allocation138_spill] sm:$0xff] }
 0x6d5   : > { %4432 = vmatmul.f32.gmra.mxu1 %v10309_v1  ;;  %v12361_v1 = vld [vmem:[#allocation13_spill] sm:$0xff] }
 0x6d6   : > { %4494 = vmatmul.f32.gmra.mxu2 %v4110_v54  ;;  %v3747_v33 = vadd.f32 %v10269_v19, %v3658_v7 }
 0x6d7   : > { %v3833_v25 = vpop.f32.mrf.mxu3 }
 0x6d8   : > { %v3834_v43 = vadd.f32 %v3833_v25, %v3745_v34  ;;  %v3924_v34 = vmul.f32 %v12362_v38, %v12362_v38  ;;  %v12363_v25 = vld [vmem:[#allocation22_spill] sm:$0xff] }
 0x6d9   : > { %v4275_v14 = vpop.f32.mrf.mxu0 }
 0x6da   : > { %v4017_v22 = vmul.f32 %v3834_v43, %v3834_v43  ;;  %v4276_v9 = vadd.f32 5.9604645e-08, %v4275_v14  ;;  %v4388_v5 = vpop.f32.mrf.mxu1  ;;  %v12364_v43 = vld [vmem:[#allocation57_spill] sm:$0xff] }
 0x6db   : > { %v3661_v14 = vadd.f32 %v12364_v43, %v12363_v25 }
 0x6dc   : > { %v4113_v2 = vadd.f32 %v4017_v22, %v3921_v52  ;;  %v10493_v51 = vadd.f32 %v4388_v5, %v4276_v9  ;;  %4322 = vmatmul.f32.gmra.mxu0 %v12361_v1  ;;  %v12365_v9 = vld [vmem:[#allocation81_spill] sm:$0xff]  ;;  %v10506_v19 = vpop.f32.mrf.mxu2 }
 0x6dd   : > { %4435 = vmatmul.f32.gmra.mxu1 %v10324_v27  ;;  %v12366_v27 = vld [vmem:[#allocation88_spill] sm:$0xff]  ;;  %v3750_v7 = vadd.f32 %v10286_v42, %v3661_v14 }
 0x6de   : > { %4497 = vmatmul.f32.gmra.mxu2 %v4113_v2 }
 0x6df   : > { %v3835_v63 = vpop.f32.mrf.mxu3 }
 0x6e0   : > { %v3836_v54 = vadd.f32 %v3835_v63, %v3747_v33  ;;  %v12367_v33 = vld [vmem:[#allocation139_spill] sm:$0xff] }
 0x6e1   : > { %v4278_v8 = vpop.f32.mrf.mxu0  ;;  %v3927_v63 = vmul.f32 %v12367_v33, %v12367_v33 }
 0x6e2   : > { %v4020_v3 = vmul.f32 %v3836_v54, %v3836_v54  ;;  %v4279_v52 = vadd.f32 5.9604645e-08, %v4278_v8  ;;  %v4391_v17 = vpop.f32.mrf.mxu1  ;;  %v3663_v54 = vadd.f32 %v10087_v48, %v10083_v35  ;;  %v12370_v48 = vld [vmem:[#allocation93_spill] sm:$0xff] }
 0x6e4   : > { %v4116_v40 = vadd.f32 %v4020_v3, %v3924_v34  ;;  %v10502_v22 = vadd.f32 %v4391_v17, %v4279_v52  ;;  %3877 = vmatmul.bf16.gmra.mxu3 %v12365_v9  ;;  %4325 = vmatmul.f32.gmra.mxu0 %v12366_v27  ;;  %v12368_v3 = vld [vmem:[#allocation89_spill] sm:$0xff]  ;;  %v10519_v42 = vpop.f32.mrf.mxu2  ;;  %v12371_v9 = vld [vmem:[#allocation23_spill] sm:$0xff] }
 0x6e5   : > { %4438 = vmatmul.f32.gmra.mxu1 %v10334_v36  ;;  %v3752_v36 = vadd.f32 %v10303_v4, %v3663_v54  ;;  %v3666_v27 = vadd.f32 %v12371_v9, %v12370_v48 }
 0x6e6   : > { %4500 = vmatmul.f32.gmra.mxu2 %v4116_v40  ;;  %v12369_v40 = vld [vmem:[#allocation140_spill] sm:$0xff] }
 0x6e7   : > { %v3838_v5 = vpop.f32.mrf.mxu3  ;;  %v3930_v35 = vmul.f32 %v12369_v40, %v12369_v40  ;;  %v3755_v4 = vadd.f32 %v10320_v10, %v3666_v27  ;;  %v12373_v27 = vld [vmem:[#allocation142_spill] sm:$0xff] }
 0x6e8   : > { %v3839_v2 = vadd.f32 %v3838_v5, %v3750_v7 }
 0x6e9   : > { %v4281_v1 = vpop.f32.mrf.mxu0 }
 0x6ea   : > { %v4023_v8 = vmul.f32 %v3839_v2, %v3839_v2  ;;  %v4282_v38 = vadd.f32 5.9604645e-08, %v4281_v1  ;;  %v4394_v34 = vpop.f32.mrf.mxu1 }
 0x6ec   : > { %v4119_v25 = vadd.f32 %v4023_v8, %v3927_v63  ;;  %v10514_v43 = vadd.f32 %v4394_v34, %v4282_v38  ;;  %4328 = vmatmul.f32.gmra.mxu0 %v12368_v3  ;;  %v10528_v54 = vpop.f32.mrf.mxu2  ;;  %v12372_v38 = vld [vmem:[#allocation141_spill] sm:$0xff] }
 0x6ed   : > { %4441 = vmatmul.f32.gmra.mxu1 %v10349_v55  ;;  %v3933_v34 = vmul.f32 %v12372_v38, %v12372_v38 }
 0x6ee   : > { %4503 = vmatmul.f32.gmra.mxu2 %v4119_v25  ;;  %v3668_v25 = vadd.f32 %v10118_v47, %v10114_v21 }
 0x6ef   : > { %v3840_v14 = vpop.f32.mrf.mxu3 }
 0x6f0   : > { %v3841_v52 = vadd.f32 %v3840_v14, %v3752_v36  ;;  %v3757_v10 = vadd.f32 %v10338_v41, %v3668_v25 }
 0x6f1   : > { %v4284_v17 = vpop.f32.mrf.mxu0 }
 0x6f2   : > { %v4026_v7 = vmul.f32 %v3841_v52, %v3841_v52  ;;  %v4285_v5 = vadd.f32 5.9604645e-08, %v4284_v17  ;;  %v4397_v2 = vpop.f32.mrf.mxu1 }
 0x6f4   : > { %v4122_v1 = vadd.f32 %v4026_v7, %v3930_v35  ;;  %v10525_v33 = vadd.f32 %v4397_v2, %v4285_v5  ;;  %v3936_v7 = vmul.f32 %v12373_v27, %v12373_v27  ;;  %v12374_v5 = vld [vmem:[#allocation25_spill] sm:$0xff]  ;;  %v12375_v2 = vld [vmem:[#allocation26_spill] sm:$0xff] }
 0x6f5   : > { %v3671_v21 = vadd.f32 %v12375_v2, %v12374_v5 }
 0x6f6   : > { %4506 = vmatmul.f32.gmra.mxu2 %v4122_v1 }
 0x6f7   : > { %v3843_v55 = vpop.f32.mrf.mxu3  ;;  %v3760_v41 = vadd.f32 %v10352_v30, %v3671_v21  ;;  %v12377_v21 = vld [vmem:[#allocation144_spill] sm:$0xff] }
 0x6f8   : > { %v3844_v63 = vadd.f32 %v3843_v55, %v3755_v4 }
 0x6f9   : > { %v4287_v8 = vpop.f32.mrf.mxu0 }
 0x6fa   : > { %v4029_v3 = vmul.f32 %v3844_v63, %v3844_v63  ;;  %v4288_v36 = vadd.f32 5.9604645e-08, %v4287_v8  ;;  %v4400_v14 = vpop.f32.mrf.mxu1 }
 0x6fc   : > { %v4125_v52 = vadd.f32 %v4029_v3, %v3933_v34  ;;  %v10534_v17 = vadd.f32 %v4400_v14, %v4288_v36  ;;  %v12376_v3 = vld [vmem:[#allocation143_spill] sm:$0xff]  ;;  %v3673_v14 = vadd.f32 %v10151_v15, %v10147_v53  ;;  %v3676_v53 = vadd.f32 %v10168_v62, %v10164_v56 }
 0x6fd   : > { %v3939_v36 = vmul.f32 %v12376_v3, %v12376_v3  ;;  %v12378_v3 = vld [vmem:[#allocation145_spill] sm:$0xff] }
 0x6fe   : > { %4509 = vmatmul.f32.gmra.mxu2 %v4125_v52  ;;  %v3762_v30 = vadd.f32 %v10366_v61, %v3673_v14  ;;  %v3765_v61 = vadd.f32 %v10382_v6, %v3676_v53  ;;  %v12379_v14 = vld [vmem:[#allocation58_spill] sm:$0xff] }
 0x6ff   : > { %v3845_v40 = vpop.f32.mrf.mxu3  ;;  %v12381_v6 = vld [vmem:[#allocation146_spill] sm:$0xff] }
 0x700   : > { %v3846_v35 = vadd.f32 %v3845_v40, %v3757_v10 }
 0x701   : > { %v4290_v48 = vpop.f32.mrf.mxu0  ;;  %v10537_v9 = vpop.f32.mrf.mxu2 }
 0x702   : > { %v4032_v47 = vmul.f32 %v3846_v35, %v3846_v35  ;;  %v4291_v1 = vadd.f32 5.9604645e-08, %v4290_v48  ;;  %v4403_v4 = vpop.f32.mrf.mxu1 }
 0x704   : > { %v4128_v55 = vadd.f32 %v4032_v47, %v3936_v7  ;;  %v10543_v63 = vadd.f32 %v4403_v4, %v4291_v1  ;;  %v3942_v47 = vmul.f32 %v12377_v21, %v12377_v21  ;;  %v12383_v21 = vld [vmem:[#allocation27_spill] sm:$0xff] }
 0x706   : > { %4512 = vmatmul.f32.gmra.mxu2 %v4128_v55 }
 0x707   : > { %v3848_v8 = vpop.f32.mrf.mxu3 }
 0x708   : > { %v3849_v38 = vadd.f32 %v3848_v8, %v3760_v41 }
 0x709   : > { %v4293_v34 = vpop.f32.mrf.mxu0  ;;  %v10546_v25 = vpop.f32.mrf.mxu2 }
 0x70a   : > { %v4035_v52 = vmul.f32 %v3849_v38, %v3849_v38  ;;  %v4294_v10 = vadd.f32 5.9604645e-08, %v4293_v34  ;;  %v4406_v40 = vpop.f32.mrf.mxu1 }
 0x70c   : > { %v4131_v35 = vadd.f32 %v4035_v52, %v3939_v36  ;;  %v10552_v48 = vadd.f32 %v4406_v40, %v4294_v10  ;;  %v3945_v36 = vmul.f32 %v12378_v3, %v12378_v3  ;;  %v12380_v52 = vld [vmem:[#allocation94_spill] sm:$0xff] }
 0x70d   : > { %v3678_v10 = vadd.f32 %v12380_v52, %v12379_v14 }
 0x70e   : > { %4515 = vmatmul.f32.gmra.mxu2 %v4131_v35 }
 0x70f   : > { %v3850_v27 = vpop.f32.mrf.mxu3  ;;  %v3767_v40 = vadd.f32 %v10396_v0, %v3678_v10  ;;  %v12384_v0 = vld [vmem:[#allocation147_spill] sm:$0xff] }
 0x710   : > { %v3851_v7 = vadd.f32 %v3850_v27, %v3762_v30 }
 0x711   : > { %v4296_v5 = vpop.f32.mrf.mxu0  ;;  %v10555_v2 = vpop.f32.mrf.mxu2 }
 0x712   : > { %v4038_v15 = vmul.f32 %v3851_v7, %v3851_v7  ;;  %v4297_v1 = vadd.f32 5.9604645e-08, %v4296_v5  ;;  %v4409_v4 = vpop.f32.mrf.mxu1  ;;  %v3948_v7 = vmul.f32 %v12381_v6, %v12381_v6  ;;  %v12382_v5 = vld [vmem:[#allocation59_spill] sm:$0xff] }
 0x714   : > { %v4134_v55 = vadd.f32 %v4038_v15, %v3942_v47  ;;  %v10561_v41 = vadd.f32 %v4409_v4, %v4297_v1  ;;  %v3681_v47 = vadd.f32 %v12383_v21, %v12382_v5 }
 0x716   : > { %4518 = vmatmul.f32.gmra.mxu2 %v4134_v55  ;;  %v3770_v1 = vadd.f32 %v10407_v26, %v3681_v47  ;;  %v12386_v26 = vld [vmem:[#allocation148_spill] sm:$0xff] }
 0x717   : > { %v3853_v8 = vpop.f32.mrf.mxu3 }
 0x718   : > { %v3854_v38 = vadd.f32 %v3853_v8, %v3765_v61  ;;  %v3951_v8 = vmul.f32 %v12384_v0, %v12384_v0 }
 0x719   : > { %v10564_v34 = vpop.f32.mrf.mxu2 }
 0x71a   : > { %v4041_v56 = vmul.f32 %v3854_v38, %v3854_v38  ;;  %v12385_v38 = vld [vmem:[#allocation29_spill] sm:$0xff] }
 0x71b   : > { %v3683_v3 = vadd.f32 %v12385_v38, %v10211_v57 }
 0x71c   : > { %v4137_v62 = vadd.f32 %v4041_v56, %v3945_v36 }
 0x71d   : > { %v3772_v52 = vadd.f32 %v10422_v45, %v3683_v3  ;;  %v12389_v45 = vld [vmem:[#allocation149_spill] sm:$0xff] }
 0x71e   : > { %4521 = vmatmul.f32.gmra.mxu2 %v4137_v62 }
 0x71f   : > { %v3855_v35 = vpop.f32.mrf.mxu3 }
 0x720   : > { %v3856_v30 = vadd.f32 %v3855_v35, %v3767_v40  ;;  %v3954_v40 = vmul.f32 %v12386_v26, %v12386_v26  ;;  %v12387_v35 = vld [vmem:[#allocation30_spill] sm:$0xff] }
 0x721   : > { %v10571_v27 = vpop.f32.mrf.mxu2 }
 0x722   : > { %v4044_v53 = vmul.f32 %v3856_v30, %v3856_v30  ;;  %v12388_v30 = vld [vmem:[#allocation60_spill] sm:$0xff] }
 0x723   : > { %v3686_v6 = vadd.f32 %v12388_v30, %v12387_v35 }
 0x724   : > { %v4140_v15 = vadd.f32 %v4044_v53, %v3948_v7 }
 0x725   : > { %v3775_v21 = vadd.f32 %v10435_v28, %v3686_v6  ;;  %v12391_v28 = vld [vmem:[#allocation150_spill] sm:$0xff] }
 0x726   : > { %4524 = vmatmul.f32.gmra.mxu2 %v4140_v15  ;;  %v3957_v15 = vmul.f32 %v12389_v45, %v12389_v45 }
 0x727   : > { %v3858_v4 = vpop.f32.mrf.mxu3 }
 0x728   : > { %v3859_v55 = vadd.f32 %v3858_v4, %v3770_v1  ;;  %v12390_v1 = vld [vmem:[#allocation61_spill] sm:$0xff] }
 0x729   : > { %v10578_v61 = vpop.f32.mrf.mxu2  ;;  %v3688_v4 = vadd.f32 %v12390_v1, %v10242_v60 }
 0x72a   : > { %v4047_v36 = vmul.f32 %v3859_v55, %v3859_v55 }
 0x72c   : > { %v4143_v14 = vadd.f32 %v4047_v36, %v3951_v8  ;;  %v3777_v8 = vadd.f32 %v10451_v12, %v3688_v4 }
 0x72e   : > { %4527 = vmatmul.f32.gmra.mxu2 %v4143_v14  ;;  %v3960_v14 = vmul.f32 %v12391_v28, %v12391_v28 }
 0x72f   : > { %v3860_v10 = vpop.f32.mrf.mxu3 }
 0x730   : > { %v3861_v56 = vadd.f32 %v3860_v10, %v3772_v52  ;;  %v12392_v52 = vld [vmem:[#allocation31_spill] sm:$0xff]  ;;  %v12393_v10 = vld [vmem:[#allocation33_spill] sm:$0xff] }
 0x731   : > { %v10585_v62 = vpop.f32.mrf.mxu2 }
 0x732   : > { %v4050_v7 = vmul.f32 %v3861_v56, %v3861_v56  ;;  %v3691_v56 = vadd.f32 %v12393_v10, %v12392_v52 }
 0x734   : > { %v4146_v5 = vadd.f32 %v4050_v7, %v3954_v40  ;;  %v3780_v60 = vadd.f32 %v10464_v24, %v3691_v56  ;;  %v12394_v7 = vld [vmem:[#allocation151_spill] sm:$0xff] }
 0x736   : > { %4530 = vmatmul.f32.gmra.mxu2 %v4146_v5  ;;  %v3963_v5 = vmul.f32 %v12394_v7, %v12394_v7 }
 0x737   : > { %v3863_v57 = vpop.f32.mrf.mxu3 }
 0x738   : > { %v3864_v47 = vadd.f32 %v3863_v57, %v3775_v21  ;;  %v12395_v21 = vld [vmem:[#allocation34_spill] sm:$0xff]  ;;  %v12396_v57 = vld [vmem:[#allocation95_spill] sm:$0xff] }
 0x739   : > { %v10592_v53 = vpop.f32.mrf.mxu2 }
 0x73a   : > { %v4053_v55 = vmul.f32 %v3864_v47, %v3864_v47  ;;  %v3693_v47 = vadd.f32 %v12396_v57, %v12395_v21  ;;  %v12402_v57 = vld [vmem:[#allocation154_spill] sm:$0xff] }
 0x73c   : > { %v4149_v0 = vadd.f32 %v4053_v55, %v3957_v15 }
 0x73e   : > { %4533 = vmatmul.f32.gmra.mxu2 %v4149_v0  ;;  %v12397_v0 = vld [vmem:[#allocation152_spill] sm:$0xff] }
 0x73f   : > { %v3865_v38 = vpop.f32.mrf.mxu3 }
 0x740   : > { %v3866_v3 = vadd.f32 %v3865_v38, %v3777_v8  ;;  %v3966_v8 = vmul.f32 %v12397_v0, %v12397_v0  ;;  %v12398_v38 = vld [vmem:[#allocation96_spill] sm:$0xff]  ;;  %v12404_v0 = vld [vmem:[#allocation155_spill] sm:$0xff] }
 0x741   : > { %v4486_v36 = vpop.f32.mrf.mxu2 }
 0x742   : > { %v4056_v26 = vmul.f32 %v3866_v3, %v3866_v3  ;;  %v10604_v40 = vadd.f32 %v4486_v36, %v10437_v44  ;;  %v3782_v44 = vadd.f32 %v10475_v31, %v3693_v47  ;;  %v12399_v3 = vld [vmem:[#allocation35_spill] sm:$0xff]  ;;  %v3972_v47 = vmul.f32 %v12402_v57, %v12402_v57 }
 0x743   : > { %v3696_v36 = vadd.f32 %v12399_v3, %v12398_v38  ;;  %v12405_v38 = vld [vmem:[#allocation98_spill] sm:$0xff] }
 0x744   : > { %v4152_v35 = vadd.f32 %v4056_v26, %v3960_v14  ;;  %v12400_v26 = vld [vmem:[#allocation153_spill] sm:$0xff]  ;;  %v3703_v3 = vadd.f32 %v12405_v38, %v10328_v18  ;;  %v4246_v38 = vadd.f32 5.9604645e-08, %v10376_v50  ;;  %v4255_v50 = vadd.f32 5.9604645e-08, %v10410_v49 }
 0x745   : > { %v12414_v49 = vld [vmem:[#allocation45_spill] sm:$0xff] }
 0x746   : > { %4536 = vmatmul.f32.gmra.mxu2 %v4152_v35  ;;  %v3969_v35 = vmul.f32 %v12400_v26, %v12400_v26 }
 0x747   : > { %v3868_v30 = vpop.f32.mrf.mxu3 }
 0x748   : > { %v3869_v12 = vadd.f32 %v3868_v30, %v3780_v60  ;;  %v12401_v60 = vld [vmem:[#allocation38_spill] sm:$0xff] }
 0x749   : > { %v4489_v6 = vpop.f32.mrf.mxu2  ;;  %v3698_v30 = vadd.f32 %v10307_v39, %v12401_v60 }
 0x74a   : > { %v4059_v45 = vmul.f32 %v3869_v12, %v3869_v12  ;;  %v10612_v15 = vadd.f32 %v4489_v6, %v10447_v32  ;;  %v3785_v32 = vadd.f32 %v10491_v23, %v3696_v36 }
 0x74c   : > { %v4155_v1 = vadd.f32 %v4059_v45, %v3963_v5  ;;  %v12403_v45 = vld [vmem:[#allocation97_spill] sm:$0xff] }
 0x74e   : > { %4539 = vmatmul.f32.gmra.mxu2 %v4155_v1  ;;  %v3701_v1 = vadd.f32 %v12403_v45, %v10314_v20 }
 0x74f   : > { %v3870_v4 = vpop.f32.mrf.mxu3 }
 0x750   : > { %v3871_v24 = vadd.f32 %v3870_v4, %v3782_v44 }
 0x751   : > { %v4492_v55 = vpop.f32.mrf.mxu2 }
 0x752   : > { %v4062_v28 = vmul.f32 %v3871_v24, %v3871_v24  ;;  %v10620_v14 = vadd.f32 %v4492_v55, %v10458_v11  ;;  %v3787_v11 = vadd.f32 %v10506_v19, %v3698_v30 }
 0x754   : > { %v4158_v52 = vadd.f32 %v4062_v28, %v3966_v8  ;;  %v3975_v8 = vmul.f32 %v12404_v0, %v12404_v0  ;;  %v12409_v0 = vld [vmem:[#allocation40_spill] sm:$0xff] }
 0x756   : > { %4542 = vmatmul.f32.gmra.mxu2 %v4158_v52 }
 0x757   : > { %v3873_v10 = vpop.f32.mrf.mxu3 }
 0x758   : > { %v3874_v31 = vadd.f32 %v3873_v10, %v3785_v32  ;;  %v12406_v10 = vld [vmem:[#allocation156_spill] sm:$0xff] }
 0x759   : > { %v4495_v56 = vpop.f32.mrf.mxu2 }
 0x75a   : > { %v4065_v12 = vmul.f32 %v3874_v31, %v3874_v31  ;;  %v10628_v6 = vadd.f32 %v4495_v56, %v10470_v59  ;;  %v3790_v59 = vadd.f32 %v10519_v42, %v3701_v1  ;;  %v3978_v31 = vmul.f32 %v12406_v10, %v12406_v10 }
 0x75b   : > { %v4240_v1 = vadd.f32 5.9604645e-08, %v10355_v46  ;;  %v12411_v46 = vld [vmem:[#allocation100_spill] sm:$0xff] }
 0x75c   : > { %v4161_v7 = vadd.f32 %v4065_v12, %v3969_v35 }
 0x75e   : > { %4545 = vmatmul.f32.gmra.mxu2 %v4161_v7  ;;  %v10661_v7 = vpop.f32.mrf.mxu0 }
 0x75f   : > { %v3875_v5 = vpop.f32.mrf.mxu3 }
 0x760   : > { %v3876_v23 = vadd.f32 %v3875_v5, %v3787_v11  ;;  %v10666_v5 = vpop.f32.mrf.mxu1 }
 0x761   : > { %v4498_v21 = vpop.f32.mrf.mxu2 }
 0x762   : > { %v4068_v44 = vmul.f32 %v3876_v23, %v3876_v23  ;;  %v10636_v39 = vadd.f32 %v4498_v21, %v10481_v13  ;;  %v3792_v13 = vadd.f32 %v10528_v54, %v3703_v3  ;;  %v12410_v3 = vld [vmem:[#allocation69_spill] sm:$0xff] }
 0x764   : > { %v4164_v4 = vadd.f32 %v4068_v44, %v3972_v47  ;;  %v12407_v44 = vld [vmem:[#allocation99_spill] sm:$0xff] }
 0x766   : > { %4548 = vmatmul.f32.gmra.mxu2 %v4164_v4  ;;  %v10668_v23 = vpop.f32.mrf.mxu0  ;;  %v4237_v4 = vadd.f32 5.9604645e-08, %v12407_v44 }
 0x767   : > { %v3878_v24 = vpop.f32.mrf.mxu3 }
 0x768   : > { %v3879_v19 = vadd.f32 %v3878_v24, %v3790_v59  ;;  %v4762_v59 = vstv %s4761_s19 }
 0x769   : > { %v4501_v55 = vpop.f32.mrf.mxu2  ;;  %6611 = vrcp.f32 %v4762_v59  ;;  %vm4768_vm0 = vweird.f32 %v4762_v59 }
 0x76a   : > { %v4071_v36 = vmul.f32 %v3879_v19, %v3879_v19  ;;  %v10644_v20 = vadd.f32 %v4501_v55, %v10493_v51 }
 0x76c   : > { %v4167_v28 = vadd.f32 %v4071_v36, %v3975_v8  ;;  %v4353_v8 = vadd.f32 %v12409_v0, %v4240_v1  ;;  %v4350_v36 = vadd.f32 %v12410_v3, %v4237_v4  ;;  %v12415_v1 = vld [vmem:[#allocation101_spill] sm:$0xff] }
 0x76e   : > { %4551 = vmatmul.f32.gmra.mxu2 %v4167_v28 }
 0x76f   : > { %v3880_v52 = vpop.f32.mrf.mxu3  ;;  %v6612_v10 = vpop.eup %6611 }
 0x770   : > { %v3881_v42 = vadd.f32 %v3880_v52, %v3792_v13  ;;  %v4249_v52 = vadd.f32 5.9604645e-08, %v10387_v58  ;;  %vm4769_vm1 = vweird.f32 %v6612_v10 }
 0x771   : > { %v4504_v32 = vpop.f32.mrf.mxu2  ;;  %vm4770_vm2 = vmor %vm4768_vm0, %vm4769_vm1 }
 0x772   : > { %v4074_v56 = vmul.f32 %v3881_v42, %v3881_v42  ;;  %v10650_v26 = vadd.f32 %v4504_v32, %v10502_v22  ;;  %v4466_v42 = vadd.f32 %v10546_v25, %v4353_v8  ;;  %v4463_v32 = vadd.f32 %v10537_v9, %v4350_v36 }
 0x774   : > { %v4170_v35 = vadd.f32 %v4074_v56, %v3978_v31  ;;  %v4359_v31 = vadd.f32 %v10380_v37, %v4246_v38  ;;  %v4252_v56 = vadd.f32 5.9604645e-08, %v10399_v29  ;;  %6613 = vlog2.f32 %v4466_v42  ;;  %v12413_v37 = vld [vmem:[#allocation18_spill] sm:$0xff] }
 0x775   : > { %6615 = vlog2.f32 %v4463_v32  ;;  %v4772_v38 = vand.u32 2147483647, %v4762_v59 }
 0x776   : > { %4554 = vmatmul.f32.gmra.mxu2 %v4170_v35  ;;  %v4472_v58 = vadd.f32 %v10564_v34, %v4359_v31 }
 0x777   : > { %vm4773_vm3 = vcmp.eq.f32.partialorder %v4772_v38, 8.507059e+37 }
 0x779   : > { %v4507_v18 = vpop.f32.mrf.mxu2 }
 0x77a   : > { %v10653_v51 = vadd.f32 %v4507_v18, %v10514_v43  ;;  %v4258_v18 = vadd.f32 5.9604645e-08, %v10420_v16  ;;  %v4368_v16 = vadd.f32 %v12414_v49, %v4255_v50 }
 0x77c   : > { %v4371_v44 = vadd.f32 %v12415_v1, %v4258_v18  ;;  %v4481_v36 = vadd.f32 %v10585_v62, %v4368_v16 }
 0x781   : > { %v4510_v60 = vpop.f32.mrf.mxu2 }
 0x782   : > { %v10656_v54 = vadd.f32 %v4510_v60, %v10525_v33  ;;  %v10673_v33 = vpop.f32.mrf.mxu1  ;;  %v4764_v60 = vmul.f32 %v6612_v10, %v4762_v59 }
 0x784   : > { %v4765_v9 = vsub.f32 1.0, %v4764_v60 }
 0x786   : > { %v4766_v4 = vmul.f32 %v6612_v10, %v4765_v9 }
 0x788   : > { %v4767_v8 = vadd.f32 %v6612_v10, %v4766_v4 }
 0x789   : > { %v4513_v30 = vpop.f32.mrf.mxu2 }
 0x78a   : > { %v10659_v12 = vadd.f32 %v4513_v30, %v10534_v17  ;;  %v10678_v17 = vpop.f32.mrf.mxu0  ;;  %v10684_v47 = vpop.f32.mrf.mxu1  ;;  %v12412_v30 = vld [vmem:[#allocation6_spill] sm:$0xff] }
 0x791   : > { %v4516_v11 = vpop.f32.mrf.mxu2 }
 0x792   : > { %v10664_v22 = vadd.f32 %v4516_v11, %v10543_v63  ;;  %v10691_v45 = vpop.f32.mrf.mxu0  ;;  %v10699_v19 = vpop.f32.mrf.mxu1  ;;  %v4362_v11 = vadd.f32 %v12412_v30, %v4249_v52  ;;  %v4771_v52 = vsel %vm4770_vm2, %v6612_v10, %v4767_v8 }
 0x794   : > { %v4475_v29 = vadd.f32 %v10571_v27, %v4362_v11  ;;  %v6614_v27 = vpop.eup %6613 }
 0x799   : > { %v4519_v43 = vpop.f32.mrf.mxu2 }
 0x79a   : > { %v10671_v21 = vadd.f32 %v4519_v43, %v10552_v48  ;;  %v10706_v28 = vpop.f32.mrf.mxu0  ;;  %v4693_v43 = vlaneseq }
 0x7a1   : > { %v4522_v57 = vpop.f32.mrf.mxu2 }
 0x7a2   : > { %v10681_v63 = vadd.f32 %v4522_v57, %v10561_v41  ;;  %v12408_v41 = vld [vmem:[#allocation43_spill] sm:$0xff]  ;;  %v4365_v57 = vadd.f32 %v12413_v37, %v4252_v56  ;;  %v10730_v0 = vpop.f32.mrf.mxu0  ;;  %v10743_v56 = vstv %s10676_s22 }
 0x7a3   : > { %v4243_v24 = vadd.f32 5.9604645e-08, %v12408_v41  ;;  %v10727_v41 = vshrl.u32 %v4693_v43, 7 }
 0x7a4   : > { %v4478_v34 = vadd.f32 %v10578_v61, %v4365_v57 }
 0x7a5   : > { %v4356_v13 = vadd.f32 %v12411_v46, %v4243_v24  ;;  %v4774_v24 = vand.u32 2147483648, %v4762_v59  ;;  %v10733_v3 = vadd.s32 8, %v10727_v41  ;;  %v10737_v42 = vadd.s32 16, %v10727_v41 }
 0x7a6   : > { %v4484_v59 = vadd.f32 %v10592_v53, %v4371_v44  ;;  %v10750_v10 = vadd.s32 24, %v10727_v41  ;;  %vm4727_vm5 = vcmp.lt.s32.totalorder %v10727_v41, %v10743_v56  ;;  %v10761_v60 = vadd.s32 32, %v10727_v41 }
 0x7a7   : > { %v4469_v35 = vadd.f32 %v10555_v2, %v4356_v13  ;;  %v10723_v2 = vpop.f32.mrf.mxu1  ;;  %v4775_v46 = vor.u32 1.1754944e-38, %v4774_v24  ;;  %v6616_v13 = vpop.eup %6615  ;;  %vm4728_vm4 = vcmp.lt.s32.totalorder %v10733_v3, %v10743_v56  ;;  %vm4729_vm6 = vcmp.lt.s32.totalorder %v10737_v42, %v10743_v56 }
 0x7a8   : > { %v10752_v50 = vmul.f32 0.6931472, %v6616_v13  ;;  %vm4730_vm7 = vcmp.lt.s32.totalorder %v10750_v10, %v10743_v56  ;;  %v10774_v9 = vadd.s32 40, %v10727_v41  ;;  %vm4731_vm8 = vcmp.lt.s32.totalorder %v10761_v60, %v10743_v56 }
 0x7a9   : > { %v10689_v48 = vpop.f32.mrf.mxu2  ;;  %6617 = vlog2.f32 %v4469_v35  ;;  %v4776_v31 = vsel %vm4773_vm3, %v4775_v46, %v4771_v52  ;;  %v10745_v35 = vmul.f32 0.6931472, %v6614_v27  ;;  %v10806_v38 = vadd.s32 56, %v10727_v41 }
 0x7aa   : > { %6619 = vlog2.f32 %v4472_v58  ;;  %6581 = vpush %v4776_v31  ;;  %v4860_v37 = vsel %vm4727_vm5, %v10752_v50, 0.0  ;;  %v10787_v49 = vpop.f32.mrf.mxu0  ;;  %vm4732_vm9 = vcmp.lt.s32.totalorder %v10774_v9, %v10743_v56  ;;  %v10818_v13 = vadd.s32 64, %v10727_v41 }
 0x7ab   : > { %6621 = vlog2.f32 %v4475_v29  ;;  %v4861_v11 = vsel %vm4728_vm4, %v10745_v35, 0.0  ;;  %v4300_v52 = vadd.f32 5.9604645e-08, %v10661_v7  ;;  %vm4734_vm11 = vcmp.lt.s32.totalorder %v10806_v38, %v10743_v56 }
 0x7ac   : > { %6623 = vlog2.f32 %v4478_v34  ;;  %v4892_v1 = vadd.f32 %v4861_v11, %v4860_v37  ;;  %vm4735_vm12 = vcmp.lt.s32.totalorder %v10818_v13, %v10743_v56  ;;  %v10845_v37 = vadd.s32 80, %v10727_v41 }
 0x7ad   : > { %6625 = vlog2.f32 %v4481_v36 }
 0x7ae   : > { %6627 = vlog2.f32 %v4484_v59  ;;  %vm11774_vm14 = vcmp.lt.s32.totalorder %v10845_v37, %v10743_v56 }
 0x7af   : > { %v6618_v61 = vpop.eup %6617  ;;  %v10763_v30 = vpop.f32.mrf.mxu1  ;;  %6629 = vlog2.f32 %v10604_v40  ;;  %v10792_v40 = vadd.s32 48, %v10727_v41 }
 0x7b0   : > { %v6620_v62 = vpop.eup %6619  ;;  %v10754_v18 = vmul.f32 0.6931472, %v6618_v61  ;;  %6631 = vlog2.f32 %v10612_v15 }
 0x7b1   : > { %v10701_v55 = vpop.f32.mrf.mxu2  ;;  %v6622_v53 = vpop.eup %6621  ;;  %v10769_v43 = vmul.f32 0.6931472, %v6620_v62  ;;  %6633 = vlog2.f32 %v10620_v14  ;;  %vm4733_vm10 = vcmp.lt.s32.totalorder %v10792_v40, %v10743_v56 }
 0x7b2   : > { %v6624_v58 = vpop.eup %6623  ;;  %v4862_v57 = vsel %vm4729_vm6, %v10754_v18, 0.0  ;;  %v10785_v29 = vmul.f32 0.6931472, %v6622_v53  ;;  %6635 = vlog2.f32 %v10628_v6  ;;  %v10833_v53 = vadd.s32 72, %v10727_v41 }
 0x7b3   : > { %v6626_v16 = vpop.eup %6625  ;;  %v4863_v4 = vsel %vm4730_vm7, %v10769_v43, 0.0  ;;  %v10801_v34 = vmul.f32 0.6931472, %v6624_v58  ;;  %v4893_v8 = vadd.f32 %v4892_v1, %v4862_v57  ;;  %6637 = vlog2.f32 %v10636_v39 }
 0x7b4   : > { %v6628_v24 = vpop.eup %6627  ;;  %v4864_v15 = vsel %vm4731_vm8, %v10785_v29, 0.0  ;;  %v10813_v27 = vmul.f32 0.6931472, %v6626_v16  ;;  %6639 = vlog2.f32 %v10644_v20  ;;  %v4413_v39 = vadd.f32 %v10666_v5, %v4300_v52 }
 0x7b5   : > { %v6630_v36 = vpop.eup %6629  ;;  %v4894_v46 = vadd.f32 %v4893_v8, %v4863_v4  ;;  %v4865_v14 = vsel %vm4732_vm9, %v10801_v34, 0.0  ;;  %v10826_v61 = vmul.f32 0.6931472, %v6628_v24  ;;  %v10857_v4 = vpop.f32.mrf.mxu0  ;;  %vm11778_vm13 = vcmp.lt.s32.totalorder %v10833_v53, %v10743_v56 }
 0x7b6   : > { %v6632_v59 = vpop.eup %6631  ;;  %v4866_v6 = vsel %vm4733_vm10, %v10813_v27, 0.0  ;;  %v10840_v7 = vmul.f32 0.6931472, %v6630_v36  ;;  %v10862_v20 = vadd.s32 88, %v10727_v41  ;;  %6641 = vlog2.f32 %v10650_v26 }
 0x7b7   : > { %v4895_v31 = vadd.f32 %v4894_v46, %v4864_v15  ;;  %v10830_v62 = vpop.f32.mrf.mxu1  ;;  %v6634_v11 = vpop.eup %6633  ;;  %v4867_v16 = vsel %vm4734_vm11, %v10826_v61, 0.0  ;;  %v10855_v1 = vmul.f32 0.6931472, %v6632_v59  ;;  %v4303_v5 = vadd.f32 5.9604645e-08, %v10668_v23 }
 0x7b8   : > { %v6636_v24 = vpop.eup %6635  ;;  %12416 = vst [vmem:[#allocation102_spill] sm:$0xff] %v10862_v20  ;;  %v4306_v15 = vadd.f32 5.9604645e-08, %v10678_v17  ;;  %v4868_v36 = vsel %vm4735_vm12, %v10840_v7, 0.0  ;;  %v10871_v46 = vmul.f32 0.6931472, %v6634_v11  ;;  %v10876_v59 = vadd.s32 96, %v10727_v41 }
 0x7b9   : > { %v10719_v25 = vpop.f32.mrf.mxu2  ;;  %v4896_v58 = vadd.f32 %v4895_v31, %v4865_v14  ;;  %v6638_v52 = vpop.eup %6637  ;;  %6643 = vlog2.f32 %v10653_v51  ;;  %v4309_v26 = vadd.f32 5.9604645e-08, %v10691_v45  ;;  %v4312_v23 = vadd.f32 5.9604645e-08, %v10706_v28 }
 0x7ba   : > { %v4869_v17 = vsel %vm11778_vm13, %v10855_v1, 0.0  ;;  %v10885_v31 = vmul.f32 0.6931472, %v6636_v24  ;;  %vm11771_vm15 = vcmp.lt.s32.totalorder %v10862_v20, %v10743_v56  ;;  %6645 = vlog2.f32 %v10656_v54 }
 0x7bb   : > { %v4897_v8 = vadd.f32 %v4896_v58, %v4866_v6  ;;  %v6640_v6 = vpop.eup %6639  ;;  %v10890_v58 = vadd.s32 104, %v10727_v41  ;;  %v4416_v51 = vadd.f32 %v10673_v33, %v4303_v5  ;;  %v4419_v45 = vadd.f32 %v10684_v47, %v4306_v15 }
 0x7bc   : > { %v4870_v28 = vsel %vm11774_vm14, %v10871_v46, 0.0  ;;  %v6642_v24 = vpop.eup %6641  ;;  %vm11767_vm0 = vcmp.lt.s32.totalorder %v10876_v59, %v10743_v56  ;;  %v10906_v54 = vadd.s32 112, %v10727_v41  ;;  %6647 = vlog2.f32 %v10659_v12 }
 0x7bd   : > { %v4898_v14 = vadd.f32 %v4897_v8, %v4867_v16  ;;  %v10899_v16 = vmul.f32 0.6931472, %v6638_v52  ;;  %v4422_v47 = vadd.f32 %v10699_v19, %v4309_v26  ;;  %v4871_v5 = vsel %vm11771_vm15, %v10885_v31, 0.0  ;;  %v4323_v19 = vpop.f32.mrf.mxu0 }
 0x7be   : > { %12417 = vst [vmem:[#allocation9_spill] sm:$0xff] %v10906_v54  ;;  %v10916_v15 = vmul.f32 0.6931472, %v6640_v6  ;;  %v10919_v52 = vadd.s32 120, %v10727_v41  ;;  %vm11734_vm1 = vcmp.lt.s32.totalorder %v10890_v58, %v10743_v56  ;;  %6649 = vlog2.f32 %v10664_v22 }
 0x7bf   : > { %v4899_v11 = vadd.f32 %v4898_v14, %v4868_v36  ;;  %v10901_v36 = vpop.f32.mrf.mxu1  ;;  %v6644_v14 = vpop.eup %6643  ;;  %v4315_v12 = vadd.f32 5.9604645e-08, %v10730_v0  ;;  %v4872_v26 = vsel %vm11767_vm0, %v10899_v16, 0.0  ;;  %v10930_v6 = vmul.f32 0.6931472, %v6642_v24 }
 0x7c0   : > { %v10933_v20 = vadd.s32 128, %v10727_v41  ;;  %vm11737_vm2 = vcmp.lt.s32.totalorder %v10906_v54, %v10743_v56  ;;  %6651 = vlog2.f32 %v10671_v21  ;;  %v4526_v22 = vadd.f32 %v10689_v48, %v4413_v39 }
 0x7c1   : > { %v10740_v32 = vpop.f32.mrf.mxu2  ;;  %v4900_v8 = vadd.f32 %v4899_v11, %v4869_v17  ;;  %v4425_v17 = vadd.f32 %v10723_v2, %v4312_v23  ;;  %v6646_v2 = vpop.eup %6645  ;;  %v4318_v0 = vadd.f32 5.9604645e-08, %v10787_v49  ;;  %v10944_v24 = vmul.f32 0.6931472, %v6644_v14 }
 0x7c2   : > { %vm11738_vm3 = vcmp.lt.s32.totalorder %v10919_v52, %v10743_v56  ;;  %6653 = vlog2.f32 %v10681_v63  ;;  %v4529_v21 = vadd.f32 %v10701_v55, %v4416_v51  ;;  %v4428_v48 = vadd.f32 %v10763_v30, %v4315_v12 }
 0x7c3   : > { %v4901_v11 = vadd.f32 %v4900_v8, %v4870_v28  ;;  %v4873_v28 = vsel %vm11734_vm1, %v10916_v15, 0.0  ;;  %v6648_v8 = vpop.eup %6647  ;;  %v4874_v49 = vsel %vm11737_vm2, %v10930_v6, 0.0  ;;  %v10958_v39 = vmul.f32 0.6931472, %v6646_v2 }
 0x7c4   : > { %vm11739_vm1 = vcmp.lt.s32.totalorder %v10933_v20, %v10743_v56  ;;  %v6650_v14 = vpop.eup %6649  ;;  %6655 = vlog2.f32 %v4526_v22  ;;  %v4532_v63 = vadd.f32 %v10719_v25, %v4419_v45  ;;  %v4431_v30 = vadd.f32 %v10830_v62, %v4318_v0 }
 0x7c5   : > { %v4902_v23 = vadd.f32 %v4901_v11, %v4871_v5  ;;  %v10949_v11 = vadd.s32 136, %v10727_v41  ;;  %v4875_v51 = vsel %vm11738_vm3, %v10944_v24, 0.0  ;;  %v10971_v12 = vmul.f32 0.6931472, %v6648_v8 }
 0x7c6   : > { %v10974_v2 = vadd.s32 152, %v10727_v41  ;;  %6657 = vlog2.f32 %v4529_v21  ;;  %v4535_v25 = vadd.f32 %v10740_v32, %v4422_v47  ;;  %v4321_v62 = vadd.f32 5.9604645e-08, %v10857_v4  ;;  %v4326_v4 = vpop.f32.mrf.mxu0 }
 0x7c7   : > { %v4903_v5 = vadd.f32 %v4902_v23, %v4872_v26  ;;  %12418 = vst [vmem:[#allocation21_spill] sm:$0xff] %v10949_v11  ;;  %v10963_v23 = vadd.s32 144, %v10727_v41  ;;  %vm11740_vm2 = vcmp.lt.s32.totalorder %v10949_v11, %v10743_v56  ;;  %v4876_v45 = vsel %vm11739_vm1, %v10958_v39, 0.0 }
 0x7c8   : > { %12420 = vst [vmem:[#allocation103_spill] sm:$0xff] %v10974_v2  ;;  %v10984_v22 = vmul.f32 0.6931472, %v6650_v14  ;;  %v10987_v0 = vadd.s32 160, %v10727_v41  ;;  %6659 = vlog2.f32 %v4532_v63  ;;  %v4324_v47 = vadd.f32 5.9604645e-08, %v4323_v19 }
 0x7c9   : > { %v10795_v44 = vpop.f32.mrf.mxu2  ;;  %v4904_v26 = vadd.f32 %v4903_v5, %v4873_v28  ;;  %12419 = vst [vmem:[#allocation47_spill] sm:$0xff] %v10963_v23  ;;  %v6652_v28 = vpop.eup %6651  ;;  %vm11745_vm3 = vcmp.lt.s32.totalorder %v10963_v23, %v10743_v56  ;;  %v4877_v21 = vsel %vm11740_vm2, %v10971_v12, 0.0  ;;  %vm11746_vm1 = vcmp.lt.s32.totalorder %v10974_v2, %v10743_v56 }
 0x7ca   : > { %v4436_v5 = vpop.f32.mrf.mxu1  ;;  %12421 = vst [vmem:[#allocation104_spill] sm:$0xff] %v10987_v0  ;;  %v6654_v8 = vpop.eup %6653  ;;  %v4538_v32 = vadd.f32 %v10795_v44, %v4425_v17  ;;  %v10996_v14 = vmul.f32 0.6931472, %v6652_v28  ;;  %6661 = vlog2.f32 %v4535_v25  ;;  %v11002_v63 = vadd.s32 168, %v10727_v41 }
 0x7cb   : > { %v4905_v54 = vadd.f32 %v4904_v26, %v4874_v49  ;;  %v6656_v26 = vpop.eup %6655  ;;  %v4878_v44 = vsel %vm11745_vm3, %v10984_v22, 0.0  ;;  %v11008_v17 = vmul.f32 0.6931472, %v6654_v8  ;;  %vm11747_vm2 = vcmp.lt.s32.totalorder %v10987_v0, %v10743_v56 }
 0x7cc   : > { %12422 = vst [vmem:[#allocation12_spill] sm:$0xff] %v11002_v63  ;;  %v6658_v19 = vpop.eup %6657  ;;  %6663 = vlog2.f32 %v4538_v32  ;;  %v11017_v11 = vmul.f32 0.6931472, %v6656_v26  ;;  %v4879_v8 = vsel %vm11746_vm1, %v10996_v14, 0.0  ;;  %vm11748_vm3 = vcmp.lt.s32.totalorder %v11002_v63, %v10743_v56 }
 0x7cd   : > { %v4906_v49 = vadd.f32 %v4905_v54, %v4875_v51  ;;  %v11035_v26 = vadd.s32 192, %v10727_v41 }
 0x7ce   : > { %v6660_v23 = vpop.eup %6659 }
 0x7cf   : > { %v4907_v54 = vadd.f32 %v4906_v49, %v4876_v45  ;;  %v4437_v49 = vadd.f32 %v4436_v5, %v4324_v47  ;;  %12425 = vst [vmem:[#allocation105_spill] sm:$0xff] %v11035_v26 }
 0x7d0   : > { %v6662_v32 = vpop.eup %6661 }
 0x7d1   : > { %v10848_v57 = vpop.f32.mrf.mxu2  ;;  %v4908_v28 = vadd.f32 %v4907_v54, %v4877_v21 }
 0x7d2   : > { %v4541_v51 = vadd.f32 %v10848_v57, %v4428_v48  ;;  %v11014_v57 = vadd.s32 176, %v10727_v41  ;;  %v4434_v48 = vadd.f32 %v10901_v36, %v4321_v62  ;;  %v11028_v36 = vmul.f32 0.6931472, %v6658_v19  ;;  %v4439_v47 = vpop.f32.mrf.mxu1 }
 0x7d3   : > { %v4909_v21 = vadd.f32 %v4908_v28, %v4878_v44  ;;  %v4880_v62 = vsel %vm11747_vm2, %v11008_v17, 0.0  ;;  %v6664_v44 = vpop.eup %6663  ;;  %v11048_v19 = vadd.s32 200, %v10727_v41 }
 0x7d4   : > { %12423 = vst [vmem:[#allocation24_spill] sm:$0xff] %v11014_v57  ;;  %6665 = vlog2.f32 %v4541_v51  ;;  %vm11751_vm1 = vcmp.lt.s32.totalorder %v11014_v57, %v10743_v56  ;;  %v4881_v51 = vsel %vm11748_vm3, %v11017_v11, 0.0  ;;  %vm11755_vm3 = vcmp.lt.s32.totalorder %v11035_v26, %v10743_v56 }
 0x7d5   : > { %v4910_v54 = vadd.f32 %v4909_v21, %v4879_v8  ;;  %12427 = vst [vmem:[#allocation15_spill] sm:$0xff] %v11048_v19  ;;  %v11052_v8 = vmul.f32 0.6931472, %v6662_v32  ;;  %v11059_v21 = vadd.s32 208, %v10727_v41 }
 0x7d7   : > { %v4911_v28 = vadd.f32 %v4910_v54, %v4880_v62  ;;  %12428 = vst [vmem:[#allocation28_spill] sm:$0xff] %v11052_v8  ;;  %v11070_v54 = vadd.s32 216, %v10727_v41 }
 0x7d8   : > { %12429 = vst [vmem:[#allocation51_spill] sm:$0xff] %v11059_v21 }
 0x7d9   : > { %v10909_v33 = vpop.f32.mrf.mxu2  ;;  %v4912_v63 = vadd.f32 %v4911_v28, %v4881_v51  ;;  %12431 = vst [vmem:[#allocation108_spill] sm:$0xff] %v11070_v54 }
 0x7da   : > { %v4544_v25 = vadd.f32 %v10909_v33, %v4431_v30  ;;  %v11024_v33 = vadd.s32 184, %v10727_v41  ;;  %v4327_v30 = vadd.f32 5.9604645e-08, %v4326_v4  ;;  %v11041_v4 = vmul.f32 0.6931472, %v6660_v23 }
 0x7db   : > { %v4882_v23 = vsel %vm11751_vm1, %v11028_v36, 0.0  ;;  %vm11765_vm1 = vcmp.lt.s32.totalorder %v11048_v19, %v10743_v56  ;;  %s6582_s27 = spop %6581 }
 0x7dc   : > { %12424 = vst [vmem:[#allocation49_spill] sm:$0xff] %v11024_v33  ;;  %6667 = vlog2.f32 %v4544_v25  ;;  %vm11752_vm2 = vcmp.lt.s32.totalorder %v11024_v33, %v10743_v56  ;;  %v4440_v25 = vadd.f32 %v4439_v47, %v4327_v30  ;;  %v11063_v30 = vmul.f32 0.6931472, %v6664_v44 }
 0x7dd   : > { %12426 = vst [vmem:[#allocation106_spill] sm:$0xff] %v11041_v4  ;;  %v4883_v62 = vsel %vm11752_vm2, %v11041_v4, 0.0  ;;  %v4913_v51 = vadd.f32 %v4912_v63, %v4882_v23  ;;  %v4780_v44 = vstv %s4779_s26  ;;  %vm11766_vm2 = vcmp.lt.s32.totalorder %v11059_v21, %v10743_v56  ;;  %v4442_v23 = vpop.f32.mrf.mxu1 }
 0x7de   : > { %12430 = vst [vmem:[#allocation107_spill] sm:$0xff] %v11063_v30  ;;  %v11085_v33 = vadd.s32 224, %v10727_v41  ;;  %v4885_v63 = vsel %vm11765_vm1, %v11063_v30, 0.0 }
 0x7e0   : > { %12433 = vst [vmem:[#allocation53_spill] sm:$0xff] %v11085_v33  ;;  %vm11777_vm1 = vcmp.lt.s32.totalorder %v11085_v33, %v10743_v56 }
 0x7e1   : > { %v4546_v55 = vpop.f32.mrf.mxu2 }
 0x7e2   : > { %v4547_v5 = vadd.f32 %v4546_v55, %v4434_v48  ;;  %v4329_v48 = vpop.f32.mrf.mxu0 }
 0x7e3   : > { %v4330_v47 = vadd.f32 5.9604645e-08, %v4329_v48 }
 0x7e4   : > { %6669 = vlog2.f32 %v4547_v5 }
 0x7e9   : > { %v4549_v45 = vpop.f32.mrf.mxu2 }
 0x7ea   : > { %v4550_v55 = vadd.f32 %v4549_v45, %v4437_v49  ;;  %v6666_v45 = vpop.eup %6665 }
 0x7eb   : > { %v6668_v32 = vpop.eup %6667  ;;  %v11074_v28 = vmul.f32 0.6931472, %v6666_v45  ;;  %v11092_v45 = vadd.s32 232, %v10727_v41 }
 0x7ec   : > { %6671 = vlog2.f32 %v4550_v55  ;;  %v4884_v55 = vsel %vm11755_vm3, %v11052_v8, 0.0  ;;  %v6670_v48 = vpop.eup %6669  ;;  %vm11770_vm3 = vcmp.lt.s32.totalorder %v11070_v54, %v10743_v56 }
 0x7ed   : > { %12434 = vst [vmem:[#allocation109_spill] sm:$0xff] %v11092_v45  ;;  %v4886_v26 = vsel %vm11766_vm2, %v11074_v28, 0.0  ;;  %v11103_v19 = vmul.f32 0.6931472, %v6670_v48  ;;  %vm4756_vm2 = vcmp.lt.s32.totalorder %v11092_v45, %v10743_v56 }
 0x7ef   : > { %12436 = vst [vmem:[#allocation110_spill] sm:$0xff] %v11103_v19 }
 0x7f1   : > { %v4552_v49 = vpop.f32.mrf.mxu2 }
 0x7f2   : > { %v4553_v5 = vadd.f32 %v4552_v49, %v4440_v25  ;;  %v4914_v25 = vadd.f32 %v4913_v51, %v4883_v62  ;;  %v11082_v49 = vmul.f32 0.6931472, %v6668_v32  ;;  %v6672_v62 = vpop.eup %6671  ;;  %v4443_v51 = vadd.f32 %v4442_v23, %v4330_v47 }
 0x7f3   : > { %v11097_v32 = vadd.s32 240, %v10727_v41 }
 0x7f4   : > { %6673 = vlog2.f32 %v4553_v5  ;;  %12432 = vst [vmem:[#allocation62_spill] sm:$0xff] %v11082_v49  ;;  %v4915_v5 = vadd.f32 %v4914_v25, %v4884_v55  ;;  %v4887_v47 = vsel %vm11770_vm3, %v11082_v49, 0.0  ;;  %v11111_v25 = vmul.f32 0.6931472, %v6672_v62 }
 0x7f5   : > { %6675 = vrcp.f32 %v4780_v44  ;;  %12435 = vst [vmem:[#allocation63_spill] sm:$0xff] %v11097_v32  ;;  %vm11800_vm0 = vcmp.lt.s32.totalorder %v11097_v32, %v10743_v56  ;;  %vm4786_vm3 = vweird.f32 %v4780_v44 }
 0x7f6   : > { %v4916_v57 = vadd.f32 %v4915_v5, %v4885_v63  ;;  %12437 = vst [vmem:[#allocation46_spill] sm:$0xff] %v11111_v25  ;;  %v11116_v63 = vadd.s32 248, %v10727_v41  ;;  %v4888_v5 = vsel %vm11777_vm1, %v11103_v19, 0.0 }
 0x7f8   : > { %v4917_v48 = vadd.f32 %v4916_v57, %v4886_v26  ;;  %12438 = vst [vmem:[#allocation37_spill] sm:$0xff] %v11116_v63  ;;  %v4790_v57 = vand.u32 2147483647, %v4780_v44  ;;  %v4889_v26 = vsel %vm4756_vm2, %v11111_v25, 0.0  ;;  %vm11799_vm1 = vcmp.lt.s32.totalorder %v11116_v63, %v10743_v56 }
 0x7f9   : > { %v4555_v30 = vpop.f32.mrf.mxu2 }
 0x7fa   : > { %v6674_v8 = vpop.eup %6673  ;;  %v4556_v4 = vadd.f32 %v4555_v30, %v4443_v51  ;;  %v4918_v62 = vadd.f32 %v4917_v48, %v4887_v47  ;;  %v4792_v51 = vand.u32 2147483648, %v4780_v44  ;;  %vm4791_vm13 = vcmp.eq.f32.partialorder %v4790_v57, 8.507059e+37 }
 0x7fb   : > { %v6676_v55 = vpop.eup %6675  ;;  %v11120_v23 = vmul.f32 0.6931472, %v6674_v8  ;;  %v4929_v57 = vstv %s6582_s27 }
 0x7fc   : > { %6677 = vlog2.f32 %v4556_v4  ;;  %v4782_v30 = vmul.f32 %v6676_v55, %v4780_v44  ;;  %vm4787_vm15 = vweird.f32 %v6676_v55  ;;  %v4919_v4 = vadd.f32 %v4918_v62, %v4888_v5 }
 0x7fd   : > { %12439 = vst [vmem:[#allocation56_spill] sm:$0xff] %v11120_v23  ;;  %v4890_v8 = vsel %vm11800_vm0, %v11120_v23, 0.0  ;;  %vm4788_vm14 = vmor %vm4786_vm3, %vm4787_vm15  ;;  %v4793_v33 = vor.u32 1.1754944e-38, %v4792_v51  ;;  %vm12444_vm3 = vcmp.lt.s32.totalorder %v10876_v59, %v10743_v56 }
 0x7fe   : > { %v4783_v54 = vsub.f32 1.0, %v4782_v30  ;;  %v4920_v48 = vadd.f32 %v4919_v4, %v4889_v26 }
 0x800   : > { %v4784_v21 = vmul.f32 %v6676_v55, %v4783_v54  ;;  %v4921_v45 = vadd.f32 %v4920_v48, %v4890_v8 }
 0x802   : > { %v6678_v47 = vpop.eup %6677  ;;  %v4785_v44 = vadd.f32 %v6676_v55, %v4784_v21 }
 0x803   : > { %v11136_v30 = vmul.f32 0.6931472, %v6678_v47 }
 0x804   : > { %v4789_v25 = vsel %vm4788_vm14, %v6676_v55, %v4785_v44  ;;  %vm12441_vm14 = vcmp.lt.s32.totalorder %v10845_v37, %v10743_v56 }
 0x805   : > { %v4891_v54 = vsel %vm11799_vm1, %v11136_v30, 0.0  ;;  %v4794_v5 = vsel %vm4791_vm13, %v4793_v33, %v4789_v25  ;;  %vm12440_vm13 = vcmp.lt.s32.totalorder %v10833_v53, %v10743_v56 }
 0x806   : > { %v4922_v62 = vadd.f32 %v4921_v45, %v4891_v54  ;;  %6583 = vpush %v4794_v5 }
 0x808   : > { %v4923_v51 = vrot.slane %v4922_v62, 4 }
 0x80a   : > { %v4924_v32 = vadd.f32 %v4923_v51, %v4922_v62 }
 0x80c   : > { %v4925_v23 = vrot.slane %v4924_v32, 2 }
 0x80e   : > { %v4926_v19 = vadd.f32 %v4925_v23, %v4924_v32 }
 0x810   : > { %v4927_v49 = vrot.slane %v4926_v19, 1 }
 0x812   : > { %v4928_v21 = vadd.f32 %v4927_v49, %v4926_v19 }
 0x814   : > { %v11142_v26 = vmul.f32 %v4929_v57, %v4928_v21 }
 0x816   : > { %v11146_v55 = vsub.f32 %v10752_v50, %v11142_v26  ;;  %v11150_v4 = vsub.f32 %v10745_v35, %v11142_v26  ;;  %v11154_v33 = vsub.f32 %v10754_v18, %v11142_v26  ;;  %v11166_v50 = vsub.f32 %v10769_v43, %v11142_v26 }
 0x817   : > { %v11170_v18 = vsub.f32 %v10785_v29, %v11142_v26  ;;  %v11178_v25 = vsub.f32 %v10801_v34, %v11142_v26  ;;  %v11186_v29 = vsub.f32 %v10813_v27, %v11142_v26  ;;  %v11194_v34 = vsub.f32 %v10826_v61, %v11142_v26 }
 0x818   : > { %v4963_v19 = vsel %vm4727_vm5, %v11146_v55, 0.0  ;;  %v4964_v49 = vsel %vm4728_vm4, %v11150_v4, 0.0  ;;  %v4965_v32 = vsel %vm4729_vm6, %v11154_v33, 0.0  ;;  %v4966_v43 = vsel %vm4730_vm7, %v11166_v50, 0.0 }
 0x819   : > { %v4995_v35 = vmul.f32 %v4963_v19, %v4963_v19  ;;  %v4996_v45 = vmul.f32 %v4964_v49, %v4964_v49  ;;  %v4997_v23 = vmul.f32 %v4965_v32, %v4965_v32  ;;  %v4967_v47 = vsel %vm4731_vm8, %v11170_v18, 0.0 }
 0x81a   : > { %v4998_v48 = vmul.f32 %v4966_v43, %v4966_v43  ;;  %v4968_v54 = vsel %vm4732_vm9, %v11178_v25, 0.0  ;;  %v4999_v5 = vmul.f32 %v4967_v47, %v4967_v47  ;;  %v11202_v27 = vsub.f32 %v10840_v7, %v11142_v26 }
 0x81b   : > { %v5027_v8 = vadd.f32 %v4996_v45, %v4995_v35  ;;  %v4969_v51 = vsel %vm4733_vm10, %v11186_v29, 0.0  ;;  %v5000_v21 = vmul.f32 %v4968_v54, %v4968_v54  ;;  %v11210_v61 = vsub.f32 %v10855_v1, %v11142_v26 }
 0x81c   : > { %v4970_v19 = vsel %vm4734_vm11, %v11194_v34, 0.0  ;;  %v5001_v49 = vmul.f32 %v4969_v51, %v4969_v51  ;;  %v11218_v7 = vsub.f32 %v10871_v46, %v11142_v26  ;;  %v4971_v45 = vsel %vm4735_vm12, %v11202_v27, 0.0 }
 0x81d   : > { %v5028_v44 = vadd.f32 %v5027_v8, %v4997_v23  ;;  %v5002_v32 = vmul.f32 %v4970_v19, %v4970_v19  ;;  %v11226_v1 = vsub.f32 %v10885_v31, %v11142_v26  ;;  %v4972_v23 = vsel %vm12440_vm13, %v11210_v61, 0.0 }
 0x81e   : > { %v5003_v8 = vmul.f32 %v4971_v45, %v4971_v45  ;;  %v11234_v46 = vsub.f32 %v10899_v16, %v11142_v26  ;;  %v11242_v31 = vsub.f32 %v10916_v15, %v11142_v26  ;;  %v11250_v16 = vsub.f32 %v10930_v6, %v11142_v26 }
 0x81f   : > { %v5029_v62 = vadd.f32 %v5028_v44, %v4998_v48  ;;  %v4973_v48 = vsel %vm12441_vm14, %v11218_v7, 0.0  ;;  %v5004_v44 = vmul.f32 %v4972_v23, %v4972_v23  ;;  %v11258_v15 = vsub.f32 %v10944_v24, %v11142_v26 }
 0x820   : > { %v5005_v51 = vmul.f32 %v4973_v48, %v4973_v48  ;;  %vm12445_vm13 = vcmp.lt.s32.totalorder %v10890_v58, %v10743_v56  ;;  %v11266_v6 = vsub.f32 %v10958_v39, %v11142_v26  ;;  %v11274_v24 = vsub.f32 %v10971_v12, %v11142_v26 }
 0x821   : > { %v5030_v57 = vadd.f32 %v5029_v62, %v4999_v5  ;;  %v12442_v5 = vld [vmem:[#allocation102_spill] sm:$0xff]  ;;  %v11282_v39 = vsub.f32 %v10984_v22, %v11142_v26  ;;  %v11290_v12 = vsub.f32 %v10996_v14, %v11142_v26  ;;  %v11298_v22 = vsub.f32 %v11008_v17, %v11142_v26 }
 0x822   : > { %vm12443_vm15 = vcmp.lt.s32.totalorder %v12442_v5, %v10743_v56  ;;  %v11306_v14 = vsub.f32 %v11017_v11, %v11142_v26  ;;  %v11314_v17 = vsub.f32 %v11028_v36, %v11142_v26  ;;  %v12456_v11 = vld [vmem:[#allocation106_spill] sm:$0xff]  ;;  %v12460_v36 = vld [vmem:[#allocation28_spill] sm:$0xff] }
 0x823   : > { %v5031_v35 = vadd.f32 %v5030_v57, %v5000_v21  ;;  %v4974_v62 = vsel %vm12443_vm15, %v11226_v1, 0.0  ;;  %v4975_v57 = vsel %vm12444_vm3, %v11234_v46, 0.0  ;;  %vm12448_vm15 = vcmp.lt.s32.totalorder %v10919_v52, %v10743_v56 }
 0x824   : > { %v5006_v19 = vmul.f32 %v4974_v62, %v4974_v62  ;;  %v5007_v45 = vmul.f32 %v4975_v57, %v4975_v57  ;;  %v4978_v48 = vsel %vm12448_vm15, %v11258_v15, 0.0  ;;  %vm12449_vm3 = vcmp.lt.s32.totalorder %v10933_v20, %v10743_v56  ;;  %v12450_v57 = vld [vmem:[#allocation21_spill] sm:$0xff] }
 0x825   : > { %v5032_v43 = vadd.f32 %v5031_v35, %v5001_v49  ;;  %v4976_v35 = vsel %vm12445_vm13, %v11242_v31, 0.0  ;;  %v4979_v62 = vsel %vm12449_vm3, %v11266_v6, 0.0  ;;  %vm12451_vm13 = vcmp.lt.s32.totalorder %v12450_v57, %v10743_v56 }
 0x826   : > { %vm12454_vm15 = vcmp.lt.s32.totalorder %v10974_v2, %v10743_v56  ;;  %vm12455_vm3 = vcmp.lt.s32.totalorder %v10987_v0, %v10743_v56 }
 0x827   : > { %v5033_v47 = vadd.f32 %v5032_v43, %v5002_v32  ;;  %v12446_v43 = vld [vmem:[#allocation9_spill] sm:$0xff] }
 0x828   : > { %vm12447_vm14 = vcmp.lt.s32.totalorder %v12446_v43, %v10743_v56 }
 0x829   : > { %v5034_v54 = vadd.f32 %v5033_v47, %v5003_v8  ;;  %v4977_v23 = vsel %vm12447_vm14, %v11250_v16, 0.0  ;;  %v5008_v8 = vmul.f32 %v4976_v35, %v4976_v35 }
 0x82b   : > { %v5035_v21 = vadd.f32 %v5034_v54, %v5004_v44  ;;  %v5009_v44 = vmul.f32 %v4977_v23, %v4977_v23 }
 0x82d   : > { %v5036_v49 = vadd.f32 %v5035_v21, %v5005_v51  ;;  %v5010_v51 = vmul.f32 %v4978_v48, %v4978_v48 }
 0x82f   : > { %v5037_v32 = vadd.f32 %v5036_v49, %v5006_v19  ;;  %v4980_v19 = vsel %vm12451_vm13, %v11274_v24, 0.0  ;;  %v5011_v49 = vmul.f32 %v4979_v62, %v4979_v62 }
 0x830   : > { %v5012_v23 = vmul.f32 %v4980_v19, %v4980_v19  ;;  %v12458_v19 = vld [vmem:[#allocation12_spill] sm:$0xff] }
 0x831   : > { %v5038_v47 = vadd.f32 %v5037_v32, %v5007_v45  ;;  %v12452_v45 = vld [vmem:[#allocation47_spill] sm:$0xff]  ;;  %vm12459_vm13 = vcmp.lt.s32.totalorder %v12458_v19, %v10743_v56  ;;  %v12466_v19 = vld [vmem:[#allocation49_spill] sm:$0xff] }
 0x832   : > { %vm12453_vm14 = vcmp.lt.s32.totalorder %v12452_v45, %v10743_v56 }
 0x833   : > { %v5039_v54 = vadd.f32 %v5038_v47, %v5008_v8  ;;  %v4981_v32 = vsel %vm12453_vm14, %v11282_v39, 0.0  ;;  %v4982_v47 = vsel %vm12454_vm15, %v11290_v12, 0.0  ;;  %vm12467_vm15 = vcmp.lt.s32.totalorder %v12466_v19, %v10743_v56  ;;  %v12473_v19 = vld [vmem:[#allocation15_spill] sm:$0xff] }
 0x834   : > { %v5013_v48 = vmul.f32 %v4981_v32, %v4981_v32  ;;  %v5014_v62 = vmul.f32 %v4982_v47, %v4982_v47 }
 0x835   : > { %v5040_v21 = vadd.f32 %v5039_v54, %v5009_v44  ;;  %v4983_v54 = vsel %vm12455_vm3, %v11298_v22, 0.0 }
 0x837   : > { %v5041_v35 = vadd.f32 %v5040_v21, %v5010_v51  ;;  %v11322_v21 = vsub.f32 %v12456_v11, %v11142_v26  ;;  %v12464_v11 = vld [vmem:[#allocation107_spill] sm:$0xff]  ;;  %s6584_s28 = spop %6583 }
 0x838   : > { %v11338_v0 = vsub.f32 %v12464_v11, %v11142_v26  ;;  %v12471_v11 = vld [vmem:[#allocation62_spill] sm:$0xff] }
 0x839   : > { %v5042_v8 = vadd.f32 %v5041_v35, %v5011_v49  ;;  %12457 = vst [vmem:[#allocation111_spill] sm:$0xff] %v11322_v21  ;;  %v4984_v49 = vsel %vm12459_vm13, %v11306_v14, 0.0  ;;  %v5015_v35 = vmul.f32 %v4983_v54, %v4983_v54  ;;  %v4986_v54 = vsel %vm12467_vm15, %v11322_v21, 0.0 }
 0x83a   : > { %12465 = vst [vmem:[#allocation112_spill] sm:$0xff] %v11338_v0  ;;  %v11354_v2 = vsub.f32 %v12471_v11, %v11142_v26  ;;  %vm12474_vm13 = vcmp.lt.s32.totalorder %v12473_v19, %v10743_v56  ;;  %v12479_v11 = vld [vmem:[#allocation46_spill] sm:$0xff]  ;;  %v12481_v19 = vld [vmem:[#allocation108_spill] sm:$0xff] }
 0x83b   : > { %v5043_v44 = vadd.f32 %v5042_v8, %v5012_v23  ;;  %v11330_v23 = vsub.f32 %v12460_v36, %v11142_v26  ;;  %v12462_v8 = vld [vmem:[#allocation24_spill] sm:$0xff]  ;;  %v11346_v36 = vsub.f32 %v11074_v28, %v11142_v26  ;;  %v12475_v28 = vld [vmem:[#allocation110_spill] sm:$0xff]  ;;  %vm12482_vm15 = vcmp.lt.s32.totalorder %v12481_v19, %v10743_v56 }
 0x83c   : > { %vm12463_vm14 = vcmp.lt.s32.totalorder %v12462_v8, %v10743_v56  ;;  %v12469_v8 = vld [vmem:[#allocation105_spill] sm:$0xff]  ;;  %12472 = vst [vmem:[#allocation32_spill] sm:$0xff] %v11354_v2  ;;  %v11362_v21 = vsub.f32 %v12475_v28, %v11142_v26  ;;  %v12483_v28 = vld [vmem:[#allocation56_spill] sm:$0xff] }
 0x83d   : > { %v5044_v51 = vadd.f32 %v5043_v44, %v5013_v48  ;;  %12461 = vst [vmem:[#allocation65_spill] sm:$0xff] %v11330_v23  ;;  %v4985_v47 = vsel %vm12463_vm14, %v11314_v17, 0.0  ;;  %v5016_v48 = vmul.f32 %v4984_v49, %v4984_v49  ;;  %vm12470_vm3 = vcmp.lt.s32.totalorder %v12469_v8, %v10743_v56  ;;  %v12477_v8 = vld [vmem:[#allocation51_spill] sm:$0xff] }
 0x83e   : > { %12468 = vst [vmem:[#allocation66_spill] sm:$0xff] %v11346_v36  ;;  %v4987_v49 = vsel %vm12470_vm3, %v11330_v23, 0.0  ;;  %vm12478_vm14 = vcmp.lt.s32.totalorder %v12477_v8, %v10743_v56  ;;  %v11370_v23 = vsub.f32 %v12479_v11, %v11142_v26  ;;  %v12485_v8 = vld [vmem:[#allocation53_spill] sm:$0xff]  ;;  %v11386_v11 = vsub.f32 %v11136_v30, %v11142_v26 }
 0x83f   : > { %v5045_v32 = vadd.f32 %v5044_v51, %v5014_v62  ;;  %v5017_v62 = vmul.f32 %v4985_v47, %v4985_v47  ;;  %v4988_v47 = vsel %vm12474_vm13, %v11338_v0, 0.0  ;;  %12476 = vst [vmem:[#allocation113_spill] sm:$0xff] %v11362_v21  ;;  %v11378_v0 = vsub.f32 %v12483_v28, %v11142_v26 }
 0x840   : > { %12480 = vst [vmem:[#allocation67_spill] sm:$0xff] %v11370_v23  ;;  %vm12486_vm3 = vcmp.lt.s32.totalorder %v12485_v8, %v10743_v56  ;;  %v4994_v30 = vsel %vm11799_vm1, %v11386_v11, 0.0  ;;  %v5064_v28 = vstv %s6584_s28 }
 0x841   : > { %v5046_v44 = vadd.f32 %v5045_v32, %v5015_v35  ;;  %v5018_v35 = vmul.f32 %v4986_v54, %v4986_v54  ;;  %v4989_v54 = vsel %vm12478_vm14, %v11346_v36, 0.0  ;;  %12484 = vst [vmem:[#allocation114_spill] sm:$0xff] %v11378_v0 }
 0x842   : > { %12487 = vst [vmem:[#allocation50_spill] sm:$0xff] %v11386_v11 }
 0x843   : > { %v5047_v51 = vadd.f32 %v5046_v44, %v5016_v48  ;;  %v5019_v48 = vmul.f32 %v4987_v49, %v4987_v49  ;;  %v4990_v49 = vsel %vm12482_vm15, %v11354_v2, 0.0  ;;  %v4993_v2 = vsel %vm11800_vm0, %v11378_v0, 0.0 }
 0x844   : > { %v5025_v26 = vmul.f32 %v4993_v2, %v4993_v2 }
 0x845   : > { %v5048_v32 = vadd.f32 %v5047_v51, %v5017_v62  ;;  %v5020_v62 = vmul.f32 %v4988_v47, %v4988_v47  ;;  %v4991_v47 = vsel %vm12486_vm3, %v11362_v21, 0.0 }
 0x847   : > { %v5049_v44 = vadd.f32 %v5048_v32, %v5018_v35  ;;  %v5021_v35 = vmul.f32 %v4989_v54, %v4989_v54  ;;  %v4992_v54 = vsel %vm4756_vm2, %v11370_v23, 0.0 }
 0x848   : > { %v5024_v8 = vmul.f32 %v4992_v54, %v4992_v54 }
 0x849   : > { %v5050_v51 = vadd.f32 %v5049_v44, %v5019_v48  ;;  %v5022_v48 = vmul.f32 %v4990_v49, %v4990_v49 }
 0x84b   : > { %v5051_v32 = vadd.f32 %v5050_v51, %v5020_v62  ;;  %v5023_v62 = vmul.f32 %v4991_v47, %v4991_v47 }
 0x84d   : > { %v5052_v44 = vadd.f32 %v5051_v32, %v5021_v35  ;;  %v5026_v35 = vmul.f32 %v4994_v30, %v4994_v30 }
 0x84f   : > { %v5053_v51 = vadd.f32 %v5052_v44, %v5022_v48 }
 0x851   : > { %v5054_v21 = vadd.f32 %v5053_v51, %v5023_v62 }
 0x853   : > { %v5055_v49 = vadd.f32 %v5054_v21, %v5024_v8 }
 0x855   : > { %v5056_v32 = vadd.f32 %v5055_v49, %v5025_v26 }
 0x857   : > { %v5057_v19 = vadd.f32 %v5056_v32, %v5026_v35 }
 0x859   : > { %v5058_v23 = vrot.slane %v5057_v19, 4 }
 0x85b   : > { %v5059_v47 = vadd.f32 %v5058_v23, %v5057_v19 }
 0x85d   : > { %v5060_v48 = vrot.slane %v5059_v47, 2 }
 0x85f   : > { %v5061_v44 = vadd.f32 %v5060_v48, %v5059_v47 }
 0x861   : > { %v5062_v36 = vrot.slane %v5061_v44, 1 }
 0x863   : > { %v5063_v0 = vadd.f32 %v5062_v36, %v5061_v44 }
 0x865   : > { %v5065_v54 = vmul.f32 %v5064_v28, %v5063_v0 }
 0x867   : > { %6679 = vrsqrt.f32 %v5065_v54  ;;  %vm5073_vm13 = vcmp.eq.f32.partialorder %v5065_v54, inf  ;;  %v5076_v8 = vand.u32 2147483648, %v5065_v54  ;;  %vm5075_vm14 = vcmp.eq.f32.partialorder %v5065_v54, 0.0 }
 0x86d   : > { %v6680_v62 = vpop.eup %6679 }
 0x86e   : > { %v5067_v51 = vmul.f32 %v6680_v62, %v5065_v54 }
 0x870   : > { %v5068_v45 = vmul.f32 %v6680_v62, %v5067_v51  ;;  %v12499_v51 = vld [vmem:[#allocation47_spill] sm:$0xff] }
 0x872   : > { %v5069_v63 = vmul.f32 0.5, %v5068_v45 }
 0x874   : > { %v5070_v11 = vsub.f32 1.5, %v5069_v63 }
 0x876   : > { %v5071_v2 = vmul.f32 %v6680_v62, %v5070_v11 }
 0x878   : > { %v5072_v21 = vmul.f32 %v5071_v2, %v5065_v54 }
 0x87a   : > { %v5074_v30 = vsel %vm5073_vm13, %v5065_v54, %v5072_v21  ;;  %v12502_v21 = vld [vmem:[#allocation103_spill] sm:$0xff] }
 0x87b   : > { %v5077_v19 = vsel %vm5075_vm14, %v5076_v8, %v5074_v30  ;;  %v12505_v30 = vld [vmem:[#allocation104_spill] sm:$0xff] }
 0x87c   : > { %v5078_v23 = vadd.f32 1e-05, %v5077_v19  ;;  %vm12506_vm13 = vcmp.lt.s32.totalorder %v12505_v30, %v10743_v56  ;;  %v12507_v19 = vld [vmem:[#allocation112_spill] sm:$0xff] }
 0x87e   : > { %6681 = vrcp.f32 %v5078_v23  ;;  %v5090_v28 = vand.u32 2147483648, %v5078_v23  ;;  %vm5084_vm3 = vweird.f32 %v5078_v23  ;;  %v5088_v45 = vand.u32 2147483647, %v5078_v23 }
 0x880   : > { %v5091_v11 = vor.u32 1.1754944e-38, %v5090_v28  ;;  %vm5089_vm0 = vcmp.eq.f32.partialorder %v5088_v45, 8.507059e+37  ;;  %v12511_v28 = vld [vmem:[#allocation24_spill] sm:$0xff] }
 0x881   : > { %v12513_v45 = vld [vmem:[#allocation32_spill] sm:$0xff] }
 0x884   : > { %v6682_v26 = vpop.eup %6681 }
 0x885   : > { %v5080_v49 = vmul.f32 %v6682_v26, %v5078_v23  ;;  %vm5085_vm15 = vweird.f32 %v6682_v26 }
 0x886   : > { %vm5086_vm1 = vmor %vm5084_vm3, %vm5085_vm15  ;;  %vm12512_vm15 = vcmp.lt.s32.totalorder %v12511_v28, %v10743_v56 }
 0x887   : > { %v5081_v36 = vsub.f32 1.0, %v5080_v49 }
 0x889   : > { %v5082_v0 = vmul.f32 %v6682_v26, %v5081_v36  ;;  %v12510_v36 = vld [vmem:[#allocation66_spill] sm:$0xff] }
 0x88b   : > { %v5083_v35 = vadd.f32 %v6682_v26, %v5082_v0 }
 0x88d   : > { %v5087_v63 = vsel %vm5086_vm1, %v6682_v26, %v5083_v35  ;;  %vm12503_vm1 = vcmp.lt.s32.totalorder %v12502_v21, %v10743_v56  ;;  %v12508_v26 = vld [vmem:[#allocation12_spill] sm:$0xff] }
 0x88e   : > { %v11400_v32 = vsel %vm5089_vm0, %v5091_v11, %v5087_v63  ;;  %vm12500_vm0 = vcmp.lt.s32.totalorder %v12499_v51, %v10743_v56  ;;  %vm12509_vm14 = vcmp.lt.s32.totalorder %v12508_v26, %v10743_v56  ;;  %v12514_v11 = vld [vmem:[#allocation49_spill] sm:$0xff] }
 0x88f   : > { %v5093_v47 = vmul.f32 %v11400_v32, %v11146_v55  ;;  %v5094_v48 = vmul.f32 %v11400_v32, %v11150_v4  ;;  %v5095_v44 = vmul.f32 %v11400_v32, %v11154_v33  ;;  %v5096_v54 = vmul.f32 %v11400_v32, %v11166_v50 }
 0x890   : > { %v5097_v55 = vmul.f32 %v11400_v32, %v11170_v18  ;;  %v5098_v4 = vmul.f32 %v11400_v32, %v11178_v25  ;;  %v5099_v33 = vmul.f32 %v11400_v32, %v11186_v29  ;;  %v5100_v25 = vmul.f32 %v11400_v32, %v11194_v34 }
 0x891   : > { %v5125_v50 = vsel %vm4727_vm5, %v5093_v47, 0.0  ;;  %v5126_v62 = vsel %vm4728_vm4, %v5094_v48, 0.0  ;;  %v5127_v18 = vsel %vm4729_vm6, %v5095_v44, 0.0  ;;  %v5128_v29 = vsel %vm4730_vm7, %v5096_v54, 0.0  ;;  %v12516_v48 = vld [vmem:[#allocation113_spill] sm:$0xff] }
 0x892   : > { %5157 = vst [vmem:[%s11414_s5] sm:$0xff] %v5125_v50  ;;  %v5101_v41 = vmul.f32 %v11400_v32, %v11202_v27  ;;  %v5129_v3 = vsel %vm4731_vm8, %v5097_v55, 0.0  ;;  %v5102_v42 = vmul.f32 %v11400_v32, %v11210_v61  ;;  %v5130_v34 = vsel %vm4732_vm9, %v5098_v4, 0.0  ;;  %v12517_v54 = vld [vmem:[#allocation105_spill] sm:$0xff]  ;;  %v12519_v4 = vld [vmem:[#allocation67_spill] sm:$0xff] }
 0x893   : > { %5158 = vst [vmem:[%s11414_s5 + $0x8] sm:$0xff] %v5126_v62  ;;  %v5103_v10 = vmul.f32 %v11400_v32, %v11218_v7  ;;  %v5131_v27 = vsel %vm4733_vm10, %v5099_v33, 0.0  ;;  %v5104_v60 = vmul.f32 %v11400_v32, %v11226_v1  ;;  %v5132_v61 = vsel %vm4734_vm11, %v5100_v25, 0.0  ;;  %v12520_v50 = vld [vmem:[#allocation15_spill] sm:$0xff] }
 0x894   : > { %5159 = vst [vmem:[%s11414_s5 + $0x10] sm:$0xff] %v5127_v18  ;;  %v5105_v9 = vmul.f32 %v11400_v32, %v11234_v46  ;;  %v5133_v7 = vsel %vm4735_vm12, %v5101_v41, 0.0  ;;  %v5106_v40 = vmul.f32 %v11400_v32, %v11242_v31  ;;  %vm12490_vm4 = vcmp.lt.s32.totalorder %v10833_v53, %v10743_v56  ;;  %v12522_v18 = vld [vmem:[#allocation114_spill] sm:$0xff] }
 0x895   : > { %5160 = vst [vmem:[%s11414_s5 + $0x18] sm:$0xff] %v5128_v29  ;;  %v5134_v1 = vsel %vm12490_vm4, %v5102_v42, 0.0  ;;  %v5107_v38 = vmul.f32 %v11400_v32, %v11250_v16  ;;  %vm12491_vm5 = vcmp.lt.s32.totalorder %v10845_v37, %v10743_v56  ;;  %v5108_v13 = vmul.f32 %v11400_v32, %v11258_v15  ;;  %v12523_v29 = vld [vmem:[#allocation51_spill] sm:$0xff] }
 0x896   : > { %5161 = vst [vmem:[%s11414_s5 + $0x20] sm:$0xff] %v5129_v3  ;;  %v5135_v46 = vsel %vm12491_vm5, %v5103_v10, 0.0  ;;  %vm12492_vm6 = vcmp.lt.s32.totalorder %v12442_v5, %v10743_v56  ;;  %v5109_v53 = vmul.f32 %v11400_v32, %v11266_v6  ;;  %vm12493_vm7 = vcmp.lt.s32.totalorder %v10876_v59, %v10743_v56  ;;  %v12525_v3 = vld [vmem:[#allocation50_spill] sm:$0xff] }
 0x897   : > { %5162 = vst [vmem:[%s11414_s5 + $0x28] sm:$0xff] %v5130_v34  ;;  %v5136_v31 = vsel %vm12492_vm6, %v5104_v60, 0.0  ;;  %v5137_v16 = vsel %vm12493_vm7, %v5105_v9, 0.0  ;;  %v5110_v37 = vmul.f32 %v11400_v32, %v11274_v24  ;;  %vm12494_vm8 = vcmp.lt.s32.totalorder %v10890_v58, %v10743_v56  ;;  %v12526_v34 = vld [vmem:[#allocation108_spill] sm:$0xff] }
 0x898   : > { %5163 = vst [vmem:[%s11414_s5 + $0x30] sm:$0xff] %v5131_v27  ;;  %v5138_v15 = vsel %vm12494_vm8, %v5106_v40, 0.0  ;;  %v5111_v5 = vmul.f32 %v11400_v32, %v11282_v39  ;;  %vm12495_vm9 = vcmp.lt.s32.totalorder %v12446_v43, %v10743_v56  ;;  %v5112_v59 = vmul.f32 %v11400_v32, %v11290_v12  ;;  %v12528_v27 = vld [vmem:[#allocation53_spill] sm:$0xff] }
 0x899   : > { %5164 = vst [vmem:[%s11414_s5 + $0x38] sm:$0xff] %v5132_v61  ;;  %v5139_v6 = vsel %vm12495_vm9, %v5107_v38, 0.0  ;;  %vm12496_vm10 = vcmp.lt.s32.totalorder %v10919_v52, %v10743_v56  ;;  %v5113_v58 = vmul.f32 %v11400_v32, %v11298_v22  ;;  %vm12497_vm11 = vcmp.lt.s32.totalorder %v10933_v20, %v10743_v56  ;;  %v12501_v20 = vld [vmem:[#allocation111_spill] sm:$0xff] }
 0x89a   : > { %5165 = vst [vmem:[%s11414_s5 + $0x40] sm:$0xff] %v5133_v7  ;;  %v5140_v24 = vsel %vm12496_vm10, %v5108_v13, 0.0  ;;  %v5141_v39 = vsel %vm12497_vm11, %v5109_v53, 0.0  ;;  %v5114_v43 = vmul.f32 %v11400_v32, %v11306_v14  ;;  %vm12498_vm12 = vcmp.lt.s32.totalorder %v12450_v57, %v10743_v56  ;;  %v12504_v57 = vld [vmem:[#allocation65_spill] sm:$0xff]  ;;  %v12531_v7 = vld [vmem:[#allocation63_spill] sm:$0xff] }
 0x89b   : > { %5166 = vst [vmem:[%s11414_s5 + $0x48] sm:$0xff] %v5134_v1  ;;  %v5142_v12 = vsel %vm12498_vm12, %v5110_v37, 0.0  ;;  %v5115_v52 = vmul.f32 %v11400_v32, %v11314_v17  ;;  %v5143_v22 = vsel %vm12500_vm0, %v5111_v5, 0.0  ;;  %v5116_v2 = vmul.f32 %v11400_v32, %v12501_v20 }
 0x89c   : > { %5167 = vst [vmem:[%s11414_s5 + $0x50] sm:$0xff] %v5135_v46  ;;  %v5144_v14 = vsel %vm12503_vm1, %v5112_v59, 0.0  ;;  %v5117_v8 = vmul.f32 %v11400_v32, %v12504_v57  ;;  %v5145_v17 = vsel %vm12506_vm13, %v5113_v58, 0.0  ;;  %v5118_v23 = vmul.f32 %v11400_v32, %v12507_v19 }
 0x89d   : > { %5168 = vst [vmem:[%s11414_s5 + $0x58] sm:$0xff] %v5136_v31  ;;  %v5146_v49 = vsel %vm12509_vm14, %v5114_v43, 0.0  ;;  %v5119_v0 = vmul.f32 %v11400_v32, %v12510_v36  ;;  %v5147_v35 = vsel %vm12512_vm15, %v5115_v52, 0.0  ;;  %v5120_v63 = vmul.f32 %v11400_v32, %v12513_v45 }
 0x89e   : > { %5169 = vst [vmem:[%s11414_s5 + $0x60] sm:$0xff] %v5137_v16  ;;  %vm12515_vm3 = vcmp.lt.s32.totalorder %v12514_v11, %v10743_v56  ;;  %v5121_v44 = vmul.f32 %v11400_v32, %v12516_v48  ;;  %vm12518_vm4 = vcmp.lt.s32.totalorder %v12517_v54, %v10743_v56  ;;  %v5122_v33 = vmul.f32 %v11400_v32, %v12519_v4 }
 0x89f   : > { %5170 = vst [vmem:[%s11414_s5 + $0x68] sm:$0xff] %v5138_v15  ;;  %v5148_v47 = vsel %vm12515_vm3, %v5116_v2, 0.0  ;;  %v5149_v55 = vsel %vm12518_vm4, %v5117_v8, 0.0  ;;  %vm12521_vm5 = vcmp.lt.s32.totalorder %v12520_v50, %v10743_v56  ;;  %v5123_v25 = vmul.f32 %v11400_v32, %v12522_v18 }
 0x8a0   : > { %5171 = vst [vmem:[%s11414_s5 + $0x70] sm:$0xff] %v5139_v6  ;;  %v5150_v62 = vsel %vm12521_vm5, %v5118_v23, 0.0  ;;  %vm12524_vm6 = vcmp.lt.s32.totalorder %v12523_v29, %v10743_v56  ;;  %v5124_v42 = vmul.f32 %v11400_v32, %v12525_v3  ;;  %vm12527_vm7 = vcmp.lt.s32.totalorder %v12526_v34, %v10743_v56  ;;  %v12533_v32 = vld [vmem:[#allocation37_spill] sm:$0xff] }
 0x8a1   : > { %5172 = vst [vmem:[%s11414_s5 + $0x78] sm:$0xff] %v5140_v24  ;;  %v5151_v41 = vsel %vm12524_vm6, %v5119_v0, 0.0  ;;  %v5152_v10 = vsel %vm12527_vm7, %v5120_v63, 0.0  ;;  %vm12529_vm8 = vcmp.lt.s32.totalorder %v12528_v27, %v10743_v56  ;;  %v5154_v9 = vsel %vm4756_vm2, %v5122_v33, 0.0 }
 0x8a2   : > { %5173 = vst [vmem:[%s11414_s5 + $0x80] sm:$0xff] %v5141_v39  ;;  %v5153_v60 = vsel %vm12529_vm8, %v5121_v44, 0.0  ;;  %vm12532_vm9 = vcmp.lt.s32.totalorder %v12531_v7, %v10743_v56  ;;  %vm12534_vm10 = vcmp.lt.s32.totalorder %v12533_v32, %v10743_v56 }
 0x8a3   : > { %5174 = vst [vmem:[%s11414_s5 + $0x88] sm:$0xff] %v5142_v12  ;;  %v5155_v40 = vsel %vm12532_vm9, %v5123_v25, 0.0  ;;  %v5156_v1 = vsel %vm12534_vm10, %v5124_v42, 0.0 }
 0x8a4   : > { %5175 = vst [vmem:[%s11414_s5 + $0x90] sm:$0xff] %v5143_v22 }
 0x8a5   : > { %5176 = vst [vmem:[%s11414_s5 + $0x98] sm:$0xff] %v5144_v14 }
 0x8a6   : > { %5177 = vst [vmem:[%s11414_s5 + $0xa0] sm:$0xff] %v5145_v17 }
 0x8a7   : > { %5178 = vst [vmem:[%s11414_s5 + $0xa8] sm:$0xff] %v5146_v49 }
 0x8a8   : > { %5179 = vst [vmem:[%s11414_s5 + $0xb0] sm:$0xff] %v5147_v35 }
 0x8a9   : > { %5180 = vst [vmem:[%s11414_s5 + $0xb8] sm:$0xff] %v5148_v47 }
 0x8aa   : > { %5181 = vst [vmem:[%s11414_s5 + $0xc0] sm:$0xff] %v5149_v55 }
 0x8ab   : > { %5182 = vst [vmem:[%s11414_s5 + $0xc8] sm:$0xff] %v5150_v62 }
 0x8ac   : > { %5183 = vst [vmem:[%s11414_s5 + $0xd0] sm:$0xff] %v5151_v41 }
 0x8ad   : > { %5184 = vst [vmem:[%s11414_s5 + $0xd8] sm:$0xff] %v5152_v10 }
 0x8ae   : > { %5185 = vst [vmem:[%s11414_s5 + $0xe0] sm:$0xff] %v5153_v60 }
 0x8af   : > { %5186 = vst [vmem:[%s11414_s5 + $0xe8] sm:$0xff] %v5154_v9 }
 0x8b0   : > { %5187 = vst [vmem:[%s11414_s5 + $0xf0] sm:$0xff] %v5155_v40 }
 0x8b1   : > { %5188 = vst [vmem:[%s11414_s5 + $0xf8] sm:$0xff] %v5156_v1 }
 0x8b2 PF: > { %s22_s21 = sadd.s32 1, %s6719_s21   ;;  %s12535_s19 = smov %s6715_s20 }
 0x8b3   : > { %p19_p6 = scmp.ge.s32.totalorder %s22_s21, 4   ;;  %s12536_s20 = smov %s12538_s0 }
 0x8b5   :  { %21 = sbr.rel (!%p19_p6) target bundleno = 8 (0x8), region = 67 }

</bundles_post_ra>
